<compile_context>
chip_gen: v7x
topology: tpu7x:2x2x1
jax: 0.10.0
libtpu: 0.0.40
codegen_flags: <defaults>
</compile_context>

<pallas_src>
import functools

import numpy as np
import jax
import jax.numpy as jnp
from jax.experimental import pallas as pl
from jax.experimental.pallas import tpu as pltpu


def _round_up(x, m):
    return (x + m - 1) // m * m


def _tap_masks(D, H, W):
    """(27, 1, M) f32 masks: 1.0 where the 3x3x3 tap reads a real voxel,
    0.0 where it falls into the conv zero-padding (computed host-side)."""
    M = D * H * W
    idx = np.arange(M)
    d = idx // (H * W)
    h = (idx // W) % H
    w = idx % W
    masks = []
    for kd in range(3):
        for kh in range(3):
            for kw in range(3):
                ok = ((d + kd - 1 >= 0) & (d + kd - 1 < D)
                      & (h + kh - 1 >= 0) & (h + kh - 1 < H)
                      & (w + kw - 1 >= 0) & (w + kw - 1 < W))
                masks.append(ok.astype(np.float32))
    return jnp.asarray(np.stack(masks).reshape(27, 1, M))


def _make_fused_block_kernel(layer_dims, D, H, W, pad):
    """Kernel processing one batch element: all conv layers, VMEM-resident."""
    M = D * H * W
    HW = H * W
    n_layers = len(layer_dims)

    def kernel(*refs):
        x_ref = refs[0]          # (1, Cin0, M)   f32
        mask_ref = refs[1]       # (27, 1, M)     f32
        w_refs = [refs[2 + 2 * l] for l in range(n_layers)]   # (27,Cout,Cin) bf16
        b_refs = [refs[3 + 2 * l] for l in range(n_layers)]   # (Cout, 1)     f32
        o_ref = refs[2 + 2 * n_layers]        # (1, CoutL, M)  f32
        act_a = refs[3 + 2 * n_layers]        # (Cmax, M+2*pad) f32 scratch
        act_b = refs[4 + 2 * n_layers]        # (Cmax, M+2*pad) f32 scratch

        # Zero both ping-pong buffers (keeps halo columns zero for every
        # layer), then drop the input volume into the interior of buffer A.
        act_a[...] = jnp.zeros_like(act_a)
        act_b[...] = jnp.zeros_like(act_b)
        cin0 = layer_dims[0][0]
        act_a[0:cin0, pad:pad + M] = x_ref[0]

        bufs = (act_a, act_b)
        for l, (cin, cout) in enumerate(layer_dims):
            src = bufs[l % 2]
            dst = bufs[(l + 1) % 2]
            acc = jnp.zeros((cout, M), jnp.float32)
            t = 0
            for kd in range(3):
                for kh in range(3):
                    for kw in range(3):
                        off = (kd - 1) * HW + (kh - 1) * W + (kw - 1)
                        s = src[0:cin, pad + off:pad + off + M]   # (Cin, M) f32
                        if not (kd == 1 and kh == 1 and kw == 1):
                            s = s * mask_ref[t]      # zero conv-padding taps
                        acc = acc + jnp.dot(
                            w_refs[l][t], s.astype(jnp.bfloat16),
                            preferred_element_type=jnp.float32)
                        t += 1
            out = jnp.maximum(acc + b_refs[l][...], 0.0)   # bias + ReLU in f32
            if l == n_layers - 1:
                o_ref[0] = out.astype(o_ref.dtype)          # lane-dense store
            else:
                dst[0:cout, pad:pad + M] = out

    return kernel


def conv_block3d_forward(x_ncdhw, params):
    """ConvBlock3D forward (enable_bn=False).

    x_ncdhw : (N, C_in, D, H, W) f32 (PyTorch NCDHW layout)
    params  : list of (weight (C_out, C_in, 3, 3, 3), bias (C_out,))
    returns : (N, C_out_last, D, H, W) f32
    """
    N, Cin, D, H, W = x_ncdhw.shape
    M = D * H * W
    layer_dims = tuple((int(w.shape[1]), int(w.shape[0])) for (w, _) in params)
    assert layer_dims[0][0] == Cin
    cmax = max(max(ci, co) for ci, co in layer_dims)
    cout_final = layer_dims[-1][1]
    pad = _round_up(H * W + W + 1, 128)   # flat halo, lane-tile aligned

    x_flat = x_ncdhw.reshape(N, Cin, M).astype(jnp.float32)   # free reshape
    masks = _tap_masks(D, H, W)

    inputs = [x_flat, masks]
    in_specs = [
        pl.BlockSpec((1, Cin, M), lambda n: (n, 0, 0)),
        pl.BlockSpec((27, 1, M), lambda n: (0, 0, 0)),
    ]
    for (w, b) in params:
        cout, cin = int(w.shape[0]), int(w.shape[1])
        # (Cout,Cin,kd,kh,kw) -> (kd,kh,kw,Cout,Cin) -> (27,Cout,Cin), bf16
        wt = jnp.transpose(w, (2, 3, 4, 0, 1)).reshape(27, cout, cin)
        inputs.append(wt.astype(jnp.bfloat16))
        inputs.append(b.reshape(cout, 1).astype(jnp.float32))
        in_specs.append(pl.BlockSpec((27, cout, cin), lambda n: (0, 0, 0)))
        in_specs.append(pl.BlockSpec((cout, 1), lambda n: (0, 0)))

    kernel = _make_fused_block_kernel(layer_dims, D, H, W, pad)

    out_flat = pl.pallas_call(
        kernel,
        out_shape=jax.ShapeDtypeStruct((N, cout_final, M), jnp.float32),
        grid_spec=pltpu.PrefetchScalarGridSpec(
            num_scalar_prefetch=0,
            grid=(N,),
            in_specs=in_specs,
            out_specs=pl.BlockSpec((1, cout_final, M), lambda n: (n, 0, 0)),
            scratch_shapes=[
                pltpu.VMEM((cmax, M + 2 * pad), jnp.float32),
                pltpu.VMEM((cmax, M + 2 * pad), jnp.float32),
            ],
        ),
        compiler_params=pltpu.CompilerParams(
            dimension_semantics=("parallel",)),
    )(*inputs)

    # (N, Cout, D*H*W) -> NCDHW is a free reshape (no transpose needed).
    return out_flat.reshape(N, cout_final, D, H, W)


def init_conv_block3d_params(key, input_dim, hidden_dim, output_dim, layers):
    if layers == 1:
        dims = [(input_dim, output_dim)]
    else:
        dims = []
        for i in range(layers):
            if i == 0:
                dims.append((input_dim, hidden_dim))
            elif i == layers - 1:
                dims.append((hidden_dim, output_dim))
            else:
                dims.append((hidden_dim, hidden_dim))
    params = []
    for (cin, cout) in dims:
        key, kw, kb = jax.random.split(key, 3)
        fan_in = cin * 27
        bound = 1.0 / float(np.sqrt(fan_in))
        w = jax.random.uniform(kw, (cout, cin, 3, 3, 3), jnp.float32,
                               -bound, bound)
        b = jax.random.uniform(kb, (cout,), jnp.float32, -bound, bound)
        params.append((w, b))
    return params


def _reference_forward(x, params):
    """Pure-JAX reference (same bf16-operand / f32-accumulate math)."""
    y = x.astype(jnp.float32)
    for (w, b) in params:
        yq = y.astype(jnp.bfloat16).astype(jnp.float32)
        wq = w.astype(jnp.bfloat16).astype(jnp.float32)
        y = jax.lax.conv_general_dilated(
            yq, wq, window_strides=(1, 1, 1),
            padding=((1, 1), (1, 1), (1, 1)),
            dimension_numbers=("NCDHW", "OIDHW", "NCDHW"),
            precision=jax.lax.Precision.HIGHEST)
        y = jnp.maximum(y + b.reshape(1, -1, 1, 1, 1), 0.0)
    return y


if __name__ == "__main__":
    # Small shapes consistent with the module: batch=2, input_dim=4,
    # hidden_dim=8, output_dim=4, spatial volume 8x8x8, layers=2.
    N, Cin, Chid, Cout = 2, 4, 8, 4
    D = H = W = 8
    LAYERS = 2

    key = jax.random.PRNGKey(0)
    key, kx = jax.random.split(key)
    x = jax.random.normal(kx, (N, Cin, D, H, W), jnp.float32)   # NCDHW

    params = init_conv_block3d_params(key, Cin, Chid, Cout, LAYERS)

    fwd = jax.jit(conv_block3d_forward)
    out = jax.block_until_ready(fwd(x, params))

    assert out.shape == (N, Cout, D, H, W), out.shape
    assert bool(jnp.all(out >= 0.0))          # ReLU output is non-negative
    ref = _reference_forward(x, params)
    max_err = float(jnp.max(jnp.abs(out - ref)))
    assert bool(jnp.allclose(out, ref, atol=1e-2, rtol=1e-2)), max_err
    print("KERNEL_OK")
</pallas_src>

<mosaic_0001>
module attributes {stable_mosaic.version = 11 : i64} {
  func.func @kernel(%arg0: i32, %arg1: memref<1x4x512xf32, #tpu.memory_space<vmem>>, %arg2: memref<27x1x512xf32, #tpu.memory_space<vmem>>, %arg3: memref<27x8x4xbf16, #tpu.memory_space<vmem>>, %arg4: memref<8x1xf32, #tpu.memory_space<vmem>>, %arg5: memref<27x4x8xbf16, #tpu.memory_space<vmem>>, %arg6: memref<4x1xf32, #tpu.memory_space<vmem>>, %arg7: memref<1x4x512xf32, #tpu.memory_space<vmem>>, %arg8: memref<8x768xf32, #tpu.memory_space<vmem>>, %arg9: memref<8x768xf32, #tpu.memory_space<vmem>>) attributes {dimension_semantics = [#tpu.dimension_semantics<parallel>], iteration_bounds = array<i64: 2>, scalar_prefetch = 0 : i64, scratch_operands = 2 : i64, tpu.core_type = #tpu.core_type<tc>, window_params = [{transform_indices = @transform_0, window_bounds = array<i64: 1, 4, 512>}, {pipeline_mode = #tpu.pipeline_mode<synchronous>, transform_indices = @transform_1, window_bounds = array<i64: 27, 1, 512>}, {pipeline_mode = #tpu.pipeline_mode<synchronous>, transform_indices = @transform_2, window_bounds = array<i64: 27, 8, 4>}, {pipeline_mode = #tpu.pipeline_mode<synchronous>, transform_indices = @transform_3, window_bounds = array<i64: 8, 1>}, {pipeline_mode = #tpu.pipeline_mode<synchronous>, transform_indices = @transform_4, window_bounds = array<i64: 27, 4, 8>}, {pipeline_mode = #tpu.pipeline_mode<synchronous>, transform_indices = @transform_5, window_bounds = array<i64: 4, 1>}, {transform_indices = @transform_6, window_bounds = array<i64: 1, 4, 512>}]} {
    %cst = arith.constant 0.000000e+00 : f32
    %0 = vector.broadcast %cst : f32 to vector<8x768xf32>
    %c0 = arith.constant 0 : index
    %c0_0 = arith.constant 0 : index
    %1 = vector.load %arg8[%c0, %c0_0] : memref<8x768xf32, #tpu.memory_space<vmem>>, vector<8x768xf32>
    tpu.vector_store %arg8[%c0, %c0_0], %0 {strides = array<i32>} : memref<8x768xf32, #tpu.memory_space<vmem>>, vector<8x768xf32>,
    %cst_1 = arith.constant 0.000000e+00 : f32
    %2 = vector.broadcast %cst_1 : f32 to vector<8x768xf32>
    %c0_2 = arith.constant 0 : index
    %c0_3 = arith.constant 0 : index
    %3 = vector.load %arg9[%c0_2, %c0_3] : memref<8x768xf32, #tpu.memory_space<vmem>>, vector<8x768xf32>
    tpu.vector_store %arg9[%c0_2, %c0_3], %2 {strides = array<i32>} : memref<8x768xf32, #tpu.memory_space<vmem>>, vector<8x768xf32>,
    %c0_4 = arith.constant 0 : index
    %c0_5 = arith.constant 0 : index
    %c0_6 = arith.constant 0 : index
    %4 = vector.load %arg1[%c0_4, %c0_5, %c0_6] : memref<1x4x512xf32, #tpu.memory_space<vmem>>, vector<1x4x512xf32>
    %5 = vector.shape_cast %4 : vector<1x4x512xf32> to vector<4x512xf32>
    %c0_7 = arith.constant 0 : index
    %c128 = arith.constant 128 : index
    %6 = vector.load %arg8[%c0_7, %c128] : memref<8x768xf32, #tpu.memory_space<vmem>>, vector<4x512xf32>
    tpu.vector_store %arg8[%c0_7, %c128], %5 {strides = array<i32>} : memref<8x768xf32, #tpu.memory_space<vmem>>, vector<4x512xf32>,
    %cst_8 = arith.constant 0.000000e+00 : f32
    %7 = vector.broadcast %cst_8 : f32 to vector<8x512xf32>
    %c0_9 = arith.constant 0 : index
    %c55 = arith.constant 55 : index
    %8 = vector.load %arg8[%c0_9, %c55] : memref<8x768xf32, #tpu.memory_space<vmem>>, vector<4x512xf32>
    %c0_10 = arith.constant 0 : index
    %c0_11 = arith.constant 0 : index
    %c0_12 = arith.constant 0 : index
    %9 = vector.load %arg2[%c0_10, %c0_11, %c0_12] : memref<27x1x512xf32, #tpu.memory_space<vmem>>, vector<1x1x512xf32>
    %10 = vector.shape_cast %9 : vector<1x1x512xf32> to vector<1x512xf32>
    %11 = vector.broadcast %10 : vector<1x512xf32> to vector<4x512xf32>
    %12 = arith.mulf %8, %11 : vector<4x512xf32>
    %c0_13 = arith.constant 0 : index
    %c0_14 = arith.constant 0 : index
    %c0_15 = arith.constant 0 : index
    %13 = vector.load %arg3[%c0_13, %c0_14, %c0_15] : memref<27x8x4xbf16, #tpu.memory_space<vmem>>, vector<1x8x4xbf16>
    %14 = vector.shape_cast %13 : vector<1x8x4xbf16> to vector<8x4xbf16>
    %15 = arith.truncf %12 : vector<4x512xf32> to vector<4x512xbf16>
    %cst_16 = arith.constant dense<0.000000e+00> : vector<8x512xf32>
    %16 = tpu.matmul %14, %15, %cst_16 {dimension_numbers = #tpu.dot_dimension_numbers<[1], [0], [0], [1], [0, 0, 1, 1], [], []>} : vector<8x4xbf16>, vector<4x512xbf16>, vector<8x512xf32> -> vector<8x512xf32>
    %17 = arith.addf %7, %16 : vector<8x512xf32>
    %c0_17 = arith.constant 0 : index
    %c56 = arith.constant 56 : index
    %18 = vector.load %arg8[%c0_17, %c56] : memref<8x768xf32, #tpu.memory_space<vmem>>, vector<4x512xf32>
    %c1 = arith.constant 1 : index
    %c0_18 = arith.constant 0 : index
    %c0_19 = arith.constant 0 : index
    %19 = vector.load %arg2[%c1, %c0_18, %c0_19] : memref<27x1x512xf32, #tpu.memory_space<vmem>>, vector<1x1x512xf32>
    %20 = vector.shape_cast %19 : vector<1x1x512xf32> to vector<1x512xf32>
    %21 = vector.broadcast %20 : vector<1x512xf32> to vector<4x512xf32>
    %22 = arith.mulf %18, %21 : vector<4x512xf32>
    %c1_20 = arith.constant 1 : index
    %c0_21 = arith.constant 0 : index
    %c0_22 = arith.constant 0 : index
    %23 = vector.load %arg3[%c1_20, %c0_21, %c0_22] : memref<27x8x4xbf16, #tpu.memory_space<vmem>>, vector<1x8x4xbf16>
    %24 = vector.shape_cast %23 : vector<1x8x4xbf16> to vector<8x4xbf16>
    %25 = arith.truncf %22 : vector<4x512xf32> to vector<4x512xbf16>
    %cst_23 = arith.constant dense<0.000000e+00> : vector<8x512xf32>
    %26 = tpu.matmul %24, %25, %cst_23 {dimension_numbers = #tpu.dot_dimension_numbers<[1], [0], [0], [1], [0, 0, 1, 1], [], []>} : vector<8x4xbf16>, vector<4x512xbf16>, vector<8x512xf32> -> vector<8x512xf32>
    %27 = arith.addf %17, %26 : vector<8x512xf32>
    %c0_24 = arith.constant 0 : index
    %c57 = arith.constant 57 : index
    %28 = vector.load %arg8[%c0_24, %c57] : memref<8x768xf32, #tpu.memory_space<vmem>>, vector<4x512xf32>
    %c2 = arith.constant 2 : index
    %c0_25 = arith.constant 0 : index
    %c0_26 = arith.constant 0 : index
    %29 = vector.load %arg2[%c2, %c0_25, %c0_26] : memref<27x1x512xf32, #tpu.memory_space<vmem>>, vector<1x1x512xf32>
    %30 = vector.shape_cast %29 : vector<1x1x512xf32> to vector<1x512xf32>
    %31 = vector.broadcast %30 : vector<1x512xf32> to vector<4x512xf32>
    %32 = arith.mulf %28, %31 : vector<4x512xf32>
    %c2_27 = arith.constant 2 : index
    %c0_28 = arith.constant 0 : index
    %c0_29 = arith.constant 0 : index
    %33 = vector.load %arg3[%c2_27, %c0_28, %c0_29] : memref<27x8x4xbf16, #tpu.memory_space<vmem>>, vector<1x8x4xbf16>
    %34 = vector.shape_cast %33 : vector<1x8x4xbf16> to vector<8x4xbf16>
    %35 = arith.truncf %32 : vector<4x512xf32> to vector<4x512xbf16>
    %cst_30 = arith.constant dense<0.000000e+00> : vector<8x512xf32>
    %36 = tpu.matmul %34, %35, %cst_30 {dimension_numbers = #tpu.dot_dimension_numbers<[1], [0], [0], [1], [0, 0, 1, 1], [], []>} : vector<8x4xbf16>, vector<4x512xbf16>, vector<8x512xf32> -> vector<8x512xf32>
    %37 = arith.addf %27, %36 : vector<8x512xf32>
    %c0_31 = arith.constant 0 : index
    %c63 = arith.constant 63 : index
    %38 = vector.load %arg8[%c0_31, %c63] : memref<8x768xf32, #tpu.memory_space<vmem>>, vector<4x512xf32>
    %c3 = arith.constant 3 : index
    %c0_32 = arith.constant 0 : index
    %c0_33 = arith.constant 0 : index
    %39 = vector.load %arg2[%c3, %c0_32, %c0_33] : memref<27x1x512xf32, #tpu.memory_space<vmem>>, vector<1x1x512xf32>
    %40 = vector.shape_cast %39 : vector<1x1x512xf32> to vector<1x512xf32>
    %41 = vector.broadcast %40 : vector<1x512xf32> to vector<4x512xf32>
    %42 = arith.mulf %38, %41 : vector<4x512xf32>
    %c3_34 = arith.constant 3 : index
    %c0_35 = arith.constant 0 : index
    %c0_36 = arith.constant 0 : index
    %43 = vector.load %arg3[%c3_34, %c0_35, %c0_36] : memref<27x8x4xbf16, #tpu.memory_space<vmem>>, vector<1x8x4xbf16>
    %44 = vector.shape_cast %43 : vector<1x8x4xbf16> to vector<8x4xbf16>
    %45 = arith.truncf %42 : vector<4x512xf32> to vector<4x512xbf16>
    %cst_37 = arith.constant dense<0.000000e+00> : vector<8x512xf32>
    %46 = tpu.matmul %44, %45, %cst_37 {dimension_numbers = #tpu.dot_dimension_numbers<[1], [0], [0], [1], [0, 0, 1, 1], [], []>} : vector<8x4xbf16>, vector<4x512xbf16>, vector<8x512xf32> -> vector<8x512xf32>
    %47 = arith.addf %37, %46 : vector<8x512xf32>
    %c0_38 = arith.constant 0 : index
    %c64 = arith.constant 64 : index
    %48 = vector.load %arg8[%c0_38, %c64] : memref<8x768xf32, #tpu.memory_space<vmem>>, vector<4x512xf32>
    %c4 = arith.constant 4 : index
    %c0_39 = arith.constant 0 : index
    %c0_40 = arith.constant 0 : index
    %49 = vector.load %arg2[%c4, %c0_39, %c0_40] : memref<27x1x512xf32, #tpu.memory_space<vmem>>, vector<1x1x512xf32>
    %50 = vector.shape_cast %49 : vector<1x1x512xf32> to vector<1x512xf32>
    %51 = vector.broadcast %50 : vector<1x512xf32> to vector<4x512xf32>
    %52 = arith.mulf %48, %51 : vector<4x512xf32>
    %c4_41 = arith.constant 4 : index
    %c0_42 = arith.constant 0 : index
    %c0_43 = arith.constant 0 : index
    %53 = vector.load %arg3[%c4_41, %c0_42, %c0_43] : memref<27x8x4xbf16, #tpu.memory_space<vmem>>, vector<1x8x4xbf16>
    %54 = vector.shape_cast %53 : vector<1x8x4xbf16> to vector<8x4xbf16>
    %55 = arith.truncf %52 : vector<4x512xf32> to vector<4x512xbf16>
    %cst_44 = arith.constant dense<0.000000e+00> : vector<8x512xf32>
    %56 = tpu.matmul %54, %55, %cst_44 {dimension_numbers = #tpu.dot_dimension_numbers<[1], [0], [0], [1], [0, 0, 1, 1], [], []>} : vector<8x4xbf16>, vector<4x512xbf16>, vector<8x512xf32> -> vector<8x512xf32>
    %57 = arith.addf %47, %56 : vector<8x512xf32>
    %c0_45 = arith.constant 0 : index
    %c65 = arith.constant 65 : index
    %58 = vector.load %arg8[%c0_45, %c65] : memref<8x768xf32, #tpu.memory_space<vmem>>, vector<4x512xf32>
    %c5 = arith.constant 5 : index
    %c0_46 = arith.constant 0 : index
    %c0_47 = arith.constant 0 : index
    %59 = vector.load %arg2[%c5, %c0_46, %c0_47] : memref<27x1x512xf32, #tpu.memory_space<vmem>>, vector<1x1x512xf32>
    %60 = vector.shape_cast %59 : vector<1x1x512xf32> to vector<1x512xf32>
    %61 = vector.broadcast %60 : vector<1x512xf32> to vector<4x512xf32>
    %62 = arith.mulf %58, %61 : vector<4x512xf32>
    %c5_48 = arith.constant 5 : index
    %c0_49 = arith.constant 0 : index
    %c0_50 = arith.constant 0 : index
    %63 = vector.load %arg3[%c5_48, %c0_49, %c0_50] : memref<27x8x4xbf16, #tpu.memory_space<vmem>>, vector<1x8x4xbf16>
    %64 = vector.shape_cast %63 : vector<1x8x4xbf16> to vector<8x4xbf16>
    %65 = arith.truncf %62 : vector<4x512xf32> to vector<4x512xbf16>
    %cst_51 = arith.constant dense<0.000000e+00> : vector<8x512xf32>
    %66 = tpu.matmul %64, %65, %cst_51 {dimension_numbers = #tpu.dot_dimension_numbers<[1], [0], [0], [1], [0, 0, 1, 1], [], []>} : vector<8x4xbf16>, vector<4x512xbf16>, vector<8x512xf32> -> vector<8x512xf32>
    %67 = arith.addf %57, %66 : vector<8x512xf32>
    %c0_52 = arith.constant 0 : index
    %c71 = arith.constant 71 : index
    %68 = vector.load %arg8[%c0_52, %c71] : memref<8x768xf32, #tpu.memory_space<vmem>>, vector<4x512xf32>
    %c6 = arith.constant 6 : index
    %c0_53 = arith.constant 0 : index
    %c0_54 = arith.constant 0 : index
    %69 = vector.load %arg2[%c6, %c0_53, %c0_54] : memref<27x1x512xf32, #tpu.memory_space<vmem>>, vector<1x1x512xf32>
    %70 = vector.shape_cast %69 : vector<1x1x512xf32> to vector<1x512xf32>
    %71 = vector.broadcast %70 : vector<1x512xf32> to vector<4x512xf32>
    %72 = arith.mulf %68, %71 : vector<4x512xf32>
    %c6_55 = arith.constant 6 : index
    %c0_56 = arith.constant 0 : index
    %c0_57 = arith.constant 0 : index
    %73 = vector.load %arg3[%c6_55, %c0_56, %c0_57] : memref<27x8x4xbf16, #tpu.memory_space<vmem>>, vector<1x8x4xbf16>
    %74 = vector.shape_cast %73 : vector<1x8x4xbf16> to vector<8x4xbf16>
    %75 = arith.truncf %72 : vector<4x512xf32> to vector<4x512xbf16>
    %cst_58 = arith.constant dense<0.000000e+00> : vector<8x512xf32>
    %76 = tpu.matmul %74, %75, %cst_58 {dimension_numbers = #tpu.dot_dimension_numbers<[1], [0], [0], [1], [0, 0, 1, 1], [], []>} : vector<8x4xbf16>, vector<4x512xbf16>, vector<8x512xf32> -> vector<8x512xf32>
    %77 = arith.addf %67, %76 : vector<8x512xf32>
    %c0_59 = arith.constant 0 : index
    %c72 = arith.constant 72 : index
    %78 = vector.load %arg8[%c0_59, %c72] : memref<8x768xf32, #tpu.memory_space<vmem>>, vector<4x512xf32>
    %c7 = arith.constant 7 : index
    %c0_60 = arith.constant 0 : index
    %c0_61 = arith.constant 0 : index
    %79 = vector.load %arg2[%c7, %c0_60, %c0_61] : memref<27x1x512xf32, #tpu.memory_space<vmem>>, vector<1x1x512xf32>
    %80 = vector.shape_cast %79 : vector<1x1x512xf32> to vector<1x512xf32>
    %81 = vector.broadcast %80 : vector<1x512xf32> to vector<4x512xf32>
    %82 = arith.mulf %78, %81 : vector<4x512xf32>
    %c7_62 = arith.constant 7 : index
    %c0_63 = arith.constant 0 : index
    %c0_64 = arith.constant 0 : index
    %83 = vector.load %arg3[%c7_62, %c0_63, %c0_64] : memref<27x8x4xbf16, #tpu.memory_space<vmem>>, vector<1x8x4xbf16>
    %84 = vector.shape_cast %83 : vector<1x8x4xbf16> to vector<8x4xbf16>
    %85 = arith.truncf %82 : vector<4x512xf32> to vector<4x512xbf16>
    %cst_65 = arith.constant dense<0.000000e+00> : vector<8x512xf32>
    %86 = tpu.matmul %84, %85, %cst_65 {dimension_numbers = #tpu.dot_dimension_numbers<[1], [0], [0], [1], [0, 0, 1, 1], [], []>} : vector<8x4xbf16>, vector<4x512xbf16>, vector<8x512xf32> -> vector<8x512xf32>
    %87 = arith.addf %77, %86 : vector<8x512xf32>
    %c0_66 = arith.constant 0 : index
    %c73 = arith.constant 73 : index
    %88 = vector.load %arg8[%c0_66, %c73] : memref<8x768xf32, #tpu.memory_space<vmem>>, vector<4x512xf32>
    %c8 = arith.constant 8 : index
    %c0_67 = arith.constant 0 : index
    %c0_68 = arith.constant 0 : index
    %89 = vector.load %arg2[%c8, %c0_67, %c0_68] : memref<27x1x512xf32, #tpu.memory_space<vmem>>, vector<1x1x512xf32>
    %90 = vector.shape_cast %89 : vector<1x1x512xf32> to vector<1x512xf32>
    %91 = vector.broadcast %90 : vector<1x512xf32> to vector<4x512xf32>
    %92 = arith.mulf %88, %91 : vector<4x512xf32>
    %c8_69 = arith.constant 8 : index
    %c0_70 = arith.constant 0 : index
    %c0_71 = arith.constant 0 : index
    %93 = vector.load %arg3[%c8_69, %c0_70, %c0_71] : memref<27x8x4xbf16, #tpu.memory_space<vmem>>, vector<1x8x4xbf16>
    %94 = vector.shape_cast %93 : vector<1x8x4xbf16> to vector<8x4xbf16>
    %95 = arith.truncf %92 : vector<4x512xf32> to vector<4x512xbf16>
    %cst_72 = arith.constant dense<0.000000e+00> : vector<8x512xf32>
    %96 = tpu.matmul %94, %95, %cst_72 {dimension_numbers = #tpu.dot_dimension_numbers<[1], [0], [0], [1], [0, 0, 1, 1], [], []>} : vector<8x4xbf16>, vector<4x512xbf16>, vector<8x512xf32> -> vector<8x512xf32>
    %97 = arith.addf %87, %96 : vector<8x512xf32>
    %c0_73 = arith.constant 0 : index
    %c119 = arith.constant 119 : index
    %98 = vector.load %arg8[%c0_73, %c119] : memref<8x768xf32, #tpu.memory_space<vmem>>, vector<4x512xf32>
    %c9 = arith.constant 9 : index
    %c0_74 = arith.constant 0 : index
    %c0_75 = arith.constant 0 : index
    %99 = vector.load %arg2[%c9, %c0_74, %c0_75] : memref<27x1x512xf32, #tpu.memory_space<vmem>>, vector<1x1x512xf32>
    %100 = vector.shape_cast %99 : vector<1x1x512xf32> to vector<1x512xf32>
    %101 = vector.broadcast %100 : vector<1x512xf32> to vector<4x512xf32>
    %102 = arith.mulf %98, %101 : vector<4x512xf32>
    %c9_76 = arith.constant 9 : index
    %c0_77 = arith.constant 0 : index
    %c0_78 = arith.constant 0 : index
    %103 = vector.load %arg3[%c9_76, %c0_77, %c0_78] : memref<27x8x4xbf16, #tpu.memory_space<vmem>>, vector<1x8x4xbf16>
    %104 = vector.shape_cast %103 : vector<1x8x4xbf16> to vector<8x4xbf16>
    %105 = arith.truncf %102 : vector<4x512xf32> to vector<4x512xbf16>
    %cst_79 = arith.constant dense<0.000000e+00> : vector<8x512xf32>
    %106 = tpu.matmul %104, %105, %cst_79 {dimension_numbers = #tpu.dot_dimension_numbers<[1], [0], [0], [1], [0, 0, 1, 1], [], []>} : vector<8x4xbf16>, vector<4x512xbf16>, vector<8x512xf32> -> vector<8x512xf32>
    %107 = arith.addf %97, %106 : vector<8x512xf32>
    %c0_80 = arith.constant 0 : index
    %c120 = arith.constant 120 : index
    %108 = vector.load %arg8[%c0_80, %c120] : memref<8x768xf32, #tpu.memory_space<vmem>>, vector<4x512xf32>
    %c10 = arith.constant 10 : index
    %c0_81 = arith.constant 0 : index
    %c0_82 = arith.constant 0 : index
    %109 = vector.load %arg2[%c10, %c0_81, %c0_82] : memref<27x1x512xf32, #tpu.memory_space<vmem>>, vector<1x1x512xf32>
    %110 = vector.shape_cast %109 : vector<1x1x512xf32> to vector<1x512xf32>
    %111 = vector.broadcast %110 : vector<1x512xf32> to vector<4x512xf32>
    %112 = arith.mulf %108, %111 : vector<4x512xf32>
    %c10_83 = arith.constant 10 : index
    %c0_84 = arith.constant 0 : index
    %c0_85 = arith.constant 0 : index
    %113 = vector.load %arg3[%c10_83, %c0_84, %c0_85] : memref<27x8x4xbf16, #tpu.memory_space<vmem>>, vector<1x8x4xbf16>
    %114 = vector.shape_cast %113 : vector<1x8x4xbf16> to vector<8x4xbf16>
    %115 = arith.truncf %112 : vector<4x512xf32> to vector<4x512xbf16>
    %cst_86 = arith.constant dense<0.000000e+00> : vector<8x512xf32>
    %116 = tpu.matmul %114, %115, %cst_86 {dimension_numbers = #tpu.dot_dimension_numbers<[1], [0], [0], [1], [0, 0, 1, 1], [], []>} : vector<8x4xbf16>, vector<4x512xbf16>, vector<8x512xf32> -> vector<8x512xf32>
    %117 = arith.addf %107, %116 : vector<8x512xf32>
    %c0_87 = arith.constant 0 : index
    %c121 = arith.constant 121 : index
    %118 = vector.load %arg8[%c0_87, %c121] : memref<8x768xf32, #tpu.memory_space<vmem>>, vector<4x512xf32>
    %c11 = arith.constant 11 : index
    %c0_88 = arith.constant 0 : index
    %c0_89 = arith.constant 0 : index
    %119 = vector.load %arg2[%c11, %c0_88, %c0_89] : memref<27x1x512xf32, #tpu.memory_space<vmem>>, vector<1x1x512xf32>
    %120 = vector.shape_cast %119 : vector<1x1x512xf32> to vector<1x512xf32>
    %121 = vector.broadcast %120 : vector<1x512xf32> to vector<4x512xf32>
    %122 = arith.mulf %118, %121 : vector<4x512xf32>
    %c11_90 = arith.constant 11 : index
    %c0_91 = arith.constant 0 : index
    %c0_92 = arith.constant 0 : index
    %123 = vector.load %arg3[%c11_90, %c0_91, %c0_92] : memref<27x8x4xbf16, #tpu.memory_space<vmem>>, vector<1x8x4xbf16>
    %124 = vector.shape_cast %123 : vector<1x8x4xbf16> to vector<8x4xbf16>
    %125 = arith.truncf %122 : vector<4x512xf32> to vector<4x512xbf16>
    %cst_93 = arith.constant dense<0.000000e+00> : vector<8x512xf32>
    %126 = tpu.matmul %124, %125, %cst_93 {dimension_numbers = #tpu.dot_dimension_numbers<[1], [0], [0], [1], [0, 0, 1, 1], [], []>} : vector<8x4xbf16>, vector<4x512xbf16>, vector<8x512xf32> -> vector<8x512xf32>
    %127 = arith.addf %117, %126 : vector<8x512xf32>
    %c0_94 = arith.constant 0 : index
    %c127 = arith.constant 127 : index
    %128 = vector.load %arg8[%c0_94, %c127] : memref<8x768xf32, #tpu.memory_space<vmem>>, vector<4x512xf32>
    %c12 = arith.constant 12 : index
    %c0_95 = arith.constant 0 : index
    %c0_96 = arith.constant 0 : index
    %129 = vector.load %arg2[%c12, %c0_95, %c0_96] : memref<27x1x512xf32, #tpu.memory_space<vmem>>, vector<1x1x512xf32>
    %130 = vector.shape_cast %129 : vector<1x1x512xf32> to vector<1x512xf32>
    %131 = vector.broadcast %130 : vector<1x512xf32> to vector<4x512xf32>
    %132 = arith.mulf %128, %131 : vector<4x512xf32>
    %c12_97 = arith.constant 12 : index
    %c0_98 = arith.constant 0 : index
    %c0_99 = arith.constant 0 : index
    %133 = vector.load %arg3[%c12_97, %c0_98, %c0_99] : memref<27x8x4xbf16, #tpu.memory_space<vmem>>, vector<1x8x4xbf16>
    %134 = vector.shape_cast %133 : vector<1x8x4xbf16> to vector<8x4xbf16>
    %135 = arith.truncf %132 : vector<4x512xf32> to vector<4x512xbf16>
    %cst_100 = arith.constant dense<0.000000e+00> : vector<8x512xf32>
    %136 = tpu.matmul %134, %135, %cst_100 {dimension_numbers = #tpu.dot_dimension_numbers<[1], [0], [0], [1], [0, 0, 1, 1], [], []>} : vector<8x4xbf16>, vector<4x512xbf16>, vector<8x512xf32> -> vector<8x512xf32>
    %137 = arith.addf %127, %136 : vector<8x512xf32>
    %c0_101 = arith.constant 0 : index
    %c128_102 = arith.constant 128 : index
    %138 = vector.load %arg8[%c0_101, %c128_102] : memref<8x768xf32, #tpu.memory_space<vmem>>, vector<4x512xf32>
    %c13 = arith.constant 13 : index
    %c0_103 = arith.constant 0 : index
    %c0_104 = arith.constant 0 : index
    %139 = vector.load %arg3[%c13, %c0_103, %c0_104] : memref<27x8x4xbf16, #tpu.memory_space<vmem>>, vector<1x8x4xbf16>
    %140 = vector.shape_cast %139 : vector<1x8x4xbf16> to vector<8x4xbf16>
    %141 = arith.truncf %138 : vector<4x512xf32> to vector<4x512xbf16>
    %cst_105 = arith.constant dense<0.000000e+00> : vector<8x512xf32>
    %142 = tpu.matmul %140, %141, %cst_105 {dimension_numbers = #tpu.dot_dimension_numbers<[1], [0], [0], [1], [0, 0, 1, 1], [], []>} : vector<8x4xbf16>, vector<4x512xbf16>, vector<8x512xf32> -> vector<8x512xf32>
    %143 = arith.addf %137, %142 : vector<8x512xf32>
    %c0_106 = arith.constant 0 : index
    %c129 = arith.constant 129 : index
    %144 = vector.load %arg8[%c0_106, %c129] : memref<8x768xf32, #tpu.memory_space<vmem>>, vector<4x512xf32>
    %c14 = arith.constant 14 : index
    %c0_107 = arith.constant 0 : index
    %c0_108 = arith.constant 0 : index
    %145 = vector.load %arg2[%c14, %c0_107, %c0_108] : memref<27x1x512xf32, #tpu.memory_space<vmem>>, vector<1x1x512xf32>
    %146 = vector.shape_cast %145 : vector<1x1x512xf32> to vector<1x512xf32>
    %147 = vector.broadcast %146 : vector<1x512xf32> to vector<4x512xf32>
    %148 = arith.mulf %144, %147 : vector<4x512xf32>
    %c14_109 = arith.constant 14 : index
    %c0_110 = arith.constant 0 : index
    %c0_111 = arith.constant 0 : index
    %149 = vector.load %arg3[%c14_109, %c0_110, %c0_111] : memref<27x8x4xbf16, #tpu.memory_space<vmem>>, vector<1x8x4xbf16>
    %150 = vector.shape_cast %149 : vector<1x8x4xbf16> to vector<8x4xbf16>
    %151 = arith.truncf %148 : vector<4x512xf32> to vector<4x512xbf16>
    %cst_112 = arith.constant dense<0.000000e+00> : vector<8x512xf32>
    %152 = tpu.matmul %150, %151, %cst_112 {dimension_numbers = #tpu.dot_dimension_numbers<[1], [0], [0], [1], [0, 0, 1, 1], [], []>} : vector<8x4xbf16>, vector<4x512xbf16>, vector<8x512xf32> -> vector<8x512xf32>
    %153 = arith.addf %143, %152 : vector<8x512xf32>
    %c0_113 = arith.constant 0 : index
    %c135 = arith.constant 135 : index
    %154 = vector.load %arg8[%c0_113, %c135] : memref<8x768xf32, #tpu.memory_space<vmem>>, vector<4x512xf32>
    %c15 = arith.constant 15 : index
    %c0_114 = arith.constant 0 : index
    %c0_115 = arith.constant 0 : index
    %155 = vector.load %arg2[%c15, %c0_114, %c0_115] : memref<27x1x512xf32, #tpu.memory_space<vmem>>, vector<1x1x512xf32>
    %156 = vector.shape_cast %155 : vector<1x1x512xf32> to vector<1x512xf32>
    %157 = vector.broadcast %156 : vector<1x512xf32> to vector<4x512xf32>
    %158 = arith.mulf %154, %157 : vector<4x512xf32>
    %c15_116 = arith.constant 15 : index
    %c0_117 = arith.constant 0 : index
    %c0_118 = arith.constant 0 : index
    %159 = vector.load %arg3[%c15_116, %c0_117, %c0_118] : memref<27x8x4xbf16, #tpu.memory_space<vmem>>, vector<1x8x4xbf16>
    %160 = vector.shape_cast %159 : vector<1x8x4xbf16> to vector<8x4xbf16>
    %161 = arith.truncf %158 : vector<4x512xf32> to vector<4x512xbf16>
    %cst_119 = arith.constant dense<0.000000e+00> : vector<8x512xf32>
    %162 = tpu.matmul %160, %161, %cst_119 {dimension_numbers = #tpu.dot_dimension_numbers<[1], [0], [0], [1], [0, 0, 1, 1], [], []>} : vector<8x4xbf16>, vector<4x512xbf16>, vector<8x512xf32> -> vector<8x512xf32>
    %163 = arith.addf %153, %162 : vector<8x512xf32>
    %c0_120 = arith.constant 0 : index
    %c136 = arith.constant 136 : index
    %164 = vector.load %arg8[%c0_120, %c136] : memref<8x768xf32, #tpu.memory_space<vmem>>, vector<4x512xf32>
    %c16 = arith.constant 16 : index
    %c0_121 = arith.constant 0 : index
    %c0_122 = arith.constant 0 : index
    %165 = vector.load %arg2[%c16, %c0_121, %c0_122] : memref<27x1x512xf32, #tpu.memory_space<vmem>>, vector<1x1x512xf32>
    %166 = vector.shape_cast %165 : vector<1x1x512xf32> to vector<1x512xf32>
    %167 = vector.broadcast %166 : vector<1x512xf32> to vector<4x512xf32>
    %168 = arith.mulf %164, %167 : vector<4x512xf32>
    %c16_123 = arith.constant 16 : index
    %c0_124 = arith.constant 0 : index
    %c0_125 = arith.constant 0 : index
    %169 = vector.load %arg3[%c16_123, %c0_124, %c0_125] : memref<27x8x4xbf16, #tpu.memory_space<vmem>>, vector<1x8x4xbf16>
    %170 = vector.shape_cast %169 : vector<1x8x4xbf16> to vector<8x4xbf16>
    %171 = arith.truncf %168 : vector<4x512xf32> to vector<4x512xbf16>
    %cst_126 = arith.constant dense<0.000000e+00> : vector<8x512xf32>
    %172 = tpu.matmul %170, %171, %cst_126 {dimension_numbers = #tpu.dot_dimension_numbers<[1], [0], [0], [1], [0, 0, 1, 1], [], []>} : vector<8x4xbf16>, vector<4x512xbf16>, vector<8x512xf32> -> vector<8x512xf32>
    %173 = arith.addf %163, %172 : vector<8x512xf32>
    %c0_127 = arith.constant 0 : index
    %c137 = arith.constant 137 : index
    %174 = vector.load %arg8[%c0_127, %c137] : memref<8x768xf32, #tpu.memory_space<vmem>>, vector<4x512xf32>
    %c17 = arith.constant 17 : index
    %c0_128 = arith.constant 0 : index
    %c0_129 = arith.constant 0 : index
    %175 = vector.load %arg2[%c17, %c0_128, %c0_129] : memref<27x1x512xf32, #tpu.memory_space<vmem>>, vector<1x1x512xf32>
    %176 = vector.shape_cast %175 : vector<1x1x512xf32> to vector<1x512xf32>
    %177 = vector.broadcast %176 : vector<1x512xf32> to vector<4x512xf32>
    %178 = arith.mulf %174, %177 : vector<4x512xf32>
    %c17_130 = arith.constant 17 : index
    %c0_131 = arith.constant 0 : index
    %c0_132 = arith.constant 0 : index
    %179 = vector.load %arg3[%c17_130, %c0_131, %c0_132] : memref<27x8x4xbf16, #tpu.memory_space<vmem>>, vector<1x8x4xbf16>
    %180 = vector.shape_cast %179 : vector<1x8x4xbf16> to vector<8x4xbf16>
    %181 = arith.truncf %178 : vector<4x512xf32> to vector<4x512xbf16>
    %cst_133 = arith.constant dense<0.000000e+00> : vector<8x512xf32>
    %182 = tpu.matmul %180, %181, %cst_133 {dimension_numbers = #tpu.dot_dimension_numbers<[1], [0], [0], [1], [0, 0, 1, 1], [], []>} : vector<8x4xbf16>, vector<4x512xbf16>, vector<8x512xf32> -> vector<8x512xf32>
    %183 = arith.addf %173, %182 : vector<8x512xf32>
    %c0_134 = arith.constant 0 : index
    %c183 = arith.constant 183 : index
    %184 = vector.load %arg8[%c0_134, %c183] : memref<8x768xf32, #tpu.memory_space<vmem>>, vector<4x512xf32>
    %c18 = arith.constant 18 : index
    %c0_135 = arith.constant 0 : index
    %c0_136 = arith.constant 0 : index
    %185 = vector.load %arg2[%c18, %c0_135, %c0_136] : memref<27x1x512xf32, #tpu.memory_space<vmem>>, vector<1x1x512xf32>
    %186 = vector.shape_cast %185 : vector<1x1x512xf32> to vector<1x512xf32>
    %187 = vector.broadcast %186 : vector<1x512xf32> to vector<4x512xf32>
    %188 = arith.mulf %184, %187 : vector<4x512xf32>
    %c18_137 = arith.constant 18 : index
    %c0_138 = arith.constant 0 : index
    %c0_139 = arith.constant 0 : index
    %189 = vector.load %arg3[%c18_137, %c0_138, %c0_139] : memref<27x8x4xbf16, #tpu.memory_space<vmem>>, vector<1x8x4xbf16>
    %190 = vector.shape_cast %189 : vector<1x8x4xbf16> to vector<8x4xbf16>
    %191 = arith.truncf %188 : vector<4x512xf32> to vector<4x512xbf16>
    %cst_140 = arith.constant dense<0.000000e+00> : vector<8x512xf32>
    %192 = tpu.matmul %190, %191, %cst_140 {dimension_numbers = #tpu.dot_dimension_numbers<[1], [0], [0], [1], [0, 0, 1, 1], [], []>} : vector<8x4xbf16>, vector<4x512xbf16>, vector<8x512xf32> -> vector<8x512xf32>
    %193 = arith.addf %183, %192 : vector<8x512xf32>
    %c0_141 = arith.constant 0 : index
    %c184 = arith.constant 184 : index
    %194 = vector.load %arg8[%c0_141, %c184] : memref<8x768xf32, #tpu.memory_space<vmem>>, vector<4x512xf32>
    %c19 = arith.constant 19 : index
    %c0_142 = arith.constant 0 : index
    %c0_143 = arith.constant 0 : index
    %195 = vector.load %arg2[%c19, %c0_142, %c0_143] : memref<27x1x512xf32, #tpu.memory_space<vmem>>, vector<1x1x512xf32>
    %196 = vector.shape_cast %195 : vector<1x1x512xf32> to vector<1x512xf32>
    %197 = vector.broadcast %196 : vector<1x512xf32> to vector<4x512xf32>
    %198 = arith.mulf %194, %197 : vector<4x512xf32>
    %c19_144 = arith.constant 19 : index
    %c0_145 = arith.constant 0 : index
    %c0_146 = arith.constant 0 : index
    %199 = vector.load %arg3[%c19_144, %c0_145, %c0_146] : memref<27x8x4xbf16, #tpu.memory_space<vmem>>, vector<1x8x4xbf16>
    %200 = vector.shape_cast %199 : vector<1x8x4xbf16> to vector<8x4xbf16>
    %201 = arith.truncf %198 : vector<4x512xf32> to vector<4x512xbf16>
    %cst_147 = arith.constant dense<0.000000e+00> : vector<8x512xf32>
    %202 = tpu.matmul %200, %201, %cst_147 {dimension_numbers = #tpu.dot_dimension_numbers<[1], [0], [0], [1], [0, 0, 1, 1], [], []>} : vector<8x4xbf16>, vector<4x512xbf16>, vector<8x512xf32> -> vector<8x512xf32>
    %203 = arith.addf %193, %202 : vector<8x512xf32>
    %c0_148 = arith.constant 0 : index
    %c185 = arith.constant 185 : index
    %204 = vector.load %arg8[%c0_148, %c185] : memref<8x768xf32, #tpu.memory_space<vmem>>, vector<4x512xf32>
    %c20 = arith.constant 20 : index
    %c0_149 = arith.constant 0 : index
    %c0_150 = arith.constant 0 : index
    %205 = vector.load %arg2[%c20, %c0_149, %c0_150] : memref<27x1x512xf32, #tpu.memory_space<vmem>>, vector<1x1x512xf32>
    %206 = vector.shape_cast %205 : vector<1x1x512xf32> to vector<1x512xf32>
    %207 = vector.broadcast %206 : vector<1x512xf32> to vector<4x512xf32>
    %208 = arith.mulf %204, %207 : vector<4x512xf32>
    %c20_151 = arith.constant 20 : index
    %c0_152 = arith.constant 0 : index
    %c0_153 = arith.constant 0 : index
    %209 = vector.load %arg3[%c20_151, %c0_152, %c0_153] : memref<27x8x4xbf16, #tpu.memory_space<vmem>>, vector<1x8x4xbf16>
    %210 = vector.shape_cast %209 : vector<1x8x4xbf16> to vector<8x4xbf16>
    %211 = arith.truncf %208 : vector<4x512xf32> to vector<4x512xbf16>
    %cst_154 = arith.constant dense<0.000000e+00> : vector<8x512xf32>
    %212 = tpu.matmul %210, %211, %cst_154 {dimension_numbers = #tpu.dot_dimension_numbers<[1], [0], [0], [1], [0, 0, 1, 1], [], []>} : vector<8x4xbf16>, vector<4x512xbf16>, vector<8x512xf32> -> vector<8x512xf32>
    %213 = arith.addf %203, %212 : vector<8x512xf32>
    %c0_155 = arith.constant 0 : index
    %c191 = arith.constant 191 : index
    %214 = vector.load %arg8[%c0_155, %c191] : memref<8x768xf32, #tpu.memory_space<vmem>>, vector<4x512xf32>
    %c21 = arith.constant 21 : index
    %c0_156 = arith.constant 0 : index
    %c0_157 = arith.constant 0 : index
    %215 = vector.load %arg2[%c21, %c0_156, %c0_157] : memref<27x1x512xf32, #tpu.memory_space<vmem>>, vector<1x1x512xf32>
    %216 = vector.shape_cast %215 : vector<1x1x512xf32> to vector<1x512xf32>
    %217 = vector.broadcast %216 : vector<1x512xf32> to vector<4x512xf32>
    %218 = arith.mulf %214, %217 : vector<4x512xf32>
    %c21_158 = arith.constant 21 : index
    %c0_159 = arith.constant 0 : index
    %c0_160 = arith.constant 0 : index
    %219 = vector.load %arg3[%c21_158, %c0_159, %c0_160] : memref<27x8x4xbf16, #tpu.memory_space<vmem>>, vector<1x8x4xbf16>
    %220 = vector.shape_cast %219 : vector<1x8x4xbf16> to vector<8x4xbf16>
    %221 = arith.truncf %218 : vector<4x512xf32> to vector<4x512xbf16>
    %cst_161 = arith.constant dense<0.000000e+00> : vector<8x512xf32>
    %222 = tpu.matmul %220, %221, %cst_161 {dimension_numbers = #tpu.dot_dimension_numbers<[1], [0], [0], [1], [0, 0, 1, 1], [], []>} : vector<8x4xbf16>, vector<4x512xbf16>, vector<8x512xf32> -> vector<8x512xf32>
    %223 = arith.addf %213, %222 : vector<8x512xf32>
    %c0_162 = arith.constant 0 : index
    %c192 = arith.constant 192 : index
    %224 = vector.load %arg8[%c0_162, %c192] : memref<8x768xf32, #tpu.memory_space<vmem>>, vector<4x512xf32>
    %c22 = arith.constant 22 : index
    %c0_163 = arith.constant 0 : index
    %c0_164 = arith.constant 0 : index
    %225 = vector.load %arg2[%c22, %c0_163, %c0_164] : memref<27x1x512xf32, #tpu.memory_space<vmem>>, vector<1x1x512xf32>
    %226 = vector.shape_cast %225 : vector<1x1x512xf32> to vector<1x512xf32>
    %227 = vector.broadcast %226 : vector<1x512xf32> to vector<4x512xf32>
    %228 = arith.mulf %224, %227 : vector<4x512xf32>
    %c22_165 = arith.constant 22 : index
    %c0_166 = arith.constant 0 : index
    %c0_167 = arith.constant 0 : index
    %229 = vector.load %arg3[%c22_165, %c0_166, %c0_167] : memref<27x8x4xbf16, #tpu.memory_space<vmem>>, vector<1x8x4xbf16>
    %230 = vector.shape_cast %229 : vector<1x8x4xbf16> to vector<8x4xbf16>
    %231 = arith.truncf %228 : vector<4x512xf32> to vector<4x512xbf16>
    %cst_168 = arith.constant dense<0.000000e+00> : vector<8x512xf32>
    %232 = tpu.matmul %230, %231, %cst_168 {dimension_numbers = #tpu.dot_dimension_numbers<[1], [0], [0], [1], [0, 0, 1, 1], [], []>} : vector<8x4xbf16>, vector<4x512xbf16>, vector<8x512xf32> -> vector<8x512xf32>
    %233 = arith.addf %223, %232 : vector<8x512xf32>
    %c0_169 = arith.constant 0 : index
    %c193 = arith.constant 193 : index
    %234 = vector.load %arg8[%c0_169, %c193] : memref<8x768xf32, #tpu.memory_space<vmem>>, vector<4x512xf32>
    %c23 = arith.constant 23 : index
    %c0_170 = arith.constant 0 : index
    %c0_171 = arith.constant 0 : index
    %235 = vector.load %arg2[%c23, %c0_170, %c0_171] : memref<27x1x512xf32, #tpu.memory_space<vmem>>, vector<1x1x512xf32>
    %236 = vector.shape_cast %235 : vector<1x1x512xf32> to vector<1x512xf32>
    %237 = vector.broadcast %236 : vector<1x512xf32> to vector<4x512xf32>
    %238 = arith.mulf %234, %237 : vector<4x512xf32>
    %c23_172 = arith.constant 23 : index
    %c0_173 = arith.constant 0 : index
    %c0_174 = arith.constant 0 : index
    %239 = vector.load %arg3[%c23_172, %c0_173, %c0_174] : memref<27x8x4xbf16, #tpu.memory_space<vmem>>, vector<1x8x4xbf16>
    %240 = vector.shape_cast %239 : vector<1x8x4xbf16> to vector<8x4xbf16>
    %241 = arith.truncf %238 : vector<4x512xf32> to vector<4x512xbf16>
    %cst_175 = arith.constant dense<0.000000e+00> : vector<8x512xf32>
    %242 = tpu.matmul %240, %241, %cst_175 {dimension_numbers = #tpu.dot_dimension_numbers<[1], [0], [0], [1], [0, 0, 1, 1], [], []>} : vector<8x4xbf16>, vector<4x512xbf16>, vector<8x512xf32> -> vector<8x512xf32>
    %243 = arith.addf %233, %242 : vector<8x512xf32>
    %c0_176 = arith.constant 0 : index
    %c199 = arith.constant 199 : index
    %244 = vector.load %arg8[%c0_176, %c199] : memref<8x768xf32, #tpu.memory_space<vmem>>, vector<4x512xf32>
    %c24 = arith.constant 24 : index
    %c0_177 = arith.constant 0 : index
    %c0_178 = arith.constant 0 : index
    %245 = vector.load %arg2[%c24, %c0_177, %c0_178] : memref<27x1x512xf32, #tpu.memory_space<vmem>>, vector<1x1x512xf32>
    %246 = vector.shape_cast %245 : vector<1x1x512xf32> to vector<1x512xf32>
    %247 = vector.broadcast %246 : vector<1x512xf32> to vector<4x512xf32>
    %248 = arith.mulf %244, %247 : vector<4x512xf32>
    %c24_179 = arith.constant 24 : index
    %c0_180 = arith.constant 0 : index
    %c0_181 = arith.constant 0 : index
    %249 = vector.load %arg3[%c24_179, %c0_180, %c0_181] : memref<27x8x4xbf16, #tpu.memory_space<vmem>>, vector<1x8x4xbf16>
    %250 = vector.shape_cast %249 : vector<1x8x4xbf16> to vector<8x4xbf16>
    %251 = arith.truncf %248 : vector<4x512xf32> to vector<4x512xbf16>
    %cst_182 = arith.constant dense<0.000000e+00> : vector<8x512xf32>
    %252 = tpu.matmul %250, %251, %cst_182 {dimension_numbers = #tpu.dot_dimension_numbers<[1], [0], [0], [1], [0, 0, 1, 1], [], []>} : vector<8x4xbf16>, vector<4x512xbf16>, vector<8x512xf32> -> vector<8x512xf32>
    %253 = arith.addf %243, %252 : vector<8x512xf32>
    %c0_183 = arith.constant 0 : index
    %c200 = arith.constant 200 : index
    %254 = vector.load %arg8[%c0_183, %c200] : memref<8x768xf32, #tpu.memory_space<vmem>>, vector<4x512xf32>
    %c25 = arith.constant 25 : index
    %c0_184 = arith.constant 0 : index
    %c0_185 = arith.constant 0 : index
    %255 = vector.load %arg2[%c25, %c0_184, %c0_185] : memref<27x1x512xf32, #tpu.memory_space<vmem>>, vector<1x1x512xf32>
    %256 = vector.shape_cast %255 : vector<1x1x512xf32> to vector<1x512xf32>
    %257 = vector.broadcast %256 : vector<1x512xf32> to vector<4x512xf32>
    %258 = arith.mulf %254, %257 : vector<4x512xf32>
    %c25_186 = arith.constant 25 : index
    %c0_187 = arith.constant 0 : index
    %c0_188 = arith.constant 0 : index
    %259 = vector.load %arg3[%c25_186, %c0_187, %c0_188] : memref<27x8x4xbf16, #tpu.memory_space<vmem>>, vector<1x8x4xbf16>
    %260 = vector.shape_cast %259 : vector<1x8x4xbf16> to vector<8x4xbf16>
    %261 = arith.truncf %258 : vector<4x512xf32> to vector<4x512xbf16>
    %cst_189 = arith.constant dense<0.000000e+00> : vector<8x512xf32>
    %262 = tpu.matmul %260, %261, %cst_189 {dimension_numbers = #tpu.dot_dimension_numbers<[1], [0], [0], [1], [0, 0, 1, 1], [], []>} : vector<8x4xbf16>, vector<4x512xbf16>, vector<8x512xf32> -> vector<8x512xf32>
    %263 = arith.addf %253, %262 : vector<8x512xf32>
    %c0_190 = arith.constant 0 : index
    %c201 = arith.constant 201 : index
    %264 = vector.load %arg8[%c0_190, %c201] : memref<8x768xf32, #tpu.memory_space<vmem>>, vector<4x512xf32>
    %c26 = arith.constant 26 : index
    %c0_191 = arith.constant 0 : index
    %c0_192 = arith.constant 0 : index
    %265 = vector.load %arg2[%c26, %c0_191, %c0_192] : memref<27x1x512xf32, #tpu.memory_space<vmem>>, vector<1x1x512xf32>
    %266 = vector.shape_cast %265 : vector<1x1x512xf32> to vector<1x512xf32>
    %267 = vector.broadcast %266 : vector<1x512xf32> to vector<4x512xf32>
    %268 = arith.mulf %264, %267 : vector<4x512xf32>
    %c26_193 = arith.constant 26 : index
    %c0_194 = arith.constant 0 : index
    %c0_195 = arith.constant 0 : index
    %269 = vector.load %arg3[%c26_193, %c0_194, %c0_195] : memref<27x8x4xbf16, #tpu.memory_space<vmem>>, vector<1x8x4xbf16>
    %270 = vector.shape_cast %269 : vector<1x8x4xbf16> to vector<8x4xbf16>
    %271 = arith.truncf %268 : vector<4x512xf32> to vector<4x512xbf16>
    %cst_196 = arith.constant dense<0.000000e+00> : vector<8x512xf32>
    %272 = tpu.matmul %270, %271, %cst_196 {dimension_numbers = #tpu.dot_dimension_numbers<[1], [0], [0], [1], [0, 0, 1, 1], [], []>} : vector<8x4xbf16>, vector<4x512xbf16>, vector<8x512xf32> -> vector<8x512xf32>
    %273 = arith.addf %263, %272 : vector<8x512xf32>
    %c0_197 = arith.constant 0 : index
    %c0_198 = arith.constant 0 : index
    %274 = vector.load %arg4[%c0_197, %c0_198] : memref<8x1xf32, #tpu.memory_space<vmem>>, vector<8x1xf32>
    %275 = vector.broadcast %274 : vector<8x1xf32> to vector<8x512xf32>
    %276 = arith.addf %273, %275 : vector<8x512xf32>
    %cst_199 = arith.constant 0.000000e+00 : f32
    %277 = vector.broadcast %cst_199 : f32 to vector<8x512xf32>
    %278 = arith.maximumf %276, %277 : vector<8x512xf32>
    %c0_200 = arith.constant 0 : index
    %c128_201 = arith.constant 128 : index
    %279 = vector.load %arg9[%c0_200, %c128_201] : memref<8x768xf32, #tpu.memory_space<vmem>>, vector<8x512xf32>
    tpu.vector_store %arg9[%c0_200, %c128_201], %278 {strides = array<i32>} : memref<8x768xf32, #tpu.memory_space<vmem>>, vector<8x512xf32>,
    %cst_202 = arith.constant 0.000000e+00 : f32
    %280 = vector.broadcast %cst_202 : f32 to vector<4x512xf32>
    %c0_203 = arith.constant 0 : index
    %c55_204 = arith.constant 55 : index
    %281 = vector.load %arg9[%c0_203, %c55_204] : memref<8x768xf32, #tpu.memory_space<vmem>>, vector<8x512xf32>
    %c0_205 = arith.constant 0 : index
    %c0_206 = arith.constant 0 : index
    %c0_207 = arith.constant 0 : index
    %282 = vector.load %arg2[%c0_205, %c0_206, %c0_207] : memref<27x1x512xf32, #tpu.memory_space<vmem>>, vector<1x1x512xf32>
    %283 = vector.shape_cast %282 : vector<1x1x512xf32> to vector<1x512xf32>
    %284 = vector.broadcast %283 : vector<1x512xf32> to vector<8x512xf32>
    %285 = arith.mulf %281, %284 : vector<8x512xf32>
    %c0_208 = arith.constant 0 : index
    %c0_209 = arith.constant 0 : index
    %c0_210 = arith.constant 0 : index
    %286 = vector.load %arg5[%c0_208, %c0_209, %c0_210] : memref<27x4x8xbf16, #tpu.memory_space<vmem>>, vector<1x4x8xbf16>
    %287 = vector.shape_cast %286 : vector<1x4x8xbf16> to vector<4x8xbf16>
    %288 = arith.truncf %285 : vector<8x512xf32> to vector<8x512xbf16>
    %cst_211 = arith.constant dense<0.000000e+00> : vector<4x512xf32>
    %289 = tpu.matmul %287, %288, %cst_211 {dimension_numbers = #tpu.dot_dimension_numbers<[1], [0], [0], [1], [0, 0, 1, 1], [], []>} : vector<4x8xbf16>, vector<8x512xbf16>, vector<4x512xf32> -> vector<4x512xf32>
    %290 = arith.addf %280, %289 : vector<4x512xf32>
    %c0_212 = arith.constant 0 : index
    %c56_213 = arith.constant 56 : index
    %291 = vector.load %arg9[%c0_212, %c56_213] : memref<8x768xf32, #tpu.memory_space<vmem>>, vector<8x512xf32>
    %c1_214 = arith.constant 1 : index
    %c0_215 = arith.constant 0 : index
    %c0_216 = arith.constant 0 : index
    %292 = vector.load %arg2[%c1_214, %c0_215, %c0_216] : memref<27x1x512xf32, #tpu.memory_space<vmem>>, vector<1x1x512xf32>
    %293 = vector.shape_cast %292 : vector<1x1x512xf32> to vector<1x512xf32>
    %294 = vector.broadcast %293 : vector<1x512xf32> to vector<8x512xf32>
    %295 = arith.mulf %291, %294 : vector<8x512xf32>
    %c1_217 = arith.constant 1 : index
    %c0_218 = arith.constant 0 : index
    %c0_219 = arith.constant 0 : index
    %296 = vector.load %arg5[%c1_217, %c0_218, %c0_219] : memref<27x4x8xbf16, #tpu.memory_space<vmem>>, vector<1x4x8xbf16>
    %297 = vector.shape_cast %296 : vector<1x4x8xbf16> to vector<4x8xbf16>
    %298 = arith.truncf %295 : vector<8x512xf32> to vector<8x512xbf16>
    %cst_220 = arith.constant dense<0.000000e+00> : vector<4x512xf32>
    %299 = tpu.matmul %297, %298, %cst_220 {dimension_numbers = #tpu.dot_dimension_numbers<[1], [0], [0], [1], [0, 0, 1, 1], [], []>} : vector<4x8xbf16>, vector<8x512xbf16>, vector<4x512xf32> -> vector<4x512xf32>
    %300 = arith.addf %290, %299 : vector<4x512xf32>
    %c0_221 = arith.constant 0 : index
    %c57_222 = arith.constant 57 : index
    %301 = vector.load %arg9[%c0_221, %c57_222] : memref<8x768xf32, #tpu.memory_space<vmem>>, vector<8x512xf32>
    %c2_223 = arith.constant 2 : index
    %c0_224 = arith.constant 0 : index
    %c0_225 = arith.constant 0 : index
    %302 = vector.load %arg2[%c2_223, %c0_224, %c0_225] : memref<27x1x512xf32, #tpu.memory_space<vmem>>, vector<1x1x512xf32>
    %303 = vector.shape_cast %302 : vector<1x1x512xf32> to vector<1x512xf32>
    %304 = vector.broadcast %303 : vector<1x512xf32> to vector<8x512xf32>
    %305 = arith.mulf %301, %304 : vector<8x512xf32>
    %c2_226 = arith.constant 2 : index
    %c0_227 = arith.constant 0 : index
    %c0_228 = arith.constant 0 : index
    %306 = vector.load %arg5[%c2_226, %c0_227, %c0_228] : memref<27x4x8xbf16, #tpu.memory_space<vmem>>, vector<1x4x8xbf16>
    %307 = vector.shape_cast %306 : vector<1x4x8xbf16> to vector<4x8xbf16>
    %308 = arith.truncf %305 : vector<8x512xf32> to vector<8x512xbf16>
    %cst_229 = arith.constant dense<0.000000e+00> : vector<4x512xf32>
    %309 = tpu.matmul %307, %308, %cst_229 {dimension_numbers = #tpu.dot_dimension_numbers<[1], [0], [0], [1], [0, 0, 1, 1], [], []>} : vector<4x8xbf16>, vector<8x512xbf16>, vector<4x512xf32> -> vector<4x512xf32>
    %310 = arith.addf %300, %309 : vector<4x512xf32>
    %c0_230 = arith.constant 0 : index
    %c63_231 = arith.constant 63 : index
    %311 = vector.load %arg9[%c0_230, %c63_231] : memref<8x768xf32, #tpu.memory_space<vmem>>, vector<8x512xf32>
    %c3_232 = arith.constant 3 : index
    %c0_233 = arith.constant 0 : index
    %c0_234 = arith.constant 0 : index
    %312 = vector.load %arg2[%c3_232, %c0_233, %c0_234] : memref<27x1x512xf32, #tpu.memory_space<vmem>>, vector<1x1x512xf32>
    %313 = vector.shape_cast %312 : vector<1x1x512xf32> to vector<1x512xf32>
    %314 = vector.broadcast %313 : vector<1x512xf32> to vector<8x512xf32>
    %315 = arith.mulf %311, %314 : vector<8x512xf32>
    %c3_235 = arith.constant 3 : index
    %c0_236 = arith.constant 0 : index
    %c0_237 = arith.constant 0 : index
    %316 = vector.load %arg5[%c3_235, %c0_236, %c0_237] : memref<27x4x8xbf16, #tpu.memory_space<vmem>>, vector<1x4x8xbf16>
    %317 = vector.shape_cast %316 : vector<1x4x8xbf16> to vector<4x8xbf16>
    %318 = arith.truncf %315 : vector<8x512xf32> to vector<8x512xbf16>
    %cst_238 = arith.constant dense<0.000000e+00> : vector<4x512xf32>
    %319 = tpu.matmul %317, %318, %cst_238 {dimension_numbers = #tpu.dot_dimension_numbers<[1], [0], [0], [1], [0, 0, 1, 1], [], []>} : vector<4x8xbf16>, vector<8x512xbf16>, vector<4x512xf32> -> vector<4x512xf32>
    %320 = arith.addf %310, %319 : vector<4x512xf32>
    %c0_239 = arith.constant 0 : index
    %c64_240 = arith.constant 64 : index
    %321 = vector.load %arg9[%c0_239, %c64_240] : memref<8x768xf32, #tpu.memory_space<vmem>>, vector<8x512xf32>
    %c4_241 = arith.constant 4 : index
    %c0_242 = arith.constant 0 : index
    %c0_243 = arith.constant 0 : index
    %322 = vector.load %arg2[%c4_241, %c0_242, %c0_243] : memref<27x1x512xf32, #tpu.memory_space<vmem>>, vector<1x1x512xf32>
    %323 = vector.shape_cast %322 : vector<1x1x512xf32> to vector<1x512xf32>
    %324 = vector.broadcast %323 : vector<1x512xf32> to vector<8x512xf32>
    %325 = arith.mulf %321, %324 : vector<8x512xf32>
    %c4_244 = arith.constant 4 : index
    %c0_245 = arith.constant 0 : index
    %c0_246 = arith.constant 0 : index
    %326 = vector.load %arg5[%c4_244, %c0_245, %c0_246] : memref<27x4x8xbf16, #tpu.memory_space<vmem>>, vector<1x4x8xbf16>
    %327 = vector.shape_cast %326 : vector<1x4x8xbf16> to vector<4x8xbf16>
    %328 = arith.truncf %325 : vector<8x512xf32> to vector<8x512xbf16>
    %cst_247 = arith.constant dense<0.000000e+00> : vector<4x512xf32>
    %329 = tpu.matmul %327, %328, %cst_247 {dimension_numbers = #tpu.dot_dimension_numbers<[1], [0], [0], [1], [0, 0, 1, 1], [], []>} : vector<4x8xbf16>, vector<8x512xbf16>, vector<4x512xf32> -> vector<4x512xf32>
    %330 = arith.addf %320, %329 : vector<4x512xf32>
    %c0_248 = arith.constant 0 : index
    %c65_249 = arith.constant 65 : index
    %331 = vector.load %arg9[%c0_248, %c65_249] : memref<8x768xf32, #tpu.memory_space<vmem>>, vector<8x512xf32>
    %c5_250 = arith.constant 5 : index
    %c0_251 = arith.constant 0 : index
    %c0_252 = arith.constant 0 : index
    %332 = vector.load %arg2[%c5_250, %c0_251, %c0_252] : memref<27x1x512xf32, #tpu.memory_space<vmem>>, vector<1x1x512xf32>
    %333 = vector.shape_cast %332 : vector<1x1x512xf32> to vector<1x512xf32>
    %334 = vector.broadcast %333 : vector<1x512xf32> to vector<8x512xf32>
    %335 = arith.mulf %331, %334 : vector<8x512xf32>
    %c5_253 = arith.constant 5 : index
    %c0_254 = arith.constant 0 : index
    %c0_255 = arith.constant 0 : index
    %336 = vector.load %arg5[%c5_253, %c0_254, %c0_255] : memref<27x4x8xbf16, #tpu.memory_space<vmem>>, vector<1x4x8xbf16>
    %337 = vector.shape_cast %336 : vector<1x4x8xbf16> to vector<4x8xbf16>
    %338 = arith.truncf %335 : vector<8x512xf32> to vector<8x512xbf16>
    %cst_256 = arith.constant dense<0.000000e+00> : vector<4x512xf32>
    %339 = tpu.matmul %337, %338, %cst_256 {dimension_numbers = #tpu.dot_dimension_numbers<[1], [0], [0], [1], [0, 0, 1, 1], [], []>} : vector<4x8xbf16>, vector<8x512xbf16>, vector<4x512xf32> -> vector<4x512xf32>
    %340 = arith.addf %330, %339 : vector<4x512xf32>
    %c0_257 = arith.constant 0 : index
    %c71_258 = arith.constant 71 : index
    %341 = vector.load %arg9[%c0_257, %c71_258] : memref<8x768xf32, #tpu.memory_space<vmem>>, vector<8x512xf32>
    %c6_259 = arith.constant 6 : index
    %c0_260 = arith.constant 0 : index
    %c0_261 = arith.constant 0 : index
    %342 = vector.load %arg2[%c6_259, %c0_260, %c0_261] : memref<27x1x512xf32, #tpu.memory_space<vmem>>, vector<1x1x512xf32>
    %343 = vector.shape_cast %342 : vector<1x1x512xf32> to vector<1x512xf32>
    %344 = vector.broadcast %343 : vector<1x512xf32> to vector<8x512xf32>
    %345 = arith.mulf %341, %344 : vector<8x512xf32>
    %c6_262 = arith.constant 6 : index
    %c0_263 = arith.constant 0 : index
    %c0_264 = arith.constant 0 : index
    %346 = vector.load %arg5[%c6_262, %c0_263, %c0_264] : memref<27x4x8xbf16, #tpu.memory_space<vmem>>, vector<1x4x8xbf16>
    %347 = vector.shape_cast %346 : vector<1x4x8xbf16> to vector<4x8xbf16>
    %348 = arith.truncf %345 : vector<8x512xf32> to vector<8x512xbf16>
    %cst_265 = arith.constant dense<0.000000e+00> : vector<4x512xf32>
    %349 = tpu.matmul %347, %348, %cst_265 {dimension_numbers = #tpu.dot_dimension_numbers<[1], [0], [0], [1], [0, 0, 1, 1], [], []>} : vector<4x8xbf16>, vector<8x512xbf16>, vector<4x512xf32> -> vector<4x512xf32>
    %350 = arith.addf %340, %349 : vector<4x512xf32>
    %c0_266 = arith.constant 0 : index
    %c72_267 = arith.constant 72 : index
    %351 = vector.load %arg9[%c0_266, %c72_267] : memref<8x768xf32, #tpu.memory_space<vmem>>, vector<8x512xf32>
    %c7_268 = arith.constant 7 : index
    %c0_269 = arith.constant 0 : index
    %c0_270 = arith.constant 0 : index
    %352 = vector.load %arg2[%c7_268, %c0_269, %c0_270] : memref<27x1x512xf32, #tpu.memory_space<vmem>>, vector<1x1x512xf32>
    %353 = vector.shape_cast %352 : vector<1x1x512xf32> to vector<1x512xf32>
    %354 = vector.broadcast %353 : vector<1x512xf32> to vector<8x512xf32>
    %355 = arith.mulf %351, %354 : vector<8x512xf32>
    %c7_271 = arith.constant 7 : index
    %c0_272 = arith.constant 0 : index
    %c0_273 = arith.constant 0 : index
    %356 = vector.load %arg5[%c7_271, %c0_272, %c0_273] : memref<27x4x8xbf16, #tpu.memory_space<vmem>>, vector<1x4x8xbf16>
    %357 = vector.shape_cast %356 : vector<1x4x8xbf16> to vector<4x8xbf16>
    %358 = arith.truncf %355 : vector<8x512xf32> to vector<8x512xbf16>
    %cst_274 = arith.constant dense<0.000000e+00> : vector<4x512xf32>
    %359 = tpu.matmul %357, %358, %cst_274 {dimension_numbers = #tpu.dot_dimension_numbers<[1], [0], [0], [1], [0, 0, 1, 1], [], []>} : vector<4x8xbf16>, vector<8x512xbf16>, vector<4x512xf32> -> vector<4x512xf32>
    %360 = arith.addf %350, %359 : vector<4x512xf32>
    %c0_275 = arith.constant 0 : index
    %c73_276 = arith.constant 73 : index
    %361 = vector.load %arg9[%c0_275, %c73_276] : memref<8x768xf32, #tpu.memory_space<vmem>>, vector<8x512xf32>
    %c8_277 = arith.constant 8 : index
    %c0_278 = arith.constant 0 : index
    %c0_279 = arith.constant 0 : index
    %362 = vector.load %arg2[%c8_277, %c0_278, %c0_279] : memref<27x1x512xf32, #tpu.memory_space<vmem>>, vector<1x1x512xf32>
    %363 = vector.shape_cast %362 : vector<1x1x512xf32> to vector<1x512xf32>
    %364 = vector.broadcast %363 : vector<1x512xf32> to vector<8x512xf32>
    %365 = arith.mulf %361, %364 : vector<8x512xf32>
    %c8_280 = arith.constant 8 : index
    %c0_281 = arith.constant 0 : index
    %c0_282 = arith.constant 0 : index
    %366 = vector.load %arg5[%c8_280, %c0_281, %c0_282] : memref<27x4x8xbf16, #tpu.memory_space<vmem>>, vector<1x4x8xbf16>
    %367 = vector.shape_cast %366 : vector<1x4x8xbf16> to vector<4x8xbf16>
    %368 = arith.truncf %365 : vector<8x512xf32> to vector<8x512xbf16>
    %cst_283 = arith.constant dense<0.000000e+00> : vector<4x512xf32>
    %369 = tpu.matmul %367, %368, %cst_283 {dimension_numbers = #tpu.dot_dimension_numbers<[1], [0], [0], [1], [0, 0, 1, 1], [], []>} : vector<4x8xbf16>, vector<8x512xbf16>, vector<4x512xf32> -> vector<4x512xf32>
    %370 = arith.addf %360, %369 : vector<4x512xf32>
    %c0_284 = arith.constant 0 : index
    %c119_285 = arith.constant 119 : index
    %371 = vector.load %arg9[%c0_284, %c119_285] : memref<8x768xf32, #tpu.memory_space<vmem>>, vector<8x512xf32>
    %c9_286 = arith.constant 9 : index
    %c0_287 = arith.constant 0 : index
    %c0_288 = arith.constant 0 : index
    %372 = vector.load %arg2[%c9_286, %c0_287, %c0_288] : memref<27x1x512xf32, #tpu.memory_space<vmem>>, vector<1x1x512xf32>
    %373 = vector.shape_cast %372 : vector<1x1x512xf32> to vector<1x512xf32>
    %374 = vector.broadcast %373 : vector<1x512xf32> to vector<8x512xf32>
    %375 = arith.mulf %371, %374 : vector<8x512xf32>
    %c9_289 = arith.constant 9 : index
    %c0_290 = arith.constant 0 : index
    %c0_291 = arith.constant 0 : index
    %376 = vector.load %arg5[%c9_289, %c0_290, %c0_291] : memref<27x4x8xbf16, #tpu.memory_space<vmem>>, vector<1x4x8xbf16>
    %377 = vector.shape_cast %376 : vector<1x4x8xbf16> to vector<4x8xbf16>
    %378 = arith.truncf %375 : vector<8x512xf32> to vector<8x512xbf16>
    %cst_292 = arith.constant dense<0.000000e+00> : vector<4x512xf32>
    %379 = tpu.matmul %377, %378, %cst_292 {dimension_numbers = #tpu.dot_dimension_numbers<[1], [0], [0], [1], [0, 0, 1, 1], [], []>} : vector<4x8xbf16>, vector<8x512xbf16>, vector<4x512xf32> -> vector<4x512xf32>
    %380 = arith.addf %370, %379 : vector<4x512xf32>
    %c0_293 = arith.constant 0 : index
    %c120_294 = arith.constant 120 : index
    %381 = vector.load %arg9[%c0_293, %c120_294] : memref<8x768xf32, #tpu.memory_space<vmem>>, vector<8x512xf32>
    %c10_295 = arith.constant 10 : index
    %c0_296 = arith.constant 0 : index
    %c0_297 = arith.constant 0 : index
    %382 = vector.load %arg2[%c10_295, %c0_296, %c0_297] : memref<27x1x512xf32, #tpu.memory_space<vmem>>, vector<1x1x512xf32>
    %383 = vector.shape_cast %382 : vector<1x1x512xf32> to vector<1x512xf32>
    %384 = vector.broadcast %383 : vector<1x512xf32> to vector<8x512xf32>
    %385 = arith.mulf %381, %384 : vector<8x512xf32>
    %c10_298 = arith.constant 10 : index
    %c0_299 = arith.constant 0 : index
    %c0_300 = arith.constant 0 : index
    %386 = vector.load %arg5[%c10_298, %c0_299, %c0_300] : memref<27x4x8xbf16, #tpu.memory_space<vmem>>, vector<1x4x8xbf16>
    %387 = vector.shape_cast %386 : vector<1x4x8xbf16> to vector<4x8xbf16>
    %388 = arith.truncf %385 : vector<8x512xf32> to vector<8x512xbf16>
    %cst_301 = arith.constant dense<0.000000e+00> : vector<4x512xf32>
    %389 = tpu.matmul %387, %388, %cst_301 {dimension_numbers = #tpu.dot_dimension_numbers<[1], [0], [0], [1], [0, 0, 1, 1], [], []>} : vector<4x8xbf16>, vector<8x512xbf16>, vector<4x512xf32> -> vector<4x512xf32>
    %390 = arith.addf %380, %389 : vector<4x512xf32>
    %c0_302 = arith.constant 0 : index
    %c121_303 = arith.constant 121 : index
    %391 = vector.load %arg9[%c0_302, %c121_303] : memref<8x768xf32, #tpu.memory_space<vmem>>, vector<8x512xf32>
    %c11_304 = arith.constant 11 : index
    %c0_305 = arith.constant 0 : index
    %c0_306 = arith.constant 0 : index
    %392 = vector.load %arg2[%c11_304, %c0_305, %c0_306] : memref<27x1x512xf32, #tpu.memory_space<vmem>>, vector<1x1x512xf32>
    %393 = vector.shape_cast %392 : vector<1x1x512xf32> to vector<1x512xf32>
    %394 = vector.broadcast %393 : vector<1x512xf32> to vector<8x512xf32>
    %395 = arith.mulf %391, %394 : vector<8x512xf32>
    %c11_307 = arith.constant 11 : index
    %c0_308 = arith.constant 0 : index
    %c0_309 = arith.constant 0 : index
    %396 = vector.load %arg5[%c11_307, %c0_308, %c0_309] : memref<27x4x8xbf16, #tpu.memory_space<vmem>>, vector<1x4x8xbf16>
    %397 = vector.shape_cast %396 : vector<1x4x8xbf16> to vector<4x8xbf16>
    %398 = arith.truncf %395 : vector<8x512xf32> to vector<8x512xbf16>
    %cst_310 = arith.constant dense<0.000000e+00> : vector<4x512xf32>
    %399 = tpu.matmul %397, %398, %cst_310 {dimension_numbers = #tpu.dot_dimension_numbers<[1], [0], [0], [1], [0, 0, 1, 1], [], []>} : vector<4x8xbf16>, vector<8x512xbf16>, vector<4x512xf32> -> vector<4x512xf32>
    %400 = arith.addf %390, %399 : vector<4x512xf32>
    %c0_311 = arith.constant 0 : index
    %c127_312 = arith.constant 127 : index
    %401 = vector.load %arg9[%c0_311, %c127_312] : memref<8x768xf32, #tpu.memory_space<vmem>>, vector<8x512xf32>
    %c12_313 = arith.constant 12 : index
    %c0_314 = arith.constant 0 : index
    %c0_315 = arith.constant 0 : index
    %402 = vector.load %arg2[%c12_313, %c0_314, %c0_315] : memref<27x1x512xf32, #tpu.memory_space<vmem>>, vector<1x1x512xf32>
    %403 = vector.shape_cast %402 : vector<1x1x512xf32> to vector<1x512xf32>
    %404 = vector.broadcast %403 : vector<1x512xf32> to vector<8x512xf32>
    %405 = arith.mulf %401, %404 : vector<8x512xf32>
    %c12_316 = arith.constant 12 : index
    %c0_317 = arith.constant 0 : index
    %c0_318 = arith.constant 0 : index
    %406 = vector.load %arg5[%c12_316, %c0_317, %c0_318] : memref<27x4x8xbf16, #tpu.memory_space<vmem>>, vector<1x4x8xbf16>
    %407 = vector.shape_cast %406 : vector<1x4x8xbf16> to vector<4x8xbf16>
    %408 = arith.truncf %405 : vector<8x512xf32> to vector<8x512xbf16>
    %cst_319 = arith.constant dense<0.000000e+00> : vector<4x512xf32>
    %409 = tpu.matmul %407, %408, %cst_319 {dimension_numbers = #tpu.dot_dimension_numbers<[1], [0], [0], [1], [0, 0, 1, 1], [], []>} : vector<4x8xbf16>, vector<8x512xbf16>, vector<4x512xf32> -> vector<4x512xf32>
    %410 = arith.addf %400, %409 : vector<4x512xf32>
    %c0_320 = arith.constant 0 : index
    %c128_321 = arith.constant 128 : index
    %411 = vector.load %arg9[%c0_320, %c128_321] : memref<8x768xf32, #tpu.memory_space<vmem>>, vector<8x512xf32>
    %c13_322 = arith.constant 13 : index
    %c0_323 = arith.constant 0 : index
    %c0_324 = arith.constant 0 : index
    %412 = vector.load %arg5[%c13_322, %c0_323, %c0_324] : memref<27x4x8xbf16, #tpu.memory_space<vmem>>, vector<1x4x8xbf16>
    %413 = vector.shape_cast %412 : vector<1x4x8xbf16> to vector<4x8xbf16>
    %414 = arith.truncf %411 : vector<8x512xf32> to vector<8x512xbf16>
    %cst_325 = arith.constant dense<0.000000e+00> : vector<4x512xf32>
    %415 = tpu.matmul %413, %414, %cst_325 {dimension_numbers = #tpu.dot_dimension_numbers<[1], [0], [0], [1], [0, 0, 1, 1], [], []>} : vector<4x8xbf16>, vector<8x512xbf16>, vector<4x512xf32> -> vector<4x512xf32>
    %416 = arith.addf %410, %415 : vector<4x512xf32>
    %c0_326 = arith.constant 0 : index
    %c129_327 = arith.constant 129 : index
    %417 = vector.load %arg9[%c0_326, %c129_327] : memref<8x768xf32, #tpu.memory_space<vmem>>, vector<8x512xf32>
    %c14_328 = arith.constant 14 : index
    %c0_329 = arith.constant 0 : index
    %c0_330 = arith.constant 0 : index
    %418 = vector.load %arg2[%c14_328, %c0_329, %c0_330] : memref<27x1x512xf32, #tpu.memory_space<vmem>>, vector<1x1x512xf32>
    %419 = vector.shape_cast %418 : vector<1x1x512xf32> to vector<1x512xf32>
    %420 = vector.broadcast %419 : vector<1x512xf32> to vector<8x512xf32>
    %421 = arith.mulf %417, %420 : vector<8x512xf32>
    %c14_331 = arith.constant 14 : index
    %c0_332 = arith.constant 0 : index
    %c0_333 = arith.constant 0 : index
    %422 = vector.load %arg5[%c14_331, %c0_332, %c0_333] : memref<27x4x8xbf16, #tpu.memory_space<vmem>>, vector<1x4x8xbf16>
    %423 = vector.shape_cast %422 : vector<1x4x8xbf16> to vector<4x8xbf16>
    %424 = arith.truncf %421 : vector<8x512xf32> to vector<8x512xbf16>
    %cst_334 = arith.constant dense<0.000000e+00> : vector<4x512xf32>
    %425 = tpu.matmul %423, %424, %cst_334 {dimension_numbers = #tpu.dot_dimension_numbers<[1], [0], [0], [1], [0, 0, 1, 1], [], []>} : vector<4x8xbf16>, vector<8x512xbf16>, vector<4x512xf32> -> vector<4x512xf32>
    %426 = arith.addf %416, %425 : vector<4x512xf32>
    %c0_335 = arith.constant 0 : index
    %c135_336 = arith.constant 135 : index
    %427 = vector.load %arg9[%c0_335, %c135_336] : memref<8x768xf32, #tpu.memory_space<vmem>>, vector<8x512xf32>
    %c15_337 = arith.constant 15 : index
    %c0_338 = arith.constant 0 : index
    %c0_339 = arith.constant 0 : index
    %428 = vector.load %arg2[%c15_337, %c0_338, %c0_339] : memref<27x1x512xf32, #tpu.memory_space<vmem>>, vector<1x1x512xf32>
    %429 = vector.shape_cast %428 : vector<1x1x512xf32> to vector<1x512xf32>
    %430 = vector.broadcast %429 : vector<1x512xf32> to vector<8x512xf32>
    %431 = arith.mulf %427, %430 : vector<8x512xf32>
    %c15_340 = arith.constant 15 : index
    %c0_341 = arith.constant 0 : index
    %c0_342 = arith.constant 0 : index
    %432 = vector.load %arg5[%c15_340, %c0_341, %c0_342] : memref<27x4x8xbf16, #tpu.memory_space<vmem>>, vector<1x4x8xbf16>
    %433 = vector.shape_cast %432 : vector<1x4x8xbf16> to vector<4x8xbf16>
    %434 = arith.truncf %431 : vector<8x512xf32> to vector<8x512xbf16>
    %cst_343 = arith.constant dense<0.000000e+00> : vector<4x512xf32>
    %435 = tpu.matmul %433, %434, %cst_343 {dimension_numbers = #tpu.dot_dimension_numbers<[1], [0], [0], [1], [0, 0, 1, 1], [], []>} : vector<4x8xbf16>, vector<8x512xbf16>, vector<4x512xf32> -> vector<4x512xf32>
    %436 = arith.addf %426, %435 : vector<4x512xf32>
    %c0_344 = arith.constant 0 : index
    %c136_345 = arith.constant 136 : index
    %437 = vector.load %arg9[%c0_344, %c136_345] : memref<8x768xf32, #tpu.memory_space<vmem>>, vector<8x512xf32>
    %c16_346 = arith.constant 16 : index
    %c0_347 = arith.constant 0 : index
    %c0_348 = arith.constant 0 : index
    %438 = vector.load %arg2[%c16_346, %c0_347, %c0_348] : memref<27x1x512xf32, #tpu.memory_space<vmem>>, vector<1x1x512xf32>
    %439 = vector.shape_cast %438 : vector<1x1x512xf32> to vector<1x512xf32>
    %440 = vector.broadcast %439 : vector<1x512xf32> to vector<8x512xf32>
    %441 = arith.mulf %437, %440 : vector<8x512xf32>
    %c16_349 = arith.constant 16 : index
    %c0_350 = arith.constant 0 : index
    %c0_351 = arith.constant 0 : index
    %442 = vector.load %arg5[%c16_349, %c0_350, %c0_351] : memref<27x4x8xbf16, #tpu.memory_space<vmem>>, vector<1x4x8xbf16>
    %443 = vector.shape_cast %442 : vector<1x4x8xbf16> to vector<4x8xbf16>
    %444 = arith.truncf %441 : vector<8x512xf32> to vector<8x512xbf16>
    %cst_352 = arith.constant dense<0.000000e+00> : vector<4x512xf32>
    %445 = tpu.matmul %443, %444, %cst_352 {dimension_numbers = #tpu.dot_dimension_numbers<[1], [0], [0], [1], [0, 0, 1, 1], [], []>} : vector<4x8xbf16>, vector<8x512xbf16>, vector<4x512xf32> -> vector<4x512xf32>
    %446 = arith.addf %436, %445 : vector<4x512xf32>
    %c0_353 = arith.constant 0 : index
    %c137_354 = arith.constant 137 : index
    %447 = vector.load %arg9[%c0_353, %c137_354] : memref<8x768xf32, #tpu.memory_space<vmem>>, vector<8x512xf32>
    %c17_355 = arith.constant 17 : index
    %c0_356 = arith.constant 0 : index
    %c0_357 = arith.constant 0 : index
    %448 = vector.load %arg2[%c17_355, %c0_356, %c0_357] : memref<27x1x512xf32, #tpu.memory_space<vmem>>, vector<1x1x512xf32>
    %449 = vector.shape_cast %448 : vector<1x1x512xf32> to vector<1x512xf32>
    %450 = vector.broadcast %449 : vector<1x512xf32> to vector<8x512xf32>
    %451 = arith.mulf %447, %450 : vector<8x512xf32>
    %c17_358 = arith.constant 17 : index
    %c0_359 = arith.constant 0 : index
    %c0_360 = arith.constant 0 : index
    %452 = vector.load %arg5[%c17_358, %c0_359, %c0_360] : memref<27x4x8xbf16, #tpu.memory_space<vmem>>, vector<1x4x8xbf16>
    %453 = vector.shape_cast %452 : vector<1x4x8xbf16> to vector<4x8xbf16>
    %454 = arith.truncf %451 : vector<8x512xf32> to vector<8x512xbf16>
    %cst_361 = arith.constant dense<0.000000e+00> : vector<4x512xf32>
    %455 = tpu.matmul %453, %454, %cst_361 {dimension_numbers = #tpu.dot_dimension_numbers<[1], [0], [0], [1], [0, 0, 1, 1], [], []>} : vector<4x8xbf16>, vector<8x512xbf16>, vector<4x512xf32> -> vector<4x512xf32>
    %456 = arith.addf %446, %455 : vector<4x512xf32>
    %c0_362 = arith.constant 0 : index
    %c183_363 = arith.constant 183 : index
    %457 = vector.load %arg9[%c0_362, %c183_363] : memref<8x768xf32, #tpu.memory_space<vmem>>, vector<8x512xf32>
    %c18_364 = arith.constant 18 : index
    %c0_365 = arith.constant 0 : index
    %c0_366 = arith.constant 0 : index
    %458 = vector.load %arg2[%c18_364, %c0_365, %c0_366] : memref<27x1x512xf32, #tpu.memory_space<vmem>>, vector<1x1x512xf32>
    %459 = vector.shape_cast %458 : vector<1x1x512xf32> to vector<1x512xf32>
    %460 = vector.broadcast %459 : vector<1x512xf32> to vector<8x512xf32>
    %461 = arith.mulf %457, %460 : vector<8x512xf32>
    %c18_367 = arith.constant 18 : index
    %c0_368 = arith.constant 0 : index
    %c0_369 = arith.constant 0 : index
    %462 = vector.load %arg5[%c18_367, %c0_368, %c0_369] : memref<27x4x8xbf16, #tpu.memory_space<vmem>>, vector<1x4x8xbf16>
    %463 = vector.shape_cast %462 : vector<1x4x8xbf16> to vector<4x8xbf16>
    %464 = arith.truncf %461 : vector<8x512xf32> to vector<8x512xbf16>
    %cst_370 = arith.constant dense<0.000000e+00> : vector<4x512xf32>
    %465 = tpu.matmul %463, %464, %cst_370 {dimension_numbers = #tpu.dot_dimension_numbers<[1], [0], [0], [1], [0, 0, 1, 1], [], []>} : vector<4x8xbf16>, vector<8x512xbf16>, vector<4x512xf32> -> vector<4x512xf32>
    %466 = arith.addf %456, %465 : vector<4x512xf32>
    %c0_371 = arith.constant 0 : index
    %c184_372 = arith.constant 184 : index
    %467 = vector.load %arg9[%c0_371, %c184_372] : memref<8x768xf32, #tpu.memory_space<vmem>>, vector<8x512xf32>
    %c19_373 = arith.constant 19 : index
    %c0_374 = arith.constant 0 : index
    %c0_375 = arith.constant 0 : index
    %468 = vector.load %arg2[%c19_373, %c0_374, %c0_375] : memref<27x1x512xf32, #tpu.memory_space<vmem>>, vector<1x1x512xf32>
    %469 = vector.shape_cast %468 : vector<1x1x512xf32> to vector<1x512xf32>
    %470 = vector.broadcast %469 : vector<1x512xf32> to vector<8x512xf32>
    %471 = arith.mulf %467, %470 : vector<8x512xf32>
    %c19_376 = arith.constant 19 : index
    %c0_377 = arith.constant 0 : index
    %c0_378 = arith.constant 0 : index
    %472 = vector.load %arg5[%c19_376, %c0_377, %c0_378] : memref<27x4x8xbf16, #tpu.memory_space<vmem>>, vector<1x4x8xbf16>
    %473 = vector.shape_cast %472 : vector<1x4x8xbf16> to vector<4x8xbf16>
    %474 = arith.truncf %471 : vector<8x512xf32> to vector<8x512xbf16>
    %cst_379 = arith.constant dense<0.000000e+00> : vector<4x512xf32>
    %475 = tpu.matmul %473, %474, %cst_379 {dimension_numbers = #tpu.dot_dimension_numbers<[1], [0], [0], [1], [0, 0, 1, 1], [], []>} : vector<4x8xbf16>, vector<8x512xbf16>, vector<4x512xf32> -> vector<4x512xf32>
    %476 = arith.addf %466, %475 : vector<4x512xf32>
    %c0_380 = arith.constant 0 : index
    %c185_381 = arith.constant 185 : index
    %477 = vector.load %arg9[%c0_380, %c185_381] : memref<8x768xf32, #tpu.memory_space<vmem>>, vector<8x512xf32>
    %c20_382 = arith.constant 20 : index
    %c0_383 = arith.constant 0 : index
    %c0_384 = arith.constant 0 : index
    %478 = vector.load %arg2[%c20_382, %c0_383, %c0_384] : memref<27x1x512xf32, #tpu.memory_space<vmem>>, vector<1x1x512xf32>
    %479 = vector.shape_cast %478 : vector<1x1x512xf32> to vector<1x512xf32>
    %480 = vector.broadcast %479 : vector<1x512xf32> to vector<8x512xf32>
    %481 = arith.mulf %477, %480 : vector<8x512xf32>
    %c20_385 = arith.constant 20 : index
    %c0_386 = arith.constant 0 : index
    %c0_387 = arith.constant 0 : index
    %482 = vector.load %arg5[%c20_385, %c0_386, %c0_387] : memref<27x4x8xbf16, #tpu.memory_space<vmem>>, vector<1x4x8xbf16>
    %483 = vector.shape_cast %482 : vector<1x4x8xbf16> to vector<4x8xbf16>
    %484 = arith.truncf %481 : vector<8x512xf32> to vector<8x512xbf16>
    %cst_388 = arith.constant dense<0.000000e+00> : vector<4x512xf32>
    %485 = tpu.matmul %483, %484, %cst_388 {dimension_numbers = #tpu.dot_dimension_numbers<[1], [0], [0], [1], [0, 0, 1, 1], [], []>} : vector<4x8xbf16>, vector<8x512xbf16>, vector<4x512xf32> -> vector<4x512xf32>
    %486 = arith.addf %476, %485 : vector<4x512xf32>
    %c0_389 = arith.constant 0 : index
    %c191_390 = arith.constant 191 : index
    %487 = vector.load %arg9[%c0_389, %c191_390] : memref<8x768xf32, #tpu.memory_space<vmem>>, vector<8x512xf32>
    %c21_391 = arith.constant 21 : index
    %c0_392 = arith.constant 0 : index
    %c0_393 = arith.constant 0 : index
    %488 = vector.load %arg2[%c21_391, %c0_392, %c0_393] : memref<27x1x512xf32, #tpu.memory_space<vmem>>, vector<1x1x512xf32>
    %489 = vector.shape_cast %488 : vector<1x1x512xf32> to vector<1x512xf32>
    %490 = vector.broadcast %489 : vector<1x512xf32> to vector<8x512xf32>
    %491 = arith.mulf %487, %490 : vector<8x512xf32>
    %c21_394 = arith.constant 21 : index
    %c0_395 = arith.constant 0 : index
    %c0_396 = arith.constant 0 : index
    %492 = vector.load %arg5[%c21_394, %c0_395, %c0_396] : memref<27x4x8xbf16, #tpu.memory_space<vmem>>, vector<1x4x8xbf16>
    %493 = vector.shape_cast %492 : vector<1x4x8xbf16> to vector<4x8xbf16>
    %494 = arith.truncf %491 : vector<8x512xf32> to vector<8x512xbf16>
    %cst_397 = arith.constant dense<0.000000e+00> : vector<4x512xf32>
    %495 = tpu.matmul %493, %494, %cst_397 {dimension_numbers = #tpu.dot_dimension_numbers<[1], [0], [0], [1], [0, 0, 1, 1], [], []>} : vector<4x8xbf16>, vector<8x512xbf16>, vector<4x512xf32> -> vector<4x512xf32>
    %496 = arith.addf %486, %495 : vector<4x512xf32>
    %c0_398 = arith.constant 0 : index
    %c192_399 = arith.constant 192 : index
    %497 = vector.load %arg9[%c0_398, %c192_399] : memref<8x768xf32, #tpu.memory_space<vmem>>, vector<8x512xf32>
    %c22_400 = arith.constant 22 : index
    %c0_401 = arith.constant 0 : index
    %c0_402 = arith.constant 0 : index
    %498 = vector.load %arg2[%c22_400, %c0_401, %c0_402] : memref<27x1x512xf32, #tpu.memory_space<vmem>>, vector<1x1x512xf32>
    %499 = vector.shape_cast %498 : vector<1x1x512xf32> to vector<1x512xf32>
    %500 = vector.broadcast %499 : vector<1x512xf32> to vector<8x512xf32>
    %501 = arith.mulf %497, %500 : vector<8x512xf32>
    %c22_403 = arith.constant 22 : index
    %c0_404 = arith.constant 0 : index
    %c0_405 = arith.constant 0 : index
    %502 = vector.load %arg5[%c22_403, %c0_404, %c0_405] : memref<27x4x8xbf16, #tpu.memory_space<vmem>>, vector<1x4x8xbf16>
    %503 = vector.shape_cast %502 : vector<1x4x8xbf16> to vector<4x8xbf16>
    %504 = arith.truncf %501 : vector<8x512xf32> to vector<8x512xbf16>
    %cst_406 = arith.constant dense<0.000000e+00> : vector<4x512xf32>
    %505 = tpu.matmul %503, %504, %cst_406 {dimension_numbers = #tpu.dot_dimension_numbers<[1], [0], [0], [1], [0, 0, 1, 1], [], []>} : vector<4x8xbf16>, vector<8x512xbf16>, vector<4x512xf32> -> vector<4x512xf32>
    %506 = arith.addf %496, %505 : vector<4x512xf32>
    %c0_407 = arith.constant 0 : index
    %c193_408 = arith.constant 193 : index
    %507 = vector.load %arg9[%c0_407, %c193_408] : memref<8x768xf32, #tpu.memory_space<vmem>>, vector<8x512xf32>
    %c23_409 = arith.constant 23 : index
    %c0_410 = arith.constant 0 : index
    %c0_411 = arith.constant 0 : index
    %508 = vector.load %arg2[%c23_409, %c0_410, %c0_411] : memref<27x1x512xf32, #tpu.memory_space<vmem>>, vector<1x1x512xf32>
    %509 = vector.shape_cast %508 : vector<1x1x512xf32> to vector<1x512xf32>
    %510 = vector.broadcast %509 : vector<1x512xf32> to vector<8x512xf32>
    %511 = arith.mulf %507, %510 : vector<8x512xf32>
    %c23_412 = arith.constant 23 : index
    %c0_413 = arith.constant 0 : index
    %c0_414 = arith.constant 0 : index
    %512 = vector.load %arg5[%c23_412, %c0_413, %c0_414] : memref<27x4x8xbf16, #tpu.memory_space<vmem>>, vector<1x4x8xbf16>
    %513 = vector.shape_cast %512 : vector<1x4x8xbf16> to vector<4x8xbf16>
    %514 = arith.truncf %511 : vector<8x512xf32> to vector<8x512xbf16>
    %cst_415 = arith.constant dense<0.000000e+00> : vector<4x512xf32>
    %515 = tpu.matmul %513, %514, %cst_415 {dimension_numbers = #tpu.dot_dimension_numbers<[1], [0], [0], [1], [0, 0, 1, 1], [], []>} : vector<4x8xbf16>, vector<8x512xbf16>, vector<4x512xf32> -> vector<4x512xf32>
    %516 = arith.addf %506, %515 : vector<4x512xf32>
    %c0_416 = arith.constant 0 : index
    %c199_417 = arith.constant 199 : index
    %517 = vector.load %arg9[%c0_416, %c199_417] : memref<8x768xf32, #tpu.memory_space<vmem>>, vector<8x512xf32>
    %c24_418 = arith.constant 24 : index
    %c0_419 = arith.constant 0 : index
    %c0_420 = arith.constant 0 : index
    %518 = vector.load %arg2[%c24_418, %c0_419, %c0_420] : memref<27x1x512xf32, #tpu.memory_space<vmem>>, vector<1x1x512xf32>
    %519 = vector.shape_cast %518 : vector<1x1x512xf32> to vector<1x512xf32>
    %520 = vector.broadcast %519 : vector<1x512xf32> to vector<8x512xf32>
    %521 = arith.mulf %517, %520 : vector<8x512xf32>
    %c24_421 = arith.constant 24 : index
    %c0_422 = arith.constant 0 : index
    %c0_423 = arith.constant 0 : index
    %522 = vector.load %arg5[%c24_421, %c0_422, %c0_423] : memref<27x4x8xbf16, #tpu.memory_space<vmem>>, vector<1x4x8xbf16>
    %523 = vector.shape_cast %522 : vector<1x4x8xbf16> to vector<4x8xbf16>
    %524 = arith.truncf %521 : vector<8x512xf32> to vector<8x512xbf16>
    %cst_424 = arith.constant dense<0.000000e+00> : vector<4x512xf32>
    %525 = tpu.matmul %523, %524, %cst_424 {dimension_numbers = #tpu.dot_dimension_numbers<[1], [0], [0], [1], [0, 0, 1, 1], [], []>} : vector<4x8xbf16>, vector<8x512xbf16>, vector<4x512xf32> -> vector<4x512xf32>
    %526 = arith.addf %516, %525 : vector<4x512xf32>
    %c0_425 = arith.constant 0 : index
    %c200_426 = arith.constant 200 : index
    %527 = vector.load %arg9[%c0_425, %c200_426] : memref<8x768xf32, #tpu.memory_space<vmem>>, vector<8x512xf32>
    %c25_427 = arith.constant 25 : index
    %c0_428 = arith.constant 0 : index
    %c0_429 = arith.constant 0 : index
    %528 = vector.load %arg2[%c25_427, %c0_428, %c0_429] : memref<27x1x512xf32, #tpu.memory_space<vmem>>, vector<1x1x512xf32>
    %529 = vector.shape_cast %528 : vector<1x1x512xf32> to vector<1x512xf32>
    %530 = vector.broadcast %529 : vector<1x512xf32> to vector<8x512xf32>
    %531 = arith.mulf %527, %530 : vector<8x512xf32>
    %c25_430 = arith.constant 25 : index
    %c0_431 = arith.constant 0 : index
    %c0_432 = arith.constant 0 : index
    %532 = vector.load %arg5[%c25_430, %c0_431, %c0_432] : memref<27x4x8xbf16, #tpu.memory_space<vmem>>, vector<1x4x8xbf16>
    %533 = vector.shape_cast %532 : vector<1x4x8xbf16> to vector<4x8xbf16>
    %534 = arith.truncf %531 : vector<8x512xf32> to vector<8x512xbf16>
    %cst_433 = arith.constant dense<0.000000e+00> : vector<4x512xf32>
    %535 = tpu.matmul %533, %534, %cst_433 {dimension_numbers = #tpu.dot_dimension_numbers<[1], [0], [0], [1], [0, 0, 1, 1], [], []>} : vector<4x8xbf16>, vector<8x512xbf16>, vector<4x512xf32> -> vector<4x512xf32>
    %536 = arith.addf %526, %535 : vector<4x512xf32>
    %c0_434 = arith.constant 0 : index
    %c201_435 = arith.constant 201 : index
    %537 = vector.load %arg9[%c0_434, %c201_435] : memref<8x768xf32, #tpu.memory_space<vmem>>, vector<8x512xf32>
    %c26_436 = arith.constant 26 : index
    %c0_437 = arith.constant 0 : index
    %c0_438 = arith.constant 0 : index
    %538 = vector.load %arg2[%c26_436, %c0_437, %c0_438] : memref<27x1x512xf32, #tpu.memory_space<vmem>>, vector<1x1x512xf32>
    %539 = vector.shape_cast %538 : vector<1x1x512xf32> to vector<1x512xf32>
    %540 = vector.broadcast %539 : vector<1x512xf32> to vector<8x512xf32>
    %541 = arith.mulf %537, %540 : vector<8x512xf32>
    %c26_439 = arith.constant 26 : index
    %c0_440 = arith.constant 0 : index
    %c0_441 = arith.constant 0 : index
    %542 = vector.load %arg5[%c26_439, %c0_440, %c0_441] : memref<27x4x8xbf16, #tpu.memory_space<vmem>>, vector<1x4x8xbf16>
    %543 = vector.shape_cast %542 : vector<1x4x8xbf16> to vector<4x8xbf16>
    %544 = arith.truncf %541 : vector<8x512xf32> to vector<8x512xbf16>
    %cst_442 = arith.constant dense<0.000000e+00> : vector<4x512xf32>
    %545 = tpu.matmul %543, %544, %cst_442 {dimension_numbers = #tpu.dot_dimension_numbers<[1], [0], [0], [1], [0, 0, 1, 1], [], []>} : vector<4x8xbf16>, vector<8x512xbf16>, vector<4x512xf32> -> vector<4x512xf32>
    %546 = arith.addf %536, %545 : vector<4x512xf32>
    %c0_443 = arith.constant 0 : index
    %c0_444 = arith.constant 0 : index
    %547 = vector.load %arg6[%c0_443, %c0_444] : memref<4x1xf32, #tpu.memory_space<vmem>>, vector<4x1xf32>
    %548 = vector.broadcast %547 : vector<4x1xf32> to vector<4x512xf32>
    %549 = arith.addf %546, %548 : vector<4x512xf32>
    %cst_445 = arith.constant 0.000000e+00 : f32
    %550 = vector.broadcast %cst_445 : f32 to vector<4x512xf32>
    %551 = arith.maximumf %549, %550 : vector<4x512xf32>
    %c0_446 = arith.constant 0 : index
    %c0_447 = arith.constant 0 : index
    %c0_448 = arith.constant 0 : index
    %552 = vector.load %arg7[%c0_446, %c0_447, %c0_448] : memref<1x4x512xf32, #tpu.memory_space<vmem>>, vector<1x4x512xf32>
    %553 = vector.shape_cast %552 : vector<1x4x512xf32> to vector<4x512xf32>
    %554 = vector.shape_cast %551 : vector<4x512xf32> to vector<1x4x512xf32>
    tpu.vector_store %arg7[%c0_446, %c0_447, %c0_448], %554 {strides = array<i32>} : memref<1x4x512xf32, #tpu.memory_space<vmem>>, vector<1x4x512xf32>,
    return
  }
  func.func @transform_0(%arg0: i32) -> (i32, i32, i32) {
    %c0_i32 = arith.constant 0 : i32
    %c0_i32_0 = arith.constant 0 : i32
    %c0_i32_1 = arith.constant 0 : i32
    return %arg0, %c0_i32, %c0_i32_0 : i32, i32, i32
  }
  func.func @transform_1(%arg0: i32) -> (i32, i32, i32) {
    %c0_i32 = arith.constant 0 : i32
    %c0_i32_0 = arith.constant 0 : i32
    %c0_i32_1 = arith.constant 0 : i32
    %c0_i32_2 = arith.constant 0 : i32
    return %c0_i32, %c0_i32_0, %c0_i32_1 : i32, i32, i32
  }
  func.func @transform_2(%arg0: i32) -> (i32, i32, i32) {
    %c0_i32 = arith.constant 0 : i32
    %c0_i32_0 = arith.constant 0 : i32
    %c0_i32_1 = arith.constant 0 : i32
    %c0_i32_2 = arith.constant 0 : i32
    return %c0_i32, %c0_i32_0, %c0_i32_1 : i32, i32, i32
  }
  func.func @transform_3(%arg0: i32) -> (i32, i32) {
    %c0_i32 = arith.constant 0 : i32
    %c0_i32_0 = arith.constant 0 : i32
    %c0_i32_1 = arith.constant 0 : i32
    return %c0_i32, %c0_i32_0 : i32, i32
  }
  func.func @transform_4(%arg0: i32) -> (i32, i32, i32) {
    %c0_i32 = arith.constant 0 : i32
    %c0_i32_0 = arith.constant 0 : i32
    %c0_i32_1 = arith.constant 0 : i32
    %c0_i32_2 = arith.constant 0 : i32
    return %c0_i32, %c0_i32_0, %c0_i32_1 : i32, i32, i32
  }
  func.func @transform_5(%arg0: i32) -> (i32, i32) {
    %c0_i32 = arith.constant 0 : i32
    %c0_i32_0 = arith.constant 0 : i32
    %c0_i32_1 = arith.constant 0 : i32
    return %c0_i32, %c0_i32_0 : i32, i32
  }
  func.func @transform_6(%arg0: i32) -> (i32, i32, i32) {
    %c0_i32 = arith.constant 0 : i32
    %c0_i32_0 = arith.constant 0 : i32
    %c0_i32_1 = arith.constant 0 : i32
    return %arg0, %c0_i32, %c0_i32_0 : i32, i32, i32
  }
}

</mosaic_0001>

<bundles_post_ra>
// kernel: conv_block3d_forward.1
= control target key start
LH: loop header
LB: loop body
LE: loop exit
PB: predicated region body
PF: predicated region fallthrough
CT: control target
= control target key end

     0   :  { %s9716_s21 = smov 0   ;;  %s12299_s0 = inlined_call_operand.vmem [shape: f32[2,4,512], index: 0, kind: input, shape index: {}]   ;;  %s12300_s1 = inlined_call_operand.vmem [shape: f32[27,1,512], index: 1, kind: input, shape index: {}]   ;;  %s12301_s2 = inlined_call_operand.vmem [shape: bf16[27,8,4], index: 2, kind: input, shape index: {}]   ;;  %s12302_s3 = inlined_call_operand.vmem [shape: f32[8,1], index: 3, kind: input, shape index: {}]   ;;  %s12303_s4 = inlined_call_operand.vmem [shape: bf16[27,4,8], index: 4, kind: input, shape index: {}]   ;;  %s12304_s5 = inlined_call_operand.vmem [shape: f32[4,1], index: 5, kind: input, shape index: {}]   ;;  %s12305_s6 = inlined_call_operand.vmem [shape: f32[2,4,512], index: 6, kind: output, shape index: {}]  }
   0x1 LB: > { %s9284_s22 = sadd.s32 4294967295, %s9660_s21   ;;  %p9288_p0 = scmp.ge.s32.totalorder %s9660_s21, 1  ;;  %s9660_s21 = sphi %s9716_s21, %s16_s21  }
   0x2   : > { %p212_p1 = scmp.lt.s32.totalorder %s9660_s21, 3 }
   0x4   : > { %p213_p2 = pnand %p9288_p0, %p212_p1 }
   0x5   : > { %v284_v0 = vlaneseq (!%p213_p2)  ;;  %v9293_v2 = vld [vmem:[%s12300_s1 + $0x4] sm:$0xf] (!%p213_p2)  ;;  %v9662_v3 = vmov (!%p213_p2), 0.0   ;;  %p242_p3 = scmp.lt.s32.totalorder (!%p213_p2), %s9284_s22, 1  ;;  %s9663_s25 = smov (!%p213_p2), 56   ;;  %vm355_vm0 = vcmask (!%p213_p2), 457728  }
   0x6   : > { %216 = sbr.rel (%p213_p2) target bundleno = 1609 (0x649), region = 44  ;;  %253 = vst [vmem:[#allocation2] sm:$0xff] (!%p213_p2), %v9662_v3  ;;  %254 = vst [vmem:[#allocation2 + $0x8] sm:$0xff] (!%p213_p2), %v9662_v3  ;;  %v282_v12 = vld [vmem:[%s12300_s1] sm:$0xf] (!%p213_p2)  ;;  %s9664_s8 = smov (!%p213_p2), 55  }
   0x7   : > { %v285_v1 = vshrl.u32 (!%p213_p2), %v284_v0, 7  ;;  %255 = vst [vmem:[#allocation2 + $0x10] sm:$0xff] (!%p213_p2), %v9662_v3  ;;  %256 = vst [vmem:[#allocation2 + $0x18] sm:$0xff] (!%p213_p2), %v9662_v3  ;;  %v9303_v19 = vld [vmem:[%s12300_s1 + $0x8] sm:$0xf] (!%p213_p2)  ;;  %s9665_s11 = smov (!%p213_p2), 57  }
   0x8   : > { %257 = vst [vmem:[#allocation2 + $0x20] sm:$0xff] (!%p213_p2), %v9662_v3  ;;  %258 = vst [vmem:[#allocation2 + $0x28] sm:$0xff] (!%p213_p2), %v9662_v3  ;;  %v9309_v26 = vld [vmem:[%s12300_s1 + $0xc] sm:$0xf] (!%p213_p2)  ;;  %s9666_s14 = smov (!%p213_p2), 63   ;;  %s9667_s17 = smov (!%p213_p2), 64  }
   0x9   : > { %v9727_v4 = vsub.s32 (!%p213_p2), 2, %v285_v1  ;;  %v9729_v5 = vsub.s32 (!%p213_p2), 0, %v285_v1  ;;  %v9731_v6 = vsub.s32 (!%p213_p2), 3, %v285_v1  ;;  %v9733_v7 = vsub.s32 (!%p213_p2), 1, %v285_v1  ;;  %v9315_v31 = vld [vmem:[%s12300_s1 + $0x10] sm:$0xf] (!%p213_p2) }
   0xa   : > { %v9321_v36 = vld [vmem:[%s12300_s1 + $0x14] sm:$0xf] (!%p213_p2)  ;;  %s9668_s20 = smov (!%p213_p2), 65   ;;  %v9327_v41 = vld [vmem:[%s12300_s1 + $0x18] sm:$0xf] (!%p213_p2)  ;;  %s9669_s26 = smov (!%p213_p2), 71  }
   0xb   : > { %v342_v8 = vrot.slane (!%p213_p2), %v9293_v2, %v9727_v4  ;;  %v334_v9 = vrot.slane (!%p213_p2), %v9293_v2, %v9729_v5  ;;  %v346_v10 = vrot.slane (!%p213_p2), %v9293_v2, %v9731_v6  ;;  %v338_v11 = vrot.slane (!%p213_p2), %v9293_v2, %v9733_v7  ;;  %v9333_v46 = vld [vmem:[%s12300_s1 + $0x1c] sm:$0xf] (!%p213_p2)  ;;  %s9670_s30 = smov (!%p213_p2), 72   ;;  %v9339_v51 = vld [vmem:[%s12300_s1 + $0x20] sm:$0xf] (!%p213_p2)  ;;  %s9671_s10 = smov (!%p213_p2), 73  }
   0xc   : > { %v291_v13 = vrot.slane (!%p213_p2), %v282_v12, %v9733_v7  ;;  %v287_v14 = vrot.slane (!%p213_p2), %v282_v12, %v9729_v5  ;;  %v299_v17 = vrot.slane (!%p213_p2), %v282_v12, %v9731_v6  ;;  %v295_v18 = vrot.slane (!%p213_p2), %v282_v12, %v9727_v4  ;;  %v9345_v56 = vld [vmem:[%s12300_s1 + $0x24] sm:$0xf] (!%p213_p2)  ;;  %s9672_s15 = smov (!%p213_p2), 119   ;;  %v9351_v61 = vld [vmem:[%s12300_s1 + $0x28] sm:$0xf] (!%p213_p2)  ;;  %s9673_s19 = smov (!%p213_p2), 120  }
   0xd   : > { %351 = vrot.lane.b32.xlu1 %v342_v8, %s9663_s25  ;;  %347 = vrot.lane.b32.xlu0 %v334_v9, %s9663_s25  ;;  %s12372_s22 = smov (!%p242_p3, %s9284_s22), 1  ;;  %v622_v22 = vrot.slane %v9303_v19, %v9733_v7  ;;  %v618_v23 = vrot.slane %v9303_v19, %v9729_v5  ;;  %v630_v24 = vrot.slane %v9303_v19, %v9731_v6  ;;  %v9862_v2 = vld [vmem:[%s12300_s1 + $0x2c] sm:$0xf]  ;;  %s9674_s27 = smov 121   ;;  %v9872_v9 = vld [vmem:[#allocation2] sm:$0xf] }
   0xe   : > { %s12311_s28 = sshll.u32 %s12372_s22, 4  ;;  %v626_v25 = vrot.slane %v9303_v19, %v9727_v4  ;;  %v791_v27 = vrot.slane %v9309_v26, %v9733_v7  ;;  %v787_v28 = vrot.slane %v9309_v26, %v9729_v5  ;;  %v799_v29 = vrot.slane %v9309_v26, %v9731_v6  ;;  %s9676_s9 = smov 127  }
   0xf   : > { %s246_s7 = scalar_lea.vmem %s12299_s0, %s12311_s28  ;;  %v795_v30 = vrot.slane %v9309_v26, %v9727_v4  ;;  %v956_v32 = vrot.slane %v9315_v31, %v9729_v5  ;;  %v960_v33 = vrot.slane %v9315_v31, %v9733_v7  ;;  %v964_v34 = vrot.slane %v9315_v31, %v9727_v4  ;;  %s9677_s16 = smov 1  }
  0x10   : > { %v266_v15 = vld [vmem:[%s246_s7 + $0x8] sm:$0xff]  ;;  %v265_v16 = vld [vmem:[%s246_s7] sm:$0xff]  ;;  %v968_v35 = vrot.slane %v9315_v31, %v9731_v6  ;;  %v1125_v37 = vrot.slane %v9321_v36, %v9729_v5  ;;  %v1129_v38 = vrot.slane %v9321_v36, %v9733_v7  ;;  %v1133_v39 = vrot.slane %v9321_v36, %v9727_v4  ;;  %s9678_s24 = smov 7   ;;  %s9679_s12 = smov 8  }
  0x11   : > { %353 = vrot.lane.b32.xlu1 %v346_v10, %s9663_s25  ;;  %349 = vrot.lane.b32.xlu0 %v338_v11, %s9663_s25  ;;  %275 = vst [vmem:[#allocation2 + $0x18] sm:$0xf] %v266_v15  ;;  %273 = vst [vmem:[#allocation2 + $0x8] sm:$0xf] %v265_v16  ;;  %v270_v20 = vcombine.high %v266_v15, %v266_v15  ;;  %v269_v21 = vcombine.high %v265_v16, %v265_v16  ;;  %vm308_vm1 = vcmask 449536   ;;  %vm639_vm2 = vcmask 465920  }
  0x12   : > { %v1137_v40 = vrot.slane %v9321_v36, %v9731_v6  ;;  %v1294_v42 = vrot.slane %v9327_v41, %v9729_v5  ;;  %v1298_v43 = vrot.slane %v9327_v41, %v9733_v7  ;;  %v1302_v44 = vrot.slane %v9327_v41, %v9727_v4  ;;  %s9680_s13 = smov 9  }
  0x13   : > { %276 = vst [vmem:[#allocation2 + $0x20] sm:$0xf] %v270_v20  ;;  %274 = vst [vmem:[#allocation2 + $0x10] sm:$0xf] %v269_v21  ;;  %v1306_v45 = vrot.slane %v9327_v41, %v9731_v6  ;;  %v1463_v47 = vrot.slane %v9333_v46, %v9729_v5  ;;  %v1467_v48 = vrot.slane %v9333_v46, %v9733_v7  ;;  %vm808_vm3 = vcmask 515072  }
  0x14   : > { %v1471_v49 = vrot.slane %v9333_v46, %v9727_v4  ;;  %v1475_v50 = vrot.slane %v9333_v46, %v9731_v6  ;;  %v1636_v52 = vrot.slane %v9339_v51, %v9733_v7  ;;  %v1632_v53 = vrot.slane %v9339_v51, %v9729_v5 }
  0x15   : > { %302 = vrot.lane.b32.xlu1 %v291_v13, %s9664_s8  ;;  %300 = vrot.lane.b32.xlu0 %v287_v14, %s9664_s8  ;;  %v1644_v54 = vrot.slane %v9339_v51, %v9731_v6  ;;  %v1640_v55 = vrot.slane %v9339_v51, %v9727_v4  ;;  %v1801_v57 = vrot.slane %v9345_v56, %v9729_v5  ;;  %vm977_vm4 = vcmask 523264  }
  0x16   : > { %v1805_v58 = vrot.slane %v9345_v56, %v9733_v7  ;;  %v1809_v59 = vrot.slane %v9345_v56, %v9727_v4  ;;  %v1813_v60 = vrot.slane %v9345_v56, %v9731_v6  ;;  %v1974_v62 = vrot.slane %v9351_v61, %v9733_v7 }
  0x17   : > { %v1970_v63 = vrot.slane %v9351_v61, %v9729_v5  ;;  %v1982_v0 = vrot.slane %v9351_v61, %v9731_v6  ;;  %v1978_v1 = vrot.slane %v9351_v61, %v9727_v4  ;;  %v2139_v3 = vrot.slane %v9862_v2, %v9729_v5 }
  0x18   : > { %v2143_v8 = vrot.slane %v9862_v2, %v9733_v7  ;;  %v9904_v51 = vld [vmem:[#allocation2 + $0x18] sm:$0xf]  ;;  %vm844_vm5 = vcmask 531456   ;;  %vm675_vm6 = vcmask 580608   ;;  %vm12307_vm7 = vcmask 588800  }
  0x19   : > { %306 = vrot.lane.b32.xlu1 %v299_v17, %s9664_s8  ;;  %304 = vrot.lane.b32.xlu0 %v295_v18, %s9664_s8  ;;  %vm12306_vm8 = vcmask 596992   ;;  %vm12308_vm9 = vcmask 973824   ;;  %vm1991_vm10 = vcmask 982016   ;;  %vm400_vm11 = vcmask 1041408  }
  0x1a   : > { %v9875_v13 = vld [vmem:[#allocation2 + $0x20] sm:$0xf]  ;;  %vm396_vm12 = vcmask 31744   ;;  %vm2160_vm13 = vcmask 990208   ;;  %vm2329_vm14 = vcmask 1039360   ;;  %vm2365_vm15 = vcmask 7168  }
  0x1d   : > { %633 = vrot.lane.b32.xlu1 %v622_v22, %s9665_s11  ;;  %631 = vrot.lane.b32.xlu0 %v618_v23, %s9665_s11 }
  0x21   : > { %637 = vrot.lane.b32.xlu1 %v630_v24, %s9665_s11  ;;  %635 = vrot.lane.b32.xlu0 %v626_v25, %s9665_s11 }
  0x25   : > { %802 = vrot.lane.b32.xlu1 %v791_v27, %s9666_s14  ;;  %800 = vrot.lane.b32.xlu0 %v787_v28, %s9666_s14 }
  0x29   : > { %806 = vrot.lane.b32.xlu1 %v799_v29, %s9666_s14  ;;  %804 = vrot.lane.b32.xlu0 %v795_v30, %s9666_s14 }
  0x2d   : > { %969 = vrot.lane.b32.xlu0 %v956_v32, %s9667_s17  ;;  %971 = vrot.lane.b32.xlu1 %v960_v33, %s9667_s17 }
  0x31   : > { %973 = vrot.lane.b32.xlu0 %v964_v34, %s9667_s17  ;;  %975 = vrot.lane.b32.xlu1 %v968_v35, %s9667_s17  ;;  %v9886_v34 = vld [vmem:[#allocation2 + $0x10] sm:$0xf] }
  0x35   : > { %1138 = vrot.lane.b32.xlu0 %v1125_v37, %s9668_s20  ;;  %1140 = vrot.lane.b32.xlu1 %v1129_v38, %s9668_s20 }
  0x39   : > { %1142 = vrot.lane.b32.xlu0 %v1133_v39, %s9668_s20  ;;  %1144 = vrot.lane.b32.xlu1 %v1137_v40, %s9668_s20 }
  0x3d   : > { %1307 = vrot.lane.b32.xlu0 %v1294_v42, %s9669_s26  ;;  %1309 = vrot.lane.b32.xlu1 %v1298_v43, %s9669_s26  ;;  %v9894_v42 = vld [vmem:[#allocation2 + $0x8] sm:$0xf] }
  0x41   : > { %1311 = vrot.lane.b32.xlu0 %v1302_v44, %s9669_s26  ;;  %1313 = vrot.lane.b32.xlu1 %v1306_v45, %s9669_s26 }
  0x45   : > { %1476 = vrot.lane.b32.xlu0 %v1463_v47, %s9670_s30  ;;  %1478 = vrot.lane.b32.xlu1 %v1467_v48, %s9670_s30 }
  0x49   : > { %1480 = vrot.lane.b32.xlu0 %v1471_v49, %s9670_s30  ;;  %1482 = vrot.lane.b32.xlu1 %v1475_v50, %s9670_s30  ;;  %v9675_v49 = vmov 0  }
  0x4a   : > { %445 = vmatprep.mubr.bf16.mxu0 %v9675_v49  ;;  %486 = vmatprep.mubr.bf16.mxu1 %v9675_v49 }
  0x4b   : > { %9642 = vset.pattern.permute.xlu0 %v9675_v49 }
  0x4d   : > { %1647 = vrot.lane.b32.xlu0 %v1636_v52, %s9671_s10  ;;  %1645 = vrot.lane.b32.xlu1 %v1632_v53, %s9671_s10 }
  0x51   : > { %1651 = vrot.lane.b32.xlu0 %v1644_v54, %s9671_s10  ;;  %1649 = vrot.lane.b32.xlu1 %v1640_v55, %s9671_s10 }
  0x55   : > { %1814 = vrot.lane.b32.xlu0 %v1801_v57, %s9672_s15  ;;  %1816 = vrot.lane.b32.xlu1 %v1805_v58, %s9672_s15 }
  0x59   : > { %1818 = vrot.lane.b32.xlu0 %v1809_v59, %s9672_s15  ;;  %1820 = vrot.lane.b32.xlu1 %v1813_v60, %s9672_s15 }
  0x5d   : > { %1985 = vrot.lane.b32.xlu0 %v1974_v62, %s9673_s19  ;;  %1983 = vrot.lane.b32.xlu1 %v1970_v63, %s9673_s19 }
  0x61   : > { %1989 = vrot.lane.b32.xlu0 %v1982_v0, %s9673_s19  ;;  %1987 = vrot.lane.b32.xlu1 %v1978_v1, %s9673_s19 }
  0x65   : > { %2152 = vrot.lane.b32.xlu0 %v2139_v3, %s9674_s27  ;;  %2154 = vrot.lane.b32.xlu1 %v2143_v8, %s9674_s27 }
  0x7f   : > { %v352_v10 = vpop.permute.xlu1 %351  ;;  %v348_v11 = vpop.permute.xlu0 %347 }
  0x80   : > { %v364_v12 = vmul.f32 %v348_v11, %v9872_v9 }
  0x82   : > { %v371_v14 = vpack.c.bf16 %v364_v12, %v364_v12 }
  0x83   : > { %v354_v15 = vpop.permute.xlu1 %353  ;;  %v350_v16 = vpop.permute.xlu0 %349 }
  0x84   : > { %v368_v17 = vmul.f32 %v354_v15, %v9875_v13  ;;  %381 = vrot.lane.b32.xlu0 %v371_v14, %s9670_s30  ;;  %v357_v31 = vsel %vm355_vm0, %v350_v16, %v352_v10  ;;  %v356_v46 = vsel %vm355_vm0, %v348_v11, %v350_v16  ;;  %v358_v56 = vsel %vm355_vm0, %v352_v10, %v354_v15 }
  0x85   : > { %v366_v37 = vmul.f32 %v357_v31, %v9886_v34  ;;  %v365_v54 = vmul.f32 %v356_v46, %v9894_v42  ;;  %v367_v61 = vmul.f32 %v358_v56, %v9904_v51 }
  0x86   : > { %v375_v18 = vpack.c.bf16 %v368_v17, %v368_v17 }
  0x87   : > { %v303_v19 = vpop.permute.xlu1 %302  ;;  %v301_v20 = vpop.permute.xlu0 %300  ;;  %v373_v44 = vpack.c.bf16 %v366_v37, %v366_v37  ;;  %v372_v59 = vpack.c.bf16 %v365_v54, %v365_v54  ;;  %v374_v3 = vpack.c.bf16 %v367_v61, %v367_v61 }
  0x88   : > { %v317_v21 = vmul.f32 %v301_v20, %v9872_v9  ;;  %389 = vrot.lane.b32.xlu0 %v375_v18, %s9670_s30  ;;  %v309_v38 = vsel %vm308_vm1, %v301_v20, %v303_v19 }
  0x89   : > { %v318_v45 = vmul.f32 %v309_v38, %v9894_v42 }
  0x8a   : > { %v323_v22 = vpack.c.bf16 %v317_v21, %v317_v21 }
  0x8b   : > { %v307_v23 = vpop.permute.xlu1 %306  ;;  %v305_v24 = vpop.permute.xlu0 %304  ;;  %v324_v53 = vpack.c.bf16 %v318_v45, %v318_v45 }
  0x8c   : > { %v321_v25 = vmul.f32 %v307_v23, %v9875_v13  ;;  %500 = vrot.lane.b32.xlu1 %v323_v22, %s9671_s10  ;;  %v311_v47 = vsel %vm308_vm1, %v305_v24, %v307_v23  ;;  %v310_v63 = vsel %vm308_vm1, %v303_v19, %v305_v24 }
  0x8d   : > { %v320_v55 = vmul.f32 %v311_v47, %v9904_v51  ;;  %v319_v11 = vmul.f32 %v310_v63, %v9886_v34 }
  0x8e   : > { %v327_v26 = vpack.c.bf16 %v321_v25, %v321_v25 }
  0x8f   : > { %v634_v27 = vpop.permute.xlu1 %633  ;;  %v632_v28 = vpop.permute.xlu0 %631  ;;  %v326_v60 = vpack.c.bf16 %v320_v55, %v320_v55  ;;  %v325_v16 = vpack.c.bf16 %v319_v11, %v319_v11 }
  0x90   : > { %v648_v29 = vmul.f32 %v632_v28, %v9872_v9  ;;  %508 = vrot.lane.b32.xlu1 %v327_v26, %s9671_s10  ;;  %v640_v12 = vsel %vm639_vm2, %v632_v28, %v634_v27  ;;  %v2147_v28 = vrot.slane %v9862_v2, %v9727_v4 }
  0x91   : > { %v649_v18 = vmul.f32 %v640_v12, %v9894_v42 }
  0x92   : > { %v655_v30 = vpack.c.bf16 %v648_v29, %v648_v29 }
  0x93   : > { %v638_v32 = vpop.permute.xlu1 %637  ;;  %v636_v33 = vpop.permute.xlu0 %635  ;;  %v656_v22 = vpack.c.bf16 %v649_v18, %v649_v18 }
  0x94   : > { %v652_v35 = vmul.f32 %v638_v32, %v9875_v13  ;;  %665 = vrot.lane.b32.xlu0 %v655_v30, %s9669_s26  ;;  %v641_v57 = vsel %vm639_vm2, %v634_v27, %v636_v33  ;;  %v642_v20 = vsel %vm639_vm2, %v636_v33, %v638_v32 }
  0x95   : > { %v650_v62 = vmul.f32 %v641_v57, %v9886_v34  ;;  %v651_v23 = vmul.f32 %v642_v20, %v9904_v51 }
  0x96   : > { %v659_v36 = vpack.c.bf16 %v652_v35, %v652_v35 }
  0x97   : > { %v803_v39 = vpop.permute.xlu1 %802  ;;  %v801_v40 = vpop.permute.xlu0 %800  ;;  %v657_v8 = vpack.c.bf16 %v650_v62, %v650_v62  ;;  %v658_v30 = vpack.c.bf16 %v651_v23, %v651_v23 }
  0x98   : > { %v817_v41 = vmul.f32 %v801_v40, %v9872_v9  ;;  %673 = vrot.lane.b32.xlu0 %v659_v36, %s9669_s26  ;;  %v809_v0 = vsel %vm808_vm3, %v801_v40, %v803_v39 }
  0x99   : > { %v818_v10 = vmul.f32 %v809_v0, %v9894_v42 }
  0x9a   : > { %v824_v43 = vpack.c.bf16 %v817_v41, %v817_v41  ;;  %v2151_v41 = vrot.slane %v9862_v2, %v9731_v6 }
  0x9b   : > { %v807_v48 = vpop.permute.xlu1 %806  ;;  %v805_v58 = vpop.permute.xlu0 %804  ;;  %v825_v15 = vpack.c.bf16 %v818_v10, %v818_v10 }
  0x9c   : > { %v821_v50 = vmul.f32 %v807_v48, %v9875_v13  ;;  %834 = vrot.lane.b32.xlu1 %v824_v43, %s9668_s20  ;;  %385 = vrot.lane.b32.xlu0 %v373_v44, %s9670_s30  ;;  %v811_v14 = vsel %vm808_vm3, %v805_v58, %v807_v48  ;;  %v810_v26 = vsel %vm808_vm3, %v803_v39, %v805_v58  ;;  %v9363_v48 = vld [vmem:[%s12300_s1 + $0x30] sm:$0xf] }
  0x9d   : > { %v820_v17 = vmul.f32 %v811_v14, %v9904_v51  ;;  %v819_v31 = vmul.f32 %v810_v26, %v9886_v34  ;;  %v2320_v58 = vrot.slane %v9363_v48, %v9731_v6  ;;  %v2316_v63 = vrot.slane %v9363_v48, %v9727_v4 }
  0x9e   : > { %v828_v52 = vpack.c.bf16 %v821_v50, %v821_v50 }
  0x9f   : > { %v970_v1 = vpop.permute.xlu0 %969  ;;  %v827_v21 = vpack.c.bf16 %v820_v17, %v820_v17  ;;  %v972_v24 = vpop.permute.xlu1 %971  ;;  %v826_v37 = vpack.c.bf16 %v819_v31, %v819_v31 }
  0xa0   : > { %842 = vrot.lane.b32.xlu1 %v828_v52, %s9668_s20  ;;  %502 = vrot.lane.b32.xlu0 %v324_v53, %s9671_s10  ;;  %v986_v27 = vmul.f32 %v970_v1, %v9872_v9  ;;  %v978_v38 = vsel %vm977_vm4, %v970_v1, %v972_v24  ;;  %v2312_v53 = vrot.slane %v9363_v48, %v9733_v7 }
  0xa1   : > { %v987_v44 = vmul.f32 %v978_v38, %v9894_v42 }
  0xa2   : > { %v993_v32 = vpack.c.bf16 %v986_v27, %v986_v27 }
  0xa3   : > { %v974_v19 = vpop.permute.xlu0 %973  ;;  %v976_v33 = vpop.permute.xlu1 %975  ;;  %v994_v50 = vpack.c.bf16 %v987_v44, %v987_v44 }
  0xa4   : > { %383 = vrot.lane.b32.xlu1 %v372_v59, %s9670_s30  ;;  %506 = vrot.lane.b32.xlu0 %v326_v60, %s9671_s10  ;;  %v979_v29 = vsel %vm977_vm4, %v972_v24, %v974_v19  ;;  %v990_v39 = vmul.f32 %v976_v33, %v9875_v13  ;;  %v980_v46 = vsel %vm977_vm4, %v974_v19, %v976_v33  ;;  %v9374_v33 = vld [vmem:[%s12300_s1 + $0x38] sm:$0xf] }
  0xa5   : > { %v988_v35 = vmul.f32 %v979_v29, %v9886_v34  ;;  %v989_v52 = vmul.f32 %v980_v46, %v9904_v51  ;;  %v2308_v59 = vrot.slane %v9363_v48, %v9729_v5  ;;  %v2593_v38 = vrot.slane %v9374_v33, %v9733_v7 }
  0xa6   : > { %v997_v47 = vpack.c.bf16 %v990_v39, %v990_v39  ;;  %v2589_v44 = vrot.slane %v9374_v33, %v9729_v5 }
  0xa7   : > { %v1139_v25 = vpop.permute.xlu0 %1138  ;;  %v995_v40 = vpack.c.bf16 %v988_v35, %v988_v35  ;;  %v1141_v43 = vpop.permute.xlu1 %1140  ;;  %v996_v56 = vpack.c.bf16 %v989_v52, %v989_v52 }
  0xa8   : > { %387 = vrot.lane.b32.xlu1 %v374_v3, %s9670_s30  ;;  %669 = vrot.lane.b32.xlu0 %v657_v8, %s9669_s26  ;;  %v1147_v55 = vsel %vm844_vm5, %v1139_v25, %v1141_v43  ;;  %v1155_v0 = vmul.f32 %v1139_v25, %v9872_v9 }
  0xa9   : > { %v1156_v60 = vmul.f32 %v1147_v55, %v9894_v42 }
  0xaa   : > { %v1162_v14 = vpack.c.bf16 %v1155_v0, %v1155_v0 }
  0xab   : > { %v1143_v36 = vpop.permute.xlu0 %1142  ;;  %v1145_v2 = vpop.permute.xlu1 %1144  ;;  %v1163_v1 = vpack.c.bf16 %v1156_v60, %v1156_v60 }
  0xac   : > { %836 = vrot.lane.b32.xlu0 %v825_v15, %s9668_s20  ;;  %504 = vrot.lane.b32.xlu1 %v325_v16, %s9671_s10  ;;  %v1149_v61 = vsel %vm844_vm5, %v1143_v36, %v1145_v2  ;;  %v1148_v10 = vsel %vm844_vm5, %v1141_v43, %v1143_v36  ;;  %v2601_v43 = vrot.slane %v9374_v33, %v9731_v6 }
  0xad   : > { %v1158_v3 = vmul.f32 %v1149_v61, %v9904_v51  ;;  %v1157_v17 = vmul.f32 %v1148_v10, %v9886_v34 }
  0xaf   : > { %v1308_v45 = vpop.permute.xlu0 %1307  ;;  %v1310_v57 = vpop.permute.xlu1 %1309  ;;  %v1165_v12 = vpack.c.bf16 %v1158_v3, %v1158_v3 }
  0xb0   : > { %840 = vrot.lane.b32.xlu0 %v827_v21, %s9668_s20  ;;  %667 = vrot.lane.b32.xlu1 %v656_v22, %s9669_s26  ;;  %v1324_v11 = vmul.f32 %v1308_v45, %v9872_v9  ;;  %v1159_v21 = vmul.f32 %v1145_v2, %v9875_v13  ;;  %v1164_v22 = vpack.c.bf16 %v1157_v17, %v1157_v17 }
  0xb1   : > { %v1316_v24 = vsel %vm675_vm6, %v1308_v45, %v1310_v57 }
  0xb2   : > { %v1331_v19 = vpack.c.bf16 %v1324_v11, %v1324_v11  ;;  %v1325_v29 = vmul.f32 %v1316_v24, %v9894_v42 }
  0xb3   : > { %v1312_v54 = vpop.permute.xlu0 %1311  ;;  %v1314_v8 = vpop.permute.xlu1 %1313 }
  0xb4   : > { %2156 = vrot.lane.b32.xlu0 %v2147_v28, %s9674_s27  ;;  %671 = vrot.lane.b32.xlu1 %v658_v30, %s9669_s26  ;;  %v1317_v16 = vsel %vm675_vm6, %v1310_v57, %v1312_v54  ;;  %v1328_v25 = vmul.f32 %v1314_v8, %v9875_v13  ;;  %v1166_v28 = vpack.c.bf16 %v1159_v21, %v1159_v21 }
  0xb5   : > { %v1326_v20 = vmul.f32 %v1317_v16, %v9886_v34  ;;  %v1318_v30 = vsel %vm675_vm6, %v1312_v54, %v1314_v8  ;;  %v1332_v35 = vpack.c.bf16 %v1325_v29, %v1325_v29 }
  0xb6   : > { %v1335_v31 = vpack.c.bf16 %v1328_v25, %v1328_v25  ;;  %v1327_v36 = vmul.f32 %v1318_v30, %v9904_v51 }
  0xb7   : > { %v1477_v62 = vpop.permute.xlu0 %1476  ;;  %v1479_v18 = vpop.permute.xlu1 %1478  ;;  %v1333_v26 = vpack.c.bf16 %v1326_v20, %v1326_v20 }
  0xb8   : > { %1003 = vrot.lane.b32.xlu0 %v993_v32, %s9667_s17  ;;  %838 = vrot.lane.b32.xlu1 %v826_v37, %s9668_s20  ;;  %v1334_v39 = vpack.c.bf16 %v1327_v36, %v1327_v36  ;;  %v1493_v52 = vmul.f32 %v1477_v62, %v9872_v9 }
  0xbb   : > { %v1481_v15 = vpop.permute.xlu0 %1480  ;;  %v1483_v27 = vpop.permute.xlu1 %1482 }
  0xbc   : > { %1007 = vrot.lane.b32.xlu0 %v995_v40, %s9667_s17  ;;  %2158 = vrot.lane.b32.xlu1 %v2151_v41, %s9674_s27  ;;  %v1485_v41 = vsel %vm12307_vm7, %v1477_v62, %v1479_v18  ;;  %v1486_v55 = vsel %vm12307_vm7, %v1479_v18, %v1481_v15 }
  0xbd   : > { %v1494_v46 = vmul.f32 %v1485_v41, %v9894_v42  ;;  %v1495_v60 = vmul.f32 %v1486_v55, %v9886_v34 }
  0xbf   : > { %v9981_v23 = vpop.permute.xlu0 %1647  ;;  %v1646_v37 = vpop.permute.xlu1 %1645  ;;  %v1501_v2 = vpack.c.bf16 %v1494_v46, %v1494_v46  ;;  %v1502_v0 = vpack.c.bf16 %v1495_v60, %v1495_v60 }
  0xc0   : > { %1011 = vrot.lane.b32.xlu0 %v997_v47, %s9667_s17  ;;  %1005 = vrot.lane.b32.xlu1 %v994_v50, %s9667_s17  ;;  %v1487_v47 = vsel %vm12307_vm7, %v1481_v15, %v1483_v27  ;;  %v2597_v50 = vrot.slane %v9374_v33, %v9727_v4  ;;  %v1662_v8 = vmul.f32 %v1646_v37, %v9872_v9 }
  0xc1   : > { %v1496_v54 = vmul.f32 %v1487_v47, %v9904_v51  ;;  %v1654_v18 = vsel %vm12306_vm8, %v1646_v37, %v9981_v23 }
  0xc2   : > { %v1669_v15 = vpack.c.bf16 %v1662_v8, %v1662_v8 }
  0xc3   : > { %v9991_v32 = vpop.permute.xlu0 %1651  ;;  %v1650_v45 = vpop.permute.xlu1 %1649 }
  0xc4   : > { %2323 = vrot.lane.b32.xlu0 %v2312_v53, %s9676_s9  ;;  %1009 = vrot.lane.b32.xlu1 %v996_v56, %s9667_s17  ;;  %v9380_v56 = vld [vmem:[%s12300_s1 + $0x3c] sm:$0xf]  ;;  %v1666_v21 = vmul.f32 %v9991_v32, %v9875_v13  ;;  %v1656_v25 = vsel %vm12306_vm8, %v1650_v45, %v9991_v32 }
  0xc5   : > { %v2758_v62 = vrot.slane %v9380_v56, %v9729_v5  ;;  %v2766_v3 = vrot.slane %v9380_v56, %v9727_v4  ;;  %v2770_v20 = vrot.slane %v9380_v56, %v9731_v6  ;;  %v1665_v29 = vmul.f32 %v1656_v25, %v9904_v51  ;;  %v9294_v25 = vld [vmem:[%s12301_s2 + $0x4] sm:$0xf] }
  0xc7   : > { %v10000_v40 = vpop.permute.xlu0 %1814  ;;  %v10015_v53 = vpop.permute.xlu1 %1816  ;;  %v1672_v32 = vpack.c.bf16 %v1665_v29, %v1665_v29 }
  0xc8   : > { %2327 = vrot.lane.b32.xlu0 %v2320_v58, %s9676_s9  ;;  %2321 = vrot.lane.b32.xlu1 %v2308_v59, %s9676_s9  ;;  %v1503_v58 = vpack.c.bf16 %v1496_v54, %v1496_v54  ;;  %v1500_v59 = vpack.c.bf16 %v1493_v52, %v1493_v52  ;;  %v10103_v54 = vld [vmem:[%s12300_s1 + $0x44] sm:$0xf] }
  0xcb   : > { %v10011_v48 = vpop.permute.xlu0 %1818  ;;  %v10029_v61 = vpop.permute.xlu1 %1820 }
  0xcc   : > { %1174 = vrot.lane.b32.xlu0 %v1163_v1, %s9666_s14  ;;  %2325 = vrot.lane.b32.xlu1 %v2316_v63, %s9676_s9  ;;  %v1497_v63 = vmul.f32 %v1483_v27, %v9875_v13  ;;  %v1673_v27 = vpack.c.bf16 %v1666_v21, %v1666_v21 }
  0xce   : > { %v1504_v11 = vpack.c.bf16 %v1497_v63, %v1497_v63  ;;  %v1835_v63 = vmul.f32 %v10029_v61, %v9875_v13 }
  0xcf   : > { %v10024_v57 = vpop.permute.xlu0 %1985  ;;  %v10039_v10 = vpop.permute.xlu1 %1983 }
  0xd0   : > { %1178 = vrot.lane.b32.xlu0 %v1165_v12, %s9666_s14  ;;  %1172 = vrot.lane.b32.xlu1 %v1162_v14, %s9666_s14  ;;  %v1655_v12 = vsel %vm12306_vm8, %v9981_v23, %v1650_v45  ;;  %v2762_v14 = vrot.slane %v9380_v56, %v9733_v7  ;;  %v9386_v23 = vld [vmem:[%s12300_s1 + $0x40] sm:$0xf]  ;;  %v1831_v45 = vmul.f32 %v10000_v40, %v9872_v9 }
  0xd1   : > { %v1664_v16 = vmul.f32 %v1655_v12, %v9886_v34  ;;  %v2939_v37 = vrot.slane %v9386_v23, %v9731_v6  ;;  %v1842_v12 = vpack.c.bf16 %v1835_v63, %v1835_v63 }
  0xd3   : > { %v10033_v1 = vpop.permute.xlu0 %1989  ;;  %v1671_v24 = vpack.c.bf16 %v1664_v16, %v1664_v16 }
  0xd4   : > { %1341 = vrot.lane.b32.xlu0 %v1331_v19, %s9665_s11  ;;  %1176 = vrot.lane.b32.xlu1 %v1164_v22, %s9666_s14  ;;  %v10051_v19 = vpop.permute.xlu1 %1987  ;;  %v1663_v22 = vmul.f32 %v1654_v18, %v9894_v42  ;;  %v3100_v18 = vrot.slane %v10103_v54, %v9733_v7  ;;  %v2004_v29 = vmul.f32 %v10033_v1, %v9875_v13 }
  0xd7   : > { %v10047_v17 = vpop.permute.xlu0 %2152 }
  0xd8   : > { %1345 = vrot.lane.b32.xlu0 %v1333_v26, %s9665_s11  ;;  %1180 = vrot.lane.b32.xlu1 %v1166_v28, %s9666_s14  ;;  %v1670_v28 = vpack.c.bf16 %v1663_v22, %v1663_v22  ;;  %v10067_v30 = vpop.permute.xlu1 %2154 }
  0xdc   : > { %1349 = vrot.lane.b32.xlu0 %v1335_v31, %s9665_s11  ;;  %1343 = vrot.lane.b32.xlu1 %v1332_v35, %s9665_s11  ;;  %v2931_v31 = vrot.slane %v9386_v23, %v9733_v7  ;;  %v1823_v35 = vsel %vm12308_vm9, %v10000_v40, %v10015_v53  ;;  %v1838_v40 = vpack.c.bf16 %v1831_v45, %v1831_v45  ;;  %v9398_v45 = vld [vmem:[%s12300_s1 + $0x48] sm:$0xf] }
  0xe0   : > { %2604 = vrot.lane.b32.xlu0 %v2593_v38, %s9677_s16  ;;  %1347 = vrot.lane.b32.xlu1 %v1334_v39, %s9665_s11  ;;  %v2927_v38 = vrot.slane %v9386_v23, %v9729_v5  ;;  %v1832_v39 = vmul.f32 %v1823_v35, %v9894_v42 }
  0xe2   : > { %v1839_v46 = vpack.c.bf16 %v1832_v39, %v1832_v39 }
  0xe4   : > { %2608 = vrot.lane.b32.xlu0 %v2601_v43, %s9677_s16  ;;  %2602 = vrot.lane.b32.xlu1 %v2589_v44, %s9677_s16  ;;  %v1825_v43 = vsel %vm12308_vm9, %v10011_v48, %v10029_v61  ;;  %v2935_v44 = vrot.slane %v9386_v23, %v9727_v4 }
  0xe5   : > { %v1834_v47 = vmul.f32 %v1825_v43, %v9904_v51  ;;  %v1994_v43 = vsel %vm1991_vm10, %v10051_v19, %v10033_v1 }
  0xe7   : > { %v1841_v56 = vpack.c.bf16 %v1834_v47, %v1834_v47  ;;  %v322_v47 = vld [vmem:[%s12301_s2] sm:$0xf] }
  0xe8   : > { %1512 = vrot.lane.b32.xlu0 %v1501_v2, %s9663_s25  ;;  %2606 = vrot.lane.b32.xlu1 %v2597_v50, %s9677_s16  ;;  %v1824_v2 = vsel %vm12308_vm9, %v10015_v53, %v10011_v48  ;;  %v3096_v48 = vrot.slane %v10103_v54, %v9729_v5  ;;  %vm12309_vm9 = vcmask 72704  }
  0xe9   : > { %v1833_v55 = vmul.f32 %v1824_v2, %v9886_v34  ;;  %v2003_v2 = vmul.f32 %v1994_v43, %v9904_v51 }
  0xeb   : > { %v1840_v53 = vpack.c.bf16 %v1833_v55, %v1833_v55 }
  0xec   : > { %1516 = vrot.lane.b32.xlu0 %v1503_v58, %s9663_s25  ;;  %1510 = vrot.lane.b32.xlu1 %v1500_v59, %s9663_s25 }
  0xf0   : > { %2771 = vrot.lane.b32.xlu0 %v2758_v62, %s9678_s24  ;;  %1514 = vrot.lane.b32.xlu1 %v1502_v0, %s9663_s25  ;;  %v3104_v0 = vrot.slane %v10103_v54, %v9727_v4 }
  0xf4   : > { %2775 = vrot.lane.b32.xlu0 %v2766_v3, %s9678_s24  ;;  %1518 = vrot.lane.b32.xlu1 %v1504_v11, %s9663_s25  ;;  %v2000_v3 = vmul.f32 %v10039_v10, %v9872_v9 }
  0xf6   : > { %v382_v26 = vpop.permute.xlu0 %381 }
  0xf8   : > { %1679 = vrot.lane.b32.xlu0 %v1669_v15, %s9664_s8  ;;  %2773 = vrot.lane.b32.xlu1 %v2762_v14, %s9678_s24  ;;  %v1993_v14 = vsel %vm1991_vm10, %v10024_v57, %v10051_v19 }
  0xf9   : > { %v2002_v21 = vmul.f32 %v1993_v14, %v9886_v34 }
  0xfa   : > { %v390_v33 = vpop.permute.xlu0 %389 }
  0xfc   : > { %1683 = vrot.lane.b32.xlu0 %v1671_v24, %s9664_s8  ;;  %2777 = vrot.lane.b32.xlu1 %v2770_v20, %s9678_s24  ;;  %v2007_v20 = vpack.c.bf16 %v2000_v3, %v2000_v3  ;;  %v3277_v3 = vrot.slane %v9398_v45, %v9731_v6 }
  0xfe   : > { %v10075_v36 = vpop.permute.xlu1 %500 }
 0x100   : > { %1687 = vrot.lane.b32.xlu0 %v1673_v27, %s9664_s8  ;;  %1681 = vrot.lane.b32.xlu1 %v1670_v28, %s9664_s8  ;;  %v1992_v27 = vsel %vm1991_vm10, %v10039_v10, %v10024_v57 }
 0x102   : > { %v509_v50 = vpop.permute.xlu1 %508 }
 0x104   : > { %2942 = vrot.lane.b32.xlu0 %v2931_v31, %s9679_s12  ;;  %1685 = vrot.lane.b32.xlu1 %v1672_v32, %s9664_s8  ;;  %v3108_v31 = vrot.slane %v10103_v54, %v9731_v6  ;;  %v2009_v32 = vpack.c.bf16 %v2002_v21, %v2002_v21 }
 0x106   : > { %v10082_v41 = vpop.permute.xlu0 %665 }
 0x108   : > { %2946 = vrot.lane.b32.xlu0 %v2939_v37, %s9679_s12  ;;  %2940 = vrot.lane.b32.xlu1 %v2927_v38, %s9679_s12  ;;  %v2001_v37 = vmul.f32 %v1992_v27, %v9894_v42 }
 0x10a   : > { %v10093_v52 = vpop.permute.xlu0 %673 }
 0x10c   : > { %1850 = vrot.lane.b32.xlu0 %v1839_v46, %s9680_s13  ;;  %2944 = vrot.lane.b32.xlu1 %v2935_v44, %s9679_s12  ;;  %v2011_v46 = vpack.c.bf16 %v2004_v29, %v2004_v29 }
 0x10e   : > { %v10106_v58 = vpop.permute.xlu1 %834  ;;  %v386_v59 = vpop.permute.xlu0 %385 }
 0x110   : > { %1854 = vrot.lane.b32.xlu0 %v1841_v56, %s9680_s13  ;;  %1848 = vrot.lane.b32.xlu1 %v1838_v40, %s9680_s13  ;;  %v3269_v56 = vrot.slane %v9398_v45, %v9733_v7 }
 0x112   : > { %v10112_v60 = vpop.permute.xlu1 %842  ;;  %v503_v62 = vpop.permute.xlu0 %502 }
 0x113   : > { %v511_v57 = vsel %vm12306_vm8, %v10075_v36, %v503_v62 }
 0x114   : > { %3109 = vrot.lane.b32.xlu0 %v3096_v48, %s9680_s13  ;;  %1852 = vrot.lane.b32.xlu1 %v1840_v53, %s9680_s13  ;;  %v519_v44 = vsel %vm400_vm11, %v511_v57, 0  ;;  %v2010_v48 = vpack.c.bf16 %v2003_v2, %v2003_v2  ;;  %v2161_v53 = vsel %vm2160_vm13, %v10047_v17, %v10067_v30 }
 0x116   : > { %v384_v8 = vpop.permute.xlu1 %383  ;;  %v507_v11 = vpop.permute.xlu0 %506 }
 0x117   : > { %v393_v61 = vsel %vm12307_vm7, %v384_v8, %v386_v59  ;;  %v392_v15 = vsel %vm12307_vm7, %v382_v26, %v384_v8  ;;  %v514_v10 = vsel %vm12306_vm8, %v507_v11, %v509_v50  ;;  %v2008_v50 = vpack.c.bf16 %v2001_v37, %v2001_v37 }
 0x118   : > { %3113 = vrot.lane.b32.xlu0 %v3104_v0, %s9680_s13  ;;  %9295 = vmatprep.subr.msk.bf16.mxu0 %vm400_vm11, %v393_v61  ;;  %v402_v16 = vsel %vm400_vm11, %v392_v15, 0  ;;  %v3265_v8 = vrot.slane %v9398_v45, %v9729_v5  ;;  %v9304_v15 = vld [vmem:[%s12301_s2 + $0x8] sm:$0xf] }
 0x119   : > { %1856 = vrot.lane.b32.xlu1 %v1842_v12, %s9680_s13  ;;  %414 = vmatpush1.bf16.msra.mxu0 %v402_v16 }
 0x11a   : > { %v388_v22 = vpop.permute.xlu1 %387  ;;  %v670_v24 = vpop.permute.xlu0 %669 }
 0x11b   : > { %v395_v26 = vsel %vm12307_vm7, %v388_v22, %v390_v33  ;;  %v394_v23 = vsel %vm12307_vm7, %v386_v59, %v388_v22  ;;  %vm2027_vm7 = vcmask 64512  }
 0x11c   : > { %9297 = vmatprep.subr.msk.bf16.mxu1 %vm400_vm11, %v395_v26  ;;  %2017 = vrot.lane.b32.xlu0 %v2007_v20, %s9679_s12  ;;  %v408_v28 = vsel %vm400_vm11, %v394_v23, 0 }
 0x11d   : > { %3111 = vrot.lane.b32.xlu1 %v3100_v18, %s9680_s13  ;;  %9296 = vmatmul.mubr.msk.bf16.vlgmr.msra.gmra.mrb[0].mxu0 %vm396_vm12, %v9294_v25 }
 0x11e   : > { %455 = vmatpush1.bf16.msra.mxu1 %v408_v28  ;;  %v837_v33 = vpop.permute.xlu0 %836  ;;  %v505_v35 = vpop.permute.xlu1 %504  ;;  %562 = vmatprep.mubr.bf16.mxu0 %v9675_v49  ;;  %v10231_v28 = vld [vmem:[%s12300_s1 + $0x4c] sm:$0xf] }
 0x11f   : > { %9301 = vmatprep.subr.msk.bf16.mxu1 %vm400_vm11, %v514_v10  ;;  %v513_v38 = vsel %vm12306_vm8, %v505_v35, %v507_v11  ;;  %v512_v39 = vsel %vm12306_vm8, %v503_v62, %v505_v35  ;;  %v2170_v11 = vmul.f32 %v2161_v53, %v9894_v42  ;;  %v845_v12 = vsel %vm844_vm5, %v10106_v58, %v837_v33 }
 0x120   : > { %2021 = vrot.lane.b32.xlu0 %v2009_v32, %s9679_s12  ;;  %9299 = vmatprep.subr.msk.bf16.mxu0 %vm400_vm11, %v512_v39  ;;  %v525_v36 = vsel %vm400_vm11, %v513_v38, 0  ;;  %v853_v58 = vsel %vm400_vm11, %v845_v12, 0  ;;  %v3432_v37 = vrot.slane %v10231_v28, %v9729_v5  ;;  %v3444_v53 = vrot.slane %v10231_v28, %v9731_v6  ;;  %v9410_v12 = vld [vmem:[%s12300_s1 + $0x50] sm:$0xf] }
 0x121   : > { %9298 = vmatmul.mubr.msk.bf16.vlgmr.msra.gmra.mrb[0].mxu1 %vm396_vm12, %v9294_v25  ;;  %3115 = vrot.lane.b32.xlu1 %v3108_v31, %s9680_s13  ;;  %v2177_v18 = vpack.c.bf16 %v2170_v11, %v2170_v11  ;;  %vm12310_vm8 = vcmask 56320  }
 0x122   : > { %531 = vmatpush1.bf16.msra.mxu0 %v519_v44  ;;  %572 = vmatpush1.bf16.msra.mxu1 %v525_v36  ;;  %v841_v1 = vpop.permute.xlu0 %840  ;;  %v668_v19 = vpop.permute.xlu1 %667 }
 0x123   : > { %v676_v54 = vsel %vm675_vm6, %v10082_v41, %v668_v19  ;;  %v677_v40 = vsel %vm675_vm6, %v668_v19, %v670_v24  ;;  %603 = vmatprep.mubr.bf16.mxu1 %v9675_v49  ;;  %v848_v14 = vsel %vm844_vm5, %v841_v1, %v10112_v60  ;;  %v3273_v60 = vrot.slane %v9398_v45, %v9727_v4 }
 0x124   : > { %2025 = vrot.lane.b32.xlu0 %v2011_v46, %s9679_s12  ;;  %9305 = vmatprep.subr.msk.bf16.mxu0 %vm400_vm11, %v677_v40  ;;  %v684_v55 = vsel %vm400_vm11, %v676_v54, 0 }
 0x125   : > { %2019 = vrot.lane.b32.xlu1 %v2008_v50, %s9679_s12  ;;  %9300 = vmatmul.mubr.msk.bf16.vlgmr.msra.gmra.mrb[4].mxu0 %vm396_vm12, %v322_v47  ;;  %v9316_v50 = vld [vmem:[%s12301_s2 + $0x10] sm:$0xf] }
 0x126   : > { %696 = vmatpush1.bf16.msra.mxu0 %v684_v55  ;;  %v2157_v59 = vpop.permute.xlu0 %2156  ;;  %v672_v41 = vpop.permute.xlu1 %671  ;;  %727 = vmatprep.mubr.bf16.mxu0 %v9675_v49  ;;  %v3436_v55 = vrot.slane %v10231_v28, %v9733_v7 }
 0x127   : > { %v678_v62 = vsel %vm675_vm6, %v670_v24, %v672_v41  ;;  %v679_v63 = vsel %vm675_vm6, %v672_v41, %v10093_v52  ;;  %v2169_v24 = vmul.f32 %v10047_v17, %v9872_v9  ;;  %v2162_v26 = vsel %vm2160_vm13, %v10067_v30, %v2157_v59  ;;  %v9310_v30 = vld [vmem:[%s12301_s2 + $0xc] sm:$0xf] }
 0x128   : > { %3280 = vrot.lane.b32.xlu0 %v3269_v56, %s9664_s8  ;;  %9307 = vmatprep.subr.msk.bf16.mxu1 %vm400_vm11, %v679_v63  ;;  %v690_v0 = vsel %vm400_vm11, %v678_v62, 0  ;;  %v2171_v57 = vmul.f32 %v2162_v26, %v9886_v34  ;;  %v3599_v26 = vrot.slane %v9410_v12, %v9729_v5 }
 0x129   : > { %2023 = vrot.lane.b32.xlu1 %v2010_v48, %s9679_s12  ;;  %9302 = vmatmul.mubr.msk.bf16.vlgmr.msra.gmra.mrb[4].mxu1 %vm396_vm12, %v322_v47  ;;  %v2176_v32 = vpack.c.bf16 %v2169_v24, %v2169_v24 }
 0x12a   : > { %737 = vmatpush1.bf16.msra.mxu1 %v690_v0  ;;  %v1004_v52 = vpop.permute.xlu0 %1003  ;;  %v839_v61 = vpop.permute.xlu1 %838  ;;  %768 = vmatprep.mubr.bf16.mxu1 %v9675_v49  ;;  %v2178_v43 = vpack.c.bf16 %v2171_v57, %v2171_v57 }
 0x12b   : > { %9313 = vmatprep.subr.msk.bf16.mxu1 %vm400_vm11, %v848_v14  ;;  %v846_v16 = vsel %vm844_vm5, %v837_v33, %v839_v61  ;;  %v847_v20 = vsel %vm844_vm5, %v839_v61, %v841_v1  ;;  %v3440_v1 = vrot.slane %v10231_v28, %v9727_v4 }
 0x12c   : > { %3284 = vrot.lane.b32.xlu0 %v3277_v3, %s9664_s8  ;;  %9311 = vmatprep.subr.msk.bf16.mxu0 %vm400_vm11, %v846_v16  ;;  %v859_v27 = vsel %vm400_vm11, %v847_v20, 0 }
 0x12d   : > { %3278 = vrot.lane.b32.xlu1 %v3265_v8, %s9664_s8  ;;  %9306 = vmatmul.mubr.msk.bf16.vlgmr.msra.gmra.mrb[8].mxu0 %vm396_vm12, %v9304_v15 }
 0x12e   : > { %865 = vmatpush1.bf16.msra.mxu0 %v853_v58  ;;  %v1008_v21 = vpop.permute.xlu0 %1007  ;;  %v2159_v22 = vpop.permute.xlu1 %2158  ;;  %896 = vmatprep.mubr.bf16.mxu0 %v9675_v49  ;;  %v3603_v58 = vrot.slane %v9410_v12, %v9733_v7 }
 0x12f   : > { %v2163_v25 = vsel %vm2160_vm13, %v2157_v59, %v2159_v22  ;;  %v2173_v36 = vmul.f32 %v2159_v22, %v9875_v13  ;;  %v9322_v22 = vld [vmem:[%s12301_s2 + $0x14] sm:$0xf] }
 0x130   : > { %v2172_v23 = vmul.f32 %v2163_v25, %v9904_v51  ;;  %2188 = vrot.lane.b32.xlu0 %v2177_v18, %s9678_s24  ;;  %v3611_v25 = vrot.slane %v9410_v12, %v9731_v6 }
 0x131   : > { %3282 = vrot.lane.b32.xlu1 %v3273_v60, %s9664_s8  ;;  %9308 = vmatmul.mubr.msk.bf16.vlgmr.msra.gmra.mrb[8].mxu1 %vm396_vm12, %v9304_v15  ;;  %v2180_v2 = vpack.c.bf16 %v2173_v36, %v2173_v36 }
 0x132   : > { %v2179_v17 = vpack.c.bf16 %v2172_v23, %v2172_v23  ;;  %906 = vmatpush1.bf16.msra.mxu1 %v859_v27  ;;  %v1012_v29 = vpop.permute.xlu0 %1011  ;;  %v1006_v31 = vpop.permute.xlu1 %1005  ;;  %937 = vmatprep.mubr.bf16.mxu1 %v9675_v49  ;;  %v9416_v23 = vld [vmem:[%s12300_s1 + $0x54] sm:$0xf] }
 0x133   : > { %v1014_v10 = vsel %vm977_vm4, %v1004_v52, %v1006_v31  ;;  %v1015_v33 = vsel %vm977_vm4, %v1006_v31, %v1008_v21  ;;  %v3766_v36 = vrot.slane %v9416_v23, %v9729_v5 }
 0x134   : > { %2192 = vrot.lane.b32.xlu0 %v2179_v17, %s9678_s24  ;;  %9317 = vmatprep.subr.msk.bf16.mxu0 %vm400_vm11, %v1015_v33  ;;  %v1022_v35 = vsel %vm400_vm11, %v1014_v10, 0 }
 0x135   : > { %2186 = vrot.lane.b32.xlu1 %v2176_v32, %s9678_s24  ;;  %9312 = vmatmul.mubr.msk.bf16.vlgmr.msra.gmra.mrb[12].mxu0 %vm396_vm12, %v9310_v30  ;;  %v3607_v32 = vrot.slane %v9410_v12, %v9727_v4 }
 0x136   : > { %1034 = vmatpush1.bf16.msra.mxu0 %v1022_v35  ;;  %v2324_v38 = vpop.permute.xlu0 %2323  ;;  %v1010_v39 = vpop.permute.xlu1 %1009  ;;  %1065 = vmatprep.mubr.bf16.mxu0 %v9675_v49 }
 0x137   : > { %v1016_v44 = vsel %vm977_vm4, %v1008_v21, %v1010_v39  ;;  %v1017_v45 = vsel %vm977_vm4, %v1010_v39, %v1012_v29  ;;  %v3778_v39 = vrot.slane %v9416_v23, %v9731_v6 }
 0x138   : > { %3445 = vrot.lane.b32.xlu0 %v3432_v37, %s9663_s25  ;;  %9319 = vmatprep.subr.msk.bf16.mxu1 %vm400_vm11, %v1017_v45  ;;  %v1028_v46 = vsel %vm400_vm11, %v1016_v44, 0  ;;  %v9328_v37 = vld [vmem:[%s12301_s2 + $0x18] sm:$0xf] }
 0x139   : > { %2190 = vrot.lane.b32.xlu1 %v2178_v43, %s9678_s24  ;;  %9314 = vmatmul.mubr.msk.bf16.vlgmr.msra.gmra.mrb[12].mxu1 %vm396_vm12, %v9310_v30  ;;  %v3770_v30 = vrot.slane %v9416_v23, %v9733_v7  ;;  %v10330_v43 = vld [vmem:[#allocation2 + $0x10] sm:$0xf] }
 0x13a   : > { %1075 = vmatpush1.bf16.msra.mxu1 %v1028_v46  ;;  %v2328_v19 = vpop.permute.xlu0 %2327  ;;  %v2322_v47 = vpop.permute.xlu1 %2321  ;;  %1106 = vmatprep.mubr.bf16.mxu1 %v9675_v49 }
 0x13b   : > { %v2338_v54 = vmul.f32 %v2322_v47, %v9872_v9  ;;  %v2330_v48 = vsel %vm2329_vm14, %v2322_v47, %v2324_v38  ;;  %v2342_v62 = vmul.f32 %v2328_v19, %v9875_v13  ;;  %v10341_v47 = vld [vmem:[#allocation2 + $0x20] sm:$0xf] }
 0x13c   : > { %3449 = vrot.lane.b32.xlu0 %v3440_v1, %s9663_s25  ;;  %v2339_v8 = vmul.f32 %v2330_v48, %v9894_v42  ;;  %v10336_v1 = vld [vmem:[#allocation2 + $0x8] sm:$0xf] }
 0x13d   : > { %v2345_v40 = vpack.c.bf16 %v2338_v54, %v2338_v54  ;;  %2194 = vrot.lane.b32.xlu1 %v2180_v2, %s9678_s24  ;;  %9318 = vmatmul.mubr.msk.bf16.vlgmr.msra.gmra.mrb[16].mxu0 %vm396_vm12, %v9316_v50  ;;  %v2349_v13 = vpack.c.bf16 %v2342_v62, %v2342_v62 }
 0x13e   : > { %v1175_v56 = vpop.permute.xlu0 %1174  ;;  %v2326_v59 = vpop.permute.xlu1 %2325  ;;  %1234 = vmatprep.mubr.bf16.mxu0 %v9675_v49  ;;  %v2346_v61 = vpack.c.bf16 %v2339_v8, %v2339_v8  ;;  %v10358_v8 = vld [vmem:[#allocation2 + $0x28] sm:$0xf] }
 0x13f   : > { %v2331_v41 = vsel %vm2329_vm14, %v2324_v38, %v2326_v59 }
 0x140   : > { %v2340_v9 = vmul.f32 %v2331_v41, %v9886_v34  ;;  %2355 = vrot.lane.b32.xlu0 %v2345_v40, %s9677_s16  ;;  %v2332_v34 = vsel %vm2329_vm14, %v2326_v59, %v2328_v19  ;;  %v10348_v59 = vld [vmem:[#allocation2 + $0x18] sm:$0xf] }
 0x141   : > { %3447 = vrot.lane.b32.xlu1 %v3436_v55, %s9663_s25  ;;  %9320 = vmatmul.mubr.msk.bf16.vlgmr.msra.gmra.mrb[16].mxu1 %vm396_vm12, %v9316_v50  ;;  %v2341_v15 = vmul.f32 %v2332_v34, %v9904_v51  ;;  %v3774_v50 = vrot.slane %v9416_v23, %v9727_v4 }
 0x142   : > { %v2347_v63 = vpack.c.bf16 %v2340_v9, %v2340_v9  ;;  %v1179_v0 = vpop.permute.xlu0 %1178  ;;  %v1173_v3 = vpop.permute.xlu1 %1172  ;;  %1275 = vmatprep.mubr.bf16.mxu1 %v9675_v49  ;;  %v9422_v9 = vld [vmem:[%s12300_s1 + $0x58] sm:$0xf] }
 0x143   : > { %v1183_v11 = vsel %vm808_vm3, %v1173_v3, %v1175_v56  ;;  %v2348_v21 = vpack.c.bf16 %v2341_v15, %v2341_v15  ;;  %v3933_v34 = vrot.slane %v9422_v9, %v9729_v5 }
 0x144   : > { %2359 = vrot.lane.b32.xlu0 %v2347_v63, %s9677_s16  ;;  %v1191_v16 = vsel %vm400_vm11, %v1183_v11, 0 }
 0x145   : > { %3451 = vrot.lane.b32.xlu1 %v3444_v53, %s9663_s25 }
 0x146   : > { %v1342_v52 = vpop.permute.xlu0 %1341  ;;  %v1177_v14 = vpop.permute.xlu1 %1176 }
 0x147   : > { %v1184_v42 = vsel %vm808_vm3, %v1175_v56, %v1177_v14  ;;  %v1185_v60 = vsel %vm808_vm3, %v1177_v14, %v1179_v0 }
 0x148   : > { %2363 = vrot.lane.b32.xlu0 %v2349_v13, %s9677_s16  ;;  %9323 = vmatprep.subr.msk.bf16.mxu0 %vm400_vm11, %v1184_v42  ;;  %v1197_v24 = vsel %vm400_vm11, %v1185_v60, 0 }
 0x149   : > { %2357 = vrot.lane.b32.xlu1 %v2346_v61, %s9677_s16  ;;  %1203 = vmatpush1.bf16.msra.mxu0 %v1191_v16  ;;  %v3941_v16 = vrot.slane %v9422_v9, %v9727_v4 }
 0x14a   : > { %v1346_v18 = vpop.permute.xlu0 %1345  ;;  %v1181_v20 = vpop.permute.xlu1 %1180 }
 0x14b   : > { %v1186_v51 = vsel %vm808_vm3, %v1179_v0, %v1181_v20 }
 0x14c   : > { %3614 = vrot.lane.b32.xlu0 %v3603_v58, %s9665_s11  ;;  %9325 = vmatprep.subr.msk.bf16.mxu1 %vm400_vm11, %v1186_v51  ;;  %v9334_v51 = vld [vmem:[%s12301_s2 + $0x1c] sm:$0xf] }
 0x14d   : > { %2361 = vrot.lane.b32.xlu1 %v2348_v21, %s9677_s16  ;;  %1244 = vmatpush1.bf16.msra.mxu1 %v1197_v24 }
 0x14e   : > { %v1350_v27 = vpop.permute.xlu0 %1349  ;;  %v1344_v28 = vpop.permute.xlu1 %1343  ;;  %9324 = vmatmul.mubr.msk.bf16.vlgmr.msra.gmra.mrb[20].mxu0 %vm396_vm12, %v9322_v22 }
 0x14f   : > { %v1352_v17 = vsel %vm639_vm2, %v1342_v52, %v1344_v28  ;;  %v1353_v29 = vsel %vm639_vm2, %v1344_v28, %v1346_v18  ;;  %1403 = vmatprep.mubr.bf16.mxu0 %v9675_v49 }
 0x150   : > { %3618 = vrot.lane.b32.xlu0 %v3611_v25, %s9665_s11  ;;  %9329 = vmatprep.subr.msk.bf16.mxu0 %vm400_vm11, %v1353_v29  ;;  %v1360_v31 = vsel %vm400_vm11, %v1352_v17, 0  ;;  %v3937_v25 = vrot.slane %v9422_v9, %v9733_v7  ;;  %v3945_v29 = vrot.slane %v9422_v9, %v9731_v6 }
 0x151   : > { %3612 = vrot.lane.b32.xlu1 %v3599_v26, %s9665_s11  ;;  %1372 = vmatpush1.bf16.msra.mxu0 %v1360_v31 }
 0x152   : > { %v2605_v57 = vpop.permute.xlu0 %2604  ;;  %v1348_v10 = vpop.permute.xlu1 %1347  ;;  %9326 = vmatmul.mubr.msk.bf16.vlgmr.msra.gmra.mrb[20].mxu1 %vm396_vm12, %v9322_v22 }
 0x153   : > { %v1354_v33 = vsel %vm639_vm2, %v1346_v18, %v1348_v10  ;;  %v1355_v35 = vsel %vm639_vm2, %v1348_v10, %v1350_v27  ;;  %1444 = vmatprep.mubr.bf16.mxu1 %v9675_v49 }
 0x154   : > { %3781 = vrot.lane.b32.xlu0 %v3770_v30, %s9666_s14  ;;  %9331 = vmatprep.subr.msk.bf16.mxu1 %vm400_vm11, %v1355_v35  ;;  %v1366_v38 = vsel %vm400_vm11, %v1354_v33, 0 }
 0x155   : > { %3616 = vrot.lane.b32.xlu1 %v3607_v32, %s9665_s11  ;;  %1413 = vmatpush1.bf16.msra.mxu1 %v1366_v38 }
 0x156   : > { %v2609_v44 = vpop.permute.xlu0 %2608  ;;  %v2603_v45 = vpop.permute.xlu1 %2602  ;;  %9330 = vmatmul.mubr.msk.bf16.vlgmr.msra.gmra.mrb[24].mxu0 %vm396_vm12, %v9328_v37 }
 0x157   : > { %v2611_v46 = vsel %vm2365_vm15, %v2603_v45, %v2605_v57  ;;  %1572 = vmatprep.mubr.bf16.mxu0 %v9675_v49  ;;  %v2619_v55 = vmul.f32 %v2603_v45, %v10336_v1  ;;  %v2623_v52 = vmul.f32 %v2609_v44, %v10358_v8 }
 0x158   : > { %v2620_v19 = vmul.f32 %v2611_v46, %v10330_v43  ;;  %3785 = vrot.lane.b32.xlu0 %v3778_v39, %s9666_s14 }
 0x159   : > { %3779 = vrot.lane.b32.xlu1 %v3766_v36, %s9666_s14  ;;  %v2626_v0 = vpack.c.bf16 %v2619_v55, %v2619_v55  ;;  %v2630_v20 = vpack.c.bf16 %v2623_v52, %v2623_v52 }
 0x15a   : > { %v2627_v2 = vpack.c.bf16 %v2620_v19, %v2620_v19  ;;  %v1513_v54 = vpop.permute.xlu0 %1512  ;;  %v2607_v40 = vpop.permute.xlu1 %2606  ;;  %9332 = vmatmul.mubr.msk.bf16.vlgmr.msra.gmra.mrb[24].mxu1 %vm396_vm12, %v9328_v37  ;;  %v9428_v37 = vld [vmem:[%s12300_s1 + $0x5c] sm:$0xf] }
 0x15b   : > { %v2613_v56 = vsel %vm2365_vm15, %v2607_v40, %v2609_v44  ;;  %1613 = vmatprep.mubr.bf16.mxu1 %v9675_v49  ;;  %v2612_v41 = vsel %vm2365_vm15, %v2605_v57, %v2607_v40  ;;  %v4112_v9 = vrot.slane %v9428_v37, %v9731_v6 }
 0x15c   : > { %v2622_v48 = vmul.f32 %v2613_v56, %v10341_v47  ;;  %2638 = vrot.lane.b32.xlu0 %v2627_v2, %s9676_s9  ;;  %v2621_v3 = vmul.f32 %v2612_v41, %v10348_v59  ;;  %v9340_v41 = vld [vmem:[%s12301_s2 + $0x20] sm:$0xf] }
 0x15d   : > { %3783 = vrot.lane.b32.xlu1 %v3774_v50, %s9666_s14  ;;  %v4104_v50 = vrot.slane %v9428_v37, %v9733_v7 }
 0x15e   : > { %v2629_v53 = vpack.c.bf16 %v2622_v48, %v2622_v48  ;;  %v1517_v62 = vpop.permute.xlu0 %1516  ;;  %v1511_v63 = vpop.permute.xlu1 %1510  ;;  %v2628_v14 = vpack.c.bf16 %v2621_v3, %v2621_v3 }
 0x15f   : > { %v1521_v11 = vsel %vm355_vm0, %v1511_v63, %v1513_v54 }
 0x160   : > { %2642 = vrot.lane.b32.xlu0 %v2629_v53, %s9676_s9  ;;  %v1529_v15 = vsel %vm400_vm11, %v1521_v11, 0  ;;  %v4100_v53 = vrot.slane %v9428_v37, %v9729_v5 }
 0x161   : > { %2636 = vrot.lane.b32.xlu1 %v2626_v0, %s9676_s9 }
 0x162   : > { %v2772_v12 = vpop.permute.xlu0 %2771  ;;  %v1515_v13 = vpop.permute.xlu1 %1514 }
 0x163   : > { %v1522_v61 = vsel %vm355_vm0, %v1513_v54, %v1515_v13  ;;  %v2788_v42 = vmul.f32 %v2772_v12, %v10336_v1  ;;  %v1523_v58 = vsel %vm355_vm0, %v1515_v13, %v1517_v62 }
 0x164   : > { %3946 = vrot.lane.b32.xlu0 %v3933_v34, %s9667_s17  ;;  %9335 = vmatprep.subr.msk.bf16.mxu0 %vm400_vm11, %v1522_v61  ;;  %v1535_v24 = vsel %vm400_vm11, %v1523_v58, 0  ;;  %v4108_v34 = vrot.slane %v9428_v37, %v9727_v4 }
 0x165   : > { %2640 = vrot.lane.b32.xlu1 %v2628_v14, %s9676_s9  ;;  %1541 = vmatpush1.bf16.msra.mxu0 %v1529_v15  ;;  %v2795_v22 = vpack.c.bf16 %v2788_v42, %v2788_v42  ;;  %v9434_v42 = vld [vmem:[%s12300_s1 + $0x60] sm:$0xf] }
 0x166   : > { %v2776_v60 = vpop.permute.xlu0 %2775  ;;  %v1519_v18 = vpop.permute.xlu1 %1518  ;;  %v4271_v37 = vrot.slane %v9434_v42, %v9733_v7 }
 0x167   : > { %v1524_v21 = vsel %vm355_vm0, %v1517_v62, %v1519_v18 }
 0x168   : > { %3950 = vrot.lane.b32.xlu0 %v3941_v16, %s9667_s17  ;;  %9337 = vmatprep.subr.msk.bf16.mxu1 %vm400_vm11, %v1524_v21  ;;  %v4267_v21 = vrot.slane %v9434_v42, %v9729_v5 }
 0x169   : > { %2644 = vrot.lane.b32.xlu1 %v2630_v20, %s9676_s9  ;;  %1582 = vmatpush1.bf16.msra.mxu1 %v1535_v24 }
 0x16a   : > { %v1680_v26 = vpop.permute.xlu0 %1679  ;;  %v2774_v23 = vpop.permute.xlu1 %2773  ;;  %9336 = vmatmul.mubr.msk.bf16.vlgmr.msra.gmra.mrb[28].mxu0 %vm396_vm12, %v9334_v51 }
 0x16b   : > { %v2781_v27 = vsel %vm12310_vm8, %v2774_v23, %v2776_v60  ;;  %1741 = vmatprep.mubr.bf16.mxu0 %v9675_v49  ;;  %v2780_v28 = vsel %vm12310_vm8, %v2772_v12, %v2774_v23 }
 0x16c   : > { %v2790_v17 = vmul.f32 %v2781_v27, %v10348_v59  ;;  %2805 = vrot.lane.b32.xlu0 %v2795_v22, %s9674_s27  ;;  %9338 = vmatmul.mubr.msk.bf16.vlgmr.msra.gmra.mrb[28].mxu1 %vm396_vm12, %v9334_v51  ;;  %v2789_v57 = vmul.f32 %v2780_v28, %v10330_v43 }
 0x16d   : > { %3948 = vrot.lane.b32.xlu1 %v3937_v25, %s9667_s17  ;;  %1782 = vmatprep.mubr.bf16.mxu1 %v9675_v49 }
 0x16e   : > { %v2797_v31 = vpack.c.bf16 %v2790_v17, %v2790_v17  ;;  %v1684_v30 = vpop.permute.xlu0 %1683  ;;  %v2778_v32 = vpop.permute.xlu1 %2777  ;;  %v2796_v36 = vpack.c.bf16 %v2789_v57, %v2789_v57  ;;  %v4275_v17 = vrot.slane %v9434_v42, %v9727_v4 }
 0x16f   : > { %v2792_v10 = vmul.f32 %v2778_v32, %v10358_v8  ;;  %v2782_v33 = vsel %vm12310_vm8, %v2776_v60, %v2778_v32 }
 0x170   : > { %2809 = vrot.lane.b32.xlu0 %v2797_v31, %s9674_s27  ;;  %v2791_v44 = vmul.f32 %v2782_v33, %v10341_v47 }
 0x171   : > { %v2799_v35 = vpack.c.bf16 %v2792_v10, %v2792_v10  ;;  %3952 = vrot.lane.b32.xlu1 %v3945_v29, %s9667_s17  ;;  %v9346_v29 = vld [vmem:[%s12301_s2 + $0x24] sm:$0xf] }
 0x172   : > { %v1688_v38 = vpop.permute.xlu0 %1687  ;;  %v1682_v39 = vpop.permute.xlu1 %1681  ;;  %v2798_v40 = vpack.c.bf16 %v2791_v44, %v2791_v44 }
 0x173   : > { %v1690_v45 = vsel %vm308_vm1, %v1680_v26, %v1682_v39  ;;  %v1691_v46 = vsel %vm308_vm1, %v1682_v39, %v1684_v30 }
 0x174   : > { %2813 = vrot.lane.b32.xlu0 %v2799_v35, %s9674_s27  ;;  %9341 = vmatprep.subr.msk.bf16.mxu0 %vm400_vm11, %v1691_v46  ;;  %v1698_v19 = vsel %vm400_vm11, %v1690_v45, 0  ;;  %v4279_v46 = vrot.slane %v9434_v42, %v9731_v6 }
 0x175   : > { %2807 = vrot.lane.b32.xlu1 %v2796_v36, %s9674_s27  ;;  %1710 = vmatpush1.bf16.msra.mxu0 %v1698_v19 }
 0x176   : > { %v2943_v2 = vpop.permute.xlu0 %2942  ;;  %v1686_v54 = vpop.permute.xlu1 %1685 }
 0x177   : > { %v1692_v55 = vsel %vm308_vm1, %v1684_v30, %v1686_v54  ;;  %v1693_v56 = vsel %vm308_vm1, %v1686_v54, %v1688_v38 }
 0x178   : > { %4115 = vrot.lane.b32.xlu0 %v4104_v50, %s9668_s20  ;;  %9343 = vmatprep.subr.msk.bf16.mxu1 %vm400_vm11, %v1693_v56  ;;  %v1704_v48 = vsel %vm400_vm11, %v1692_v55, 0 }
 0x179   : > { %2811 = vrot.lane.b32.xlu1 %v2798_v40, %s9674_s27  ;;  %1751 = vmatpush1.bf16.msra.mxu1 %v1704_v48  ;;  %v9440_v48 = vld [vmem:[%s12300_s1 + $0x64] sm:$0xf] }
 0x17a   : > { %v2947_v62 = vpop.permute.xlu0 %2946  ;;  %v2941_v63 = vpop.permute.xlu1 %2940  ;;  %9342 = vmatmul.mubr.msk.bf16.vlgmr.msra.gmra.mrb[32].mxu0 %vm396_vm12, %v9340_v41  ;;  %v4446_v42 = vrot.slane %v9440_v48, %v9731_v6 }
 0x17b   : > { %v2949_v0 = vsel %vm2027_vm7, %v2941_v63, %v2943_v2  ;;  %1910 = vmatprep.mubr.bf16.mxu0 %v9675_v49  ;;  %v2957_v52 = vmul.f32 %v2941_v63, %v10336_v1  ;;  %v2961_v25 = vmul.f32 %v2947_v62, %v10358_v8 }
 0x17c   : > { %v2958_v3 = vmul.f32 %v2949_v0, %v10330_v43  ;;  %4119 = vrot.lane.b32.xlu0 %v4112_v9, %s9668_s20  ;;  %9344 = vmatmul.mubr.msk.bf16.vlgmr.msra.gmra.mrb[32].mxu1 %vm396_vm12, %v9340_v41 }
 0x17d   : > { %4113 = vrot.lane.b32.xlu1 %v4100_v53, %s9668_s20  ;;  %1951 = vmatprep.mubr.bf16.mxu1 %v9675_v49  ;;  %v2964_v18 = vpack.c.bf16 %v2957_v52, %v2957_v52  ;;  %v2968_v32 = vpack.c.bf16 %v2961_v25, %v2961_v25  ;;  %v9352_v52 = vld [vmem:[%s12301_s2 + $0x28] sm:$0xf] }
 0x17e   : > { %v2965_v11 = vpack.c.bf16 %v2958_v3, %v2958_v3  ;;  %v1851_v12 = vpop.permute.xlu0 %1850  ;;  %v2945_v13 = vpop.permute.xlu1 %2944 }
 0x17f   : > { %v2951_v14 = vsel %vm2027_vm7, %v2945_v13, %v2947_v62  ;;  %v2950_v61 = vsel %vm2027_vm7, %v2943_v2, %v2945_v13 }
 0x180   : > { %v2960_v15 = vmul.f32 %v2951_v14, %v10341_v47  ;;  %2976 = vrot.lane.b32.xlu0 %v2965_v11, %s9673_s19  ;;  %v2959_v20 = vmul.f32 %v2950_v61, %v10348_v59 }
 0x181   : > { %4117 = vrot.lane.b32.xlu1 %v4108_v34, %s9668_s20  ;;  %v4438_v34 = vrot.slane %v9440_v48, %v9733_v7 }
 0x182   : > { %v2967_v16 = vpack.c.bf16 %v2960_v15, %v2960_v15  ;;  %v1855_v58 = vpop.permute.xlu0 %1854  ;;  %v1849_v60 = vpop.permute.xlu1 %1848  ;;  %v2966_v26 = vpack.c.bf16 %v2959_v20, %v2959_v20 }
 0x183   : > { %v1859_v51 = vsel %vm12309_vm9, %v1849_v60, %v1851_v12 }
 0x184   : > { %2980 = vrot.lane.b32.xlu0 %v2967_v16, %s9673_s19  ;;  %v1867_v27 = vsel %vm400_vm11, %v1859_v51, 0  ;;  %v4434_v16 = vrot.slane %v9440_v48, %v9729_v5 }
 0x185   : > { %2974 = vrot.lane.b32.xlu1 %v2964_v18, %s9673_s19 }
 0x186   : > { %v3110_v22 = vpop.permute.xlu0 %3109  ;;  %v1853_v24 = vpop.permute.xlu1 %1852 }
 0x187   : > { %v1860_v23 = vsel %vm12309_vm9, %v1851_v12, %v1853_v24  ;;  %v3126_v28 = vmul.f32 %v3110_v22, %v10336_v1  ;;  %v1861_v31 = vsel %vm12309_vm9, %v1853_v24, %v1855_v58 }
 0x188   : > { %4280 = vrot.lane.b32.xlu0 %v4267_v21, %s9669_s26  ;;  %9347 = vmatprep.subr.msk.bf16.mxu0 %vm400_vm11, %v1860_v23  ;;  %v1873_v35 = vsel %vm400_vm11, %v1861_v31, 0  ;;  %v4442_v21 = vrot.slane %v9440_v48, %v9727_v4 }
 0x189   : > { %2978 = vrot.lane.b32.xlu1 %v2966_v26, %s9673_s19  ;;  %1879 = vmatpush1.bf16.msra.mxu0 %v1867_v27  ;;  %v3133_v10 = vpack.c.bf16 %v3126_v28, %v3126_v28 }
 0x18a   : > { %v3114_v30 = vpop.permute.xlu0 %3113 }
 0x18b   : > { %v1857_v57 = vpop.permute.xlu1 %1856 }
 0x18c   : > { %v1862_v33 = vsel %vm12309_vm9, %v1855_v58, %v1857_v57  ;;  %4284 = vrot.lane.b32.xlu0 %v4275_v17, %s9669_s26  ;;  %9348 = vmatmul.mubr.msk.bf16.vlgmr.msra.gmra.mrb[36].mxu0 %vm396_vm12, %v9346_v29  ;;  %v9446_v17 = vld [vmem:[%s12300_s1 + $0x68] sm:$0xf] }
 0x18d   : > { %2982 = vrot.lane.b32.xlu1 %v2968_v32, %s9673_s19  ;;  %9349 = vmatprep.subr.msk.bf16.mxu1 %vm400_vm11, %v1862_v33  ;;  %v4601_v57 = vrot.slane %v9446_v17, %v9729_v5 }
 0x18e   : > { %1920 = vmatpush1.bf16.msra.mxu1 %v1873_v35  ;;  %v2018_v38 = vpop.permute.xlu0 %2017  ;;  %2079 = vmatprep.mubr.bf16.mxu0 %v9675_v49 }
 0x18f   : > { %v3112_v39 = vpop.permute.xlu1 %3111 }
 0x190   : > { %v3118_v36 = vsel %vm12309_vm9, %v3110_v22, %v3112_v39  ;;  %v3119_v44 = vsel %vm12309_vm9, %v3112_v39, %v3114_v30  ;;  %3143 = vrot.lane.b32.xlu0 %v3133_v10, %s9672_s15 }
 0x191   : > { %v3128_v45 = vmul.f32 %v3119_v44, %v10348_v59  ;;  %4282 = vrot.lane.b32.xlu1 %v4271_v37, %s9669_s26  ;;  %9350 = vmatmul.mubr.msk.bf16.vlgmr.msra.gmra.mrb[36].mxu1 %vm396_vm12, %v9346_v29  ;;  %v3127_v50 = vmul.f32 %v3118_v36, %v10330_v43  ;;  %v4609_v44 = vrot.slane %v9446_v17, %v9727_v4 }
 0x192   : > { %v2022_v19 = vpop.permute.xlu0 %2021  ;;  %2120 = vmatprep.mubr.bf16.mxu1 %v9675_v49 }
 0x193   : > { %v3135_v2 = vpack.c.bf16 %v3128_v45, %v3128_v45  ;;  %v3116_v54 = vpop.permute.xlu1 %3115  ;;  %v3134_v9 = vpack.c.bf16 %v3127_v50, %v3127_v50 }
 0x194   : > { %v3120_v40 = vsel %vm12309_vm9, %v3114_v30, %v3116_v54  ;;  %v3130_v55 = vmul.f32 %v3116_v54, %v10358_v8  ;;  %v9358_v54 = vld [vmem:[%s12301_s2 + $0x2c] sm:$0xf]  ;;  %vm12312_vm9 = vcmask 973824  }
 0x195   : > { %4286 = vrot.lane.b32.xlu1 %v4279_v46, %s9669_s26  ;;  %3147 = vrot.lane.b32.xlu0 %v3135_v2, %s9672_s15  ;;  %v3129_v53 = vmul.f32 %v3120_v40, %v10341_v47 }
 0x196   : > { %v3137_v56 = vpack.c.bf16 %v3130_v55, %v3130_v55  ;;  %v2026_v41 = vpop.permute.xlu0 %2025 }
 0x197   : > { %v2020_v62 = vpop.permute.xlu1 %2019  ;;  %v3136_v12 = vpack.c.bf16 %v3129_v53, %v3129_v53 }
 0x198   : > { %v2028_v63 = vsel %vm2027_vm7, %v2018_v38, %v2020_v62  ;;  %v2029_v0 = vsel %vm2027_vm7, %v2020_v62, %v2022_v19 }
 0x199   : > { %3145 = vrot.lane.b32.xlu1 %v3134_v9, %s9672_s15  ;;  %3151 = vrot.lane.b32.xlu0 %v3137_v56, %s9672_s15  ;;  %v2036_v3 = vsel %vm400_vm11, %v2028_v63, 0  ;;  %v4605_v56 = vrot.slane %v9446_v17, %v9733_v7 }
 0x19a   : > { %9353 = vmatprep.subr.msk.bf16.mxu0 %vm400_vm11, %v2029_v0  ;;  %v3281_v11 = vpop.permute.xlu0 %3280  ;;  %v4613_v0 = vrot.slane %v9446_v17, %v9731_v6 }
 0x19b   : > { %2048 = vmatpush1.bf16.msra.mxu0 %v2036_v3  ;;  %v2024_v13 = vpop.permute.xlu1 %2023 }
 0x19c   : > { %v2030_v14 = vsel %vm2027_vm7, %v2022_v19, %v2024_v13  ;;  %v2031_v61 = vsel %vm2027_vm7, %v2024_v13, %v2026_v41 }
 0x19d   : > { %4449 = vrot.lane.b32.xlu0 %v4438_v34, %s9670_s30  ;;  %3149 = vrot.lane.b32.xlu1 %v3136_v12, %s9672_s15  ;;  %v2042_v15 = vsel %vm400_vm11, %v2030_v14, 0 }
 0x19e   : > { %9355 = vmatprep.subr.msk.bf16.mxu1 %vm400_vm11, %v2031_v61  ;;  %v3285_v58 = vpop.permute.xlu0 %3284  ;;  %9354 = vmatmul.mubr.msk.bf16.vlgmr.msra.gmra.mrb[40].mxu0 %vm396_vm12, %v9352_v52 }
 0x19f   : > { %2089 = vmatpush1.bf16.msra.mxu1 %v2042_v15  ;;  %v3279_v60 = vpop.permute.xlu1 %3278  ;;  %2248 = vmatprep.mubr.bf16.mxu0 %v9675_v49  ;;  %v3298_v33 = vmul.f32 %v3285_v58, %v10358_v8 }
 0x1a0   : > { %v3286_v18 = vsel %vm308_vm1, %v3279_v60, %v3281_v11  ;;  %v3294_v22 = vmul.f32 %v3279_v60, %v10336_v1 }
 0x1a1   : > { %v3295_v20 = vmul.f32 %v3286_v18, %v10330_v43  ;;  %4453 = vrot.lane.b32.xlu0 %v4446_v42, %s9670_s30  ;;  %4447 = vrot.lane.b32.xlu1 %v4434_v16, %s9670_s30  ;;  %v3305_v19 = vpack.c.bf16 %v3298_v33, %v3298_v33  ;;  %v9645_v18 = vld [vmem:[#allocation2 + $0x10] sm:$0xf] }
 0x1a2   : > { %v2189_v51 = vpop.permute.xlu0 %2188  ;;  %9356 = vmatmul.mubr.msk.bf16.vlgmr.msra.gmra.mrb[40].mxu1 %vm396_vm12, %v9352_v52  ;;  %v3301_v29 = vpack.c.bf16 %v3294_v22, %v3294_v22 }
 0x1a3   : > { %v3302_v24 = vpack.c.bf16 %v3295_v20, %v3295_v20  ;;  %v3283_v25 = vpop.permute.xlu1 %3282  ;;  %2289 = vmatprep.mubr.bf16.mxu1 %v9675_v49  ;;  %v2474_v20 = vpack.c.bf16 %v9645_v18, %v9645_v18 }
 0x1a4   : > { %v3287_v26 = vsel %vm308_vm1, %v3281_v11, %v3283_v25  ;;  %v3288_v23 = vsel %vm308_vm1, %v3283_v25, %v3285_v58 }
 0x1a5   : > { %v3297_v27 = vmul.f32 %v3288_v23, %v10341_v47  ;;  %4451 = vrot.lane.b32.xlu1 %v4442_v21, %s9670_s30  ;;  %3313 = vrot.lane.b32.xlu0 %v3302_v24, %s9671_s10  ;;  %v3296_v31 = vmul.f32 %v3287_v26, %v10348_v59  ;;  %v9646_v21 = vld [vmem:[#allocation2 + $0x8] sm:$0xf]  ;;  %v9364_v23 = vld [vmem:[%s12301_s2 + $0x30] sm:$0xf] }
 0x1a6   : > { %v2193_v28 = vpop.permute.xlu0 %2192 }
 0x1a7   : > { %v3304_v30 = vpack.c.bf16 %v3297_v27, %v3297_v27  ;;  %v2187_v32 = vpop.permute.xlu1 %2186  ;;  %v3303_v35 = vpack.c.bf16 %v3296_v31, %v3296_v31  ;;  %v9647_v27 = vld [vmem:[#allocation2 + $0x18] sm:$0xf] }
 0x1a8   : > { %v2197_v37 = vsel %vm12310_vm8, %v2187_v32, %v2189_v51 }
 0x1a9   : > { %3311 = vrot.lane.b32.xlu1 %v3301_v29, %s9671_s10  ;;  %3317 = vrot.lane.b32.xlu0 %v3304_v30, %s9671_s10  ;;  %v2205_v45 = vsel %vm400_vm11, %v2197_v37, 0  ;;  %v9648_v30 = vld [vmem:[#allocation2 + $0x20] sm:$0xf] }
 0x1aa   : > { %v3446_v10 = vpop.permute.xlu0 %3445  ;;  %v2476_v32 = vpack.c.bf16 %v9648_v30, %v9648_v30 }
 0x1ab   : > { %v2191_v38 = vpop.permute.xlu1 %2190  ;;  %v3461_v36 = vmul.f32 %v3446_v10, %v10336_v1 }
 0x1ac   : > { %v2198_v39 = vsel %vm12310_vm8, %v2189_v51, %v2191_v38  ;;  %v2199_v50 = vsel %vm12310_vm8, %v2191_v38, %v2193_v28  ;;  %v2473_v51 = vpack.c.bf16 %v9646_v21, %v9646_v21 }
 0x1ad   : > { %4614 = vrot.lane.b32.xlu0 %v4601_v57, %s9671_s10  ;;  %3315 = vrot.lane.b32.xlu1 %v3303_v35, %s9671_s10  ;;  %v3468_v55 = vpack.c.bf16 %v3461_v36, %v3461_v36  ;;  %v2211_v41 = vsel %vm400_vm11, %v2199_v50, 0 }
 0x1ae   : > { %9359 = vmatprep.subr.msk.bf16.mxu0 %vm400_vm11, %v2198_v39  ;;  %v3450_v46 = vpop.permute.xlu0 %3449  ;;  %v2481_v31 = vsel %vm400_vm11, %v2473_v51, 0 }
 0x1af   : > { %2217 = vmatpush1.bf16.msra.mxu0 %v2205_v45  ;;  %v2195_v2 = vpop.permute.xlu1 %2194 }
 0x1b0   : > { %v2200_v40 = vsel %vm12310_vm8, %v2193_v28, %v2195_v2  ;;  %v2475_v28 = vpack.c.bf16 %v9647_v27, %v9647_v27  ;;  %vm12313_vm8 = vmmov %vm12312_vm9 }
 0x1b1   : > { %4618 = vrot.lane.b32.xlu0 %v4609_v44, %s9671_s10  ;;  %3319 = vrot.lane.b32.xlu1 %v3305_v19, %s9671_s10  ;;  %v9369_v19 = vld [vmem:[%s12301_s2 + $0x34] sm:$0xf] }
 0x1b2   : > { %9361 = vmatprep.subr.msk.bf16.mxu1 %vm400_vm11, %v2200_v40  ;;  %v2356_v48 = vpop.permute.xlu0 %2355  ;;  %9360 = vmatmul.mubr.msk.bf16.vlgmr.msra.gmra.mrb[44].mxu0 %vm396_vm12, %v9358_v54  ;;  %v2487_v35 = vsel %vm400_vm11, %v2475_v28, 0 }
 0x1b3   : > { %2258 = vmatpush1.bf16.msra.mxu1 %v2211_v41  ;;  %v3448_v9 = vpop.permute.xlu1 %3447  ;;  %2417 = vmatprep.mubr.bf16.mxu0 %v9675_v49 }
 0x1b4   : > { %v3453_v53 = vsel %vm355_vm0, %v3446_v10, %v3448_v9  ;;  %v3454_v62 = vsel %vm355_vm0, %v3448_v9, %v3450_v46 }
 0x1b5   : > { %v3463_v63 = vmul.f32 %v3454_v62, %v10348_v59  ;;  %3478 = vrot.lane.b32.xlu0 %v3468_v55, %s9670_s30  ;;  %4616 = vrot.lane.b32.xlu1 %v4605_v56, %s9671_s10  ;;  %v3462_v34 = vmul.f32 %v3453_v53, %v10330_v43 }
 0x1b6   : > { %v2360_v3 = vpop.permute.xlu0 %2359  ;;  %9362 = vmatmul.mubr.msk.bf16.vlgmr.msra.gmra.mrb[44].mxu1 %vm396_vm12, %v9358_v54 }
 0x1b7   : > { %v3470_v11 = vpack.c.bf16 %v3463_v63, %v3463_v63  ;;  %v3452_v12 = vpop.permute.xlu1 %3451  ;;  %2458 = vmatprep.mubr.bf16.mxu1 %v9675_v49  ;;  %v3469_v15 = vpack.c.bf16 %v3462_v34, %v3462_v34 }
 0x1b8   : > { %v3455_v13 = vsel %vm355_vm0, %v3450_v46, %v3452_v12  ;;  %v3465_v52 = vmul.f32 %v3452_v12, %v10358_v8 }
 0x1b9   : > { %4620 = vrot.lane.b32.xlu1 %v4613_v0, %s9671_s10  ;;  %3482 = vrot.lane.b32.xlu0 %v3470_v11, %s9670_s30  ;;  %v3464_v42 = vmul.f32 %v3455_v13, %v10341_v47 }
 0x1ba   : > { %v3472_v14 = vpack.c.bf16 %v3465_v52, %v3465_v52  ;;  %v2364_v61 = vpop.permute.xlu0 %2363 }
 0x1bb   : > { %v2358_v16 = vpop.permute.xlu1 %2357  ;;  %v3471_v25 = vpack.c.bf16 %v3464_v42, %v3464_v42 }
 0x1bc   : > { %v2366_v58 = vsel %vm2365_vm15, %v2356_v48, %v2358_v16  ;;  %v2367_v60 = vsel %vm2365_vm15, %v2358_v16, %v2360_v3 }
 0x1bd   : > { %3480 = vrot.lane.b32.xlu1 %v3469_v15, %s9670_s30  ;;  %3486 = vrot.lane.b32.xlu0 %v3472_v14, %s9670_s30  ;;  %v2374_v22 = vsel %vm400_vm11, %v2366_v58, 0 }
 0x1be   : > { %9365 = vmatprep.subr.msk.bf16.mxu0 %vm400_vm11, %v2367_v60  ;;  %v3615_v24 = vpop.permute.xlu0 %3614 }
 0x1bf   : > { %2386 = vmatpush1.bf16.msra.mxu0 %v2374_v22  ;;  %v2362_v26 = vpop.permute.xlu1 %2361 }
 0x1c0   : > { %v2368_v17 = vsel %vm2365_vm15, %v2360_v3, %v2362_v26  ;;  %v2369_v29 = vsel %vm2365_vm15, %v2362_v26, %v2364_v61  ;;  %9370 = vmatprep.subr.msk.bf16.mxu0 %vm400_vm11, %v2474_v20 }
 0x1c1   : > { %3484 = vrot.lane.b32.xlu1 %v3471_v25, %s9670_s30  ;;  %9367 = vmatprep.subr.msk.bf16.mxu1 %vm400_vm11, %v2369_v29  ;;  %v2380_v57 = vsel %vm400_vm11, %v2368_v17, 0  ;;  %v9375_v17 = vld [vmem:[%s12301_s2 + $0x38] sm:$0xf] }
 0x1c2   : > { %2427 = vmatpush1.bf16.msra.mxu1 %v2380_v57  ;;  %v3619_v10 = vpop.permute.xlu0 %3618  ;;  %9366 = vmatmul.mubr.msk.bf16.vlgmr.msra.gmra.mrb[48].mxu0 %vm396_vm12, %v9364_v23 }
 0x1c3   : > { %v3613_v33 = vpop.permute.xlu1 %3612  ;;  %2493 = vmatpush1.bf16.msra.mxu0 %v2481_v31  ;;  %2524 = vmatprep.mubr.bf16.mxu0 %v9675_v49  ;;  %v3632_v56 = vmul.f32 %v3619_v10, %v10358_v8 }
 0x1c4   : > { %v3620_v37 = vsel %vm639_vm2, %v3613_v33, %v3615_v24  ;;  %v3628_v38 = vmul.f32 %v3613_v33, %v10336_v1  ;;  %9372 = vmatprep.subr.msk.bf16.mxu1 %vm400_vm11, %v2476_v32 }
 0x1c5   : > { %v3629_v39 = vmul.f32 %v3620_v37, %v10330_v43  ;;  %9368 = vmatmul.mubr.msk.bf16.vlgmr.msra.gmra.mrb[48].mxu1 %vm396_vm12, %v9364_v23  ;;  %v3639_v3 = vpack.c.bf16 %v3632_v56, %v3632_v56 }
 0x1c6   : > { %v3635_v36 = vpack.c.bf16 %v3628_v38, %v3628_v38  ;;  %v3782_v44 = vpop.permute.xlu0 %3781  ;;  %2534 = vmatpush1.bf16.msra.mxu1 %v2487_v35  ;;  %2565 = vmatprep.mubr.bf16.mxu1 %v9675_v49 }
 0x1c7   : > { %v3636_v45 = vpack.c.bf16 %v3629_v39, %v3629_v39  ;;  %v3617_v46 = vpop.permute.xlu1 %3616 }
 0x1c8   : > { %v3621_v50 = vsel %vm639_vm2, %v3615_v24, %v3617_v46  ;;  %v3622_v2 = vsel %vm639_vm2, %v3617_v46, %v3619_v10  ;;  %3645 = vrot.lane.b32.xlu1 %v3635_v36, %s9669_s26 }
 0x1c9   : > { %v3630_v54 = vmul.f32 %v3621_v50, %v10348_v59  ;;  %v3631_v40 = vmul.f32 %v3622_v2, %v10341_v47  ;;  %3647 = vrot.lane.b32.xlu0 %v3636_v45, %s9669_s26 }
 0x1ca   : > { %v3786_v55 = vpop.permute.xlu0 %3785  ;;  %9371 = vmatmul.mubr.msk.bf16.vlgmr.msra.gmra.mrb[52].mxu0 %vm396_vm12, %v9369_v19 }
 0x1cb   : > { %v3637_v41 = vpack.c.bf16 %v3630_v54, %v3630_v54  ;;  %v3638_v48 = vpack.c.bf16 %v3631_v40, %v3631_v40  ;;  %v3780_v9 = vpop.permute.xlu1 %3779  ;;  %2698 = vmatprep.mubr.bf16.mxu0 %v9675_v49  ;;  %v3799_v61 = vmul.f32 %v3786_v55, %v10358_v8 }
 0x1cc   : > { %v3787_v53 = vsel %vm808_vm3, %v3780_v9, %v3782_v44  ;;  %v3795_v62 = vmul.f32 %v3780_v9, %v10336_v1  ;;  %v9381_v9 = vld [vmem:[%s12301_s2 + $0x3c] sm:$0xf] }
 0x1cd   : > { %3651 = vrot.lane.b32.xlu0 %v3638_v48, %s9669_s26  ;;  %3649 = vrot.lane.b32.xlu1 %v3637_v41, %s9669_s26  ;;  %v3796_v34 = vmul.f32 %v3787_v53, %v10330_v43  ;;  %v3806_v18 = vpack.c.bf16 %v3799_v61, %v3799_v61 }
 0x1ce   : > { %v3802_v63 = vpack.c.bf16 %v3795_v62, %v3795_v62  ;;  %v2639_v0 = vpop.permute.xlu0 %2638  ;;  %9373 = vmatmul.mubr.msk.bf16.vlgmr.msra.gmra.mrb[52].mxu1 %vm396_vm12, %v9369_v19 }
 0x1cf   : > { %v3784_v11 = vpop.permute.xlu1 %3783  ;;  %2739 = vmatprep.mubr.bf16.mxu1 %v9675_v49  ;;  %v3803_v15 = vpack.c.bf16 %v3796_v34, %v3796_v34 }
 0x1d0   : > { %v3788_v12 = vsel %vm808_vm3, %v3782_v44, %v3784_v11  ;;  %v3789_v13 = vsel %vm808_vm3, %v3784_v11, %v3786_v55 }
 0x1d1   : > { %v3797_v52 = vmul.f32 %v3788_v12, %v10348_v59  ;;  %3653 = vrot.lane.b32.xlu1 %v3639_v3, %s9669_s26  ;;  %3812 = vrot.lane.b32.xlu0 %v3802_v63, %s9668_s20  ;;  %v3798_v42 = vmul.f32 %v3789_v13, %v10341_v47 }
 0x1d2   : > { %v2643_v14 = vpop.permute.xlu0 %2642 }
 0x1d3   : > { %v3804_v16 = vpack.c.bf16 %v3797_v52, %v3797_v52  ;;  %v2637_v58 = vpop.permute.xlu1 %2636  ;;  %v3805_v20 = vpack.c.bf16 %v3798_v42, %v3798_v42 }
 0x1d4   : > { %v2647_v21 = vsel %vm2329_vm14, %v2637_v58, %v2639_v0 }
 0x1d5   : > { %3814 = vrot.lane.b32.xlu1 %v3803_v15, %s9668_s20  ;;  %3816 = vrot.lane.b32.xlu0 %v3804_v16, %s9668_s20  ;;  %v2655_v26 = vsel %vm400_vm11, %v2647_v21, 0 }
 0x1d6   : > { %v3947_v60 = vpop.permute.xlu0 %3946 }
 0x1d7   : > { %v3962_v51 = vmul.f32 %v3947_v60, %v10336_v1  ;;  %v2641_v22 = vpop.permute.xlu1 %2640 }
 0x1d8   : > { %v2648_v24 = vsel %vm2329_vm14, %v2639_v0, %v2641_v22  ;;  %v2649_v23 = vsel %vm2329_vm14, %v2641_v22, %v2643_v14 }
 0x1d9   : > { %v3969_v25 = vpack.c.bf16 %v3962_v51, %v3962_v51  ;;  %3818 = vrot.lane.b32.xlu1 %v3805_v20, %s9668_s20  ;;  %3820 = vrot.lane.b32.xlu0 %v3806_v18, %s9668_s20  ;;  %v2661_v31 = vsel %vm400_vm11, %v2649_v23, 0 }
 0x1da   : > { %9376 = vmatprep.subr.msk.bf16.mxu0 %vm400_vm11, %v2648_v24  ;;  %v3951_v27 = vpop.permute.xlu0 %3950 }
 0x1db   : > { %2667 = vmatpush1.bf16.msra.mxu0 %v2655_v26  ;;  %v2645_v28 = vpop.permute.xlu1 %2644 }
 0x1dc   : > { %v2650_v29 = vsel %vm2329_vm14, %v2643_v14, %v2645_v28 }
 0x1dd   : > { %9378 = vmatprep.subr.msk.bf16.mxu1 %vm400_vm11, %v2650_v29  ;;  %3979 = vrot.lane.b32.xlu1 %v3969_v25, %s9667_s17 }
 0x1de   : > { %2708 = vmatpush1.bf16.msra.mxu1 %v2661_v31  ;;  %v2806_v30 = vpop.permute.xlu0 %2805  ;;  %9377 = vmatmul.mubr.msk.bf16.vlgmr.msra.gmra.mrb[56].mxu0 %vm396_vm12, %v9375_v17 }
 0x1df   : > { %v3949_v32 = vpop.permute.xlu1 %3948  ;;  %2867 = vmatprep.mubr.bf16.mxu0 %v9675_v49 }
 0x1e0   : > { %v3954_v57 = vsel %vm977_vm4, %v3947_v60, %v3949_v32  ;;  %v3955_v10 = vsel %vm977_vm4, %v3949_v32, %v3951_v27 }
 0x1e1   : > { %v3963_v33 = vmul.f32 %v3954_v57, %v10330_v43  ;;  %v3964_v35 = vmul.f32 %v3955_v10, %v10348_v59  ;;  %9379 = vmatmul.mubr.msk.bf16.vlgmr.msra.gmra.mrb[56].mxu1 %vm396_vm12, %v9375_v17 }
 0x1e2   : > { %v2810_v37 = vpop.permute.xlu0 %2809  ;;  %2908 = vmatprep.mubr.bf16.mxu1 %v9675_v49 }
 0x1e3   : > { %v3970_v38 = vpack.c.bf16 %v3963_v33, %v3963_v33  ;;  %v3971_v39 = vpack.c.bf16 %v3964_v35, %v3964_v35  ;;  %v3953_v36 = vpop.permute.xlu1 %3952 }
 0x1e4   : > { %v3956_v44 = vsel %vm977_vm4, %v3951_v27, %v3953_v36  ;;  %v3966_v45 = vmul.f32 %v3953_v36, %v10358_v8 }
 0x1e5   : > { %v3965_v46 = vmul.f32 %v3956_v44, %v10341_v47  ;;  %3983 = vrot.lane.b32.xlu1 %v3971_v39, %s9667_s17  ;;  %3981 = vrot.lane.b32.xlu0 %v3970_v38, %s9667_s17 }
 0x1e6   : > { %v3973_v19 = vpack.c.bf16 %v3966_v45, %v3966_v45  ;;  %v2814_v50 = vpop.permute.xlu0 %2813 }
 0x1e7   : > { %v3972_v2 = vpack.c.bf16 %v3965_v46, %v3965_v46  ;;  %v2808_v54 = vpop.permute.xlu1 %2807 }
 0x1e8   : > { %v2816_v40 = vsel %vm2160_vm13, %v2806_v30, %v2808_v54  ;;  %v2817_v55 = vsel %vm2160_vm13, %v2808_v54, %v2810_v37  ;;  %v9387_v30 = vld [vmem:[%s12301_s2 + $0x40] sm:$0xf] }
 0x1e9   : > { %3987 = vrot.lane.b32.xlu1 %v3973_v19, %s9667_s17  ;;  %3985 = vrot.lane.b32.xlu0 %v3972_v2, %s9667_s17  ;;  %v2824_v56 = vsel %vm400_vm11, %v2816_v40, 0 }
 0x1ea   : > { %9382 = vmatprep.subr.msk.bf16.mxu0 %vm400_vm11, %v2817_v55  ;;  %v4116_v41 = vpop.permute.xlu0 %4115 }
 0x1eb   : > { %2836 = vmatpush1.bf16.msra.mxu0 %v2824_v56  ;;  %v2812_v48 = vpop.permute.xlu1 %2811 }
 0x1ec   : > { %v2818_v53 = vsel %vm2160_vm13, %v2810_v37, %v2812_v48  ;;  %v2819_v62 = vsel %vm2160_vm13, %v2812_v48, %v2814_v50 }
 0x1ed   : > { %9384 = vmatprep.subr.msk.bf16.mxu1 %vm400_vm11, %v2819_v62  ;;  %v2830_v63 = vsel %vm400_vm11, %v2818_v53, 0 }
 0x1ee   : > { %2877 = vmatpush1.bf16.msra.mxu1 %v2830_v63  ;;  %v4120_v0 = vpop.permute.xlu0 %4119  ;;  %9383 = vmatmul.mubr.msk.bf16.vlgmr.msra.gmra.mrb[60].mxu0 %vm396_vm12, %v9381_v9 }
 0x1ef   : > { %v4114_v3 = vpop.permute.xlu1 %4113  ;;  %3036 = vmatprep.mubr.bf16.mxu0 %v9675_v49  ;;  %v4133_v18 = vmul.f32 %v4120_v0, %v10358_v8 }
 0x1f0   : > { %v4121_v34 = vsel %vm844_vm5, %v4114_v3, %v4116_v41  ;;  %v4129_v11 = vmul.f32 %v4114_v3, %v10336_v1  ;;  %v447_v36 = vpop.f32.mrb[0].mxu0 }
 0x1f1   : > { %v4130_v12 = vmul.f32 %v4121_v34, %v10330_v43  ;;  %9385 = vmatmul.mubr.msk.bf16.vlgmr.msra.gmra.mrb[60].mxu1 %vm396_vm12, %v9381_v9  ;;  %v4140_v25 = vpack.c.bf16 %v4133_v18, %v4133_v18  ;;  %v449_v44 = vpop.f32.mrb[1].mxu0 }
 0x1f2   : > { %v4136_v13 = vpack.c.bf16 %v4129_v11, %v4129_v11  ;;  %v2977_v52 = vpop.permute.xlu0 %2976  ;;  %3077 = vmatprep.mubr.bf16.mxu1 %v9675_v49  ;;  %v451_v40 = vpop.f32.mrb[2].mxu0 }
 0x1f3   : > { %v4137_v14 = vpack.c.bf16 %v4130_v12, %v4130_v12  ;;  %v4118_v61 = vpop.permute.xlu1 %4117 }
 0x1f4   : > { %v4122_v15 = vsel %vm844_vm5, %v4116_v41, %v4118_v61  ;;  %v4123_v42 = vsel %vm844_vm5, %v4118_v61, %v4120_v0  ;;  %4146 = vrot.lane.b32.xlu0 %v4136_v13, %s9666_s14  ;;  %v488_v56 = vpop.f32.mrb[0].mxu1 }
 0x1f5   : > { %v4131_v16 = vmul.f32 %v4122_v15, %v10348_v59  ;;  %v4132_v58 = vmul.f32 %v4123_v42, %v10341_v47  ;;  %4148 = vrot.lane.b32.xlu1 %v4137_v14, %s9666_s14  ;;  %v9393_v15 = vld [vmem:[%s12301_s2 + $0x44] sm:$0xf] }
 0x1f6   : > { %v2981_v60 = vpop.permute.xlu0 %2980 }
 0x1f7   : > { %v4138_v20 = vpack.c.bf16 %v4131_v16, %v4131_v16  ;;  %v4139_v21 = vpack.c.bf16 %v4132_v58, %v4132_v58  ;;  %v2975_v51 = vpop.permute.xlu1 %2974 }
 0x1f8   : > { %v2985_v22 = vsel %vm1991_vm10, %v2975_v51, %v2977_v52 }
 0x1f9   : > { %4152 = vrot.lane.b32.xlu1 %v4139_v21, %s9666_s14  ;;  %4150 = vrot.lane.b32.xlu0 %v4138_v20, %s9666_s14  ;;  %v2993_v28 = vsel %vm400_vm11, %v2985_v22, 0 }
 0x1fa   : > { %v4281_v24 = vpop.permute.xlu0 %4280 }
 0x1fb   : > { %v4296_v26 = vmul.f32 %v4281_v24, %v10336_v1  ;;  %v2979_v23 = vpop.permute.xlu1 %2978 }
 0x1fc   : > { %v2986_v27 = vsel %vm1991_vm10, %v2977_v52, %v2979_v23  ;;  %v2987_v29 = vsel %vm1991_vm10, %v2979_v23, %v2981_v60 }
 0x1fd   : > { %v4303_v17 = vpack.c.bf16 %v4296_v26, %v4296_v26  ;;  %4154 = vrot.lane.b32.xlu0 %v4140_v25, %s9666_s14  ;;  %9388 = vmatprep.subr.msk.bf16.mxu0 %vm400_vm11, %v2986_v27  ;;  %v2999_v57 = vsel %vm400_vm11, %v2987_v29, 0  ;;  %v9649_v29 = vld [vmem:[#allocation2 + $0x8] sm:$0xf] }
 0x1fe   : > { %3005 = vmatpush1.bf16.msra.mxu0 %v2993_v28  ;;  %v4285_v31 = vpop.permute.xlu0 %4284 }
 0x1ff   : > { %v2983_v32 = vpop.permute.xlu1 %2982  ;;  %4313 = vrot.lane.b32.xlu1 %v4303_v17, %s9665_s11 }
 0x200   : > { %v2988_v1 = vsel %vm1991_vm10, %v2981_v60, %v2983_v32 }
 0x201   : > { %9389 = vmatmul.mubr.msk.bf16.vlgmr.msra.gmra.mrb[64].mxu0 %vm396_vm12, %v9387_v30  ;;  %9390 = vmatprep.subr.msk.bf16.mxu1 %vm400_vm11, %v2988_v1  ;;  %v10707_v1 = vld [vmem:[#allocation2 + $0x10] sm:$0xf] }
 0x202   : > { %3046 = vmatpush1.bf16.msra.mxu1 %v2999_v57  ;;  %v3144_v10 = vpop.permute.xlu0 %3143  ;;  %3205 = vmatprep.mubr.bf16.mxu0 %v9675_v49 }
 0x203   : > { %v4283_v33 = vpop.permute.xlu1 %4282 }
 0x204   : > { %v4288_v35 = vsel %vm675_vm6, %v4281_v24, %v4283_v33  ;;  %v4289_v37 = vsel %vm675_vm6, %v4283_v33, %v4285_v31 }
 0x205   : > { %v4297_v38 = vmul.f32 %v4288_v35, %v10330_v43  ;;  %v4298_v39 = vmul.f32 %v4289_v37, %v10348_v59  ;;  %9391 = vmatmul.mubr.msk.bf16.vlgmr.msra.gmra.mrb[64].mxu1 %vm396_vm12, %v9387_v30  ;;  %v452_v43 = vpop.f32.mrb[3].mxu0 }
 0x206   : > { %3246 = vmatprep.mubr.bf16.mxu1 %v9675_v49  ;;  %v564_v41 = vpop.f32.mrb[4].mxu0  ;;  %v10715_v43 = vld [vmem:[#allocation2 + $0x18] sm:$0xf] }
 0x207   : > { %v4304_v45 = vpack.c.bf16 %v4297_v38, %v4297_v38  ;;  %v4305_v46 = vpack.c.bf16 %v4298_v39, %v4298_v39  ;;  %v3148_v19 = vpop.permute.xlu0 %3147  ;;  %v4287_v50 = vpop.permute.xlu1 %4286  ;;  %v565_v62 = vadd.f32 %v564_v41, %v447_v36 }
 0x208   : > { %v4290_v2 = vsel %vm675_vm6, %v4285_v31, %v4287_v50  ;;  %v4300_v54 = vmul.f32 %v4287_v50, %v10358_v8  ;;  %v490_v8 = vpop.f32.mrb[1].mxu1  ;;  %v566_v3 = vpop.f32.mrb[5].mxu0 }
 0x209   : > { %v4299_v55 = vmul.f32 %v4290_v2, %v10341_v47  ;;  %4317 = vrot.lane.b32.xlu1 %v4305_v46, %s9665_s11  ;;  %4315 = vrot.lane.b32.xlu0 %v4304_v45, %s9665_s11  ;;  %v567_v34 = vadd.f32 %v566_v3, %v449_v44  ;;  %v492_v11 = vpop.f32.mrb[2].mxu1  ;;  %v568_v12 = vpop.f32.mrb[6].mxu0 }
 0x20a   : > { %v4307_v59 = vpack.c.bf16 %v4300_v54, %v4300_v54  ;;  %v493_v13 = vpop.f32.mrb[3].mxu1  ;;  %v569_v52 = vpop.f32.mrb[7].mxu0 }
 0x20b   : > { %v4306_v48 = vpack.c.bf16 %v4299_v55, %v4299_v55  ;;  %v3152_v9 = vpop.permute.xlu0 %3151  ;;  %v3146_v53 = vpop.permute.xlu1 %3145 }
 0x20c   : > { %v3154_v63 = vsel %vm12312_vm9, %v3144_v10, %v3146_v53  ;;  %v3155_v0 = vsel %vm12313_vm8, %v3146_v53, %v3148_v19  ;;  %vm12314_vm9 = vmmov %vm12313_vm8  ;;  %v605_v58 = vpop.f32.mrb[4].mxu1  ;;  %v729_v60 = vpop.f32.mrb[8].mxu0  ;;  %v10722_v53 = vld [vmem:[#allocation2 + $0x28] sm:$0xf] }
 0x20d   : > { %4321 = vrot.lane.b32.xlu1 %v4307_v59, %s9665_s11  ;;  %4319 = vrot.lane.b32.xlu0 %v4306_v48, %s9665_s11  ;;  %v3162_v47 = vsel %vm400_vm11, %v3154_v63, 0  ;;  %v606_v20 = vadd.f32 %v605_v58, %v488_v56  ;;  %v777_v21 = vadd.f32 %v729_v60, %v565_v62  ;;  %v607_v51 = vpop.f32.mrb[5].mxu1  ;;  %v731_v22 = vpop.f32.mrb[9].mxu0  ;;  %v10718_v56 = vld [vmem:[#allocation2 + $0x20] sm:$0xf] }
 0x20e   : > { %9394 = vmatprep.subr.msk.bf16.mxu0 %vm400_vm11, %v3155_v0  ;;  %v608_v24 = vadd.f32 %v607_v51, %v490_v8  ;;  %v778_v25 = vadd.f32 %v731_v22, %v567_v34  ;;  %v609_v26 = vpop.f32.mrb[6].mxu1  ;;  %v733_v23 = vpop.f32.mrb[10].mxu0 }
 0x20f   : > { %3174 = vmatpush1.bf16.msra.mxu0 %v3162_v47  ;;  %v4450_v14 = vpop.permute.xlu0 %4449  ;;  %v3150_v61 = vpop.permute.xlu1 %3149 }
 0x210   : > { %v3156_v42 = vsel %vm12313_vm8, %v3148_v19, %v3150_v61  ;;  %v3157_v16 = vsel %vm12314_vm9, %v3150_v61, %v3152_v9  ;;  %vm12315_vm8 = vcmask 588800   ;;  %v610_v30 = vpop.f32.mrb[7].mxu1  ;;  %v734_v32 = vpop.f32.mrb[11].mxu0 }
 0x211   : > { %9396 = vmatprep.subr.msk.bf16.mxu1 %vm400_vm11, %v3157_v16  ;;  %v3168_v18 = vsel %vm400_vm11, %v3156_v42, 0  ;;  %v770_v10 = vpop.f32.mrb[8].mxu1  ;;  %v898_v33 = vpop.f32.mrb[12].mxu0  ;;  %vm12316_vm9 = vmmov %vm12315_vm8 }
 0x212   : > { %9395 = vmatmul.mubr.msk.bf16.vlgmr.msra.gmra.mrb[68].mxu0 %vm396_vm12, %v9393_v15  ;;  %3215 = vmatpush1.bf16.msra.mxu1 %v3168_v18  ;;  %v779_v37 = vadd.f32 %v770_v10, %v606_v20  ;;  %v946_v38 = vadd.f32 %v898_v33, %v777_v21  ;;  %v772_v39 = vpop.f32.mrb[9].mxu1  ;;  %v900_v36 = vpop.f32.mrb[13].mxu0 }
 0x213   : > { %v4454_v27 = vpop.permute.xlu0 %4453  ;;  %v4448_v28 = vpop.permute.xlu1 %4447  ;;  %3372 = vmatprep.mubr.bf16.mxu0 %v9675_v49  ;;  %v780_v19 = vadd.f32 %v772_v39, %v608_v24  ;;  %v947_v50 = vadd.f32 %v900_v36, %v778_v25 }
 0x214   : > { %v4455_v17 = vsel %vm12315_vm8, %v4448_v28, %v4450_v14  ;;  %v4463_v31 = vmul.f32 %v9649_v29, %v4448_v28  ;;  %v774_v40 = vpop.f32.mrb[10].mxu1  ;;  %v902_v55 = vpop.f32.mrb[14].mxu0  ;;  %v4467_v62 = vmul.f32 %v10722_v53, %v4454_v27 }
 0x215   : > { %v4464_v57 = vmul.f32 %v10707_v1, %v4455_v17  ;;  %9397 = vmatmul.mubr.msk.bf16.vlgmr.msra.gmra.mrb[68].mxu1 %vm396_vm12, %v9393_v15  ;;  %v775_v48 = vpop.f32.mrb[11].mxu1  ;;  %v903_v9 = vpop.f32.mrb[15].mxu0 }
 0x216   : > { %v4470_v35 = vpack.c.bf16 %v4463_v31, %v4463_v31  ;;  %3413 = vmatprep.mubr.bf16.mxu1 %v9675_v49  ;;  %v939_v63 = vpop.f32.mrb[12].mxu1  ;;  %v1067_v0 = vpop.f32.mrb[16].mxu0  ;;  %v4474_v18 = vpack.c.bf16 %v4467_v62, %v4467_v62 }
 0x217   : > { %v4471_v44 = vpack.c.bf16 %v4464_v57, %v4464_v57  ;;  %v3314_v45 = vpop.permute.xlu0 %3313  ;;  %v4452_v46 = vpop.permute.xlu1 %4451  ;;  %v948_v11 = vadd.f32 %v939_v63, %v779_v37  ;;  %v1115_v12 = vadd.f32 %v1067_v0, %v946_v38 }
 0x218   : > { %v4456_v2 = vsel %vm12316_vm9, %v4450_v14, %v4452_v46  ;;  %v4457_v54 = vsel %vm12315_vm8, %v4452_v46, %v4454_v27  ;;  %4480 = vrot.lane.b32.xlu0 %v4470_v35, %s9663_s25  ;;  %v941_v13 = vpop.f32.mrb[13].mxu1  ;;  %v1069_v52 = vpop.f32.mrb[17].mxu0  ;;  %vm12317_vm9 = vcmask 596992  }
 0x219   : > { %v4465_v59 = vmul.f32 %v10715_v43, %v4456_v2  ;;  %v4466_v41 = vmul.f32 %v10718_v56, %v4457_v54  ;;  %4482 = vrot.lane.b32.xlu1 %v4471_v44, %s9663_s25  ;;  %v949_v14 = vadd.f32 %v941_v13, %v780_v19  ;;  %v1116_v61 = vadd.f32 %v1069_v52, %v947_v50  ;;  %v943_v15 = vpop.f32.mrb[14].mxu1  ;;  %v1071_v42 = vpop.f32.mrb[18].mxu0  ;;  %vm12318_vm8 = vmmov %vm12317_vm9 }
 0x21a   : > { %v944_v58 = vpop.f32.mrb[15].mxu1  ;;  %v1072_v60 = vpop.f32.mrb[19].mxu0 }
 0x21b   : > { %v4472_v8 = vpack.c.bf16 %v4465_v59, %v4465_v59  ;;  %v4473_v3 = vpack.c.bf16 %v4466_v41, %v4466_v41  ;;  %v3318_v47 = vpop.permute.xlu0 %3317  ;;  %v3312_v34 = vpop.permute.xlu1 %3311 }
 0x21c   : > { %v3321_v16 = vsel %vm12317_vm9, %v3312_v34, %v3314_v45  ;;  %v1108_v24 = vpop.f32.mrb[16].mxu1  ;;  %vm12319_vm9 = vmmov %vm12318_vm8 }
 0x21d   : > { %4486 = vrot.lane.b32.xlu1 %v4473_v3, %s9663_s25  ;;  %4484 = vrot.lane.b32.xlu0 %v4472_v8, %s9663_s25  ;;  %v3329_v25 = vsel %vm400_vm11, %v3321_v16, 0  ;;  %v1117_v26 = vadd.f32 %v1108_v24, %v948_v11  ;;  %v1110_v27 = vpop.f32.mrb[17].mxu1 }
 0x21e   : > { %v1118_v30 = vadd.f32 %v1110_v27, %v949_v14  ;;  %v1112_v57 = vpop.f32.mrb[18].mxu1 }
 0x21f   : > { %v4615_v20 = vpop.permute.xlu0 %4614  ;;  %v3316_v21 = vpop.permute.xlu1 %3315 }
 0x220   : > { %v4630_v51 = vmul.f32 %v9649_v29, %v4615_v20  ;;  %v3322_v22 = vsel %vm12318_vm8, %v3314_v45, %v3316_v21  ;;  %v3323_v17 = vsel %vm12319_vm9, %v3316_v21, %v3318_v47  ;;  %v9399_v29 = vld [vmem:[%s12301_s2 + $0x48] sm:$0xf]  ;;  %v1113_v39 = vpop.f32.mrb[19].mxu1  ;;  %vm12320_vm9 = vmmov %vm12318_vm8 }
 0x221   : > { %4488 = vrot.lane.b32.xlu0 %v4474_v18, %s9663_s25  ;;  %9400 = vmatprep.subr.msk.bf16.mxu0 %vm400_vm11, %v3322_v22  ;;  %v1236_v23 = vpop.f32.mrb[20].mxu0  ;;  %v3335_v36 = vsel %vm400_vm11, %v3323_v17, 0  ;;  %v4762_v22 = vld [vmem:[%s12302_s3] sm:$0xff] }
 0x222   : > { %v4637_v28 = vpack.c.bf16 %v4630_v51, %v4630_v51  ;;  %3341 = vmatpush1.bf16.msra.mxu0 %v3329_v25  ;;  %v1284_v31 = vadd.f32 %v1236_v23, %v1115_v12  ;;  %v1238_v32 = vpop.f32.mrb[21].mxu0 }
 0x223   : > { %v4619_v10 = vpop.permute.xlu0 %4618  ;;  %v3320_v33 = vpop.permute.xlu1 %3319  ;;  %v1285_v35 = vadd.f32 %v1238_v32, %v1116_v61 }
 0x224   : > { %v3324_v37 = vsel %vm12318_vm8, %v3318_v47, %v3320_v33  ;;  %4647 = vrot.lane.b32.xlu1 %v4637_v28, %s9664_s8  ;;  %v1240_v38 = vpop.f32.mrb[22].mxu0 }
 0x225   : > { %9401 = vmatmul.mubr.msk.bf16.vlgmr.msra.gmra.mrb[72].mxu0 %vm396_vm12, %v9399_v29  ;;  %9402 = vmatprep.subr.msk.bf16.mxu1 %vm400_vm11, %v3324_v37  ;;  %v1241_v44 = vpop.f32.mrb[23].mxu0  ;;  %v1277_v45 = vpop.f32.mrb[20].mxu1 }
 0x226   : > { %3382 = vmatpush1.bf16.msra.mxu1 %v3335_v36  ;;  %3539 = vmatprep.mubr.bf16.mxu0 %v9675_v49  ;;  %v1286_v46 = vadd.f32 %v1277_v45, %v1117_v26  ;;  %v1279_v19 = vpop.f32.mrb[21].mxu1  ;;  %v9405_v26 = vld [vmem:[%s12301_s2 + $0x4c] sm:$0xf] }
 0x227   : > { %v3479_v50 = vpop.permute.xlu0 %3478  ;;  %v4617_v2 = vpop.permute.xlu1 %4616  ;;  %v1287_v54 = vadd.f32 %v1279_v19, %v1118_v30 }
 0x228   : > { %v4622_v40 = vsel %vm12320_vm9, %v4615_v20, %v4617_v2  ;;  %v4623_v55 = vsel %vm12318_vm8, %v4617_v2, %v4619_v10  ;;  %v1281_v59 = vpop.f32.mrb[22].mxu1  ;;  %vm12321_vm9 = vmmov %vm12318_vm8  ;;  %vm12322_vm8 = vcmask 588800   ;;  %v9462_v2 = vld [vmem:[%s12300_s1 + $0x8] sm:$0xf] }
 0x229   : > { %v4631_v41 = vmul.f32 %v10707_v1, %v4622_v40  ;;  %v4632_v48 = vmul.f32 %v10715_v43, %v4623_v55  ;;  %9403 = vmatmul.mubr.msk.bf16.vlgmr.msra.gmra.mrb[72].mxu1 %vm396_vm12, %v9399_v29  ;;  %v1405_v9 = vpop.f32.mrb[24].mxu0  ;;  %v1282_v62 = vpop.f32.mrb[23].mxu1 }
 0x22a   : > { %3580 = vmatprep.mubr.bf16.mxu1 %v9675_v49  ;;  %v1453_v63 = vadd.f32 %v1405_v9, %v1284_v31  ;;  %v1407_v0 = vpop.f32.mrb[25].mxu0  ;;  %v4785_v31 = vld [vmem:[%s12300_s1] sm:$0xf]  ;;  %v9411_v62 = vld [vmem:[%s12301_s2 + $0x50] sm:$0xf] }
 0x22b   : > { %v4638_v8 = vpack.c.bf16 %v4631_v41, %v4631_v41  ;;  %v4639_v3 = vpack.c.bf16 %v4632_v48, %v4632_v48  ;;  %v4621_v47 = vpop.permute.xlu1 %4620  ;;  %v1454_v34 = vadd.f32 %v1407_v0, %v1285_v35  ;;  %v3483_v11 = vpop.permute.xlu0 %3482  ;;  %v4790_v32 = vrot.slane %v4785_v31, %v9729_v5 }
 0x22c   : > { %v4624_v12 = vsel %vm12321_vm9, %v4619_v10, %v4621_v47  ;;  %v4634_v13 = vmul.f32 %v10722_v53, %v4621_v47  ;;  %v1409_v1 = vpop.f32.mrb[26].mxu0  ;;  %vm12323_vm9 = vmmov %vm12322_vm8  ;;  %v4798_v35 = vrot.slane %v4785_v31, %v9727_v4  ;;  %v5114_v47 = vrot.slane %v9462_v2, %v9729_v5 }
 0x22d   : > { %v4633_v43 = vmul.f32 %v10718_v56, %v4624_v12  ;;  %4651 = vrot.lane.b32.xlu1 %v4639_v3, %s9664_s8  ;;  %4649 = vrot.lane.b32.xlu0 %v4638_v8, %s9664_s8  ;;  %v1410_v52 = vpop.f32.mrb[27].mxu0  ;;  %v1446_v14 = vpop.f32.mrb[24].mxu1  ;;  %v9452_v56 = vld [vmem:[%s12300_s1 + $0x4] sm:$0xf] }
 0x22e   : > { %v4641_v61 = vpack.c.bf16 %v4634_v13, %v4634_v13  ;;  %v1455_v15 = vadd.f32 %v1446_v14, %v1286_v46  ;;  %v1448_v42 = vpop.f32.mrb[25].mxu1  ;;  %v4835_v23 = vrot.slane %v9452_v56, %v9729_v5  ;;  %v4843_v29 = vrot.slane %v9452_v56, %v9727_v4 }
 0x22f   : > { %v4640_v16 = vpack.c.bf16 %v4633_v43, %v4633_v43  ;;  %v3481_v58 = vpop.permute.xlu1 %3480  ;;  %v1456_v60 = vadd.f32 %v1448_v42, %v1287_v54  ;;  %v1450_v53 = vpop.f32.mrb[26].mxu1  ;;  %v4839_v30 = vrot.slane %v9452_v56, %v9733_v7  ;;  %v4847_v33 = vrot.slane %v9452_v56, %v9731_v6  ;;  %v9468_v42 = vld [vmem:[%s12300_s1 + $0xc] sm:$0xf] }
 0x230   : > { %v3488_v18 = vsel %vm12322_vm8, %v3479_v50, %v3481_v58  ;;  %v3489_v20 = vsel %vm12323_vm9, %v3481_v58, %v3483_v11  ;;  %v1451_v51 = vpop.f32.mrb[27].mxu1  ;;  %v3487_v24 = vpop.permute.xlu0 %3486  ;;  %vm12324_vm9 = vmmov %vm12322_vm8  ;;  %v4794_v46 = vrot.slane %v4785_v31, %v9733_v7  ;;  %v5122_v52 = vrot.slane %v9462_v2, %v9727_v4  ;;  %v9417_v58 = vld [vmem:[%s12301_s2 + $0x54] sm:$0xf] }
 0x231   : > { %4655 = vrot.lane.b32.xlu1 %v4641_v61, %s9664_s8  ;;  %4653 = vrot.lane.b32.xlu0 %v4640_v16, %s9664_s8  ;;  %v3496_v21 = vsel %vm400_vm11, %v3488_v18, 0  ;;  %v5118_v14 = vrot.slane %v9462_v2, %v9733_v7  ;;  %v5126_v56 = vrot.slane %v9462_v2, %v9731_v6 }
 0x232   : > { %9406 = vmatprep.subr.msk.bf16.mxu0 %vm400_vm11, %v3489_v20  ;;  %v5280_v20 = vrot.slane %v9468_v42, %v9729_v5 }
 0x233   : > { %3508 = vmatpush1.bf16.msra.mxu0 %v3496_v21  ;;  %v3485_v25 = vpop.permute.xlu1 %3484 }
 0x234   : > { %v3490_v27 = vsel %vm12322_vm8, %v3483_v11, %v3485_v25  ;;  %v3491_v28 = vsel %vm12324_vm9, %v3485_v25, %v3487_v24 }
 0x235   : > { %9408 = vmatprep.subr.msk.bf16.mxu1 %vm400_vm11, %v3491_v28  ;;  %v3502_v17 = vsel %vm400_vm11, %v3490_v27, 0  ;;  %4765 = vperm.xlu0 %9642, %v4762_v22  }
 0x236   : > { %9407 = vmatmul.mubr.msk.bf16.vlgmr.msra.gmra.mrb[76].mxu0 %vm396_vm12, %v9405_v26  ;;  %3549 = vmatpush1.bf16.msra.mxu1 %v3502_v17  ;;  %v9474_v17 = vld [vmem:[%s12300_s1 + $0x10] sm:$0xf] }
 0x237   : > { %3706 = vmatprep.mubr.bf16.mxu0 %v9675_v49  ;;  %4848 = vrot.lane.b32.xlu1 %v4835_v23, %s9663_s25  ;;  %v5284_v23 = vrot.slane %v9468_v42, %v9733_v7 }
 0x239   : > { %9409 = vmatmul.mubr.msk.bf16.vlgmr.msra.gmra.mrb[76].mxu1 %vm396_vm12, %v9405_v26  ;;  %4852 = vrot.lane.b32.xlu0 %v4843_v29, %s9663_s25  ;;  %v5288_v26 = vrot.slane %v9468_v42, %v9727_v4 }
 0x23a   : > { %v3646_v57 = vpop.permute.xlu1 %3645  ;;  %3747 = vmatprep.mubr.bf16.mxu1 %v9675_v49 }
 0x23b   : > { %v3648_v10 = vpop.permute.xlu0 %3647  ;;  %4850 = vrot.lane.b32.xlu1 %v4839_v30, %s9663_s25 }
 0x23c   : > { %v3655_v38 = vsel %vm675_vm6, %v3646_v57, %v3648_v10 }
 0x23d   : > { %4803 = vrot.lane.b32.xlu0 %v4790_v32, %s9664_s8  ;;  %v1574_v37 = vpop.f32.mrb[28].mxu0  ;;  %v3663_v55 = vsel %vm400_vm11, %v3655_v38, 0 }
 0x23e   : > { %v10790_v39 = vadd.f32 %v1574_v37, %v1453_v63  ;;  %v1576_v36 = vpop.f32.mrb[29].mxu0  ;;  %v5292_v37 = vrot.slane %v9468_v42, %v9731_v6 }
 0x23f   : > { %v3652_v44 = vpop.permute.xlu0 %3651  ;;  %v3650_v45 = vpop.permute.xlu1 %3649  ;;  %4854 = vrot.lane.b32.xlu1 %v4847_v33, %s9663_s25  ;;  %v10794_v19 = vadd.f32 %v1576_v36, %v1454_v34  ;;  %v4802_v34 = vrot.slane %v4785_v31, %v9731_v6 }
 0x240   : > { %v3656_v50 = vsel %vm675_vm6, %v3648_v10, %v3650_v45  ;;  %v1578_v54 = vpop.f32.mrb[30].mxu0  ;;  %v1615_v40 = vpop.f32.mrb[28].mxu1  ;;  %v3657_v9 = vsel %vm675_vm6, %v3650_v45, %v3652_v44  ;;  %v5450_v45 = vrot.slane %v9474_v17, %v9733_v7 }
 0x241   : > { %9412 = vmatprep.subr.msk.bf16.mxu0 %vm400_vm11, %v3656_v50  ;;  %4807 = vrot.lane.b32.xlu0 %v4798_v35, %s9664_s8  ;;  %v1579_v59 = vpop.f32.mrb[31].mxu0  ;;  %v1624_v41 = vadd.f32 %v1615_v40, %v1455_v15  ;;  %v1617_v48 = vpop.f32.mrb[29].mxu1  ;;  %v3669_v13 = vsel %vm400_vm11, %v3657_v9, 0  ;;  %v5446_v35 = vrot.slane %v9474_v17, %v9729_v5  ;;  %v9480_v50 = vld [vmem:[%s12300_s1 + $0x14] sm:$0xf] }
 0x242   : > { %3675 = vmatpush1.bf16.msra.mxu0 %v3663_v55  ;;  %v1625_v63 = vadd.f32 %v1617_v48, %v1456_v60  ;;  %v1619_v0 = vpop.f32.mrb[30].mxu1  ;;  %v9423_v54 = vld [vmem:[%s12301_s2 + $0x58] sm:$0xf]  ;;  %v5612_v59 = vrot.slane %v9480_v50, %v9729_v5 }
 0x243   : > { %v3813_v8 = vpop.permute.xlu0 %3812  ;;  %v3654_v3 = vpop.permute.xlu1 %3653  ;;  %4805 = vrot.lane.b32.xlu1 %v4794_v46, %s9664_s8 }
 0x244   : > { %v3658_v11 = vsel %vm675_vm6, %v3652_v44, %v3654_v3  ;;  %v1620_v12 = vpop.f32.mrb[31].mxu1  ;;  %v5454_v44 = vrot.slane %v9474_v17, %v9727_v4  ;;  %v9486_v3 = vld [vmem:[%s12300_s1 + $0x18] sm:$0xf] }
 0x245   : > { %9413 = vmatmul.mubr.msk.bf16.vlgmr.msra.gmra.mrb[80].mxu0 %vm396_vm12, %v9411_v62  ;;  %9414 = vmatprep.subr.msk.bf16.mxu1 %vm400_vm11, %v3658_v11 }
 0x246   : > { %3716 = vmatpush1.bf16.msra.mxu1 %v3669_v13  ;;  %3873 = vmatprep.mubr.bf16.mxu0 %v9675_v49 }
 0x247   : > { %v3817_v1 = vpop.permute.xlu0 %3816  ;;  %v3815_v43 = vpop.permute.xlu1 %3814  ;;  %5127 = vrot.lane.b32.xlu0 %v5114_v47, %s9665_s11  ;;  %4809 = vrot.lane.b32.xlu1 %v4802_v34, %s9664_s8 }
 0x248   : > { %v3822_v61 = vsel %vm844_vm5, %v3813_v8, %v3815_v43  ;;  %v3823_v15 = vsel %vm844_vm5, %v3815_v43, %v3817_v1  ;;  %v5616_v8 = vrot.slane %v9480_v50, %v9733_v7  ;;  %v5624_v43 = vrot.slane %v9480_v50, %v9731_v6 }
 0x249   : > { %9415 = vmatmul.mubr.msk.bf16.vlgmr.msra.gmra.mrb[80].mxu1 %vm396_vm12, %v9411_v62  ;;  %9418 = vmatprep.subr.msk.bf16.mxu0 %vm400_vm11, %v3823_v15  ;;  %v3830_v16 = vsel %vm400_vm11, %v3822_v61, 0 }
 0x24a   : > { %3842 = vmatpush1.bf16.msra.mxu0 %v3830_v16  ;;  %3914 = vmatprep.mubr.bf16.mxu1 %v9675_v49 }
 0x24b   : > { %v3821_v60 = vpop.permute.xlu0 %3820  ;;  %v3819_v18 = vpop.permute.xlu1 %3818  ;;  %5131 = vrot.lane.b32.xlu0 %v5122_v52, %s9665_s11  ;;  %5129 = vrot.lane.b32.xlu1 %v5118_v14, %s9665_s11 }
 0x24c   : > { %v3824_v53 = vsel %vm844_vm5, %v3817_v1, %v3819_v18  ;;  %v3825_v21 = vsel %vm844_vm5, %v3819_v18, %v3821_v60  ;;  %v5778_v1 = vrot.slane %v9486_v3, %v9729_v5  ;;  %v5786_v60 = vrot.slane %v9486_v3, %v9727_v4 }
 0x24d   : > { %9419 = vmatmul.mubr.msk.bf16.vlgmr.msra.gmra.mrb[84].mxu0 %vm396_vm12, %v9417_v58  ;;  %9420 = vmatprep.subr.msk.bf16.mxu1 %vm400_vm11, %v3825_v21  ;;  %v3836_v51 = vsel %vm400_vm11, %v3824_v53, 0  ;;  %v1743_v22 = vpop.f32.mrb[32].mxu0 }
 0x24e   : > { %3883 = vmatpush1.bf16.msra.mxu1 %v3836_v51  ;;  %4040 = vmatprep.mubr.bf16.mxu0 %v9675_v49  ;;  %v1791_v24 = vadd.f32 %v1743_v22, %v10790_v39  ;;  %v1745_v25 = vpop.f32.mrb[33].mxu0 }
 0x24f   : > { %5293 = vrot.lane.b32.xlu0 %v5280_v20, %s9666_s14  ;;  %5133 = vrot.lane.b32.xlu1 %v5126_v56, %s9665_s11  ;;  %v1792_v27 = vadd.f32 %v1745_v25, %v10794_v19  ;;  %v1747_v28 = vpop.f32.mrb[34].mxu0  ;;  %v1784_v31 = vpop.f32.mrb[32].mxu1  ;;  %v5782_v20 = vrot.slane %v9486_v3, %v9733_v7  ;;  %v9492_v56 = vld [vmem:[%s12300_s1 + $0x1c] sm:$0xf] }
 0x250   : > { %v1748_v29 = vpop.f32.mrb[35].mxu0  ;;  %v3980_v30 = vpop.permute.xlu1 %3979  ;;  %v1793_v32 = vadd.f32 %v1784_v31, %v1624_v41  ;;  %v5458_v41 = vrot.slane %v9474_v17, %v9731_v6  ;;  %v5944_v22 = vrot.slane %v9492_v56, %v9729_v5  ;;  %v5948_v17 = vrot.slane %v9492_v56, %v9733_v7 }
 0x251   : > { %9421 = vmatmul.mubr.msk.bf16.vlgmr.msra.gmra.mrb[84].mxu1 %vm396_vm12, %v9417_v58  ;;  %v1786_v57 = vpop.f32.mrb[33].mxu1  ;;  %v5952_v29 = vrot.slane %v9492_v56, %v9727_v4 }
 0x252   : > { %4081 = vmatprep.mubr.bf16.mxu1 %v9675_v49  ;;  %v1794_v10 = vadd.f32 %v1786_v57, %v1625_v63  ;;  %v1788_v33 = vpop.f32.mrb[34].mxu1  ;;  %v5620_v63 = vrot.slane %v9480_v50, %v9727_v4 }
 0x253   : > { %5297 = vrot.lane.b32.xlu0 %v5288_v26, %s9666_s14  ;;  %5295 = vrot.lane.b32.xlu1 %v5284_v23, %s9666_s14  ;;  %v1789_v38 = vpop.f32.mrb[35].mxu1 }
 0x257   : > { %v3982_v39 = vpop.permute.xlu0 %3981  ;;  %v3984_v36 = vpop.permute.xlu1 %3983  ;;  %5459 = vrot.lane.b32.xlu0 %v5446_v35, %s9667_s17  ;;  %5299 = vrot.lane.b32.xlu1 %v5292_v37, %s9666_s14  ;;  %v5956_v37 = vrot.slane %v9492_v56, %v9731_v6 }
 0x258   : > { %v3989_v46 = vsel %vm977_vm4, %v3980_v30, %v3982_v39  ;;  %v3990_v19 = vsel %vm977_vm4, %v3982_v39, %v3984_v36  ;;  %v10927_v39 = vld [vmem:[%s12300_s1 + $0x20] sm:$0xf] }
 0x259   : > { %9424 = vmatprep.subr.msk.bf16.mxu0 %vm400_vm11, %v3990_v19  ;;  %v3997_v2 = vsel %vm400_vm11, %v3989_v46, 0 }
 0x25a   : > { %4009 = vmatpush1.bf16.msra.mxu0 %v3997_v2  ;;  %v6110_v2 = vrot.slane %v10927_v39, %v9729_v5 }
 0x25b   : > { %v3986_v40 = vpop.permute.xlu0 %3985  ;;  %v3988_v55 = vpop.permute.xlu1 %3987  ;;  %5463 = vrot.lane.b32.xlu0 %v5454_v44, %s9667_s17  ;;  %5461 = vrot.lane.b32.xlu1 %v5450_v45, %s9667_s17 }
 0x25c   : > { %v3991_v48 = vsel %vm977_vm4, %v3984_v36, %v3986_v40  ;;  %v3992_v9 = vsel %vm977_vm4, %v3986_v40, %v3988_v55 }
 0x25d   : > { %9425 = vmatmul.mubr.msk.bf16.vlgmr.msra.gmra.mrb[88].mxu0 %vm396_vm12, %v9423_v54  ;;  %9426 = vmatprep.subr.msk.bf16.mxu1 %vm400_vm11, %v3992_v9  ;;  %v4003_v62 = vsel %vm400_vm11, %v3991_v48, 0 }
 0x25e   : > { %4050 = vmatpush1.bf16.msra.mxu1 %v4003_v62  ;;  %4207 = vmatprep.mubr.bf16.mxu0 %v9675_v49  ;;  %v9435_v62 = vld [vmem:[%s12301_s2 + $0x60] sm:$0xf] }
 0x25f   : > { %5625 = vrot.lane.b32.xlu0 %v5612_v59, %s9668_s20  ;;  %v1912_v0 = vpop.f32.mrb[36].mxu0  ;;  %5465 = vrot.lane.b32.xlu1 %v5458_v41, %s9667_s17  ;;  %v6118_v59 = vrot.slane %v10927_v39, %v9727_v4 }
 0x260   : > { %v1960_v47 = vadd.f32 %v1912_v0, %v1791_v24  ;;  %v1914_v34 = vpop.f32.mrb[37].mxu0  ;;  %v5790_v24 = vrot.slane %v9486_v3, %v9731_v6 }
 0x261   : > { %9427 = vmatmul.mubr.msk.bf16.vlgmr.msra.gmra.mrb[88].mxu1 %vm396_vm12, %v9423_v54  ;;  %v1961_v11 = vadd.f32 %v1914_v34, %v1792_v27  ;;  %v1916_v12 = vpop.f32.mrb[38].mxu0  ;;  %v9429_v27 = vld [vmem:[%s12301_s2 + $0x5c] sm:$0xf] }
 0x262   : > { %4248 = vmatprep.mubr.bf16.mxu1 %v9675_v49  ;;  %v1917_v13 = vpop.f32.mrb[39].mxu0 }
 0x263   : > { %5629 = vrot.lane.b32.xlu0 %v5620_v63, %s9668_s20  ;;  %5627 = vrot.lane.b32.xlu1 %v5616_v8, %s9668_s20 }
 0x264   : > { %v1953_v52 = vpop.f32.mrb[36].mxu1 }
 0x265   : > { %v1962_v14 = vadd.f32 %v1953_v52, %v1793_v32  ;;  %v1955_v61 = vpop.f32.mrb[37].mxu1 }
 0x266   : > { %v4147_v15 = vpop.permute.xlu0 %4146  ;;  %v1963_v42 = vadd.f32 %v1955_v61, %v1794_v10  ;;  %v1957_v16 = vpop.f32.mrb[38].mxu1 }
 0x267   : > { %v4149_v58 = vpop.permute.xlu1 %4148  ;;  %5791 = vrot.lane.b32.xlu0 %v5778_v1, %s9669_s26  ;;  %v1958_v18 = vpop.f32.mrb[39].mxu1  ;;  %5631 = vrot.lane.b32.xlu1 %v5624_v43, %s9668_s20 }
 0x268   : > { %v4156_v53 = vsel %vm808_vm3, %v4147_v15, %v4149_v58 }
 0x269   : > { %v4164_v26 = vsel %vm400_vm11, %v4156_v53, 0 }
 0x26b   : > { %v4151_v21 = vpop.permute.xlu0 %4150  ;;  %v4153_v51 = vpop.permute.xlu1 %4152  ;;  %5795 = vrot.lane.b32.xlu0 %v5786_v60, %s9669_s26  ;;  %5793 = vrot.lane.b32.xlu1 %v5782_v20, %s9669_s26 }
 0x26c   : > { %v4157_v25 = vsel %vm808_vm3, %v4149_v58, %v4151_v21  ;;  %v4158_v23 = vsel %vm808_vm3, %v4151_v21, %v4153_v51 }
 0x26d   : > { %9430 = vmatprep.subr.msk.bf16.mxu0 %vm400_vm11, %v4157_v25  ;;  %v4170_v30 = vsel %vm400_vm11, %v4158_v23, 0 }
 0x26e   : > { %4176 = vmatpush1.bf16.msra.mxu0 %v4164_v26 }
 0x26f   : > { %v4155_v28 = vpop.permute.xlu0 %4154  ;;  %5957 = vrot.lane.b32.xlu0 %v5944_v22, %s9670_s30  ;;  %5797 = vrot.lane.b32.xlu1 %v5790_v24, %s9669_s26  ;;  %v9441_v22 = vld [vmem:[%s12301_s2 + $0x64] sm:$0xf] }
 0x270   : > { %v4159_v31 = vsel %vm808_vm3, %v4153_v51, %v4155_v28 }
 0x271   : > { %9431 = vmatmul.mubr.msk.bf16.vlgmr.msra.gmra.mrb[92].mxu0 %vm396_vm12, %v9429_v27  ;;  %9432 = vmatprep.subr.msk.bf16.mxu1 %vm400_vm11, %v4159_v31  ;;  %v2081_v32 = vpop.f32.mrb[40].mxu0  ;;  %v4314_v36 = vpop.permute.xlu1 %4313 }
 0x272   : > { %4217 = vmatpush1.bf16.msra.mxu1 %v4170_v30  ;;  %4374 = vmatprep.mubr.bf16.mxu0 %v9675_v49  ;;  %v2129_v57 = vadd.f32 %v2081_v32, %v1960_v47  ;;  %v2083_v10 = vpop.f32.mrb[41].mxu0 }
 0x273   : > { %v2130_v33 = vadd.f32 %v2083_v10, %v1961_v11  ;;  %v2085_v35 = vpop.f32.mrb[42].mxu0  ;;  %5959 = vrot.lane.b32.xlu1 %v5948_v17, %s9670_s30  ;;  %5961 = vrot.lane.b32.xlu0 %v5952_v29, %s9670_s30 }
 0x274   : > { %v2086_v38 = vpop.f32.mrb[43].mxu0 }
 0x275   : > { %9433 = vmatmul.mubr.msk.bf16.vlgmr.msra.gmra.mrb[92].mxu1 %vm396_vm12, %v9429_v27  ;;  %v2122_v44 = vpop.f32.mrb[40].mxu1 }
 0x276   : > { %4415 = vmatprep.mubr.bf16.mxu1 %v9675_v49  ;;  %v2131_v45 = vadd.f32 %v2122_v44, %v1962_v14  ;;  %v2124_v46 = vpop.f32.mrb[41].mxu1 }
 0x277   : > { %v2132_v19 = vadd.f32 %v2124_v46, %v1963_v42  ;;  %v2126_v50 = vpop.f32.mrb[42].mxu1  ;;  %5963 = vrot.lane.b32.xlu1 %v5956_v37, %s9670_s30 }
 0x278   : > { %v2127_v54 = vpop.f32.mrb[43].mxu1 }
 0x27b   : > { %v4316_v40 = vpop.permute.xlu0 %4315  ;;  %v4318_v55 = vpop.permute.xlu1 %4317  ;;  %6123 = vrot.lane.b32.xlu1 %v6110_v2, %s9671_s10 }
 0x27c   : > { %v4323_v41 = vsel %vm639_vm2, %v4314_v36, %v4316_v40  ;;  %v4324_v48 = vsel %vm639_vm2, %v4316_v40, %v4318_v55 }
 0x27d   : > { %9436 = vmatprep.subr.msk.bf16.mxu0 %vm400_vm11, %v4324_v48  ;;  %v4331_v9 = vsel %vm400_vm11, %v4323_v41, 0  ;;  %v9447_v41 = vld [vmem:[%s12301_s2 + $0x68] sm:$0xf] }
 0x27e   : > { %4343 = vmatpush1.bf16.msra.mxu0 %v4331_v9 }
 0x27f   : > { %v4320_v63 = vpop.permute.xlu0 %4319  ;;  %v4322_v0 = vpop.permute.xlu1 %4321  ;;  %6127 = vrot.lane.b32.xlu1 %v6118_v59, %s9671_s10 }
 0x280   : > { %v4325_v8 = vsel %vm639_vm2, %v4318_v55, %v4320_v63  ;;  %v4326_v3 = vsel %vm639_vm2, %v4320_v63, %v4322_v0 }
 0x281   : > { %9437 = vmatmul.mubr.msk.bf16.vlgmr.msra.gmra.mrb[96].mxu0 %vm396_vm12, %v9435_v62  ;;  %9438 = vmatprep.subr.msk.bf16.mxu1 %vm400_vm11, %v4326_v3  ;;  %v4337_v47 = vsel %vm400_vm11, %v4325_v8, 0 }
 0x282   : > { %4384 = vmatpush1.bf16.msra.mxu1 %v4337_v47  ;;  %4541 = vmatprep.mubr.bf16.mxu0 %v9675_v49 }
 0x285   : > { %9439 = vmatmul.mubr.msk.bf16.vlgmr.msra.gmra.mrb[96].mxu1 %vm396_vm12, %v9435_v62  ;;  %v2250_v34 = vpop.f32.mrb[44].mxu0 }
 0x286   : > { %4582 = vmatprep.mubr.bf16.mxu1 %v9675_v49  ;;  %v2298_v11 = vadd.f32 %v2250_v34, %v2129_v57  ;;  %v2252_v12 = vpop.f32.mrb[45].mxu0 }
 0x287   : > { %v2299_v13 = vadd.f32 %v2252_v12, %v2130_v33  ;;  %v2254_v1 = vpop.f32.mrb[46].mxu0 }
 0x288   : > { %v2255_v43 = vpop.f32.mrb[47].mxu0 }
 0x289   : > { %v2291_v52 = vpop.f32.mrb[44].mxu1 }
 0x28a   : > { %v4481_v14 = vpop.permute.xlu0 %4480  ;;  %v2300_v61 = vadd.f32 %v2291_v52, %v2131_v45  ;;  %v2293_v15 = vpop.f32.mrb[45].mxu1  ;;  %v6114_v52 = vrot.slane %v10927_v39, %v9733_v7 }
 0x28b   : > { %v4483_v42 = vpop.permute.xlu1 %4482  ;;  %v2301_v16 = vadd.f32 %v2293_v15, %v2132_v19  ;;  %v2295_v58 = vpop.f32.mrb[46].mxu1 }
 0x28c   : > { %v2296_v60 = vpop.f32.mrb[47].mxu1  ;;  %v4490_v18 = vsel %vm355_vm0, %v4481_v14, %v4483_v42 }
 0x28d   : > { %v4498_v21 = vsel %vm400_vm11, %v4490_v18, 0  ;;  %v9504_v18 = vld [vmem:[%s12300_s1 + $0x24] sm:$0xf] }
 0x28f   : > { %v4485_v20 = vpop.permute.xlu0 %4484  ;;  %v4487_v56 = vpop.permute.xlu1 %4486 }
 0x290   : > { %v4491_v53 = vsel %vm355_vm0, %v4483_v42, %v4485_v20  ;;  %v4492_v51 = vsel %vm355_vm0, %v4485_v20, %v4487_v56 }
 0x291   : > { %9442 = vmatprep.subr.msk.bf16.mxu0 %vm400_vm11, %v4491_v53  ;;  %v4504_v26 = vsel %vm400_vm11, %v4492_v51, 0 }
 0x292   : > { %4510 = vmatpush1.bf16.msra.mxu0 %v4498_v21 }
 0x293   : > { %v4489_v24 = vpop.permute.xlu0 %4488 }
 0x294   : > { %v4493_v25 = vsel %vm355_vm0, %v4487_v56, %v4489_v24 }
 0x295   : > { %9443 = vmatmul.mubr.msk.bf16.vlgmr.msra.gmra.mrb[100].mxu0 %vm396_vm12, %v9441_v22  ;;  %9444 = vmatprep.subr.msk.bf16.mxu1 %vm400_vm11, %v4493_v25  ;;  %v2419_v23 = vpop.f32.mrb[48].mxu0  ;;  %v6276_v25 = vrot.slane %v9504_v18, %v9729_v5 }
 0x296   : > { %4551 = vmatpush1.bf16.msra.mxu1 %v4504_v26  ;;  %4708 = vmatprep.mubr.bf16.mxu0 %v9675_v49  ;;  %v2467_v27 = vadd.f32 %v2419_v23, %v2298_v11  ;;  %v2421_v28 = vpop.f32.mrb[49].mxu0  ;;  %v4648_v32 = vpop.permute.xlu1 %4647 }
 0x297   : > { %v2468_v17 = vadd.f32 %v2421_v28, %v2299_v13  ;;  %v2423_v29 = vpop.f32.mrb[50].mxu0 }
 0x298   : > { %v2424_v31 = vpop.f32.mrb[51].mxu0  ;;  %v2460_v30 = vpop.f32.mrb[48].mxu1 }
 0x299   : > { %9445 = vmatmul.mubr.msk.bf16.vlgmr.msra.gmra.mrb[100].mxu1 %vm396_vm12, %v9441_v22  ;;  %v2469_v57 = vadd.f32 %v2460_v30, %v2300_v61  ;;  %v2462_v10 = vpop.f32.mrb[49].mxu1 }
 0x29a   : > { %4749 = vmatprep.mubr.bf16.mxu1 %v9675_v49  ;;  %v2470_v33 = vadd.f32 %v2462_v10, %v2301_v16  ;;  %v2464_v35 = vpop.f32.mrb[50].mxu1  ;;  %v6122_v16 = vrot.slane %v10927_v39, %v9731_v6 }
 0x29b   : > { %v2465_v37 = vpop.f32.mrb[51].mxu1  ;;  %v6280_v35 = vrot.slane %v9504_v18, %v9733_v7 }
 0x29d   : > { %v2526_v38 = vpop.f32.mrb[52].mxu0 }
 0x29e   : > { %v2574_v36 = vadd.f32 %v2526_v38, %v2467_v27  ;;  %v2528_v44 = vpop.f32.mrb[53].mxu0  ;;  %v6284_v27 = vrot.slane %v9504_v18, %v9727_v4 }
 0x29f   : > { %v4650_v45 = vpop.permute.xlu0 %4649  ;;  %v4652_v46 = vpop.permute.xlu1 %4651  ;;  %v2575_v19 = vadd.f32 %v2528_v44, %v2468_v17 }
 0x2a0   : > { %v4657_v50 = vsel %vm308_vm1, %v4648_v32, %v4650_v45  ;;  %v4658_v2 = vsel %vm308_vm1, %v4650_v45, %v4652_v46  ;;  %v2530_v54 = vpop.f32.mrb[54].mxu0 }
 0x2a1   : > { %9448 = vmatprep.subr.msk.bf16.mxu0 %vm400_vm11, %v4658_v2  ;;  %v4665_v40 = vsel %vm400_vm11, %v4657_v50, 0  ;;  %v2531_v55 = vpop.f32.mrb[55].mxu0  ;;  %v2567_v59 = vpop.f32.mrb[52].mxu1 }
 0x2a2   : > { %4677 = vmatpush1.bf16.msra.mxu0 %v4665_v40  ;;  %v2576_v48 = vadd.f32 %v2567_v59, %v2469_v57  ;;  %v2569_v9 = vpop.f32.mrb[53].mxu1  ;;  %v6288_v55 = vrot.slane %v9504_v18, %v9731_v6 }
 0x2a3   : > { %v4654_v62 = vpop.permute.xlu0 %4653  ;;  %v4656_v63 = vpop.permute.xlu1 %4655  ;;  %v2577_v0 = vadd.f32 %v2569_v9, %v2470_v33 }
 0x2a4   : > { %v4659_v8 = vsel %vm308_vm1, %v4652_v46, %v4654_v62  ;;  %v4660_v3 = vsel %vm308_vm1, %v4654_v62, %v4656_v63  ;;  %v2571_v47 = vpop.f32.mrb[54].mxu1 }
 0x2a5   : > { %9449 = vmatmul.mubr.msk.bf16.vlgmr.msra.gmra.mrb[104].mxu0 %vm396_vm12, %v9447_v41  ;;  %9450 = vmatprep.subr.msk.bf16.mxu1 %vm400_vm11, %v4660_v3  ;;  %v4671_v34 = vsel %vm400_vm11, %v4659_v8, 0  ;;  %v2572_v11 = vpop.f32.mrb[55].mxu1  ;;  %vm12325_vm11 = vmmov %vm12322_vm8 }
 0x2a6   : > { %4718 = vmatpush1.bf16.msra.mxu1 %v4671_v34  ;;  %4943 = vmatprep.mubr.bf16.mxu0 %v9675_v49 }
 0x2a9   : > { %9451 = vmatmul.mubr.msk.bf16.vlgmr.msra.gmra.mrb[104].mxu1 %vm396_vm12, %v9447_v41  ;;  %v10982_v12 = vpop.permute.xlu1 %4848  ;;  %vm12326_vm12 = vmmov %vm12322_vm8  ;;  %vm12327_vm8 = vcmask 596992  }
 0x2aa   : > { %v4864_v13 = vmul.f32 0.0, %v10982_v12  ;;  %4984 = vmatprep.mubr.bf16.mxu1 %v9675_v49  ;;  %vm12328_vm9 = vmmov %vm12327_vm8 }
 0x2ac   : > { %v4871_v1 = vpack.c.bf16 %v4864_v13, %v4864_v13 }
 0x2ad   : > { %v10986_v43 = vpop.permute.xlu1 %4850 }
 0x2ae   : > { %4881 = vrot.lane.b32.xlu0 %v4871_v1, %s9670_s30  ;;  %v9516_v1 = vld [vmem:[%s12300_s1 + $0x2c] sm:$0xf] }
 0x2b1   : > { %v2700_v14 = vpop.f32.mrb[56].mxu0  ;;  %v10991_v61 = vpop.permute.xlu1 %4854 }
 0x2b2   : > { %v2748_v15 = vadd.f32 %v2700_v14, %v2574_v36  ;;  %v2702_v42 = vpop.f32.mrb[57].mxu0  ;;  %6125 = vrot.lane.b32.xlu0 %v6114_v52, %s9671_s10 }
 0x2b3   : > { %v2749_v58 = vadd.f32 %v2702_v42, %v2575_v19  ;;  %v2704_v60 = vpop.f32.mrb[58].mxu0 }
 0x2b4   : > { %v2705_v20 = vpop.f32.mrb[59].mxu0  ;;  %v2741_v56 = vpop.f32.mrb[56].mxu1 }
 0x2b5   : > { %v2750_v53 = vadd.f32 %v2741_v56, %v2576_v48  ;;  %v2743_v21 = vpop.f32.mrb[57].mxu1  ;;  %v10999_v51 = vpop.permute.xlu0 %4765  ;;  %v9510_v48 = vld [vmem:[%s12300_s1 + $0x28] sm:$0xf] }
 0x2b6   : > { %v2751_v22 = vadd.f32 %v2743_v21, %v2577_v0  ;;  %v2745_v24 = vpop.f32.mrb[58].mxu1  ;;  %6129 = vrot.lane.b32.xlu0 %v6122_v16, %s9671_s10  ;;  %v11003_v26 = vpop.permute.xlu1 %4805  ;;  %v6442_v63 = vrot.slane %v9510_v48, %v9729_v5  ;;  %v6446_v0 = vrot.slane %v9510_v48, %v9733_v7  ;;  %v6450_v34 = vrot.slane %v9510_v48, %v9727_v4 }
 0x2b7   : > { %v2746_v39 = vpop.f32.mrb[59].mxu1  ;;  %v6454_v11 = vrot.slane %v9510_v48, %v9731_v6  ;;  %v6612_v21 = vrot.slane %v9516_v1, %v9733_v7 }
 0x2b9   : > { %v11005_v23 = vpop.permute.xlu0 %4852 }
 0x2ba   : > { %6289 = vrot.lane.b32.xlu0 %v6276_v25, %s9672_s15  ;;  %v11009_v28 = vpop.permute.xlu1 %4809 }
 0x2bd   : > { %v11011_v17 = vpop.permute.xlu0 %4803 }
 0x2be   : > { %v4819_v29 = vmul.f32 0.0, %v11011_v17  ;;  %6293 = vrot.lane.b32.xlu0 %v6284_v27, %s9672_s15  ;;  %v11015_v31 = vpop.permute.xlu1 %5129 }
 0x2c0   : > { %v4825_v30 = vpack.c.bf16 %v4819_v29, %v4819_v29 }
 0x2c1   : > { %v2869_v32 = vpop.f32.mrb[60].mxu0  ;;  %v11017_v57 = vpop.permute.xlu0 %4807 }
 0x2c2   : > { %v2917_v10 = vadd.f32 %v2869_v32, %v2748_v15  ;;  %v2871_v33 = vpop.f32.mrb[61].mxu0  ;;  %4998 = vrot.lane.b32.xlu1 %v4825_v30, %s9671_s10  ;;  %v11021_v37 = vpop.permute.xlu1 %5133  ;;  %v6608_v15 = vrot.slane %v9516_v1, %v9729_v5 }
 0x2c3   : > { %v2918_v38 = vadd.f32 %v2871_v33, %v2749_v58  ;;  %v2873_v36 = vpop.f32.mrb[62].mxu0 }
 0x2c4   : > { %v2910_v44 = vpop.f32.mrb[60].mxu1  ;;  %v2874_v45 = vpop.f32.mrb[63].mxu0 }
 0x2c5   : > { %v2919_v46 = vadd.f32 %v2910_v44, %v2750_v53  ;;  %v2912_v19 = vpop.f32.mrb[61].mxu1  ;;  %v11023_v50 = vpop.permute.xlu0 %5127  ;;  %v9522_v44 = vld [vmem:[%s12300_s1 + $0x30] sm:$0xf] }
 0x2c6   : > { %v2920_v2 = vadd.f32 %v2912_v19, %v2751_v22  ;;  %v2914_v54 = vpop.f32.mrb[62].mxu1  ;;  %6291 = vrot.lane.b32.xlu1 %v6280_v35, %s9672_s15  ;;  %v5143_v40 = vmul.f32 0.0, %v11023_v50  ;;  %v11028_v59 = vpop.permute.xlu1 %5295  ;;  %v6616_v22 = vrot.slane %v9516_v1, %v9727_v4  ;;  %v6620_v35 = vrot.slane %v9516_v1, %v9731_v6 }
 0x2c7   : > { %v2915_v41 = vpop.f32.mrb[63].mxu1  ;;  %v6778_v19 = vrot.slane %v9522_v44, %v9733_v7 }
 0x2c8   : > { %v5150_v9 = vpack.c.bf16 %v5143_v40, %v5143_v40  ;;  %v6786_v41 = vrot.slane %v9522_v44, %v9731_v6 }
 0x2c9   : > { %v11033_v62 = vpop.permute.xlu0 %5131 }
 0x2ca   : > { %6295 = vrot.lane.b32.xlu1 %v6288_v55, %s9672_s15  ;;  %5160 = vrot.lane.b32.xlu0 %v5150_v9, %s9669_s26  ;;  %v11039_v8 = vpop.permute.xlu1 %5299  ;;  %v6782_v55 = vrot.slane %v9522_v44, %v9727_v4 }
 0x2cd   : > { %v11041_v3 = vpop.permute.xlu0 %5293 }
 0x2ce   : > { %6455 = vrot.lane.b32.xlu1 %v6442_v63, %s9673_s19  ;;  %v5309_v47 = vmul.f32 0.0, %v11041_v3  ;;  %6457 = vrot.lane.b32.xlu0 %v6446_v0, %s9673_s19  ;;  %v11048_v13 = vpop.permute.xlu1 %5461 }
 0x2d0   : > { %v5316_v14 = vpack.c.bf16 %v5309_v47, %v5309_v47 }
 0x2d1   : > { %v11053_v52 = vpop.permute.xlu0 %5297 }
 0x2d2   : > { %6459 = vrot.lane.b32.xlu1 %v6450_v34, %s9673_s19  ;;  %6461 = vrot.lane.b32.xlu0 %v6454_v11, %s9673_s19  ;;  %v11058_v42 = vpop.permute.xlu1 %5465 }
 0x2d4   : > { %v3038_v16 = vpop.f32.mrb[64].mxu0 }
 0x2d5   : > { %v3086_v58 = vadd.f32 %v3038_v16, %v2917_v10  ;;  %v3040_v60 = vpop.f32.mrb[65].mxu0  ;;  %v11060_v18 = vpop.permute.xlu0 %5459 }
 0x2d6   : > { %v3087_v20 = vadd.f32 %v3040_v60, %v2918_v38  ;;  %v3042_v56 = vpop.f32.mrb[66].mxu0  ;;  %5326 = vrot.lane.b32.xlu1 %v5316_v14, %s9668_s20  ;;  %v5475_v53 = vmul.f32 0.0, %v11060_v18  ;;  %6621 = vrot.lane.b32.xlu0 %v6608_v15, %s9674_s27  ;;  %v11067_v24 = vpop.permute.xlu1 %5627  ;;  %v9533_v15 = vld [vmem:[%s12300_s1 + $0x38] sm:$0xf] }
 0x2d7   : > { %v3043_v25 = vpop.f32.mrb[67].mxu0 }
 0x2d8   : > { %v3079_v39 = vpop.f32.mrb[64].mxu1  ;;  %v5482_v33 = vpack.c.bf16 %v5475_v53, %v5475_v53 }
 0x2d9   : > { %v3088_v27 = vadd.f32 %v3079_v39, %v2919_v46  ;;  %v3081_v29 = vpop.f32.mrb[65].mxu1  ;;  %v11069_v30 = vpop.permute.xlu0 %5463  ;;  %v6774_v46 = vrot.slane %v9522_v44, %v9729_v5 }
 0x2da   : > { %v3089_v32 = vadd.f32 %v3081_v29, %v2920_v2  ;;  %v3083_v10 = vpop.f32.mrb[66].mxu1  ;;  %6623 = vrot.lane.b32.xlu1 %v6612_v21, %s9674_s27  ;;  %6625 = vrot.lane.b32.xlu0 %v6616_v22, %s9674_s27  ;;  %v11074_v38 = vpop.permute.xlu1 %5631  ;;  %v7056_v29 = vrot.slane %v9533_v15, %v9733_v7 }
 0x2db   : > { %v3084_v36 = vpop.f32.mrb[67].mxu1 }
 0x2dc   : > { %v9539_v36 = vld [vmem:[%s12300_s1 + $0x3c] sm:$0xf] }
 0x2dd   : > { %v11079_v45 = vpop.permute.xlu0 %5625 }
 0x2de   : > { %6627 = vrot.lane.b32.xlu1 %v6620_v35, %s9674_s27  ;;  %5492 = vrot.lane.b32.xlu0 %v5482_v33, %s9667_s17  ;;  %v11085_v2 = vpop.permute.xlu1 %5793  ;;  %v5641_v40 = vmul.f32 0.0, %v11079_v45  ;;  %v7064_v35 = vrot.slane %v9533_v15, %v9731_v6 }
 0x2e0   : > { %v5648_v34 = vpack.c.bf16 %v5641_v40, %v5641_v40 }
 0x2e1   : > { %v11087_v54 = vpop.permute.xlu0 %5629 }
 0x2e2   : > { %6787 = vrot.lane.b32.xlu1 %v6774_v46, %s9676_s9  ;;  %6789 = vrot.lane.b32.xlu0 %v6778_v19, %s9676_s9  ;;  %v11094_v48 = vpop.permute.xlu1 %5797  ;;  %v7218_v19 = vrot.slane %v9539_v36, %v9729_v5 }
 0x2e5   : > { %v3207_v9 = vpop.f32.mrb[68].mxu0  ;;  %v11096_v63 = vpop.permute.xlu0 %5791 }
 0x2e6   : > { %v3255_v0 = vadd.f32 %v3207_v9, %v3086_v58  ;;  %v3209_v47 = vpop.f32.mrb[69].mxu0  ;;  %6791 = vrot.lane.b32.xlu1 %v6782_v55, %s9676_s9  ;;  %v5807_v11 = vmul.f32 0.0, %v11096_v63  ;;  %6793 = vrot.lane.b32.xlu0 %v6786_v41, %s9676_s9  ;;  %v11104_v16 = vpop.permute.xlu1 %5959  ;;  %v7222_v55 = vrot.slane %v9539_v36, %v9733_v7  ;;  %v7226_v41 = vrot.slane %v9539_v36, %v9727_v4 }
 0x2e7   : > { %v3256_v1 = vadd.f32 %v3209_v47, %v3087_v20  ;;  %v3211_v14 = vpop.f32.mrb[70].mxu0  ;;  %v7052_v20 = vrot.slane %v9533_v15, %v9729_v5 }
 0x2e8   : > { %v3248_v60 = vpop.f32.mrb[68].mxu1  ;;  %v3212_v56 = vpop.f32.mrb[71].mxu0  ;;  %v5814_v53 = vpack.c.bf16 %v5807_v11, %v5807_v11 }
 0x2e9   : > { %v3257_v58 = vadd.f32 %v3248_v60, %v3088_v27  ;;  %v3250_v21 = vpop.f32.mrb[69].mxu1  ;;  %v11106_v22 = vpop.permute.xlu0 %5795  ;;  %v7230_v60 = vrot.slane %v9539_v36, %v9731_v6 }
 0x2ea   : > { %v3258_v25 = vadd.f32 %v3250_v21, %v3089_v32  ;;  %v3252_v39 = vpop.f32.mrb[70].mxu1  ;;  %5658 = vrot.lane.b32.xlu1 %v5648_v34, %s9666_s14  ;;  %5824 = vrot.lane.b32.xlu0 %v5814_v53, %s9665_s11  ;;  %v7060_v32 = vrot.slane %v9533_v15, %v9727_v4  ;;  %v11122_v44 = vpop.permute.xlu1 %5963 }
 0x2eb   : > { %v3253_v10 = vpop.f32.mrb[71].mxu1 }
 0x2ed   : > { %v11112_v33 = vpop.permute.xlu0 %5957 }
 0x2ee   : > { %7065 = vrot.lane.b32.xlu1 %v7052_v20, %s9677_s16  ;;  %v5973_v27 = vmul.f32 0.0, %v11112_v33  ;;  %7067 = vrot.lane.b32.xlu0 %v7056_v29, %s9677_s16  ;;  %v11127_v40 = vpop.permute.xlu1 %6123 }
 0x2ef   : > { %v6139_v9 = vmul.f32 0.0, %v11127_v40 }
 0x2f0   : > { %v5980_v46 = vpack.c.bf16 %v5973_v27, %v5973_v27 }
 0x2f1   : > { %v6146_v56 = vpack.c.bf16 %v6139_v9, %v6139_v9 }
 0x2f2   : > { %7069 = vrot.lane.b32.xlu1 %v7060_v32, %s9677_s16  ;;  %7071 = vrot.lane.b32.xlu0 %v7064_v35, %s9677_s16 }
 0x2f6   : > { %5990 = vrot.lane.b32.xlu1 %v5980_v46, %s9663_s25  ;;  %7231 = vrot.lane.b32.xlu0 %v7218_v19, %s9678_s24 }
 0x2f8   : > { %v3374_v47 = vpop.f32.mrb[72].mxu0 }
 0x2f9   : > { %v3422_v34 = vadd.f32 %v3374_v47, %v3255_v0  ;;  %v3376_v11 = vpop.f32.mrb[73].mxu0 }
 0x2fa   : > { %v3423_v14 = vadd.f32 %v3376_v11, %v3256_v1  ;;  %v3378_v15 = vpop.f32.mrb[74].mxu0  ;;  %7233 = vrot.lane.b32.xlu1 %v7222_v55, %s9678_s24  ;;  %7235 = vrot.lane.b32.xlu0 %v7226_v41, %s9678_s24 }
 0x2fb   : > { %v3379_v53 = vpop.f32.mrb[75].mxu0 }
 0x2fc   : > { %v3415_v21 = vpop.f32.mrb[72].mxu1 }
 0x2fd   : > { %v3424_v39 = vadd.f32 %v3415_v21, %v3257_v58  ;;  %v3417_v20 = vpop.f32.mrb[73].mxu1 }
 0x2fe   : > { %v3425_v29 = vadd.f32 %v3417_v20, %v3258_v25  ;;  %v3419_v10 = vpop.f32.mrb[74].mxu1  ;;  %7237 = vrot.lane.b32.xlu1 %v7230_v60, %s9678_s24  ;;  %6156 = vrot.lane.b32.xlu0 %v6146_v56, %s9664_s8 }
 0x2ff   : > { %v3420_v0 = vpop.f32.mrb[75].mxu1 }
 0x309   : > { %v3541_v1 = vpop.f32.mrb[76].mxu0 }
 0x30a   : > { %v3589_v27 = vadd.f32 %v3541_v1, %v3422_v34  ;;  %v3543_v32 = vpop.f32.mrb[77].mxu0 }
 0x30b   : > { %v3590_v35 = vadd.f32 %v3543_v32, %v3423_v14  ;;  %v3545_v46 = vpop.f32.mrb[78].mxu0 }
 0x30c   : > { %v3582_v19 = vpop.f32.mrb[76].mxu1  ;;  %v3546_v55 = vpop.f32.mrb[79].mxu0 }
 0x30d   : > { %v3591_v36 = vadd.f32 %v3582_v19, %v3424_v39  ;;  %v3584_v41 = vpop.f32.mrb[77].mxu1 }
 0x30e   : > { %v3592_v9 = vadd.f32 %v3584_v41, %v3425_v29  ;;  %v3586_v47 = vpop.f32.mrb[78].mxu1 }
 0x30f   : > { %v3587_v58 = vpop.f32.mrb[79].mxu1 }
 0x318   : > { %v3708_v11 = vpop.f32.mrb[80].mxu0 }
 0x319   : > { %v3756_v25 = vadd.f32 %v3708_v11, %v3589_v27  ;;  %v3710_v15 = vpop.f32.mrb[81].mxu0 }
 0x31a   : > { %v3757_v53 = vadd.f32 %v3710_v15, %v3590_v35  ;;  %v3712_v60 = vpop.f32.mrb[82].mxu0 }
 0x31b   : > { %v3713_v21 = vpop.f32.mrb[83].mxu0 }
 0x31c   : > { %v3749_v56 = vpop.f32.mrb[80].mxu1 }
 0x31d   : > { %v3758_v20 = vadd.f32 %v3749_v56, %v3591_v36  ;;  %v3751_v10 = vpop.f32.mrb[81].mxu1 }
 0x31e   : > { %v3759_v34 = vadd.f32 %v3751_v10, %v3592_v9  ;;  %v3753_v0 = vpop.f32.mrb[82].mxu1 }
 0x31f   : > { %v3754_v14 = vpop.f32.mrb[83].mxu1 }
 0x320   : > { %v3875_v1 = vpop.f32.mrb[84].mxu0 }
 0x321   : > { %v3923_v32 = vadd.f32 %v3875_v1, %v3756_v25  ;;  %v3877_v46 = vpop.f32.mrb[85].mxu0 }
 0x322   : > { %v3924_v39 = vadd.f32 %v3877_v46, %v3757_v53  ;;  %v3879_v19 = vpop.f32.mrb[86].mxu0 }
 0x323   : > { %v3880_v29 = vpop.f32.mrb[87].mxu0 }
 0x324   : > { %v3916_v55 = vpop.f32.mrb[84].mxu1 }
 0x325   : > { %v3925_v41 = vadd.f32 %v3916_v55, %v3758_v20  ;;  %v3918_v47 = vpop.f32.mrb[85].mxu1 }
 0x326   : > { %v3926_v27 = vadd.f32 %v3918_v47, %v3759_v34  ;;  %v3920_v58 = vpop.f32.mrb[86].mxu1 }
 0x327   : > { %v3921_v35 = vpop.f32.mrb[87].mxu1 }
 0x330   : > { %v4042_v11 = vpop.f32.mrb[88].mxu0 }
 0x331   : > { %v4090_v15 = vadd.f32 %v4042_v11, %v3923_v32  ;;  %v4044_v60 = vpop.f32.mrb[89].mxu0 }
 0x332   : > { %v4091_v36 = vadd.f32 %v4044_v60, %v3924_v39  ;;  %v4046_v21 = vpop.f32.mrb[90].mxu0 }
 0x333   : > { %v4047_v9 = vpop.f32.mrb[91].mxu0 }
 0x334   : > { %v4083_v56 = vpop.f32.mrb[88].mxu1 }
 0x335   : > { %v4092_v10 = vadd.f32 %v4083_v56, %v3925_v41  ;;  %v4085_v0 = vpop.f32.mrb[89].mxu1 }
 0x336   : > { %v4093_v25 = vadd.f32 %v4085_v0, %v3926_v27  ;;  %v4087_v14 = vpop.f32.mrb[90].mxu1 }
 0x337   : > { %v4088_v53 = vpop.f32.mrb[91].mxu1 }
 0x344   : > { %v4209_v1 = vpop.f32.mrb[92].mxu0 }
 0x345   : > { %v4257_v46 = vadd.f32 %v4209_v1, %v4090_v15  ;;  %v4211_v19 = vpop.f32.mrb[93].mxu0 }
 0x346   : > { %v4258_v20 = vadd.f32 %v4211_v19, %v4091_v36  ;;  %v4213_v29 = vpop.f32.mrb[94].mxu0 }
 0x347   : > { %v4214_v34 = vpop.f32.mrb[95].mxu0 }
 0x348   : > { %v4250_v55 = vpop.f32.mrb[92].mxu1 }
 0x349   : > { %v4259_v47 = vadd.f32 %v4250_v55, %v4092_v10  ;;  %v4252_v58 = vpop.f32.mrb[93].mxu1 }
 0x34a   : > { %v4260_v32 = vadd.f32 %v4252_v58, %v4093_v25  ;;  %v4254_v35 = vpop.f32.mrb[94].mxu1 }
 0x34b   : > { %v4255_v39 = vpop.f32.mrb[95].mxu1 }
 0x354   : > { %v4376_v11 = vpop.f32.mrb[96].mxu0 }
 0x355   : > { %v4424_v60 = vadd.f32 %v4376_v11, %v4257_v46  ;;  %v4378_v21 = vpop.f32.mrb[97].mxu0 }
 0x356   : > { %v4425_v41 = vadd.f32 %v4378_v21, %v4258_v20  ;;  %v4380_v9 = vpop.f32.mrb[98].mxu0 }
 0x357   : > { %v4381_v27 = vpop.f32.mrb[99].mxu0 }
 0x358   : > { %v4417_v56 = vpop.f32.mrb[96].mxu1 }
 0x359   : > { %v4426_v0 = vadd.f32 %v4417_v56, %v4259_v47  ;;  %v4419_v14 = vpop.f32.mrb[97].mxu1 }
 0x35a   : > { %v4427_v15 = vadd.f32 %v4419_v14, %v4260_v32  ;;  %v4421_v53 = vpop.f32.mrb[98].mxu1 }
 0x35b   : > { %v4422_v36 = vpop.f32.mrb[99].mxu1 }
 0x368   : > { %v4543_v1 = vpop.f32.mrb[100].mxu0 }
 0x369   : > { %v4591_v19 = vadd.f32 %v4543_v1, %v4424_v60  ;;  %v4545_v29 = vpop.f32.mrb[101].mxu0 }
 0x36a   : > { %v4592_v10 = vadd.f32 %v4545_v29, %v4425_v41  ;;  %v4547_v34 = vpop.f32.mrb[102].mxu0 }
 0x36b   : > { %v4548_v25 = vpop.f32.mrb[103].mxu0 }
 0x36c   : > { %v4584_v55 = vpop.f32.mrb[100].mxu1 }
 0x36d   : > { %v4593_v58 = vadd.f32 %v4584_v55, %v4426_v0  ;;  %v4586_v35 = vpop.f32.mrb[101].mxu1  ;;  %v4856_v0 = vsel %vm355_vm0, %v10982_v12, %v10986_v43 }
 0x36e   : > { %v4594_v46 = vadd.f32 %v4586_v35, %v4427_v15  ;;  %v4588_v39 = vpop.f32.mrb[102].mxu1  ;;  %v4811_v15 = vsel %vm308_vm1, %v11011_v17, %v11003_v26  ;;  %v4858_v17 = vsel %vm355_vm0, %v11005_v23, %v10991_v61  ;;  %v4813_v35 = vsel %vm308_vm1, %v11017_v57, %v11009_v28 }
 0x36f   : > { %v4589_v20 = vpop.f32.mrb[103].mxu1 }
 0x370   : > { %v5135_v20 = vsel %vm639_vm2, %v11023_v50, %v11015_v31  ;;  %v5137_v50 = vsel %vm639_vm2, %v11033_v62, %v11021_v37 }
 0x378   : > { %v4710_v11 = vpop.f32.mrb[104].mxu0 }
 0x379   : > { %v4758_v21 = vadd.f32 %v4710_v11, %v4591_v19  ;;  %v4712_v9 = vpop.f32.mrb[105].mxu0  ;;  %v11152_v19 = vpop.permute.xlu0 %5961  ;;  %v5301_v11 = vsel %vm808_vm3, %v11041_v3, %v11028_v59  ;;  %v5303_v3 = vsel %vm808_vm3, %v11053_v52, %v11039_v8 }
 0x37a   : > { %v11139_v47 = vadd.f32 %v4712_v9, %v4592_v10  ;;  %v4714_v32 = vpop.f32.mrb[106].mxu0 }
 0x37b   : > { %v4768_v27 = vadd.f32 %v10999_v51, %v4758_v21  ;;  %v4715_v56 = vpop.f32.mrb[107].mxu0 }
 0x37c   : > { %v4751_v60 = vpop.f32.mrb[104].mxu1 }
 0x37d   : > { %v11142_v14 = vmax.f32 %v4768_v27, 0.0  ;;  %v4760_v41 = vadd.f32 %v4751_v60, %v4593_v58  ;;  %v4753_v53 = vpop.f32.mrb[105].mxu1  ;;  %v11175_v21 = vpop.permute.xlu0 %4881 }
 0x37e   : > { %v11150_v36 = vadd.f32 %v4753_v53, %v4594_v46  ;;  %v4755_v1 = vpop.f32.mrb[106].mxu1 }
 0x37f   : > { %v4770_v29 = vadd.f32 %v10999_v51, %v4760_v41  ;;  %v4756_v10 = vpop.f32.mrb[107].mxu1  ;;  %v4865_v34 = vmul.f32 %v4856_v0, %v11142_v14  ;;  %v4820_v25 = vmul.f32 %v4811_v15, %v11142_v14  ;;  %v5144_v27 = vmul.f32 %v5135_v20, %v11142_v14 }
 0x380   : > { %v5310_v56 = vmul.f32 %v5301_v11, %v11142_v14  ;;  %v5467_v1 = vsel %vm977_vm4, %v11060_v18, %v11048_v13  ;;  %v5635_v18 = vsel %vm844_vm5, %v11087_v54, %v11074_v38  ;;  %v5799_v11 = vsel %vm675_vm6, %v11096_v63, %v11085_v2 }
 0x381   : > { %v11157_v55 = vmax.f32 %v4770_v29, 0.0  ;;  %v4872_v58 = vpack.c.bf16 %v4865_v34, %v4865_v34  ;;  %v4826_v12 = vpack.c.bf16 %v4820_v25, %v4820_v25  ;;  %v5151_v60 = vpack.c.bf16 %v5144_v27, %v5144_v27  ;;  %v11189_v15 = vpop.permute.xlu0 %6125 }
 0x382   : > { %v5317_v41 = vpack.c.bf16 %v5310_v56, %v5310_v56  ;;  %v5633_v29 = vsel %vm844_vm5, %v11079_v45, %v11067_v24  ;;  %v5476_v25 = vmul.f32 %v5467_v1, %v11142_v14  ;;  %v5801_v63 = vsel %vm675_vm6, %v11106_v22, %v11094_v48 }
 0x383   : > { %4883 = vrot.lane.b32.xlu1 %v4872_v58, %s9670_s30  ;;  %5000 = vrot.lane.b32.xlu0 %v4826_v12, %s9671_s10  ;;  %v4867_v46 = vmul.f32 %v4858_v17, %v11157_v55  ;;  %v4822_v39 = vmul.f32 %v4813_v35, %v11157_v55  ;;  %v5146_v53 = vmul.f32 %v5137_v50, %v11157_v55  ;;  %v11209_v17 = vpop.permute.xlu1 %6127 }
 0x384   : > { %v5312_v0 = vmul.f32 %v5303_v3, %v11157_v55  ;;  %v5642_v58 = vmul.f32 %v5633_v29, %v11142_v14  ;;  %v5469_v12 = vsel %vm977_vm4, %v11069_v30, %v11058_v42  ;;  %v5483_v35 = vpack.c.bf16 %v5476_v25, %v5476_v25 }
 0x385   : > { %v4874_v9 = vpack.c.bf16 %v4867_v46, %v4867_v46  ;;  %v4828_v32 = vpack.c.bf16 %v4822_v39, %v4822_v39  ;;  %v5153_v10 = vpack.c.bf16 %v5146_v53, %v5146_v53  ;;  %v11211_v45 = vpop.permute.xlu0 %6129  ;;  %v5478_v39 = vmul.f32 %v5469_v12, %v11157_v55 }
 0x386   : > { %v5319_v34 = vpack.c.bf16 %v5312_v0, %v5312_v0  ;;  %v5649_v46 = vpack.c.bf16 %v5642_v58, %v5642_v58  ;;  %v5644_v20 = vmul.f32 %v5635_v18, %v11157_v55  ;;  %v5808_v50 = vmul.f32 %v5799_v11, %v11142_v14 }
 0x387   : > { %4887 = vrot.lane.b32.xlu1 %v4874_v9, %s9670_s30  ;;  %5004 = vrot.lane.b32.xlu0 %v4828_v32, %s9671_s10  ;;  %v5965_v9 = vsel %vm12325_vm11, %v11112_v33, %v11104_v16  ;;  %v4769_v32 = vadd.f32 %v10999_v51, %v11139_v47  ;;  %v5485_v27 = vpack.c.bf16 %v5478_v39, %v5478_v39  ;;  %vm12329_vm11 = vmmov %vm12327_vm8 }
 0x388   : > { %v5651_v56 = vpack.c.bf16 %v5644_v20, %v5644_v20  ;;  %v5974_v3 = vmul.f32 %v5965_v9, %v11142_v14  ;;  %v5967_v33 = vsel %vm12326_vm12, %v11152_v19, %v11122_v44  ;;  %v4771_v53 = vadd.f32 %v10999_v51, %v11150_v36 }
 0x389   : > { %v11239_v47 = vmax.f32 %v4769_v32, 0.0  ;;  %v5815_v0 = vpack.c.bf16 %v5808_v50, %v5808_v50  ;;  %v5810_v29 = vmul.f32 %v5801_v63, %v11157_v55  ;;  %v6131_v25 = vsel %vm12327_vm8, %v11127_v40, %v11189_v15 }
 0x38a   : > { %v5981_v1 = vpack.c.bf16 %v5974_v3, %v5974_v3  ;;  %v11253_v58 = vmax.f32 %v4771_v53, 0.0  ;;  %v4812_v32 = vsel %vm308_vm1, %v11003_v26, %v11017_v57  ;;  %vm12330_vm8 = vcmask 973824  }
 0x38b   : > { %5162 = vrot.lane.b32.xlu1 %v5151_v60, %s9669_s26  ;;  %5328 = vrot.lane.b32.xlu0 %v5317_v41, %s9668_s20  ;;  %v11227_v60 = vpop.permute.xlu1 %4998  ;;  %v11229_v41 = vpop.permute.xlu0 %6289  ;;  %v5817_v12 = vpack.c.bf16 %v5810_v29, %v5810_v29  ;;  %v4821_v3 = vmul.f32 %v4812_v32, %v11239_v47 }
 0x38c   : > { %v4868_v39 = vmul.f32 %v10991_v61, %v11253_v58  ;;  %v5147_v57 = vmul.f32 %v11021_v37, %v11253_v58 }
 0x38d   : > { %v4827_v26 = vpack.c.bf16 %v4821_v3, %v4821_v3 }
 0x38f   : > { %5166 = vrot.lane.b32.xlu1 %v5153_v10, %s9669_s26  ;;  %5332 = vrot.lane.b32.xlu0 %v5319_v34, %s9668_s20  ;;  %v5976_v10 = vmul.f32 %v5967_v33, %v11157_v55  ;;  %v4857_v34 = vsel %vm355_vm0, %v10986_v43, %v11005_v23  ;;  %v11255_v51 = vpop.permute.xlu1 %6291  ;;  %v11257_v36 = vpop.permute.xlu0 %6293  ;;  %v6133_v43 = vsel %vm12328_vm9, %v11209_v17, %v11211_v45  ;;  %vm12331_vm9 = vmmov %vm12330_vm8 }
 0x390   : > { %v6142_v20 = vmul.f32 %v6133_v43, %v11157_v55 }
 0x391   : > { %v5983_v18 = vpack.c.bf16 %v5976_v10, %v5976_v10 }
 0x392   : > { %v6149_v61 = vpack.c.bf16 %v6142_v20, %v6142_v20  ;;  %v5966_v20 = vsel %vm12326_vm12, %v11104_v16, %v11152_v19  ;;  %v6143_v16 = vmul.f32 %v11211_v45, %v11253_v58  ;;  %v9545_v19 = vld [vmem:[%s12300_s1 + $0x40] sm:$0xf] }
 0x393   : > { %5494 = vrot.lane.b32.xlu1 %v5483_v35, %s9667_s17  ;;  %5660 = vrot.lane.b32.xlu0 %v5649_v46, %s9666_s14  ;;  %v4866_v35 = vmul.f32 %v4857_v34, %v11239_v47  ;;  %v6140_v46 = vmul.f32 %v6131_v25, %v11142_v14  ;;  %v11269_v11 = vpop.permute.xlu1 %6295  ;;  %v11271_v9 = vpop.permute.xlu0 %5160  ;;  %v7388_v45 = vrot.slane %v9545_v19, %v9733_v7 }
 0x395   : > { %v4873_v23 = vpack.c.bf16 %v4866_v35, %v4866_v35  ;;  %v6147_v40 = vpack.c.bf16 %v6140_v46, %v6140_v46 }
 0x397   : > { %5498 = vrot.lane.b32.xlu1 %v5485_v27, %s9667_s17  ;;  %5664 = vrot.lane.b32.xlu0 %v5651_v56, %s9666_s14  ;;  %v5136_v27 = vsel %vm639_vm2, %v11015_v31, %v11033_v62  ;;  %v4875_v56 = vpack.c.bf16 %v4868_v39, %v4868_v39  ;;  %v11285_v63 = vpop.permute.xlu1 %6455  ;;  %v11287_v33 = vpop.permute.xlu0 %6457  ;;  %v4823_v31 = vmul.f32 %v11009_v28, %v11253_v58 }
 0x398   : > { %v5145_v50 = vmul.f32 %v5136_v27, %v11239_v47  ;;  %v5302_v62 = vsel %vm808_vm3, %v11028_v59, %v11053_v52  ;;  %v5479_v52 = vmul.f32 %v11058_v42, %v11253_v58 }
 0x399   : > { %v4829_v29 = vpack.c.bf16 %v4823_v31, %v4823_v31  ;;  %v5311_v37 = vmul.f32 %v5302_v62, %v11239_v47  ;;  %v6297_v31 = vsel %vm12330_vm8, %v11229_v41, %v11255_v51  ;;  %v7392_v62 = vrot.slane %v9545_v19, %v9727_v4 }
 0x39a   : > { %v5152_v53 = vpack.c.bf16 %v5145_v50, %v5145_v50  ;;  %v5486_v42 = vpack.c.bf16 %v5479_v52, %v5479_v52  ;;  %v5977_v50 = vmul.f32 %v11122_v44, %v11253_v58  ;;  %v7384_v44 = vrot.slane %v9545_v19, %v9729_v5 }
 0x39b   : > { %5826 = vrot.lane.b32.xlu1 %v5815_v0, %s9665_s11  ;;  %5992 = vrot.lane.b32.xlu0 %v5981_v1, %s9663_s25  ;;  %v5468_v0 = vsel %vm977_vm4, %v11048_v13, %v11069_v30  ;;  %v5154_v1 = vpack.c.bf16 %v5147_v57, %v5147_v57  ;;  %v11303_v34 = vpop.permute.xlu1 %6459  ;;  %v11305_v28 = vpop.permute.xlu0 %6461  ;;  %v5318_v59 = vpack.c.bf16 %v5311_v37, %v5311_v37 }
 0x39c   : > { %v5477_v10 = vmul.f32 %v5468_v0, %v11239_v47  ;;  %v5313_v13 = vmul.f32 %v11039_v8, %v11253_v58  ;;  %v5634_v30 = vsel %vm844_vm5, %v11067_v24, %v11087_v54  ;;  %v5811_v54 = vmul.f32 %v11094_v48, %v11253_v58 }
 0x39d   : > { %v5643_v43 = vmul.f32 %v5634_v30, %v11239_v47  ;;  %v5984_v3 = vpack.c.bf16 %v5977_v50, %v5977_v50  ;;  %v7396_v0 = vrot.slane %v9545_v19, %v9731_v6  ;;  %v6306_v37 = vmul.f32 %v6297_v31, %v11142_v14 }
 0x39e   : > { %v5484_v25 = vpack.c.bf16 %v5477_v10, %v5477_v10  ;;  %v5320_v46 = vpack.c.bf16 %v5313_v13, %v5313_v13  ;;  %v5818_v48 = vpack.c.bf16 %v5811_v54, %v5811_v54 }
 0x39f   : > { %5830 = vrot.lane.b32.xlu1 %v5817_v12, %s9665_s11  ;;  %5996 = vrot.lane.b32.xlu0 %v5983_v18, %s9663_s25  ;;  %v5800_v12 = vsel %vm675_vm6, %v11085_v2, %v11106_v22  ;;  %v11321_v18 = vpop.permute.xlu1 %5326  ;;  %v11323_v35 = vpop.permute.xlu0 %6621  ;;  %v5650_v24 = vpack.c.bf16 %v5643_v43, %v5643_v43  ;;  %v5645_v2 = vmul.f32 %v11074_v38, %v11253_v58 }
 0x3a0   : > { %v5809_v8 = vmul.f32 %v5800_v12, %v11239_v47  ;;  %v6132_v22 = vsel %vm12329_vm11, %v11189_v15, %v11209_v17  ;;  %v5975_v38 = vmul.f32 %v5966_v20, %v11239_v47  ;;  %vm12332_vm11 = vmmov %vm12330_vm8  ;;  %v6463_v20 = vsel %vm1991_vm10, %v11285_v63, %v11287_v33 }
 0x3a1   : > { %v5652_v32 = vpack.c.bf16 %v5645_v2, %v5645_v2  ;;  %v6141_v27 = vmul.f32 %v6132_v22, %v11239_v47  ;;  %vm12333_vm8 = vmmov %vm12326_vm12 }
 0x3a3   : > { %4885 = vrot.lane.b32.xlu0 %v4873_v23, %s9670_s30  ;;  %6158 = vrot.lane.b32.xlu1 %v6147_v40, %s9664_s8  ;;  %v5816_v23 = vpack.c.bf16 %v5809_v8, %v5809_v8  ;;  %v11336_v40 = vpop.permute.xlu1 %6623  ;;  %v11338_v39 = vpop.permute.xlu0 %6625  ;;  %v6309_v8 = vmul.f32 %v11269_v11, %v11253_v58 }
 0x3a5   : > { %v6316_v54 = vpack.c.bf16 %v6309_v8, %v6309_v8 }
 0x3a7   : > { %4889 = vrot.lane.b32.xlu0 %v4875_v56, %s9670_s30  ;;  %6162 = vrot.lane.b32.xlu1 %v6149_v61, %s9664_s8  ;;  %v11349_v15 = vpop.permute.xlu1 %6627  ;;  %v11351_v17 = vpop.permute.xlu0 %5492  ;;  %v5982_v56 = vpack.c.bf16 %v5975_v38, %v5975_v38  ;;  %v6148_v61 = vpack.c.bf16 %v6141_v27, %v6141_v27 }
 0x3ab   : > { %5164 = vrot.lane.b32.xlu0 %v5152_v53, %s9669_s26  ;;  %5002 = vrot.lane.b32.xlu1 %v4827_v26, %s9671_s10  ;;  %v6150_v53 = vpack.c.bf16 %v6143_v16, %v6143_v16  ;;  %v11362_v26 = vpop.permute.xlu1 %6787  ;;  %v11364_v57 = vpop.permute.xlu0 %6789 }
 0x3af   : > { %5168 = vrot.lane.b32.xlu0 %v5154_v1, %s9669_s26  ;;  %5006 = vrot.lane.b32.xlu1 %v4829_v29, %s9671_s10  ;;  %v6305_v1 = vmul.f32 0.0, %v11229_v41  ;;  %v11378_v29 = vpop.permute.xlu1 %6791  ;;  %v11380_v10 = vpop.permute.xlu0 %6793  ;;  %v6313_v41 = vpack.c.bf16 %v6306_v37, %v6306_v37  ;;  %v6629_v37 = vsel %vm2160_vm13, %v11323_v35, %v11336_v40 }
 0x3b1   : > { %v6312_v52 = vpack.c.bf16 %v6305_v1, %v6305_v1 }
 0x3b3   : > { %5496 = vrot.lane.b32.xlu0 %v5484_v25, %s9667_s17  ;;  %5330 = vrot.lane.b32.xlu1 %v5318_v59, %s9668_s20  ;;  %v6298_v25 = vsel %vm12331_vm9, %v11255_v51, %v11257_v36  ;;  %v6299_v59 = vsel %vm12332_vm11, %v11257_v36, %v11269_v11  ;;  %v11393_v12 = vpop.permute.xlu1 %5658  ;;  %v9551_v51 = vld [vmem:[%s12300_s1 + $0x44] sm:$0xf]  ;;  %v6471_v11 = vmul.f32 0.0, %v11285_v63  ;;  %v6465_v63 = vsel %vm1991_vm10, %v11303_v34, %v11305_v28  ;;  %vm12334_vm11 = vmmov %vm12333_vm8 }
 0x3b4   : > { %v6307_v13 = vmul.f32 %v6298_v25, %v11239_v47  ;;  %v6308_v30 = vmul.f32 %v6299_v59, %v11157_v55  ;;  %v7550_v43 = vrot.slane %v9551_v51, %v9729_v5  ;;  %v7554_v2 = vrot.slane %v9551_v51, %v9733_v7 }
 0x3b5   : > { %v7558_v22 = vrot.slane %v9551_v51, %v9727_v4  ;;  %v7562_v27 = vrot.slane %v9551_v51, %v9731_v6  ;;  %v6630_v51 = vsel %vm2160_vm13, %v11336_v40, %v11338_v39  ;;  %v9563_v40 = vld [vmem:[%s12300_s1 + $0x4c] sm:$0xf]  ;;  %vm4898_vm9 = vcmask 1043456  }
 0x3b6   : > { %v6314_v36 = vpack.c.bf16 %v6307_v13, %v6307_v13 }
 0x3b7   : > { %5500 = vrot.lane.b32.xlu0 %v5486_v42, %s9667_s17  ;;  %5334 = vrot.lane.b32.xlu1 %v5320_v46, %s9668_s20  ;;  %v11395_v42 = vpop.permute.xlu0 %5824  ;;  %v6315_v46 = vpack.c.bf16 %v6308_v30, %v6308_v30  ;;  %v6638_v30 = vmul.f32 %v6629_v37, %v11142_v14 }
 0x3bb   : > { %5828 = vrot.lane.b32.xlu0 %v5816_v23, %s9665_s11  ;;  %5662 = vrot.lane.b32.xlu1 %v5650_v24, %s9666_s14  ;;  %v11407_v23 = vpop.permute.xlu1 %7065  ;;  %v11409_v24 = vpop.permute.xlu0 %7067 }
 0x3bf   : > { %5832 = vrot.lane.b32.xlu0 %v5818_v48, %s9665_s11  ;;  %5666 = vrot.lane.b32.xlu1 %v5652_v32, %s9666_s14  ;;  %v6464_v48 = vsel %vm1991_vm10, %v11287_v33, %v11303_v34  ;;  %v11422_v32 = vpop.permute.xlu1 %7069  ;;  %v11424_v38 = vpop.permute.xlu0 %7071  ;;  %v9557_v34 = vld [vmem:[%s12300_s1 + $0x48] sm:$0xf] }
 0x3c0   : > { %v6473_v50 = vmul.f32 %v6464_v48, %v11239_v47  ;;  %v7720_v1 = vrot.slane %v9557_v34, %v9733_v7  ;;  %v7724_v59 = vrot.slane %v9557_v34, %v9727_v4  ;;  %v6641_v48 = vmul.f32 %v11349_v15, %v11253_v58 }
 0x3c3   : > { %5994 = vrot.lane.b32.xlu1 %v5982_v56, %s9663_s25  ;;  %6160 = vrot.lane.b32.xlu0 %v6148_v61, %s9664_s8  ;;  %v6478_v56 = vpack.c.bf16 %v6471_v11, %v6471_v11  ;;  %v6472_v61 = vmul.f32 %v6463_v20, %v11142_v14  ;;  %v11436_v33 = vpop.permute.xlu1 %5990  ;;  %v11438_v16 = vpop.permute.xlu0 %7231 }
 0x3c5   : > { %v6479_v19 = vpack.c.bf16 %v6472_v61, %v6472_v61 }
 0x3c7   : > { %5998 = vrot.lane.b32.xlu1 %v5984_v3, %s9663_s25  ;;  %6164 = vrot.lane.b32.xlu0 %v6150_v53, %s9664_s8  ;;  %v6480_v3 = vpack.c.bf16 %v6473_v50, %v6473_v50  ;;  %v6474_v53 = vmul.f32 %v6465_v63, %v11157_v55  ;;  %v6648_v50 = vpack.c.bf16 %v6641_v48, %v6641_v48 }
 0x3c8   : > { %v7886_v63 = vrot.slane %v9563_v40, %v9733_v7 }
 0x3cb   : > { %7397 = vrot.lane.b32.xlu1 %v7384_v44, %s9679_s12  ;;  %7399 = vrot.lane.b32.xlu0 %v7388_v45, %s9679_s12  ;;  %v6475_v44 = vmul.f32 %v11305_v28, %v11253_v58  ;;  %v6481_v45 = vpack.c.bf16 %v6474_v53, %v6474_v53  ;;  %v7716_v28 = vrot.slane %v9557_v34, %v9729_v5 }
 0x3cd   : > { %v6482_v31 = vpack.c.bf16 %v6475_v44, %v6475_v44  ;;  %v6795_v44 = vsel %vm2329_vm14, %v11362_v26, %v11364_v57 }
 0x3ce   : > { %v6804_v37 = vmul.f32 %v6795_v44, %v11142_v14 }
 0x3cf   : > { %7401 = vrot.lane.b32.xlu1 %v7392_v62, %s9679_s12  ;;  %7403 = vrot.lane.b32.xlu0 %v7396_v0, %s9679_s12  ;;  %v11448_v62 = vpop.permute.xlu1 %7233  ;;  %v11450_v0 = vpop.permute.xlu0 %7235 }
 0x3d3   : > { %6322 = vrot.lane.b32.xlu1 %v6312_v52, %s9680_s13  ;;  %6324 = vrot.lane.b32.xlu0 %v6313_v41, %s9680_s13  ;;  %v11461_v25 = vpop.permute.xlu0 %6156  ;;  %v7728_v52 = vrot.slane %v9557_v34, %v9731_v6  ;;  %v6637_v41 = vmul.f32 0.0, %v11323_v35  ;;  %v11466_v13 = vpop.permute.xlu1 %7237  ;;  %v6796_v34 = vsel %vm2329_vm14, %v11364_v57, %v11378_v29 }
 0x3d7   : > { %6326 = vrot.lane.b32.xlu1 %v6314_v36, %s9680_s13  ;;  %6328 = vrot.lane.b32.xlu0 %v6315_v46, %s9680_s13  ;;  %v6631_v36 = vsel %vm2160_vm13, %v11338_v39, %v11349_v15  ;;  %v6644_v46 = vpack.c.bf16 %v6637_v41, %v6637_v41  ;;  %v6803_v15 = vmul.f32 0.0, %v11362_v26  ;;  %v6797_v26 = vsel %vm2329_vm14, %v11378_v29, %v11380_v10  ;;  %v9569_v29 = vld [vmem:[%s12300_s1 + $0x50] sm:$0xf] }
 0x3d8   : > { %v6811_v41 = vpack.c.bf16 %v6804_v37, %v6804_v37  ;;  %v8056_v48 = vrot.slane %v9569_v29, %v9727_v4 }
 0x3db   : > { %6330 = vrot.lane.b32.xlu1 %v6316_v54, %s9680_s13  ;;  %7563 = vrot.lane.b32.xlu0 %v7550_v43, %s9680_s13  ;;  %v6645_v43 = vpack.c.bf16 %v6638_v30, %v6638_v30  ;;  %v6639_v54 = vmul.f32 %v6630_v51, %v11239_v47  ;;  %v6806_v51 = vmul.f32 %v6797_v26, %v11157_v55  ;;  %v9453_v26 = vld [vmem:[%s12303_s4 + $0x2] sm:$0x3] }
 0x3dd   : > { %v6646_v11 = vpack.c.bf16 %v6639_v54, %v6639_v54  ;;  %v6813_v54 = vpack.c.bf16 %v6806_v51, %v6806_v51 }
 0x3df   : > { %7565 = vrot.lane.b32.xlu1 %v7554_v2, %s9680_s13  ;;  %7567 = vrot.lane.b32.xlu0 %v7558_v22, %s9680_s13  ;;  %v6640_v2 = vmul.f32 %v6631_v36, %v11157_v55  ;;  %v6807_v36 = vmul.f32 %v11380_v10, %v11253_v58  ;;  %v8048_v10 = vrot.slane %v9569_v29, %v9729_v5 }
 0x3e1   : > { %v6647_v20 = vpack.c.bf16 %v6640_v2, %v6640_v2  ;;  %v6814_v2 = vpack.c.bf16 %v6807_v36, %v6807_v36  ;;  %v7075_v36 = vsel %vm2365_vm15, %v11422_v32, %v11424_v38 }
 0x3e3   : > { %7569 = vrot.lane.b32.xlu1 %v7562_v27, %s9680_s13  ;;  %6488 = vrot.lane.b32.xlu0 %v6478_v56, %s9679_s12  ;;  %v7882_v27 = vrot.slane %v9563_v40, %v9729_v5 }
 0x3e7   : > { %6490 = vrot.lane.b32.xlu1 %v6479_v19, %s9679_s12  ;;  %6492 = vrot.lane.b32.xlu0 %v6480_v3, %s9679_s12  ;;  %v7890_v19 = vrot.slane %v9563_v40, %v9727_v4 }
 0x3eb   : > { %6494 = vrot.lane.b32.xlu1 %v6481_v45, %s9679_s12  ;;  %6496 = vrot.lane.b32.xlu0 %v6482_v31, %s9679_s12  ;;  %v7894_v45 = vrot.slane %v9563_v40, %v9731_v6  ;;  %v6810_v31 = vpack.c.bf16 %v6803_v15, %v6803_v15  ;;  %v8052_v40 = vrot.slane %v9569_v29, %v9733_v7 }
 0x3ef   : > { %7729 = vrot.lane.b32.xlu1 %v7716_v28, %s9664_s8  ;;  %7731 = vrot.lane.b32.xlu0 %v7720_v1, %s9664_s8 }
 0x3f3   : > { %7733 = vrot.lane.b32.xlu1 %v7724_v59, %s9664_s8  ;;  %7735 = vrot.lane.b32.xlu0 %v7728_v52, %s9664_s8  ;;  %v6805_v59 = vmul.f32 %v6796_v34, %v11239_v47 }
 0x3f5   : > { %v11477_v8 = vpop.permute.xlu0 %5000  ;;  %v11479_v35 = vpop.permute.xlu1 %4883  ;;  %v6812_v30 = vpack.c.bf16 %v6805_v59, %v6805_v59 }
 0x3f7   : > { %6654 = vrot.lane.b32.xlu1 %v6644_v46, %s9678_s24  ;;  %6656 = vrot.lane.b32.xlu0 %v6645_v43, %s9678_s24 }
 0x3f9   : > { %v11488_v39 = vpop.permute.xlu0 %5004  ;;  %v11490_v22 = vpop.permute.xlu1 %4887 }
 0x3fb   : > { %6658 = vrot.lane.b32.xlu1 %v6646_v11, %s9678_s24  ;;  %6660 = vrot.lane.b32.xlu0 %v6647_v20, %s9678_s24 }
 0x3fd   : > { %v11497_v56 = vpop.permute.xlu0 %5328  ;;  %v11499_v61 = vpop.permute.xlu1 %5162 }
 0x3ff   : > { %6662 = vrot.lane.b32.xlu1 %v6648_v50, %s9678_s24  ;;  %7895 = vrot.lane.b32.xlu0 %v7882_v27, %s9663_s25  ;;  %v8060_v27 = vrot.slane %v9569_v29, %v9731_v6  ;;  %v9575_v50 = vld [vmem:[%s12300_s1 + $0x54] sm:$0xf] }
 0x400   : > { %v8214_v34 = vrot.slane %v9575_v50, %v9729_v5  ;;  %v8226_v51 = vrot.slane %v9575_v50, %v9731_v6 }
 0x401   : > { %v11506_v3 = vpop.permute.xlu0 %5332  ;;  %v11508_v53 = vpop.permute.xlu1 %5166 }
 0x403   : > { %7897 = vrot.lane.b32.xlu1 %v7886_v63, %s9663_s25  ;;  %7899 = vrot.lane.b32.xlu0 %v7890_v19, %s9663_s25  ;;  %v4891_v63 = vsel %vm12326_vm12, %v11175_v21, %v11479_v35  ;;  %v7073_v21 = vsel %vm2365_vm15, %v11407_v23, %v11409_v24  ;;  %vm12335_vm12 = vmmov %vm12333_vm8 }
 0x405   : > { %v11519_v28 = vpop.permute.xlu0 %5660  ;;  %v11521_v1 = vpop.permute.xlu1 %5494 }
 0x407   : > { %7901 = vrot.lane.b32.xlu1 %v7894_v45, %s9663_s25  ;;  %6820 = vrot.lane.b32.xlu0 %v6810_v31, %s9677_s16  ;;  %v8218_v45 = vrot.slane %v9575_v50, %v9733_v7  ;;  %v4900_v31 = vsel %vm4898_vm9, %v4891_v63, 0 }
 0x409   : > { %v11530_v57 = vpop.permute.xlu0 %5664  ;;  %v11532_v52 = vpop.permute.xlu1 %5498 }
 0x40b   : > { %6822 = vrot.lane.b32.xlu1 %v6811_v41, %s9677_s16  ;;  %6824 = vrot.lane.b32.xlu0 %v6812_v30, %s9677_s16  ;;  %v8222_v30 = vrot.slane %v9575_v50, %v9727_v4 }
 0x40d   : > { %v11542_v46 = vpop.permute.xlu0 %5992  ;;  %v11544_v43 = vpop.permute.xlu1 %5826 }
 0x40f   : > { %6826 = vrot.lane.b32.xlu1 %v6813_v54, %s9677_s16  ;;  %6828 = vrot.lane.b32.xlu0 %v6814_v2, %s9677_s16  ;;  %v7082_v54 = vmul.f32 %v7073_v21, %v11239_v47  ;;  %v7074_v2 = vsel %vm2365_vm15, %v11409_v24, %v11422_v32 }
 0x410   : > { %v7083_v50 = vmul.f32 %v7074_v2, %v11157_v55 }
 0x411   : > { %v11550_v11 = vpop.permute.xlu0 %5996  ;;  %v11552_v20 = vpop.permute.xlu1 %5830  ;;  %v7089_v32 = vpack.c.bf16 %v7082_v54, %v7082_v54 }
 0x413   : > { %8061 = vrot.lane.b32.xlu1 %v8048_v10, %s9665_s11  ;;  %8063 = vrot.lane.b32.xlu0 %v8052_v40, %s9665_s11 }
 0x415   : > { %v4886_v19 = vpop.permute.xlu0 %4885  ;;  %v11564_v15 = vpop.permute.xlu1 %6158 }
 0x416   : > { %v4892_v44 = vsel %vm12333_vm8, %v11479_v35, %v4886_v19  ;;  %v4893_v35 = vsel %vm12334_vm11, %v4886_v19, %v11490_v22  ;;  %vm12336_vm8 = vcmask 596992  }
 0x417   : > { %8065 = vrot.lane.b32.xlu1 %v8056_v48, %s9665_s11  ;;  %8067 = vrot.lane.b32.xlu0 %v8060_v27, %s9665_s11  ;;  %v4906_v29 = vsel %vm4898_vm9, %v4893_v35, 0  ;;  %v5008_v10 = vsel %vm12336_vm8, %v11227_v60, %v11477_v8  ;;  %vm12337_vm11 = vmmov %vm12336_vm8  ;;  %v9581_v35 = vld [vmem:[%s12300_s1 + $0x58] sm:$0xf] }
 0x418   : > { %9454 = vmatprep.subr.msk.bf16.mxu0 %vm4898_vm9, %v4892_v44  ;;  %v5016_v60 = vsel %vm4898_vm9, %v5008_v10, 0  ;;  %v9463_v10 = vld [vmem:[%s12303_s4 + $0x4] sm:$0x3] }
 0x419   : > { %4912 = vmatpush1.bf16.msra.mxu0 %v4900_v31  ;;  %v4890_v37 = vpop.permute.xlu0 %4889  ;;  %v11579_v59 = vpop.permute.xlu1 %6162 }
 0x41a   : > { %v4894_v41 = vsel %vm12335_vm12, %v11490_v22, %v4890_v37  ;;  %v7081_v22 = vmul.f32 %v11407_v23, %v11142_v14  ;;  %v7084_v23 = vmul.f32 %v7075_v36, %v11253_v58  ;;  %vm12338_vm12 = vmmov %vm12336_vm8  ;;  %v7085_v37 = vmul.f32 0.0, %v11424_v38 }
 0x41b   : > { %8227 = vrot.lane.b32.xlu1 %v8214_v34, %s9666_s14  ;;  %8229 = vrot.lane.b32.xlu0 %v8218_v45, %s9666_s14  ;;  %v4824_v45 = vld [vmem:[%s12303_s4] sm:$0x3]  ;;  %v8380_v38 = vrot.slane %v9581_v35, %v9729_v5 }
 0x41c   : > { %9455 = vmatmul.mubr.msk.bf16.vlgmr.msra.gmra.mrb[108].mxu0 %vm2027_vm7, %v9453_v26  ;;  %9456 = vmatprep.subr.msk.bf16.mxu1 %vm4898_vm9, %v4894_v41  ;;  %v7088_v24 = vpack.c.bf16 %v7081_v22, %v7081_v22  ;;  %v7091_v21 = vpack.c.bf16 %v7084_v23, %v7084_v23  ;;  %v5336_v22 = vsel %vm844_vm5, %v11321_v18, %v11497_v56 }
 0x41d   : > { %4953 = vmatpush1.bf16.msra.mxu1 %v4906_v29  ;;  %v5165_v40 = vpop.permute.xlu0 %5164  ;;  %v5003_v48 = vpop.permute.xlu1 %5002  ;;  %5059 = vmatprep.mubr.bf16.mxu0 %v9675_v49  ;;  %v7092_v29 = vpack.c.bf16 %v7085_v37, %v7085_v37  ;;  %v8384_v18 = vrot.slane %v9581_v35, %v9733_v7 }
 0x41e   : > { %v5009_v27 = vsel %vm12337_vm11, %v11477_v8, %v5003_v48  ;;  %v5170_v8 = vsel %vm675_vm6, %v11271_v9, %v11499_v61  ;;  %v5010_v63 = vsel %vm12338_vm12, %v5003_v48, %v11488_v39  ;;  %v5171_v44 = vsel %vm675_vm6, %v11499_v61, %v5165_v40 }
 0x41f   : > { %8231 = vrot.lane.b32.xlu1 %v8222_v30, %s9666_s14  ;;  %8233 = vrot.lane.b32.xlu0 %v8226_v51, %s9666_s14  ;;  %v5022_v61 = vsel %vm4898_vm9, %v5010_v63, 0  ;;  %v5178_v31 = vsel %vm4898_vm9, %v5170_v8, 0  ;;  %v7090_v51 = vpack.c.bf16 %v7083_v50, %v7083_v50  ;;  %v8388_v48 = vrot.slane %v9581_v35, %v9727_v4 }
 0x420   : > { %9457 = vmatmul.mubr.msk.bf16.vlgmr.msra.gmra.mrb[108].mxu1 %vm2027_vm7, %v9453_v26  ;;  %9458 = vmatprep.subr.msk.bf16.mxu0 %vm4898_vm9, %v5009_v27  ;;  %v5344_v27 = vsel %vm4898_vm9, %v5336_v22, 0  ;;  %vm12339_vm11 = vcmask 56320   ;;  %v9475_v22 = vld [vmem:[%s12303_s4 + $0x8] sm:$0x3] }
 0x421   : > { %5028 = vmatpush1.bf16.msra.mxu0 %v5016_v60  ;;  %v5169_v19 = vpop.permute.xlu0 %5168  ;;  %v5007_v34 = vpop.permute.xlu1 %5006  ;;  %5100 = vmatprep.mubr.bf16.mxu1 %v9675_v49  ;;  %v7239_v23 = vsel %vm12339_vm11, %v11438_v16, %v11448_v62  ;;  %vm12340_vm12 = vmmov %vm12339_vm11 }
 0x422   : > { %9464 = vmatprep.subr.msk.bf16.mxu0 %vm4898_vm9, %v5171_v44  ;;  %v5011_v9 = vsel %vm12336_vm8, %v11488_v39, %v5007_v34  ;;  %v5172_v39 = vsel %vm675_vm6, %v5165_v40, %v11508_v53  ;;  %v5173_v26 = vsel %vm675_vm6, %v11508_v53, %v5169_v19  ;;  %v7240_v8 = vsel %vm12340_vm12, %v11448_v62, %v11450_v0  ;;  %vm12341_vm8 = vmmov %vm12339_vm11 }
 0x423   : > { %7098 = vrot.lane.b32.xlu1 %v7088_v24, %s9676_s9  ;;  %7100 = vrot.lane.b32.xlu0 %v7089_v32, %s9676_s9  ;;  %v5184_v53 = vsel %vm4898_vm9, %v5172_v39, 0  ;;  %v7248_v63 = vmul.f32 %v7239_v23, %v11239_v47  ;;  %v7241_v19 = vsel %vm12341_vm8, %v11450_v0, %v11466_v13  ;;  %v7249_v62 = vmul.f32 %v7240_v8, %v11157_v55  ;;  %v9469_v0 = vld [vmem:[%s12303_s4 + $0x6] sm:$0x3] }
 0x424   : > { %9459 = vmatmul.mubr.msk.bf16.vlgmr.msra.gmra.mrb[112].mxu0 %vm2027_vm7, %v4824_v45  ;;  %9460 = vmatprep.subr.msk.bf16.mxu1 %vm4898_vm9, %v5011_v9  ;;  %v5502_v34 = vsel %vm977_vm4, %v11351_v17, %v11521_v1  ;;  %v7250_v17 = vmul.f32 %v7241_v19, %v11253_v58  ;;  %vm12342_vm11 = vcmask 72704  }
 0x425   : > { %5069 = vmatpush1.bf16.msra.mxu1 %v5022_v61  ;;  %5190 = vmatpush1.bf16.msra.mxu0 %v5178_v31  ;;  %v11643_v41 = vpop.permute.xlu0 %5496  ;;  %v5331_v30 = vpop.permute.xlu1 %5330  ;;  %v7255_v31 = vpack.c.bf16 %v7248_v63, %v7248_v63  ;;  %vm12343_vm12 = vmmov %vm12342_vm11 }
 0x426   : > { %9466 = vmatprep.subr.msk.bf16.mxu1 %vm4898_vm9, %v5173_v26  ;;  %v5337_v36 = vsel %vm844_vm5, %v11497_v56, %v5331_v30  ;;  %5221 = vmatprep.mubr.bf16.mxu0 %v9675_v49  ;;  %v7247_v56 = vmul.f32 %v11438_v16, %v11142_v14  ;;  %v5338_v60 = vsel %vm844_vm5, %v5331_v30, %v11506_v3  ;;  %vm12344_vm8 = vmmov %vm12342_vm11 }
 0x427   : > { %7104 = vrot.lane.b32.xlu0 %v7091_v21, %s9676_s9  ;;  %7102 = vrot.lane.b32.xlu1 %v7090_v51, %s9676_s9  ;;  %v5503_v24 = vsel %vm977_vm4, %v11521_v1, %v11643_v41  ;;  %v8392_v16 = vrot.slane %v9581_v35, %v9731_v6  ;;  %v5350_v44 = vsel %vm4898_vm9, %v5338_v60, 0  ;;  %v7251_v1 = vmul.f32 0.0, %v11466_v13 }
 0x428   : > { %9461 = vmatmul.mubr.msk.bf16.vlgmr.msra.gmra.mrb[112].mxu1 %vm2027_vm7, %v4824_v45  ;;  %9470 = vmatprep.subr.msk.bf16.mxu0 %vm4898_vm9, %v5337_v36  ;;  %v5510_v21 = vsel %vm4898_vm9, %v5502_v34, 0  ;;  %v7256_v35 = vpack.c.bf16 %v7249_v62, %v7249_v62  ;;  %v5504_v37 = vsel %vm977_vm4, %v11643_v41, %v11532_v52  ;;  %v9587_v41 = vld [vmem:[%s12300_s1 + $0x5c] sm:$0xf]  ;;  %v7257_v51 = vpack.c.bf16 %v7250_v17, %v7250_v17 }
 0x429   : > { %5231 = vmatpush1.bf16.msra.mxu1 %v5184_v53  ;;  %v5501_v54 = vpop.permute.xlu0 %5500  ;;  %v5335_v2 = vpop.permute.xlu1 %5334  ;;  %5262 = vmatprep.mubr.bf16.mxu1 %v9675_v49  ;;  %v7258_v13 = vpack.c.bf16 %v7251_v1, %v7251_v1  ;;  %v5668_v36 = vsel %vm808_vm3, %v11393_v12, %v11519_v28  ;;  %v8550_v12 = vrot.slane %v9587_v41, %v9733_v7 }
 0x42a   : > { %v5339_v40 = vsel %vm844_vm5, %v11506_v3, %v5335_v2  ;;  %v7254_v3 = vpack.c.bf16 %v7247_v56, %v7247_v56  ;;  %v5505_v45 = vsel %vm977_vm4, %v11532_v52, %v5501_v54  ;;  %v5516_v52 = vsel %vm4898_vm9, %v5504_v37, 0 }
 0x42b   : > { %8393 = vrot.lane.b32.xlu0 %v8380_v38, %s9667_s17  ;;  %7106 = vrot.lane.b32.xlu1 %v7092_v29, %s9676_s9  ;;  %v5676_v54 = vsel %vm4898_vm9, %v5668_v36, 0  ;;  %v8558_v56 = vrot.slane %v9587_v41, %v9731_v6  ;;  %v5834_v60 = vsel %vm639_vm2, %v11395_v42, %v11544_v43 }
 0x42c   : > { %9465 = vmatmul.mubr.msk.bf16.vlgmr.msra.gmra.mrb[116].mxu0 %vm2027_vm7, %v9463_v10  ;;  %9472 = vmatprep.subr.msk.bf16.mxu1 %vm4898_vm9, %v5339_v40 }
 0x42d   : > { %5356 = vmatpush1.bf16.msra.mxu0 %v5344_v27  ;;  %v11681_v32 = vpop.permute.xlu0 %5828  ;;  %v5663_v50 = vpop.permute.xlu1 %5662  ;;  %5387 = vmatprep.mubr.bf16.mxu0 %v9675_v49 }
 0x42e   : > { %9476 = vmatprep.subr.msk.bf16.mxu0 %vm4898_vm9, %v5503_v24  ;;  %v5669_v39 = vsel %vm808_vm3, %v11519_v28, %v5663_v50  ;;  %v8546_v28 = vrot.slane %v9587_v41, %v9729_v5  ;;  %v5670_v2 = vsel %vm808_vm3, %v5663_v50, %v11530_v57 }
 0x42f   : > { %8397 = vrot.lane.b32.xlu0 %v8388_v48, %s9667_s17  ;;  %8395 = vrot.lane.b32.xlu1 %v8384_v18, %s9667_s17  ;;  %v5682_v23 = vsel %vm4898_vm9, %v5670_v2, 0 }
 0x430   : > { %9467 = vmatmul.mubr.msk.bf16.vlgmr.msra.gmra.mrb[116].mxu1 %vm2027_vm7, %v9463_v10  ;;  %v5835_v10 = vsel %vm639_vm2, %v11544_v43, %v11681_v32  ;;  %v5836_v43 = vsel %vm639_vm2, %v11681_v32, %v11552_v20 }
 0x431   : > { %5397 = vmatpush1.bf16.msra.mxu1 %v5350_v44  ;;  %v5833_v9 = vpop.permute.xlu0 %5832  ;;  %v5667_v61 = vpop.permute.xlu1 %5666  ;;  %5428 = vmatprep.mubr.bf16.mxu1 %v9675_v49  ;;  %v5842_v44 = vsel %vm4898_vm9, %v5834_v60, 0  ;;  %v5848_v32 = vsel %vm4898_vm9, %v5836_v43, 0 }
 0x432   : > { %9478 = vmatprep.subr.msk.bf16.mxu1 %vm4898_vm9, %v5505_v45  ;;  %v5671_v38 = vsel %vm808_vm3, %v11530_v57, %v5667_v61  ;;  %v8554_v57 = vrot.slane %v9587_v41, %v9727_v4  ;;  %v5837_v24 = vsel %vm639_vm2, %v11552_v20, %v5833_v9  ;;  %v6000_v20 = vsel %vm355_vm0, %v11436_v33, %v11542_v46  ;;  %v9487_v33 = vld [vmem:[%s12303_s4 + $0xc] sm:$0x3] }
 0x433   : > { %7264 = vrot.lane.b32.xlu0 %v7254_v3, %s9674_s27  ;;  %8399 = vrot.lane.b32.xlu1 %v8392_v16, %s9667_s17  ;;  %v9481_v3 = vld [vmem:[%s12303_s4 + $0xa] sm:$0x3] }
 0x434   : > { %9471 = vmatmul.mubr.msk.bf16.vlgmr.msra.gmra.mrb[120].mxu0 %vm2027_vm7, %v9469_v0 }
 0x435   : > { %5522 = vmatpush1.bf16.msra.mxu0 %v5510_v21  ;;  %v11719_v26 = vpop.permute.xlu0 %6160  ;;  %v11721_v30 = vpop.permute.xlu1 %5994  ;;  %5553 = vmatprep.mubr.bf16.mxu0 %v9675_v49 }
 0x436   : > { %9482 = vmatprep.subr.msk.bf16.mxu0 %vm4898_vm9, %v5669_v39  ;;  %v6001_v62 = vsel %vm355_vm0, %v11542_v46, %v11721_v30 }
 0x437   : > { %7268 = vrot.lane.b32.xlu0 %v7256_v35, %s9674_s27  ;;  %7266 = vrot.lane.b32.xlu1 %v7255_v31, %s9674_s27  ;;  %v9593_v31 = vld [vmem:[%s12300_s1 + $0x60] sm:$0xf] }
 0x438   : > { %9473 = vmatmul.mubr.msk.bf16.vlgmr.msra.gmra.mrb[120].mxu1 %vm2027_vm7, %v9469_v0  ;;  %v8712_v46 = vrot.slane %v9593_v31, %v9729_v5 }
 0x439   : > { %5563 = vmatpush1.bf16.msra.mxu1 %v5516_v52  ;;  %v11737_v53 = vpop.permute.xlu0 %6164  ;;  %v5999_v29 = vpop.permute.xlu1 %5998  ;;  %5594 = vmatprep.mubr.bf16.mxu1 %v9675_v49  ;;  %v6002_v52 = vsel %vm355_vm0, %v11721_v30, %v11550_v11 }
 0x43a   : > { %9484 = vmatprep.subr.msk.bf16.mxu1 %vm4898_vm9, %v5671_v38  ;;  %v6003_v17 = vsel %vm355_vm0, %v11550_v11, %v5999_v29  ;;  %v8720_v29 = vrot.slane %v9593_v31, %v9727_v4  ;;  %v8716_v11 = vrot.slane %v9593_v31, %v9733_v7  ;;  %v6014_v30 = vsel %vm4898_vm9, %v6002_v52, 0 }
 0x43b   : > { %7272 = vrot.lane.b32.xlu0 %v7258_v13, %s9674_s27  ;;  %7270 = vrot.lane.b32.xlu1 %v7257_v51, %s9674_s27  ;;  %v6008_v13 = vsel %vm4898_vm9, %v6000_v20, 0  ;;  %v6167_v51 = vsel %vm308_vm1, %v11564_v15, %v11719_v26 }
 0x43c   : > { %9477 = vmatmul.mubr.msk.bf16.vlgmr.msra.gmra.mrb[124].mxu0 %vm2027_vm7, %v9475_v22 }
 0x43d   : > { %5688 = vmatpush1.bf16.msra.mxu0 %v5676_v54  ;;  %v7400_v40 = vpop.permute.xlu0 %7399  ;;  %v7398_v48 = vpop.permute.xlu1 %7397  ;;  %5719 = vmatprep.mubr.bf16.mxu0 %v9675_v49 }
 0x43e   : > { %9488 = vmatprep.subr.msk.bf16.mxu0 %vm4898_vm9, %v5835_v10  ;;  %v7405_v18 = vsel %vm2027_vm7, %v7398_v48, %v7400_v40  ;;  %v7413_v27 = vmul.f32 %v7398_v48, %v11142_v14  ;;  %v9493_v10 = vld [vmem:[%s12303_s4 + $0xe] sm:$0x3] }
 0x43f   : > { %8561 = vrot.lane.b32.xlu0 %v8550_v12, %s9668_s20  ;;  %8559 = vrot.lane.b32.xlu1 %v8546_v28, %s9668_s20  ;;  %v7414_v50 = vmul.f32 %v7405_v18, %v11239_v47  ;;  %v6169_v12 = vsel %vm308_vm1, %v11579_v59, %v11737_v53  ;;  %v6168_v53 = vsel %vm308_vm1, %v11719_v26, %v11579_v59 }
 0x440   : > { %9479 = vmatmul.mubr.msk.bf16.vlgmr.msra.gmra.mrb[124].mxu1 %vm2027_vm7, %v9475_v22  ;;  %v7420_v19 = vpack.c.bf16 %v7413_v27, %v7413_v27  ;;  %v6166_v22 = vsel %vm308_vm1, %v11461_v25, %v11564_v15  ;;  %v8724_v15 = vrot.slane %v9593_v31, %v9731_v6 }
 0x441   : > { %5729 = vmatpush1.bf16.msra.mxu1 %v5682_v23  ;;  %v7404_v8 = vpop.permute.xlu0 %7403  ;;  %v7402_v16 = vpop.permute.xlu1 %7401  ;;  %5760 = vmatprep.mubr.bf16.mxu1 %v9675_v49  ;;  %v7421_v34 = vpack.c.bf16 %v7414_v50, %v7414_v50  ;;  %v6174_v48 = vsel %vm4898_vm9, %v6166_v22, 0  ;;  %v6180_v50 = vsel %vm4898_vm9, %v6168_v53, 0 }
 0x442   : > { %9490 = vmatprep.subr.msk.bf16.mxu1 %vm4898_vm9, %v5837_v24  ;;  %v7406_v63 = vsel %vm2027_vm7, %v7400_v40, %v7402_v16  ;;  %v7407_v42 = vsel %vm2027_vm7, %v7402_v16, %v7404_v8  ;;  %v7417_v1 = vmul.f32 0.0, %v7404_v8 }
 0x443   : > { %8565 = vrot.lane.b32.xlu0 %v8558_v56, %s9668_s20  ;;  %8563 = vrot.lane.b32.xlu1 %v8554_v57, %s9668_s20  ;;  %v7415_v45 = vmul.f32 %v7406_v63, %v11157_v55  ;;  %v7416_v9 = vmul.f32 %v7407_v42, %v11253_v58 }
 0x444   : > { %9483 = vmatmul.mubr.msk.bf16.vlgmr.msra.gmra.mrb[128].mxu0 %vm2027_vm7, %v9481_v3  ;;  %v7424_v41 = vpack.c.bf16 %v7417_v1, %v7417_v1 }
 0x445   : > { %5854 = vmatpush1.bf16.msra.mxu0 %v5842_v44  ;;  %v11790_v61 = vpop.permute.xlu0 %6324  ;;  %v11792_v0 = vpop.permute.xlu1 %6322  ;;  %5885 = vmatprep.mubr.bf16.mxu0 %v9675_v49  ;;  %v7422_v21 = vpack.c.bf16 %v7415_v45, %v7415_v45  ;;  %v7423_v35 = vpack.c.bf16 %v7416_v9, %v7416_v9 }
 0x446   : > { %9494 = vmatprep.subr.msk.bf16.mxu0 %vm4898_vm9, %v6001_v62 }
 0x447   : > { %7430 = vrot.lane.b32.xlu1 %v7420_v19, %s9673_s19  ;;  %7432 = vrot.lane.b32.xlu0 %v7421_v34, %s9673_s19  ;;  %v9499_v19 = vld [vmem:[%s12303_s4 + $0x10] sm:$0x3]  ;;  %v9599_v34 = vld [vmem:[%s12300_s1 + $0x64] sm:$0xf] }
 0x448   : > { %9485 = vmatmul.mubr.msk.bf16.vlgmr.msra.gmra.mrb[128].mxu1 %vm2027_vm7, %v9481_v3  ;;  %v8882_v31 = vrot.slane %v9599_v34, %v9733_v7 }
 0x449   : > { %5895 = vmatpush1.bf16.msra.mxu1 %v5848_v32  ;;  %v11808_v37 = vpop.permute.xlu0 %6328  ;;  %v11810_v39 = vpop.permute.xlu1 %6326  ;;  %5926 = vmatprep.mubr.bf16.mxu1 %v9675_v49 }
 0x44a   : > { %9496 = vmatprep.subr.msk.bf16.mxu1 %vm4898_vm9, %v6003_v17  ;;  %v6333_v18 = vsel %vm12344_vm8, %v11790_v61, %v11810_v39  ;;  %v8878_v17 = vrot.slane %v9599_v34, %v9729_v5 }
 0x44b   : > { %7436 = vrot.lane.b32.xlu0 %v7423_v35, %s9673_s19  ;;  %7434 = vrot.lane.b32.xlu1 %v7422_v21, %s9673_s19 }
 0x44c   : > { %9489 = vmatmul.mubr.msk.bf16.vlgmr.msra.gmra.mrb[132].mxu0 %vm2027_vm7, %v9487_v33 }
 0x44d   : > { %6020 = vmatpush1.bf16.msra.mxu0 %v6008_v13  ;;  %v7564_v36 = vpop.permute.xlu0 %7563  ;;  %v6331_v38 = vpop.permute.xlu1 %6330  ;;  %6051 = vmatprep.mubr.bf16.mxu0 %v9675_v49  ;;  %v8886_v13 = vrot.slane %v9599_v34, %v9727_v4 }
 0x44e   : > { %9500 = vmatprep.subr.msk.bf16.mxu0 %vm4898_vm9, %v6167_v51  ;;  %v7579_v28 = vmul.f32 %v7564_v36, %v11142_v14  ;;  %v6335_v24 = vsel %vm12344_vm8, %v11808_v37, %v6331_v38 }
 0x44f   : > { %8725 = vrot.lane.b32.xlu0 %v8712_v46, %s9669_s26  ;;  %7438 = vrot.lane.b32.xlu1 %v7424_v41, %s9673_s19  ;;  %v8890_v46 = vrot.slane %v9599_v34, %v9731_v6 }
 0x450   : > { %9491 = vmatmul.mubr.msk.bf16.vlgmr.msra.gmra.mrb[132].mxu1 %vm2027_vm7, %v9487_v33  ;;  %v7586_v56 = vpack.c.bf16 %v7579_v28, %v7579_v28 }
 0x451   : > { %6061 = vmatpush1.bf16.msra.mxu1 %v6014_v30  ;;  %v7568_v54 = vpop.permute.xlu0 %7567  ;;  %v7566_v2 = vpop.permute.xlu1 %7565  ;;  %6092 = vmatprep.mubr.bf16.mxu1 %v9675_v49 }
 0x452   : > { %9502 = vmatprep.subr.msk.bf16.mxu1 %vm4898_vm9, %v6169_v12  ;;  %v7571_v40 = vsel %vm12342_vm11, %v7564_v36, %v7566_v2  ;;  %v7572_v25 = vsel %vm12343_vm12, %v7566_v2, %v7568_v54  ;;  %vm12345_vm11 = vmmov %vm12344_vm8 }
 0x453   : > { %8729 = vrot.lane.b32.xlu0 %v8720_v29, %s9669_s26  ;;  %8727 = vrot.lane.b32.xlu1 %v8716_v11, %s9669_s26  ;;  %v7580_v57 = vmul.f32 %v7571_v40, %v11239_v47  ;;  %v7581_v27 = vmul.f32 %v7572_v25, %v11157_v55  ;;  %vm12346_vm12 = vmmov %vm12344_vm8  ;;  %v9511_v25 = vld [vmem:[%s12303_s4 + $0x14] sm:$0x3] }
 0x454   : > { %9495 = vmatmul.mubr.msk.bf16.vlgmr.msra.gmra.mrb[136].mxu0 %vm2027_vm7, %v9493_v10  ;;  %v6332_v26 = vsel %vm12346_vm12, %v11792_v0, %v11790_v61  ;;  %vm12348_vm12 = vcmask 56320  }
 0x455   : > { %6186 = vmatpush1.bf16.msra.mxu0 %v6174_v48  ;;  %v6489_v23 = vpop.permute.xlu0 %6488  ;;  %v7570_v60 = vpop.permute.xlu1 %7569  ;;  %6217 = vmatprep.mubr.bf16.mxu0 %v9675_v49  ;;  %v7587_v8 = vpack.c.bf16 %v7580_v57, %v7580_v57  ;;  %v7588_v16 = vpack.c.bf16 %v7581_v27, %v7581_v27  ;;  %v6340_v62 = vsel %vm4898_vm9, %v6332_v26, 0 }
 0x456   : > { %9506 = vmatprep.subr.msk.bf16.mxu0 %vm4898_vm9, %v6333_v18  ;;  %v7573_v59 = vsel %vm12345_vm11, %v7568_v54, %v7570_v60  ;;  %v7583_v63 = vmul.f32 0.0, %v7570_v60  ;;  %vm12347_vm11 = vmmov %vm12344_vm8 }
 0x457   : > { %7596 = vrot.lane.b32.xlu0 %v7586_v56, %s9672_s15  ;;  %8731 = vrot.lane.b32.xlu1 %v8724_v15, %s9669_s26  ;;  %v7582_v3 = vmul.f32 %v7573_v59, %v11253_v58  ;;  %v6334_v45 = vsel %vm12347_vm11, %v11810_v39, %v11808_v37  ;;  %v9505_v39 = vld [vmem:[%s12303_s4 + $0x12] sm:$0x3]  ;;  %v9605_v15 = vld [vmem:[%s12300_s1 + $0x68] sm:$0xf]  ;;  %vm12349_vm8 = vmmov %vm12348_vm12 }
 0x458   : > { %9497 = vmatmul.mubr.msk.bf16.vlgmr.msra.gmra.mrb[136].mxu1 %vm2027_vm7, %v9493_v10  ;;  %v7590_v61 = vpack.c.bf16 %v7583_v63, %v7583_v63  ;;  %v6346_v1 = vsel %vm4898_vm9, %v6334_v45, 0  ;;  %v9044_v60 = vrot.slane %v9605_v15, %v9729_v5  ;;  %vm12350_vm11 = vmmov %vm12349_vm8  ;;  %v9048_v63 = vrot.slane %v9605_v15, %v9733_v7 }
 0x459   : > { %6227 = vmatpush1.bf16.msra.mxu1 %v6180_v50  ;;  %v6493_v42 = vpop.permute.xlu0 %6492  ;;  %v6491_v43 = vpop.permute.xlu1 %6490  ;;  %6258 = vmatprep.mubr.bf16.mxu1 %v9675_v49  ;;  %v7589_v9 = vpack.c.bf16 %v7582_v3, %v7582_v3  ;;  %v9052_v3 = vrot.slane %v9605_v15, %v9727_v4  ;;  %v9056_v4 = vrot.slane %v9605_v15, %v9731_v6 }
 0x45a   : > { %9508 = vmatprep.subr.msk.bf16.mxu1 %vm4898_vm9, %v6335_v24  ;;  %v6499_v44 = vsel %vm2027_vm7, %v6491_v43, %v6493_v42  ;;  %v6498_v21 = vsel %vm2027_vm7, %v6489_v23, %v6491_v43 }
 0x45b   : > { %7600 = vrot.lane.b32.xlu0 %v7588_v16, %s9672_s15  ;;  %7598 = vrot.lane.b32.xlu1 %v7587_v8, %s9672_s15  ;;  %v6506_v41 = vsel %vm4898_vm9, %v6498_v21, 0  ;;  %v9517_v16 = vld [vmem:[%s12303_s4 + $0x16] sm:$0x3] }
 0x45c   : > { %9501 = vmatmul.mubr.msk.bf16.vlgmr.msra.gmra.mrb[140].mxu0 %vm2027_vm7, %v9499_v19 }
 0x45d   : > { %6352 = vmatpush1.bf16.msra.mxu0 %v6340_v62  ;;  %v6497_v0 = vpop.permute.xlu0 %6496  ;;  %v6495_v20 = vpop.permute.xlu1 %6494  ;;  %6383 = vmatprep.mubr.bf16.mxu0 %v9675_v49 }
 0x45e   : > { %9512 = vmatprep.subr.msk.bf16.mxu0 %vm4898_vm9, %v6499_v44  ;;  %v6501_v32 = vsel %vm2027_vm7, %v6495_v20, %v6497_v0  ;;  %v6500_v51 = vsel %vm2027_vm7, %v6493_v42, %v6495_v20 }
 0x45f   : > { %7604 = vrot.lane.b32.xlu0 %v7590_v61, %s9672_s15  ;;  %7602 = vrot.lane.b32.xlu1 %v7589_v9, %s9672_s15  ;;  %v6512_v12 = vsel %vm4898_vm9, %v6500_v51, 0 }
 0x460   : > { %9503 = vmatmul.mubr.msk.bf16.vlgmr.msra.gmra.mrb[140].mxu1 %vm2027_vm7, %v9499_v19 }
 0x461   : > { %6393 = vmatpush1.bf16.msra.mxu1 %v6346_v1  ;;  %v7732_v35 = vpop.permute.xlu0 %7731  ;;  %v7730_v37 = vpop.permute.xlu1 %7729  ;;  %6424 = vmatprep.mubr.bf16.mxu1 %v9675_v49 }
 0x462   : > { %9514 = vmatprep.subr.msk.bf16.mxu1 %vm4898_vm9, %v6501_v32  ;;  %v7737_v33 = vsel %vm308_vm1, %v7730_v37, %v7732_v35  ;;  %v7745_v52 = vmul.f32 %v7730_v37, %v11142_v14 }
 0x463   : > { %8893 = vrot.lane.b32.xlu0 %v8882_v31, %s9670_s30  ;;  %8891 = vrot.lane.b32.xlu1 %v8878_v17, %s9670_s30  ;;  %v7746_v36 = vmul.f32 %v7737_v33, %v11239_v47  ;;  %v6938_v33 = vpack.c.bf16 %v11239_v47, %v11239_v47 }
 0x464   : > { %9507 = vmatmul.mubr.msk.bf16.vlgmr.msra.gmra.mrb[144].mxu0 %vm2027_vm7, %v9505_v39  ;;  %v7752_v22 = vpack.c.bf16 %v7745_v52, %v7745_v52 }
 0x465   : > { %6518 = vmatpush1.bf16.msra.mxu0 %v6506_v41  ;;  %v7736_v38 = vpop.permute.xlu0 %7735  ;;  %v7734_v29 = vpop.permute.xlu1 %7733  ;;  %6549 = vmatprep.mubr.bf16.mxu0 %v9675_v49  ;;  %v7753_v28 = vpack.c.bf16 %v7746_v36, %v7746_v36  ;;  %v9523_v36 = vld [vmem:[%s12303_s4 + $0x18] sm:$0x3] }
 0x466   : > { %v7738_v11 = vsel %vm308_vm1, %v7732_v35, %v7734_v29  ;;  %v7739_v30 = vsel %vm308_vm1, %v7734_v29, %v7736_v38  ;;  %v7749_v53 = vmul.f32 0.0, %v7736_v38 }
 0x467   : > { %8897 = vrot.lane.b32.xlu0 %v8890_v46, %s9670_s30  ;;  %8895 = vrot.lane.b32.xlu1 %v8886_v13, %s9670_s30  ;;  %v7747_v54 = vmul.f32 %v7738_v11, %v11157_v55  ;;  %v7748_v2 = vmul.f32 %v7739_v30, %v11253_v58  ;;  %v6937_v46 = vpack.c.bf16 %v11142_v14, %v11142_v14 }
 0x468   : > { %9509 = vmatmul.mubr.msk.bf16.vlgmr.msra.gmra.mrb[144].mxu1 %vm2027_vm7, %v9505_v39  ;;  %v7756_v26 = vpack.c.bf16 %v7749_v53, %v7749_v53 }
 0x469   : > { %6559 = vmatpush1.bf16.msra.mxu1 %v6512_v12  ;;  %v6657_v10 = vpop.permute.xlu0 %6656  ;;  %v6655_v40 = vpop.permute.xlu1 %6654  ;;  %6590 = vmatprep.mubr.bf16.mxu1 %v9675_v49  ;;  %v7754_v48 = vpack.c.bf16 %v7747_v54, %v7747_v54  ;;  %v7755_v18 = vpack.c.bf16 %v7748_v2, %v7748_v2  ;;  %v6945_v30 = vsel %vm4898_vm9, %v6937_v46, 0  ;;  %v6939_v12 = vpack.c.bf16 %v11157_v55, %v11157_v55 }
 0x46a   : > { %v6664_v56 = vsel %vm12348_vm12, %v6655_v40, %v6657_v10  ;;  %vm12351_vm12 = vmmov %vm12349_vm8 }
 0x46b   : > { %7762 = vrot.lane.b32.xlu1 %v7752_v22, %s9671_s10  ;;  %7764 = vrot.lane.b32.xlu0 %v7753_v28, %s9671_s10  ;;  %v6672_v59 = vsel %vm4898_vm9, %v6664_v56, 0  ;;  %v6940_v22 = vpack.c.bf16 %v11253_v58, %v11253_v58  ;;  %v6951_v15 = vsel %vm4898_vm9, %v6939_v12, 0  ;;  %v9528_v56 = vld [vmem:[%s12303_s4 + $0x1a] sm:$0x3] }
 0x46c   : > { %9513 = vmatmul.mubr.msk.bf16.vlgmr.msra.gmra.mrb[148].mxu0 %vm2027_vm7, %v9511_v25 }
 0x46d   : > { %v6661_v57 = vpop.permute.xlu0 %6660  ;;  %v6659_v27 = vpop.permute.xlu1 %6658  ;;  %6715 = vmatprep.mubr.bf16.mxu0 %v9675_v49 }
 0x46e   : > { %v6665_v23 = vsel %vm12349_vm8, %v6657_v10, %v6659_v27  ;;  %v6666_v24 = vsel %vm12350_vm11, %v6659_v27, %v6661_v57  ;;  %vm12356_vm8 = vcmask 588800  }
 0x46f   : > { %7768 = vrot.lane.b32.xlu0 %v7755_v18, %s9671_s10  ;;  %7766 = vrot.lane.b32.xlu1 %v7754_v48, %s9671_s10  ;;  %v6678_v42 = vsel %vm4898_vm9, %v6666_v24, 0  ;;  %vm12357_vm11 = vmmov %vm12356_vm8 }
 0x470   : > { %9518 = vmatprep.subr.msk.bf16.mxu0 %vm4898_vm9, %v6665_v23  ;;  %9515 = vmatmul.mubr.msk.bf16.vlgmr.msra.gmra.mrb[148].mxu1 %vm2027_vm7, %v9511_v25 }
 0x471   : > { %6684 = vmatpush1.bf16.msra.mxu0 %v6672_v59  ;;  %v7896_v50 = vpop.permute.xlu0 %7895  ;;  %v6663_v8 = vpop.permute.xlu1 %6662  ;;  %6756 = vmatprep.mubr.bf16.mxu1 %v9675_v49 }
 0x472   : > { %v6667_v5 = vsel %vm12351_vm12, %v6661_v57, %v6663_v8  ;;  %v7911_v43 = vmul.f32 %v7896_v50, %v11142_v14  ;;  %vm12358_vm12 = vmmov %vm12356_vm8 }
 0x473   : > { %9057 = vrot.lane.b32.xlu0 %v9044_v60, %s9671_s10  ;;  %7770 = vrot.lane.b32.xlu1 %v7756_v26, %s9671_s10 }
 0x474   : > { %9520 = vmatprep.subr.msk.bf16.mxu1 %vm4898_vm9, %v6667_v5  ;;  %9519 = vmatmul.mubr.msk.bf16.vlgmr.msra.gmra.mrb[152].mxu0 %vm2027_vm7, %v9517_v16  ;;  %v7918_v7 = vpack.c.bf16 %v7911_v43, %v7911_v43 }
 0x475   : > { %6725 = vmatpush1.bf16.msra.mxu1 %v6678_v42  ;;  %v7900_v19 = vpop.permute.xlu0 %7899  ;;  %v7898_v44 = vpop.permute.xlu1 %7897  ;;  %6881 = vmatprep.mubr.bf16.mxu0 %v9675_v49 }
 0x476   : > { %v7903_v62 = vsel %vm355_vm0, %v7896_v50, %v7898_v44  ;;  %v7904_v34 = vsel %vm355_vm0, %v7898_v44, %v7900_v19 }
 0x477   : > { %9061 = vrot.lane.b32.xlu0 %v9052_v3, %s9671_s10  ;;  %9059 = vrot.lane.b32.xlu1 %v9048_v63, %s9671_s10  ;;  %v7912_v45 = vmul.f32 %v7903_v62, %v11239_v47  ;;  %v7913_v9 = vmul.f32 %v7904_v34, %v11157_v55 }
 0x478   : > { %9521 = vmatmul.mubr.msk.bf16.vlgmr.msra.gmra.mrb[152].mxu1 %vm2027_vm7, %v9517_v16 }
 0x479   : > { %v6821_v61 = vpop.permute.xlu0 %6820  ;;  %v7902_v0 = vpop.permute.xlu1 %7901  ;;  %6922 = vmatprep.mubr.bf16.mxu1 %v9675_v49  ;;  %v7919_v32 = vpack.c.bf16 %v7912_v45, %v7912_v45  ;;  %v7920_v31 = vpack.c.bf16 %v7913_v9, %v7913_v9 }
 0x47a   : > { %v7905_v20 = vsel %vm355_vm0, %v7900_v19, %v7902_v0  ;;  %v7915_v17 = vmul.f32 0.0, %v7902_v0 }
 0x47b   : > { %7928 = vrot.lane.b32.xlu0 %v7918_v7, %s9670_s30  ;;  %9063 = vrot.lane.b32.xlu1 %v9056_v4, %s9671_s10  ;;  %v7914_v6 = vmul.f32 %v7905_v20, %v11253_v58 }
 0x47c   : > { %v7922_v52 = vpack.c.bf16 %v7915_v17, %v7915_v17 }
 0x47d   : > { %v6825_v1 = vpop.permute.xlu0 %6824  ;;  %v6823_v21 = vpop.permute.xlu1 %6822  ;;  %v7921_v13 = vpack.c.bf16 %v7914_v6, %v7914_v6 }
 0x47e   : > { %v6830_v35 = vsel %vm2365_vm15, %v6821_v61, %v6823_v21  ;;  %v6831_v37 = vsel %vm2365_vm15, %v6823_v21, %v6825_v1 }
 0x47f   : > { %v6838_v39 = vsel %vm4898_vm9, %v6830_v35, 0  ;;  %7932 = vrot.lane.b32.xlu0 %v7920_v31, %s9670_s30  ;;  %7930 = vrot.lane.b32.xlu1 %v7919_v32, %s9670_s30 }
 0x480   : > { %9524 = vmatprep.subr.msk.bf16.mxu0 %vm4898_vm9, %v6831_v37 }
 0x481   : > { %6850 = vmatpush1.bf16.msra.mxu0 %v6838_v39  ;;  %v6829_v41 = vpop.permute.xlu0 %6828  ;;  %v6827_v51 = vpop.permute.xlu1 %6826 }
 0x482   : > { %9529 = vmatprep.subr.msk.bf16.mxu0 %vm4898_vm9, %v6938_v33  ;;  %v6832_v38 = vsel %vm2365_vm15, %v6825_v1, %v6827_v51  ;;  %v6833_v29 = vsel %vm2365_vm15, %v6827_v51, %v6829_v41  ;;  %v9534_v33 = vld [vmem:[%s12303_s4 + $0x1c] sm:$0x3] }
 0x483   : > { %v6844_v11 = vsel %vm4898_vm9, %v6832_v38, 0  ;;  %7936 = vrot.lane.b32.xlu0 %v7922_v52, %s9670_s30  ;;  %7934 = vrot.lane.b32.xlu1 %v7921_v13, %s9670_s30 }
 0x484   : > { %9526 = vmatprep.subr.msk.bf16.mxu1 %vm4898_vm9, %v6833_v29  ;;  %9525 = vmatmul.mubr.msk.bf16.vlgmr.msra.gmra.mrb[156].mxu0 %vm2027_vm7, %v9523_v36 }
 0x485   : > { %6891 = vmatpush1.bf16.msra.mxu1 %v6844_v11  ;;  %6957 = vmatpush1.bf16.msra.mxu0 %v6945_v30  ;;  %v8064_v28 = vpop.permute.xlu0 %8063  ;;  %v8062_v54 = vpop.permute.xlu1 %8061 }
 0x486   : > { %9531 = vmatprep.subr.msk.bf16.mxu1 %vm4898_vm9, %v6940_v22  ;;  %v8069_v2 = vsel %vm639_vm2, %v8062_v54, %v8064_v28  ;;  %v8077_v10 = vmul.f32 %v8062_v54, %v11142_v14  ;;  %6988 = vmatprep.mubr.bf16.mxu0 %v9675_v49 }
 0x487   : > { %v8078_v40 = vmul.f32 %v8069_v2, %v11239_v47 }
 0x488   : > { %v8084_v25 = vpack.c.bf16 %v8077_v10, %v8077_v10  ;;  %9527 = vmatmul.mubr.msk.bf16.vlgmr.msra.gmra.mrb[156].mxu1 %vm2027_vm7, %v9523_v36 }
 0x489   : > { %v8085_v53 = vpack.c.bf16 %v8078_v40, %v8078_v40  ;;  %6998 = vmatpush1.bf16.msra.mxu1 %v6951_v15  ;;  %v8068_v48 = vpop.permute.xlu0 %8067  ;;  %v8066_v18 = vpop.permute.xlu1 %8065  ;;  %7029 = vmatprep.mubr.bf16.mxu1 %v9675_v49 }
 0x48a   : > { %v8070_v57 = vsel %vm639_vm2, %v8064_v28, %v8066_v18  ;;  %v8071_v27 = vsel %vm639_vm2, %v8066_v18, %v8068_v48  ;;  %8094 = vrot.lane.b32.xlu1 %v8084_v25, %s9669_s26  ;;  %v8081_v59 = vmul.f32 0.0, %v8068_v48 }
 0x48b   : > { %v8079_v23 = vmul.f32 %v8070_v57, %v11157_v55  ;;  %v8080_v60 = vmul.f32 %v8071_v27, %v11253_v58  ;;  %8096 = vrot.lane.b32.xlu0 %v8085_v53, %s9669_s26 }
 0x48c   : > { %9530 = vmatmul.mubr.msk.bf16.vlgmr.msra.gmra.mrb[160].mxu0 %vm2027_vm7, %v9528_v56  ;;  %v8088_v63 = vpack.c.bf16 %v8081_v59, %v8081_v59 }
 0x48d   : > { %v8086_v26 = vpack.c.bf16 %v8079_v23, %v8079_v23  ;;  %v8087_v24 = vpack.c.bf16 %v8080_v60, %v8080_v60  ;;  %v8230_v50 = vpop.permute.xlu0 %8229  ;;  %v8228_v8 = vpop.permute.xlu1 %8227  ;;  %7159 = vmatprep.mubr.bf16.mxu0 %v9675_v49  ;;  %v9540_v60 = vld [vmem:[%s12303_s4 + $0x1e] sm:$0x3] }
 0x48e   : > { %v8235_v16 = vsel %vm808_vm3, %v8228_v8, %v8230_v50  ;;  %v8243_v5 = vmul.f32 %v8228_v8, %v11142_v14 }
 0x48f   : > { %8100 = vrot.lane.b32.xlu0 %v8087_v24, %s9669_s26  ;;  %8098 = vrot.lane.b32.xlu1 %v8086_v26, %s9669_s26  ;;  %v8244_v42 = vmul.f32 %v8235_v16, %v11239_v47 }
 0x490   : > { %v8250_v3 = vpack.c.bf16 %v8243_v5, %v8243_v5  ;;  %9532 = vmatmul.mubr.msk.bf16.vlgmr.msra.gmra.mrb[160].mxu1 %vm2027_vm7, %v9528_v56 }
 0x491   : > { %v8234_v43 = vpop.permute.xlu0 %8233  ;;  %v8232_v19 = vpop.permute.xlu1 %8231  ;;  %7200 = vmatprep.mubr.bf16.mxu1 %v9675_v49  ;;  %v8251_v4 = vpack.c.bf16 %v8244_v42, %v8244_v42 }
 0x492   : > { %v8236_v44 = vsel %vm808_vm3, %v8230_v50, %v8232_v19  ;;  %v8237_v62 = vsel %vm808_vm3, %v8232_v19, %v8234_v43  ;;  %v8247_v7 = vmul.f32 0.0, %v8234_v43 }
 0x493   : > { %v8245_v34 = vmul.f32 %v8236_v44, %v11157_v55  ;;  %8102 = vrot.lane.b32.xlu1 %v8088_v63, %s9669_s26  ;;  %8260 = vrot.lane.b32.xlu0 %v8250_v3, %s9668_s20  ;;  %v8246_v45 = vmul.f32 %v8237_v62, %v11253_v58 }
 0x494   : > { %v8254_v20 = vpack.c.bf16 %v8247_v7, %v8247_v7 }
 0x495   : > { %v8252_v9 = vpack.c.bf16 %v8245_v34, %v8245_v34  ;;  %v7101_v61 = vpop.permute.xlu0 %7100  ;;  %v7099_v0 = vpop.permute.xlu1 %7098  ;;  %v8253_v32 = vpack.c.bf16 %v8246_v45, %v8246_v45 }
 0x496   : > { %v7108_v31 = vsel %vm2329_vm14, %v7099_v0, %v7101_v61 }
 0x497   : > { %8262 = vrot.lane.b32.xlu1 %v8251_v4, %s9668_s20  ;;  %8264 = vrot.lane.b32.xlu0 %v8252_v9, %s9668_s20  ;;  %v7116_v21 = vsel %vm4898_vm9, %v7108_v31, 0 }
 0x499   : > { %v7105_v6 = vpop.permute.xlu0 %7104  ;;  %v7103_v17 = vpop.permute.xlu1 %7102 }
 0x49a   : > { %v7109_v1 = vsel %vm2329_vm14, %v7101_v61, %v7103_v17  ;;  %v7110_v35 = vsel %vm2329_vm14, %v7103_v17, %v7105_v6 }
 0x49b   : > { %8266 = vrot.lane.b32.xlu1 %v8253_v32, %s9668_s20  ;;  %8268 = vrot.lane.b32.xlu0 %v8254_v20, %s9668_s20  ;;  %v7122_v52 = vsel %vm4898_vm9, %v7110_v35, 0  ;;  %v9546_v35 = vld [vmem:[%s12303_s4 + $0x20] sm:$0x3] }
 0x49c   : > { %9535 = vmatprep.subr.msk.bf16.mxu0 %vm4898_vm9, %v7109_v1 }
 0x49d   : > { %7128 = vmatpush1.bf16.msra.mxu0 %v7116_v21  ;;  %v8394_v37 = vpop.permute.xlu0 %8393  ;;  %v7107_v39 = vpop.permute.xlu1 %7106 }
 0x49e   : > { %v8409_v46 = vmul.f32 %v8394_v37, %v11142_v14  ;;  %v7111_v13 = vsel %vm2329_vm14, %v7105_v6, %v7107_v39 }
 0x49f   : > { %9537 = vmatprep.subr.msk.bf16.mxu1 %vm4898_vm9, %v7111_v13 }
 0x4a0   : > { %v8416_v41 = vpack.c.bf16 %v8409_v46, %v8409_v46  ;;  %7169 = vmatpush1.bf16.msra.mxu1 %v7122_v52  ;;  %9536 = vmatmul.mubr.msk.bf16.vlgmr.msra.gmra.mrb[164].mxu0 %vm2027_vm7, %v9534_v33 }
 0x4a1   : > { %v8398_v51 = vpop.permute.xlu0 %8397  ;;  %v8396_v36 = vpop.permute.xlu1 %8395  ;;  %7325 = vmatprep.mubr.bf16.mxu0 %v9675_v49 }
 0x4a2   : > { %v8401_v38 = vsel %vm977_vm4, %v8394_v37, %v8396_v36  ;;  %v8402_v29 = vsel %vm977_vm4, %v8396_v36, %v8398_v51  ;;  %8426 = vrot.lane.b32.xlu1 %v8416_v41, %s9667_s17 }
 0x4a3   : > { %v8410_v11 = vmul.f32 %v8401_v38, %v11239_v47  ;;  %v8411_v30 = vmul.f32 %v8402_v29, %v11157_v55  ;;  %9538 = vmatmul.mubr.msk.bf16.vlgmr.msra.gmra.mrb[164].mxu1 %vm2027_vm7, %v9534_v33 }
 0x4a4   : > { %7366 = vmatprep.mubr.bf16.mxu1 %v9675_v49 }
 0x4a5   : > { %v8417_v22 = vpack.c.bf16 %v8410_v11, %v8410_v11  ;;  %v8418_v12 = vpack.c.bf16 %v8411_v30, %v8411_v30  ;;  %v7265_v28 = vpop.permute.xlu0 %7264  ;;  %v8400_v54 = vpop.permute.xlu1 %8399 }
 0x4a6   : > { %v8403_v2 = vsel %vm977_vm4, %v8398_v51, %v8400_v54  ;;  %v8413_v10 = vmul.f32 0.0, %v8400_v54 }
 0x4a7   : > { %v8412_v40 = vmul.f32 %v8403_v2, %v11253_v58  ;;  %8430 = vrot.lane.b32.xlu1 %v8418_v12, %s9667_s17  ;;  %8428 = vrot.lane.b32.xlu0 %v8417_v22, %s9667_s17 }
 0x4a8   : > { %v8420_v25 = vpack.c.bf16 %v8413_v10, %v8413_v10 }
 0x4a9   : > { %v8419_v15 = vpack.c.bf16 %v8412_v40, %v8412_v40  ;;  %v7269_v53 = vpop.permute.xlu0 %7268  ;;  %v7267_v48 = vpop.permute.xlu1 %7266 }
 0x4aa   : > { %v7274_v18 = vsel %vm2160_vm13, %v7265_v28, %v7267_v48  ;;  %v7275_v56 = vsel %vm2160_vm13, %v7267_v48, %v7269_v53 }
 0x4ab   : > { %v7282_v57 = vsel %vm4898_vm9, %v7274_v18, 0  ;;  %8434 = vrot.lane.b32.xlu1 %v8420_v25, %s9667_s17  ;;  %8432 = vrot.lane.b32.xlu0 %v8419_v15, %s9667_s17 }
 0x4ac   : > { %9541 = vmatprep.subr.msk.bf16.mxu0 %vm4898_vm9, %v7275_v56 }
 0x4ad   : > { %7294 = vmatpush1.bf16.msra.mxu0 %v7282_v57  ;;  %v7273_v27 = vpop.permute.xlu0 %7272  ;;  %v7271_v23 = vpop.permute.xlu1 %7270 }
 0x4ae   : > { %v7276_v59 = vsel %vm2160_vm13, %v7269_v53, %v7271_v23  ;;  %v7277_v26 = vsel %vm2160_vm13, %v7271_v23, %v7273_v27  ;;  %v9552_v23 = vld [vmem:[%s12303_s4 + $0x22] sm:$0x3] }
 0x4af   : > { %v7288_v24 = vsel %vm4898_vm9, %v7276_v59, 0  ;;  %9543 = vmatprep.subr.msk.bf16.mxu1 %vm4898_vm9, %v7277_v26 }
 0x4b0   : > { %7335 = vmatpush1.bf16.msra.mxu1 %v7288_v24  ;;  %9542 = vmatmul.mubr.msk.bf16.vlgmr.msra.gmra.mrb[168].mxu0 %vm2027_vm7, %v9540_v60 }
 0x4b1   : > { %v8562_v50 = vpop.permute.xlu0 %8561  ;;  %v8560_v8 = vpop.permute.xlu1 %8559  ;;  %7491 = vmatprep.mubr.bf16.mxu0 %v9675_v49 }
 0x4b2   : > { %v8567_v16 = vsel %vm844_vm5, %v8560_v8, %v8562_v50  ;;  %v8575_v5 = vmul.f32 %v8560_v8, %v11142_v14 }
 0x4b3   : > { %v8576_v3 = vmul.f32 %v8567_v16, %v11239_v47  ;;  %9544 = vmatmul.mubr.msk.bf16.vlgmr.msra.gmra.mrb[168].mxu1 %vm2027_vm7, %v9540_v60 }
 0x4b4   : > { %v8582_v63 = vpack.c.bf16 %v8575_v5, %v8575_v5  ;;  %7532 = vmatprep.mubr.bf16.mxu1 %v9675_v49 }
 0x4b5   : > { %v8583_v42 = vpack.c.bf16 %v8576_v3, %v8576_v3  ;;  %v8566_v43 = vpop.permute.xlu0 %8565  ;;  %v8564_v19 = vpop.permute.xlu1 %8563 }
 0x4b6   : > { %v8568_v44 = vsel %vm844_vm5, %v8562_v50, %v8564_v19  ;;  %v8569_v62 = vsel %vm844_vm5, %v8564_v19, %v8566_v43  ;;  %8592 = vrot.lane.b32.xlu0 %v8582_v63, %s9666_s14  ;;  %v8579_v7 = vmul.f32 0.0, %v8566_v43 }
 0x4b7   : > { %v8577_v34 = vmul.f32 %v8568_v44, %v11157_v55  ;;  %v8578_v4 = vmul.f32 %v8569_v62, %v11253_v58  ;;  %8594 = vrot.lane.b32.xlu1 %v8583_v42, %s9666_s14 }
 0x4b8   : > { %v8586_v32 = vpack.c.bf16 %v8579_v7, %v8579_v7 }
 0x4b9   : > { %v8584_v45 = vpack.c.bf16 %v8577_v34, %v8577_v34  ;;  %v8585_v9 = vpack.c.bf16 %v8578_v4, %v8578_v4  ;;  %v7433_v61 = vpop.permute.xlu0 %7432  ;;  %v7431_v0 = vpop.permute.xlu1 %7430 }
 0x4ba   : > { %v7440_v20 = vsel %vm1991_vm10, %v7431_v0, %v7433_v61 }
 0x4bb   : > { %8598 = vrot.lane.b32.xlu1 %v8585_v9, %s9666_s14  ;;  %8596 = vrot.lane.b32.xlu0 %v8584_v45, %s9666_s14  ;;  %v7448_v1 = vsel %vm4898_vm9, %v7440_v20, 0 }
 0x4bd   : > { %v7437_v31 = vpop.permute.xlu0 %7436  ;;  %v7435_v6 = vpop.permute.xlu1 %7434 }
 0x4be   : > { %v7441_v17 = vsel %vm1991_vm10, %v7433_v61, %v7435_v6  ;;  %v7442_v21 = vsel %vm1991_vm10, %v7435_v6, %v7437_v31 }
 0x4bf   : > { %8600 = vrot.lane.b32.xlu0 %v8586_v32, %s9666_s14  ;;  %9547 = vmatprep.subr.msk.bf16.mxu0 %vm4898_vm9, %v7441_v17  ;;  %v7454_v13 = vsel %vm4898_vm9, %v7442_v21, 0  ;;  %v9558_v21 = vld [vmem:[%s12303_s4 + $0x24] sm:$0x3]  ;;  %s12370_s14 = sshll.u32 %s12372_s22, 4 }
 0x4c0   : > { %7460 = vmatpush1.bf16.msra.mxu0 %v7448_v1  ;;  %s251_s13 = scalar_lea.vmem %s12305_s6, %s12370_s14 }
 0x4c1   : > { %v8726_v37 = vpop.permute.xlu0 %8725  ;;  %v7439_v39 = vpop.permute.xlu1 %7438 }
 0x4c2   : > { %v8741_v33 = vmul.f32 %v8726_v37, %v11142_v14  ;;  %v7443_v46 = vsel %vm1991_vm10, %v7437_v31, %v7439_v39  ;;  %vm12352_vm10 = vcmask 973824  }
 0x4c3   : > { %9548 = vmatmul.mubr.msk.bf16.vlgmr.msra.gmra.mrb[172].mxu0 %vm2027_vm7, %v9546_v35  ;;  %9549 = vmatprep.subr.msk.bf16.mxu1 %vm4898_vm9, %v7443_v46  ;;  %vm12353_vm13 = vmmov %vm12352_vm10 }
 0x4c4   : > { %v8748_v52 = vpack.c.bf16 %v8741_v33, %v8741_v33  ;;  %7501 = vmatpush1.bf16.msra.mxu1 %v7454_v13  ;;  %7657 = vmatprep.mubr.bf16.mxu0 %v9675_v49  ;;  %vm12354_vm14 = vmmov %vm12352_vm10 }
 0x4c5   : > { %v8730_v41 = vpop.permute.xlu0 %8729  ;;  %v8728_v51 = vpop.permute.xlu1 %8727  ;;  %vm12355_vm15 = vmmov %vm12352_vm10 }
 0x4c6   : > { %v8733_v36 = vsel %vm675_vm6, %v8726_v37, %v8728_v51  ;;  %v8734_v38 = vsel %vm675_vm6, %v8728_v51, %v8730_v41  ;;  %8758 = vrot.lane.b32.xlu1 %v8748_v52, %s9665_s11 }
 0x4c7   : > { %v8742_v29 = vmul.f32 %v8733_v36, %v11239_v47  ;;  %v8743_v11 = vmul.f32 %v8734_v38, %v11157_v55  ;;  %9550 = vmatmul.mubr.msk.bf16.vlgmr.msra.gmra.mrb[172].mxu1 %vm2027_vm7, %v9546_v35 }
 0x4c8   : > { %7698 = vmatprep.mubr.bf16.mxu1 %v9675_v49 }
 0x4c9   : > { %v8749_v30 = vpack.c.bf16 %v8742_v29, %v8742_v29  ;;  %v8750_v22 = vpack.c.bf16 %v8743_v11, %v8743_v11  ;;  %v7597_v12 = vpop.permute.xlu0 %7596  ;;  %v8732_v28 = vpop.permute.xlu1 %8731 }
 0x4ca   : > { %v8735_v54 = vsel %vm675_vm6, %v8730_v41, %v8732_v28  ;;  %v8745_v2 = vmul.f32 0.0, %v8732_v28 }
 0x4cb   : > { %v8744_v10 = vmul.f32 %v8735_v54, %v11253_v58  ;;  %8762 = vrot.lane.b32.xlu1 %v8750_v22, %s9665_s11  ;;  %8760 = vrot.lane.b32.xlu0 %v8749_v30, %s9665_s11 }
 0x4cc   : > { %v8752_v40 = vpack.c.bf16 %v8745_v2, %v8745_v2 }
 0x4cd   : > { %v8751_v25 = vpack.c.bf16 %v8744_v10, %v8744_v10  ;;  %v7601_v15 = vpop.permute.xlu0 %7600  ;;  %v7599_v53 = vpop.permute.xlu1 %7598 }
 0x4ce   : > { %v7606_v48 = vsel %vm12352_vm10, %v7597_v12, %v7599_v53  ;;  %v7607_v18 = vsel %vm12353_vm13, %v7599_v53, %v7601_v15  ;;  %vm12359_vm10 = vcmask 596992  }
 0x4cf   : > { %v7614_v56 = vsel %vm4898_vm9, %v7606_v48, 0  ;;  %8766 = vrot.lane.b32.xlu1 %v8752_v40, %s9665_s11  ;;  %8764 = vrot.lane.b32.xlu0 %v8751_v25, %s9665_s11  ;;  %vm12360_vm13 = vmmov %vm12359_vm10 }
 0x4d0   : > { %9553 = vmatprep.subr.msk.bf16.mxu0 %vm4898_vm9, %v7607_v18 }
 0x4d1   : > { %7626 = vmatpush1.bf16.msra.mxu0 %v7614_v56  ;;  %v7605_v57 = vpop.permute.xlu0 %7604  ;;  %v7603_v27 = vpop.permute.xlu1 %7602 }
 0x4d2   : > { %v7608_v60 = vsel %vm12354_vm14, %v7601_v15, %v7603_v27  ;;  %v7609_v59 = vsel %vm12355_vm15, %v7603_v27, %v7605_v57  ;;  %vm12361_vm14 = vmmov %vm12359_vm10  ;;  %v9205_v57 = vld [vmem:[%s12304_s5] sm:$0xf] }
 0x4d3   : > { %v7620_v26 = vsel %vm4898_vm9, %v7608_v60, 0  ;;  %9555 = vmatprep.subr.msk.bf16.mxu1 %vm4898_vm9, %v7609_v59  ;;  %vm12362_vm15 = vmmov %vm12359_vm10  ;;  %v9564_v59 = vld [vmem:[%s12303_s4 + $0x26] sm:$0x3] }
 0x4d4   : > { %9554 = vmatmul.mubr.msk.bf16.vlgmr.msra.gmra.mrb[176].mxu0 %vm2027_vm7, %v9552_v23  ;;  %7667 = vmatpush1.bf16.msra.mxu1 %v7620_v26 }
 0x4d5   : > { %v8894_v24 = vpop.permute.xlu0 %8893  ;;  %v8892_v50 = vpop.permute.xlu1 %8891  ;;  %7823 = vmatprep.mubr.bf16.mxu0 %v9675_v49 }
 0x4d6   : > { %v8899_v8 = vsel %vm12356_vm8, %v8892_v50, %v8894_v24  ;;  %v8907_v16 = vmul.f32 %v8892_v50, %v11142_v14  ;;  %vm12363_vm8 = vmmov %vm12359_vm10 }
 0x4d7   : > { %v8908_v5 = vmul.f32 %v8899_v8, %v11239_v47  ;;  %9556 = vmatmul.mubr.msk.bf16.vlgmr.msra.gmra.mrb[176].mxu1 %vm2027_vm7, %v9552_v23 }
 0x4d8   : > { %v8914_v3 = vpack.c.bf16 %v8907_v16, %v8907_v16  ;;  %7864 = vmatprep.mubr.bf16.mxu1 %v9675_v49 }
 0x4d9   : > { %v8915_v63 = vpack.c.bf16 %v8908_v5, %v8908_v5  ;;  %v8898_v42 = vpop.permute.xlu0 %8897  ;;  %v8896_v43 = vpop.permute.xlu1 %8895 }
 0x4da   : > { %v8900_v19 = vsel %vm12357_vm11, %v8894_v24, %v8896_v43  ;;  %v8901_v44 = vsel %vm12358_vm12, %v8896_v43, %v8898_v42  ;;  %8924 = vrot.lane.b32.xlu0 %v8914_v3, %s9663_s25  ;;  %v8911_v4 = vmul.f32 0.0, %v8898_v42  ;;  %vm12364_vm11 = vmmov %vm12363_vm8 }
 0x4db   : > { %v8909_v62 = vmul.f32 %v8900_v19, %v11157_v55  ;;  %v8910_v34 = vmul.f32 %v8901_v44, %v11253_v58  ;;  %8926 = vrot.lane.b32.xlu1 %v8915_v63, %s9663_s25  ;;  %vm12365_vm12 = vmmov %vm12363_vm8 }
 0x4dc   : > { %v8918_v20 = vpack.c.bf16 %v8911_v4, %v8911_v4 }
 0x4dd   : > { %v8916_v7 = vpack.c.bf16 %v8909_v62, %v8909_v62  ;;  %v8917_v45 = vpack.c.bf16 %v8910_v34, %v8910_v34  ;;  %v7765_v9 = vpop.permute.xlu0 %7764  ;;  %v7763_v61 = vpop.permute.xlu1 %7762 }
 0x4de   : > { %v7772_v0 = vsel %vm12359_vm10, %v7763_v61, %v7765_v9  ;;  %vm12366_vm10 = vcmask 588800  }
 0x4df   : > { %8930 = vrot.lane.b32.xlu1 %v8917_v45, %s9663_s25  ;;  %8928 = vrot.lane.b32.xlu0 %v8916_v7, %s9663_s25  ;;  %v7780_v17 = vsel %vm4898_vm9, %v7772_v0, 0 }
 0x4e1   : > { %v7769_v32 = vpop.permute.xlu0 %7768  ;;  %v7767_v31 = vpop.permute.xlu1 %7766 }
 0x4e2   : > { %v7773_v6 = vsel %vm12360_vm13, %v7765_v9, %v7767_v31  ;;  %v7774_v1 = vsel %vm12361_vm14, %v7767_v31, %v7769_v32  ;;  %vm12367_vm13 = vmmov %vm12366_vm10 }
 0x4e3   : > { %8932 = vrot.lane.b32.xlu0 %v8918_v20, %s9663_s25  ;;  %9559 = vmatprep.subr.msk.bf16.mxu0 %vm4898_vm9, %v7773_v6  ;;  %v7786_v46 = vsel %vm4898_vm9, %v7774_v1, 0  ;;  %vm12368_vm14 = vmmov %vm12366_vm10 }
 0x4e4   : > { %7792 = vmatpush1.bf16.msra.mxu0 %v7780_v17 }
 0x4e5   : > { %v9058_v35 = vpop.permute.xlu0 %9057  ;;  %v7771_v37 = vpop.permute.xlu1 %7770 }
 0x4e6   : > { %v9073_v39 = vmul.f32 %v9058_v35, %v11142_v14  ;;  %v7775_v33 = vsel %vm12362_vm15, %v7769_v32, %v7771_v37  ;;  %vm12369_vm15 = vmmov %vm12366_vm10 }
 0x4e7   : > { %9560 = vmatmul.mubr.msk.bf16.vlgmr.msra.gmra.mrb[180].mxu0 %vm2027_vm7, %v9558_v21  ;;  %9561 = vmatprep.subr.msk.bf16.mxu1 %vm4898_vm9, %v7775_v33 }
 0x4e8   : > { %v9080_v13 = vpack.c.bf16 %v9073_v39, %v9073_v39  ;;  %7833 = vmatpush1.bf16.msra.mxu1 %v7786_v46  ;;  %7989 = vmatprep.mubr.bf16.mxu0 %v9675_v49 }
 0x4e9   : > { %v9062_v52 = vpop.permute.xlu0 %9061  ;;  %v9060_v41 = vpop.permute.xlu1 %9059 }
 0x4ea   : > { %v9065_v51 = vsel %vm12363_vm8, %v9058_v35, %v9060_v41  ;;  %v9066_v36 = vsel %vm12364_vm11, %v9060_v41, %v9062_v52  ;;  %9090 = vrot.lane.b32.xlu1 %v9080_v13, %s9664_s8  ;;  %v9570_v13 = vld [vmem:[%s12303_s4 + $0x28] sm:$0x3] }
 0x4eb   : > { %v9074_v14 = vmul.f32 %v9065_v51, %v11239_v47  ;;  %v9075_v38 = vmul.f32 %v9066_v36, %v11157_v55  ;;  %9562 = vmatmul.mubr.msk.bf16.vlgmr.msra.gmra.mrb[180].mxu1 %vm2027_vm7, %v9558_v21 }
 0x4ec   : > { %8030 = vmatprep.mubr.bf16.mxu1 %v9675_v49 }
 0x4ed   : > { %v9081_v29 = vpack.c.bf16 %v9074_v14, %v9074_v14  ;;  %v9082_v11 = vpack.c.bf16 %v9075_v38, %v9075_v38  ;;  %v7929_v30 = vpop.permute.xlu0 %7928  ;;  %v9064_v22 = vpop.permute.xlu1 %9063 }
 0x4ee   : > { %v9067_v12 = vsel %vm12365_vm12, %v9062_v52, %v9064_v22  ;;  %v9077_v28 = vmul.f32 0.0, %v9064_v22 }
 0x4ef   : > { %v9076_v54 = vmul.f32 %v9067_v12, %v11253_v58  ;;  %9094 = vrot.lane.b32.xlu1 %v9082_v11, %s9664_s8  ;;  %9092 = vrot.lane.b32.xlu0 %v9081_v29, %s9664_s8  ;;  %v4945_v47 = vpop.f32.mrb[108].mxu0 }
 0x4f0   : > { %v9084_v2 = vpack.c.bf16 %v9077_v28, %v9077_v28  ;;  %v4947_v55 = vpop.f32.mrb[109].mxu0 }
 0x4f1   : > { %v9083_v10 = vpack.c.bf16 %v9076_v54, %v9076_v54  ;;  %v7933_v40 = vpop.permute.xlu0 %7932  ;;  %v7931_v25 = vpop.permute.xlu1 %7930 }
 0x4f2   : > { %v7938_v15 = vsel %vm12366_vm10, %v7929_v30, %v7931_v25  ;;  %v7939_v53 = vsel %vm12367_vm13, %v7931_v25, %v7933_v40  ;;  %v4949_v48 = vpop.f32.mrb[110].mxu0 }
 0x4f3   : > { %v7946_v18 = vsel %vm4898_vm9, %v7938_v15, 0  ;;  %9098 = vrot.lane.b32.xlu1 %v9084_v2, %s9664_s8  ;;  %9096 = vrot.lane.b32.xlu0 %v9083_v10, %s9664_s8  ;;  %v4986_v58 = vpop.f32.mrb[108].mxu1  ;;  %v4950_v56 = vpop.f32.mrb[111].mxu0  ;;  %v9576_v48 = vld [vmem:[%s12303_s4 + $0x2a] sm:$0x3] }
 0x4f4   : > { %9565 = vmatprep.subr.msk.bf16.mxu0 %vm4898_vm9, %v7939_v53  ;;  %v4988_v27 = vpop.f32.mrb[109].mxu1 }
 0x4f5   : > { %7958 = vmatpush1.bf16.msra.mxu0 %v7946_v18  ;;  %v7937_v23 = vpop.permute.xlu0 %7936  ;;  %v7935_v60 = vpop.permute.xlu1 %7934 }
 0x4f6   : > { %v7940_v26 = vsel %vm12368_vm14, %v7933_v40, %v7935_v60  ;;  %v7941_v24 = vsel %vm12369_vm15, %v7935_v60, %v7937_v23  ;;  %v4990_v50 = vpop.f32.mrb[110].mxu1 }
 0x4f7   : > { %v7952_v8 = vsel %vm4898_vm9, %v7940_v26, 0  ;;  %9208 = vperm.xlu0 %9642, %v9205_v57   ;;  %9567 = vmatprep.subr.msk.bf16.mxu1 %vm4898_vm9, %v7941_v24  ;;  %v4991_v16 = vpop.f32.mrb[111].mxu1  ;;  %v5061_v5 = vpop.f32.mrb[112].mxu0 }
 0x4f8   : > { %9566 = vmatmul.mubr.msk.bf16.vlgmr.msra.gmra.mrb[184].mxu0 %vm2027_vm7, %v9564_v59  ;;  %7999 = vmatpush1.bf16.msra.mxu1 %v7952_v8  ;;  %v5062_v3 = vadd.f32 %v5061_v5, %v4945_v47  ;;  %v5063_v63 = vpop.f32.mrb[113].mxu0 }
 0x4f9   : > { %8155 = vmatprep.mubr.bf16.mxu0 %v9675_v49  ;;  %v5064_v42 = vadd.f32 %v5063_v63, %v4947_v55  ;;  %v5065_v43 = vpop.f32.mrb[114].mxu0 }
 0x4fa   : > { %v5066_v19 = vpop.f32.mrb[115].mxu0 }
 0x4fb   : > { %9568 = vmatmul.mubr.msk.bf16.vlgmr.msra.gmra.mrb[184].mxu1 %vm2027_vm7, %v9564_v59  ;;  %v5102_v44 = vpop.f32.mrb[112].mxu1 }
 0x4fc   : > { %v8095_v62 = vpop.permute.xlu1 %8094  ;;  %8196 = vmatprep.mubr.bf16.mxu1 %v9675_v49  ;;  %v5103_v34 = vadd.f32 %v5102_v44, %v4986_v58  ;;  %v5104_v4 = vpop.f32.mrb[113].mxu1 }
 0x4fd   : > { %v8097_v7 = vpop.permute.xlu0 %8096  ;;  %v5105_v45 = vadd.f32 %v5104_v4, %v4988_v27  ;;  %v5106_v9 = vpop.f32.mrb[114].mxu1 }
 0x4fe   : > { %v5107_v61 = vpop.f32.mrb[115].mxu1  ;;  %v8104_v20 = vsel %vm675_vm6, %v8095_v62, %v8097_v7 }
 0x4ff   : > { %v5223_v0 = vpop.f32.mrb[116].mxu0  ;;  %v8112_v37 = vsel %vm4898_vm9, %v8104_v20, 0 }
 0x500   : > { %v5271_v32 = vadd.f32 %v5223_v0, %v5062_v3  ;;  %v5225_v31 = vpop.f32.mrb[117].mxu0 }
 0x501   : > { %v8101_v6 = vpop.permute.xlu0 %8100  ;;  %v8099_v17 = vpop.permute.xlu1 %8098  ;;  %v5272_v1 = vadd.f32 %v5225_v31, %v5064_v42 }
 0x502   : > { %v8105_v21 = vsel %vm675_vm6, %v8097_v7, %v8099_v17  ;;  %v5227_v35 = vpop.f32.mrb[118].mxu0  ;;  %v8106_v46 = vsel %vm675_vm6, %v8099_v17, %v8101_v6 }
 0x503   : > { %9571 = vmatprep.subr.msk.bf16.mxu0 %vm4898_vm9, %v8105_v21  ;;  %v5264_v39 = vpop.f32.mrb[116].mxu1  ;;  %v5228_v33 = vpop.f32.mrb[119].mxu0  ;;  %v8118_v11 = vsel %vm4898_vm9, %v8106_v46, 0  ;;  %v9582_v35 = vld [vmem:[%s12303_s4 + $0x2c] sm:$0x3] }
 0x504   : > { %8124 = vmatpush1.bf16.msra.mxu0 %v8112_v37  ;;  %v5273_v52 = vadd.f32 %v5264_v39, %v5103_v34  ;;  %v5266_v41 = vpop.f32.mrb[117].mxu1 }
 0x505   : > { %v8261_v51 = vpop.permute.xlu0 %8260  ;;  %v8103_v36 = vpop.permute.xlu1 %8102  ;;  %v5274_v14 = vadd.f32 %v5266_v41, %v5105_v45 }
 0x506   : > { %v8107_v38 = vsel %vm675_vm6, %v8101_v6, %v8103_v36  ;;  %v5268_v29 = vpop.f32.mrb[118].mxu1 }
 0x507   : > { %9572 = vmatmul.mubr.msk.bf16.vlgmr.msra.gmra.mrb[188].mxu0 %vm2027_vm7, %v9570_v13  ;;  %9573 = vmatprep.subr.msk.bf16.mxu1 %vm4898_vm9, %v8107_v38  ;;  %v5269_v30 = vpop.f32.mrb[119].mxu1  ;;  %v5389_v22 = vpop.f32.mrb[120].mxu0 }
 0x508   : > { %8165 = vmatpush1.bf16.msra.mxu1 %v8118_v11  ;;  %8321 = vmatprep.mubr.bf16.mxu0 %v9675_v49  ;;  %v5437_v12 = vadd.f32 %v5389_v22, %v5271_v32  ;;  %v5391_v28 = vpop.f32.mrb[121].mxu0 }
 0x509   : > { %v8265_v54 = vpop.permute.xlu0 %8264  ;;  %v8263_v47 = vpop.permute.xlu1 %8262  ;;  %v5438_v2 = vadd.f32 %v5391_v28, %v5272_v1 }
 0x50a   : > { %v8270_v55 = vsel %vm844_vm5, %v8261_v51, %v8263_v47  ;;  %v8271_v10 = vsel %vm844_vm5, %v8263_v47, %v8265_v54  ;;  %v5393_v40 = vpop.f32.mrb[122].mxu0 }
 0x50b   : > { %v8278_v25 = vsel %vm4898_vm9, %v8270_v55, 0  ;;  %9574 = vmatmul.mubr.msk.bf16.vlgmr.msra.gmra.mrb[188].mxu1 %vm2027_vm7, %v9570_v13  ;;  %9577 = vmatprep.subr.msk.bf16.mxu0 %vm4898_vm9, %v8271_v10  ;;  %v5430_v15 = vpop.f32.mrb[120].mxu1  ;;  %v5394_v53 = vpop.f32.mrb[123].mxu0 }
 0x50c   : > { %8290 = vmatpush1.bf16.msra.mxu0 %v8278_v25  ;;  %8362 = vmatprep.mubr.bf16.mxu1 %v9675_v49  ;;  %v5439_v18 = vadd.f32 %v5430_v15, %v5273_v52  ;;  %v5432_v58 = vpop.f32.mrb[121].mxu1 }
 0x50d   : > { %v8269_v56 = vpop.permute.xlu0 %8268  ;;  %v8267_v57 = vpop.permute.xlu1 %8266  ;;  %v5440_v27 = vadd.f32 %v5432_v58, %v5274_v14 }
 0x50e   : > { %v8272_v23 = vsel %vm844_vm5, %v8265_v54, %v8267_v57  ;;  %v8273_v60 = vsel %vm844_vm5, %v8267_v57, %v8269_v56  ;;  %v5434_v59 = vpop.f32.mrb[122].mxu1 }
 0x50f   : > { %v8284_v26 = vsel %vm4898_vm9, %v8272_v23, 0  ;;  %9578 = vmatmul.mubr.msk.bf16.vlgmr.msra.gmra.mrb[192].mxu0 %vm2027_vm7, %v9576_v48  ;;  %9579 = vmatprep.subr.msk.bf16.mxu1 %vm4898_vm9, %v8273_v60  ;;  %v5435_v24 = vpop.f32.mrb[123].mxu1  ;;  %v5555_v50 = vpop.f32.mrb[124].mxu0 }
 0x510   : > { %8331 = vmatpush1.bf16.msra.mxu1 %v8284_v26  ;;  %8487 = vmatprep.mubr.bf16.mxu0 %v9675_v49  ;;  %v5603_v8 = vadd.f32 %v5555_v50, %v5437_v12  ;;  %v5557_v16 = vpop.f32.mrb[125].mxu0 }
 0x511   : > { %v5604_v5 = vadd.f32 %v5557_v16, %v5438_v2  ;;  %v5559_v3 = vpop.f32.mrb[126].mxu0 }
 0x512   : > { %v5560_v63 = vpop.f32.mrb[127].mxu0 }
 0x513   : > { %9580 = vmatmul.mubr.msk.bf16.vlgmr.msra.gmra.mrb[192].mxu1 %vm2027_vm7, %v9576_v48  ;;  %v5596_v42 = vpop.f32.mrb[124].mxu1 }
 0x514   : > { %v8427_v43 = vpop.permute.xlu1 %8426  ;;  %8528 = vmatprep.mubr.bf16.mxu1 %v9675_v49  ;;  %v5605_v19 = vadd.f32 %v5596_v42, %v5439_v18  ;;  %v5598_v44 = vpop.f32.mrb[125].mxu1  ;;  %v9588_v42 = vld [vmem:[%s12303_s4 + $0x2e] sm:$0x3] }
 0x515   : > { %v5606_v62 = vadd.f32 %v5598_v44, %v5440_v27  ;;  %v5600_v34 = vpop.f32.mrb[126].mxu1 }
 0x516   : > { %v5601_v4 = vpop.f32.mrb[127].mxu1 }
 0x517   : > { %v5721_v7 = vpop.f32.mrb[128].mxu0 }
 0x518   : > { %v5769_v45 = vadd.f32 %v5721_v7, %v5603_v8  ;;  %v5723_v9 = vpop.f32.mrb[129].mxu0 }
 0x519   : > { %v8429_v61 = vpop.permute.xlu0 %8428  ;;  %v8431_v0 = vpop.permute.xlu1 %8430  ;;  %v5770_v20 = vadd.f32 %v5723_v9, %v5604_v5 }
 0x51a   : > { %v8436_v32 = vsel %vm977_vm4, %v8427_v43, %v8429_v61  ;;  %v8437_v31 = vsel %vm977_vm4, %v8429_v61, %v8431_v0  ;;  %v5725_v6 = vpop.f32.mrb[130].mxu0 }
 0x51b   : > { %v8444_v17 = vsel %vm4898_vm9, %v8436_v32, 0  ;;  %9583 = vmatprep.subr.msk.bf16.mxu0 %vm4898_vm9, %v8437_v31  ;;  %v5762_v1 = vpop.f32.mrb[128].mxu1  ;;  %v5726_v21 = vpop.f32.mrb[131].mxu0 }
 0x51c   : > { %8456 = vmatpush1.bf16.msra.mxu0 %v8444_v17  ;;  %v5771_v37 = vadd.f32 %v5762_v1, %v5605_v19  ;;  %v5764_v39 = vpop.f32.mrb[129].mxu1 }
 0x51d   : > { %v8433_v33 = vpop.permute.xlu0 %8432  ;;  %v8435_v46 = vpop.permute.xlu1 %8434  ;;  %v5772_v13 = vadd.f32 %v5764_v39, %v5606_v62 }
 0x51e   : > { %v8438_v52 = vsel %vm977_vm4, %v8431_v0, %v8433_v33  ;;  %v8439_v41 = vsel %vm977_vm4, %v8433_v33, %v8435_v46  ;;  %v5766_v51 = vpop.f32.mrb[130].mxu1 }
 0x51f   : > { %v8450_v36 = vsel %vm4898_vm9, %v8438_v52, 0  ;;  %9584 = vmatmul.mubr.msk.bf16.vlgmr.msra.gmra.mrb[196].mxu0 %vm2027_vm7, %v9582_v35  ;;  %9585 = vmatprep.subr.msk.bf16.mxu1 %vm4898_vm9, %v8439_v41  ;;  %v5767_v14 = vpop.f32.mrb[131].mxu1  ;;  %v5887_v38 = vpop.f32.mrb[132].mxu0 }
 0x520   : > { %8497 = vmatpush1.bf16.msra.mxu1 %v8450_v36  ;;  %8653 = vmatprep.mubr.bf16.mxu0 %v9675_v49  ;;  %v5935_v29 = vadd.f32 %v5887_v38, %v5769_v45  ;;  %v5889_v11 = vpop.f32.mrb[133].mxu0 }
 0x521   : > { %v5936_v30 = vadd.f32 %v5889_v11, %v5770_v20  ;;  %v5891_v22 = vpop.f32.mrb[134].mxu0 }
 0x522   : > { %v5892_v12 = vpop.f32.mrb[135].mxu0  ;;  %v9594_v22 = vld [vmem:[%s12303_s4 + $0x30] sm:$0x3] }
 0x523   : > { %9586 = vmatmul.mubr.msk.bf16.vlgmr.msra.gmra.mrb[196].mxu1 %vm2027_vm7, %v9582_v35  ;;  %v5928_v28 = vpop.f32.mrb[132].mxu1 }
 0x524   : > { %8694 = vmatprep.mubr.bf16.mxu1 %v9675_v49  ;;  %v5937_v54 = vadd.f32 %v5928_v28, %v5771_v37  ;;  %v5930_v47 = vpop.f32.mrb[133].mxu1 }
 0x525   : > { %v5938_v2 = vadd.f32 %v5930_v47, %v5772_v13  ;;  %v5932_v55 = vpop.f32.mrb[134].mxu1 }
 0x526   : > { %v5933_v10 = vpop.f32.mrb[135].mxu1 }
 0x527   : > { %v6053_v40 = vpop.f32.mrb[136].mxu0 }
 0x528   : > { %v8593_v25 = vpop.permute.xlu0 %8592  ;;  %v6101_v15 = vadd.f32 %v6053_v40, %v5935_v29  ;;  %v6055_v53 = vpop.f32.mrb[137].mxu0 }
 0x529   : > { %v8595_v48 = vpop.permute.xlu1 %8594  ;;  %v6102_v18 = vadd.f32 %v6055_v53, %v5936_v30  ;;  %v6057_v58 = vpop.f32.mrb[138].mxu0 }
 0x52a   : > { %v6058_v56 = vpop.f32.mrb[139].mxu0  ;;  %v8602_v27 = vsel %vm808_vm3, %v8593_v25, %v8595_v48 }
 0x52b   : > { %v6094_v57 = vpop.f32.mrb[136].mxu1  ;;  %v8610_v16 = vsel %vm4898_vm9, %v8602_v27, 0 }
 0x52c   : > { %v6103_v23 = vadd.f32 %v6094_v57, %v5937_v54  ;;  %v6096_v60 = vpop.f32.mrb[137].mxu1 }
 0x52d   : > { %v8597_v59 = vpop.permute.xlu0 %8596  ;;  %v8599_v26 = vpop.permute.xlu1 %8598  ;;  %v6104_v24 = vadd.f32 %v6096_v60, %v5938_v2 }
 0x52e   : > { %v8603_v50 = vsel %vm808_vm3, %v8595_v48, %v8597_v59  ;;  %v6098_v8 = vpop.f32.mrb[138].mxu1  ;;  %v8604_v63 = vsel %vm808_vm3, %v8597_v59, %v8599_v26 }
 0x52f   : > { %9589 = vmatprep.subr.msk.bf16.mxu0 %vm4898_vm9, %v8603_v50  ;;  %v6099_v5 = vpop.f32.mrb[139].mxu1  ;;  %v6219_v3 = vpop.f32.mrb[140].mxu0  ;;  %v8616_v45 = vsel %vm4898_vm9, %v8604_v63, 0 }
 0x530   : > { %8622 = vmatpush1.bf16.msra.mxu0 %v8610_v16  ;;  %v6267_v43 = vadd.f32 %v6219_v3, %v6101_v15  ;;  %v6221_v19 = vpop.f32.mrb[141].mxu0 }
 0x531   : > { %v8601_v44 = vpop.permute.xlu0 %8600  ;;  %v6268_v62 = vadd.f32 %v6221_v19, %v6102_v18  ;;  %v6223_v34 = vpop.f32.mrb[142].mxu0 }
 0x532   : > { %v8605_v4 = vsel %vm808_vm3, %v8599_v26, %v8601_v44  ;;  %v6224_v7 = vpop.f32.mrb[143].mxu0 }
 0x533   : > { %9590 = vmatmul.mubr.msk.bf16.vlgmr.msra.gmra.mrb[200].mxu0 %vm2027_vm7, %v9588_v42  ;;  %9591 = vmatprep.subr.msk.bf16.mxu1 %vm4898_vm9, %v8605_v4  ;;  %v6260_v9 = vpop.f32.mrb[140].mxu1 }
 0x534   : > { %8663 = vmatpush1.bf16.msra.mxu1 %v8616_v45  ;;  %8819 = vmatprep.mubr.bf16.mxu0 %v9675_v49  ;;  %v6269_v61 = vadd.f32 %v6260_v9, %v6103_v23  ;;  %v6262_v0 = vpop.f32.mrb[141].mxu1  ;;  %v9600_v45 = vld [vmem:[%s12303_s4 + $0x32] sm:$0x3] }
 0x535   : > { %v6270_v20 = vadd.f32 %v6262_v0, %v6104_v24  ;;  %v6264_v32 = vpop.f32.mrb[142].mxu1 }
 0x536   : > { %v6265_v31 = vpop.f32.mrb[143].mxu1 }
 0x537   : > { %9592 = vmatmul.mubr.msk.bf16.vlgmr.msra.gmra.mrb[200].mxu1 %vm2027_vm7, %v9588_v42  ;;  %v6385_v6 = vpop.f32.mrb[144].mxu0 }
 0x538   : > { %v8759_v17 = vpop.permute.xlu1 %8758  ;;  %8860 = vmatprep.mubr.bf16.mxu1 %v9675_v49  ;;  %v6433_v1 = vadd.f32 %v6385_v6, %v6267_v43  ;;  %v6387_v21 = vpop.f32.mrb[145].mxu0 }
 0x539   : > { %v6434_v35 = vadd.f32 %v6387_v21, %v6268_v62  ;;  %v6389_v37 = vpop.f32.mrb[146].mxu0 }
 0x53a   : > { %v6390_v39 = vpop.f32.mrb[147].mxu0 }
 0x53b   : > { %v6426_v33 = vpop.f32.mrb[144].mxu1 }
 0x53c   : > { %v6435_v46 = vadd.f32 %v6426_v33, %v6269_v61  ;;  %v6428_v13 = vpop.f32.mrb[145].mxu1 }
 0x53d   : > { %v8761_v52 = vpop.permute.xlu0 %8760  ;;  %v8763_v41 = vpop.permute.xlu1 %8762  ;;  %v6436_v51 = vadd.f32 %v6428_v13, %v6270_v20 }
 0x53e   : > { %v8768_v36 = vsel %vm639_vm2, %v8759_v17, %v8761_v52  ;;  %v8769_v14 = vsel %vm639_vm2, %v8761_v52, %v8763_v41  ;;  %v6430_v38 = vpop.f32.mrb[146].mxu1 }
 0x53f   : > { %v8776_v29 = vsel %vm4898_vm9, %v8768_v36, 0  ;;  %9595 = vmatprep.subr.msk.bf16.mxu0 %vm4898_vm9, %v8769_v14  ;;  %v6431_v11 = vpop.f32.mrb[147].mxu1  ;;  %v6551_v30 = vpop.f32.mrb[148].mxu0 }
 0x540   : > { %8788 = vmatpush1.bf16.msra.mxu0 %v8776_v29  ;;  %v6599_v12 = vadd.f32 %v6551_v30, %v6433_v1  ;;  %v6553_v28 = vpop.f32.mrb[149].mxu0 }
 0x541   : > { %v8765_v54 = vpop.permute.xlu0 %8764  ;;  %v8767_v47 = vpop.permute.xlu1 %8766  ;;  %v6600_v2 = vadd.f32 %v6553_v28, %v6434_v35  ;;  %v9606_v28 = vld [vmem:[%s12303_s4 + $0x34] sm:$0x3] }
 0x542   : > { %v8770_v55 = vsel %vm639_vm2, %v8763_v41, %v8765_v54  ;;  %v8771_v10 = vsel %vm639_vm2, %v8765_v54, %v8767_v47  ;;  %v6555_v40 = vpop.f32.mrb[150].mxu0 }
 0x543   : > { %v8782_v25 = vsel %vm4898_vm9, %v8770_v55, 0  ;;  %9596 = vmatmul.mubr.msk.bf16.vlgmr.msra.gmra.mrb[204].mxu0 %vm2027_vm7, %v9594_v22  ;;  %9597 = vmatprep.subr.msk.bf16.mxu1 %vm4898_vm9, %v8771_v10  ;;  %v6592_v15 = vpop.f32.mrb[148].mxu1  ;;  %v6556_v53 = vpop.f32.mrb[151].mxu0 }
 0x544   : > { %8829 = vmatpush1.bf16.msra.mxu1 %v8782_v25  ;;  %8985 = vmatprep.mubr.bf16.mxu0 %v9675_v49  ;;  %v6601_v48 = vadd.f32 %v6592_v15, %v6435_v46  ;;  %v6594_v18 = vpop.f32.mrb[149].mxu1 }
 0x545   : > { %v6602_v58 = vadd.f32 %v6594_v18, %v6436_v51  ;;  %v6596_v56 = vpop.f32.mrb[150].mxu1 }
 0x546   : > { %v6597_v57 = vpop.f32.mrb[151].mxu1 }
 0x547   : > { %9598 = vmatmul.mubr.msk.bf16.vlgmr.msra.gmra.mrb[204].mxu1 %vm2027_vm7, %v9594_v22  ;;  %v6717_v27 = vpop.f32.mrb[152].mxu0 }
 0x548   : > { %9026 = vmatprep.mubr.bf16.mxu1 %v9675_v49  ;;  %v6765_v23 = vadd.f32 %v6717_v27, %v6599_v12  ;;  %v6719_v60 = vpop.f32.mrb[153].mxu0 }
 0x549   : > { %v6766_v59 = vadd.f32 %v6719_v60, %v6600_v2  ;;  %v6721_v26 = vpop.f32.mrb[154].mxu0 }
 0x54a   : > { %v6722_v24 = vpop.f32.mrb[155].mxu0 }
 0x54b   : > { %v6758_v50 = vpop.f32.mrb[152].mxu1 }
 0x54c   : > { %v8925_v8 = vpop.permute.xlu0 %8924  ;;  %v6767_v16 = vadd.f32 %v6758_v50, %v6601_v48  ;;  %v6760_v5 = vpop.f32.mrb[153].mxu1 }
 0x54d   : > { %v8927_v3 = vpop.permute.xlu1 %8926  ;;  %v6768_v63 = vadd.f32 %v6760_v5, %v6602_v58  ;;  %v6762_v42 = vpop.f32.mrb[154].mxu1 }
 0x54e   : > { %v6763_v43 = vpop.f32.mrb[155].mxu1  ;;  %v8934_v19 = vsel %vm355_vm0, %v8925_v8, %v8927_v3 }
 0x54f   : > { %v8942_v4 = vsel %vm4898_vm9, %v8934_v19, 0 }
 0x551   : > { %v8929_v44 = vpop.permute.xlu0 %8928  ;;  %v8931_v62 = vpop.permute.xlu1 %8930 }
 0x552   : > { %v8935_v34 = vsel %vm355_vm0, %v8927_v3, %v8929_v44  ;;  %v8936_v7 = vsel %vm355_vm0, %v8929_v44, %v8931_v62 }
 0x553   : > { %9601 = vmatprep.subr.msk.bf16.mxu0 %vm4898_vm9, %v8935_v34  ;;  %v8948_v0 = vsel %vm4898_vm9, %v8936_v7, 0 }
 0x554   : > { %8954 = vmatpush1.bf16.msra.mxu0 %v8942_v4 }
 0x555   : > { %v8933_v9 = vpop.permute.xlu0 %8932 }
 0x556   : > { %v8937_v61 = vsel %vm355_vm0, %v8931_v62, %v8933_v9 }
 0x557   : > { %9602 = vmatmul.mubr.msk.bf16.vlgmr.msra.gmra.mrb[208].mxu0 %vm2027_vm7, %v9600_v45  ;;  %9603 = vmatprep.subr.msk.bf16.mxu1 %vm4898_vm9, %v8937_v61  ;;  %v6883_v20 = vpop.f32.mrb[156].mxu0 }
 0x558   : > { %8995 = vmatpush1.bf16.msra.mxu1 %v8948_v0  ;;  %9151 = vmatprep.mubr.bf16.mxu0 %v9675_v49  ;;  %v6931_v32 = vadd.f32 %v6883_v20, %v6765_v23  ;;  %v6885_v31 = vpop.f32.mrb[157].mxu0 }
 0x559   : > { %v6932_v6 = vadd.f32 %v6885_v31, %v6766_v59  ;;  %v6887_v17 = vpop.f32.mrb[158].mxu0 }
 0x55a   : > { %v6888_v1 = vpop.f32.mrb[159].mxu0 }
 0x55b   : > { %9604 = vmatmul.mubr.msk.bf16.vlgmr.msra.gmra.mrb[208].mxu1 %vm2027_vm7, %v9600_v45  ;;  %v6924_v21 = vpop.f32.mrb[156].mxu1 }
 0x55c   : > { %v9091_v35 = vpop.permute.xlu1 %9090  ;;  %9192 = vmatprep.mubr.bf16.mxu1 %v9675_v49  ;;  %v6933_v37 = vadd.f32 %v6924_v21, %v6767_v16  ;;  %v6926_v39 = vpop.f32.mrb[157].mxu1 }
 0x55d   : > { %v6934_v33 = vadd.f32 %v6926_v39, %v6768_v63  ;;  %v6928_v46 = vpop.f32.mrb[158].mxu1 }
 0x55e   : > { %v6929_v13 = vpop.f32.mrb[159].mxu1 }
 0x55f   : > { %v6990_v52 = vpop.f32.mrb[160].mxu0 }
 0x560   : > { %v7038_v41 = vadd.f32 %v6990_v52, %v6931_v32  ;;  %v6992_v51 = vpop.f32.mrb[161].mxu0 }
 0x561   : > { %v9093_v36 = vpop.permute.xlu0 %9092  ;;  %v9095_v14 = vpop.permute.xlu1 %9094  ;;  %v7039_v38 = vadd.f32 %v6992_v51, %v6932_v6 }
 0x562   : > { %v9100_v29 = vsel %vm308_vm1, %v9091_v35, %v9093_v36  ;;  %v9101_v11 = vsel %vm308_vm1, %v9093_v36, %v9095_v14  ;;  %v6994_v30 = vpop.f32.mrb[162].mxu0 }
 0x563   : > { %v9108_v22 = vsel %vm4898_vm9, %v9100_v29, 0  ;;  %9607 = vmatprep.subr.msk.bf16.mxu0 %vm4898_vm9, %v9101_v11  ;;  %v7031_v49 = vpop.f32.mrb[160].mxu1  ;;  %v6995_v12 = vpop.f32.mrb[163].mxu0 }
 0x564   : > { %9120 = vmatpush1.bf16.msra.mxu0 %v9108_v22  ;;  %v7040_v54 = vadd.f32 %v7031_v49, %v6933_v37  ;;  %v7033_v47 = vpop.f32.mrb[161].mxu1 }
 0x565   : > { %v9097_v2 = vpop.permute.xlu0 %9096  ;;  %v9099_v55 = vpop.permute.xlu1 %9098  ;;  %v7041_v10 = vadd.f32 %v7033_v47, %v6934_v33 }
 0x566   : > { %v9102_v40 = vsel %vm308_vm1, %v9095_v14, %v9097_v2  ;;  %v9103_v25 = vsel %vm308_vm1, %v9097_v2, %v9099_v55  ;;  %v7035_v15 = vpop.f32.mrb[162].mxu1 }
 0x567   : > { %v9114_v53 = vsel %vm4898_vm9, %v9102_v40, 0  ;;  %9608 = vmatmul.mubr.msk.bf16.vlgmr.msra.gmra.mrb[212].mxu0 %vm2027_vm7, %v9606_v28  ;;  %9609 = vmatprep.subr.msk.bf16.mxu1 %vm4898_vm9, %v9103_v25  ;;  %v7036_v48 = vpop.f32.mrb[163].mxu1 }
 0x568   : > { %9161 = vmatpush1.bf16.msra.mxu1 %v9114_v53 }
 0x56b   : > { %9610 = vmatmul.mubr.msk.bf16.vlgmr.msra.gmra.mrb[212].mxu1 %vm2027_vm7, %v9606_v28 }
 0x573   : > { %v7161_v18 = vpop.f32.mrb[164].mxu0 }
 0x574   : > { %v7209_v58 = vadd.f32 %v7161_v18, %v7038_v41  ;;  %v7163_v56 = vpop.f32.mrb[165].mxu0 }
 0x575   : > { %v7210_v57 = vadd.f32 %v7163_v56, %v7039_v38  ;;  %v7165_v27 = vpop.f32.mrb[166].mxu0 }
 0x576   : > { %v7202_v23 = vpop.f32.mrb[164].mxu1  ;;  %v7166_v26 = vpop.f32.mrb[167].mxu0 }
 0x577   : > { %v7211_v60 = vadd.f32 %v7202_v23, %v7040_v54  ;;  %v7204_v59 = vpop.f32.mrb[165].mxu1 }
 0x578   : > { %v7212_v24 = vadd.f32 %v7204_v59, %v7041_v10  ;;  %v7206_v50 = vpop.f32.mrb[166].mxu1 }
 0x579   : > { %v7207_v8 = vpop.f32.mrb[167].mxu1 }
 0x583   : > { %v7327_v16 = vpop.f32.mrb[168].mxu0 }
 0x584   : > { %v7375_v5 = vadd.f32 %v7327_v16, %v7209_v58  ;;  %v7329_v3 = vpop.f32.mrb[169].mxu0 }
 0x585   : > { %v7376_v63 = vadd.f32 %v7329_v3, %v7210_v57  ;;  %v7331_v42 = vpop.f32.mrb[170].mxu0 }
 0x586   : > { %v7368_v43 = vpop.f32.mrb[168].mxu1  ;;  %v7332_v19 = vpop.f32.mrb[171].mxu0 }
 0x587   : > { %v7377_v44 = vadd.f32 %v7368_v43, %v7211_v60  ;;  %v7370_v62 = vpop.f32.mrb[169].mxu1 }
 0x588   : > { %v7378_v34 = vadd.f32 %v7370_v62, %v7212_v24  ;;  %v7372_v4 = vpop.f32.mrb[170].mxu1 }
 0x589   : > { %v7373_v7 = vpop.f32.mrb[171].mxu1 }
 0x596   : > { %v7493_v45 = vpop.f32.mrb[172].mxu0 }
 0x597   : > { %v7541_v9 = vadd.f32 %v7493_v45, %v7375_v5  ;;  %v7495_v61 = vpop.f32.mrb[173].mxu0 }
 0x598   : > { %v7542_v0 = vadd.f32 %v7495_v61, %v7376_v63  ;;  %v7497_v20 = vpop.f32.mrb[174].mxu0 }
 0x599   : > { %v7498_v32 = vpop.f32.mrb[175].mxu0 }
 0x59a   : > { %v7534_v31 = vpop.f32.mrb[172].mxu1 }
 0x59b   : > { %v7543_v6 = vadd.f32 %v7534_v31, %v7377_v44  ;;  %v7536_v17 = vpop.f32.mrb[173].mxu1 }
 0x59c   : > { %v7544_v1 = vadd.f32 %v7536_v17, %v7378_v34  ;;  %v7538_v21 = vpop.f32.mrb[174].mxu1 }
 0x59d   : > { %v7539_v35 = vpop.f32.mrb[175].mxu1 }
 0x5a7   : > { %v7659_v37 = vpop.f32.mrb[176].mxu0 }
 0x5a8   : > { %v7707_v39 = vadd.f32 %v7659_v37, %v7541_v9  ;;  %v7661_v33 = vpop.f32.mrb[177].mxu0 }
 0x5a9   : > { %v7708_v46 = vadd.f32 %v7661_v33, %v7542_v0  ;;  %v7663_v13 = vpop.f32.mrb[178].mxu0 }
 0x5aa   : > { %v7700_v52 = vpop.f32.mrb[176].mxu1  ;;  %v7664_v41 = vpop.f32.mrb[179].mxu0 }
 0x5ab   : > { %v7709_v51 = vadd.f32 %v7700_v52, %v7543_v6  ;;  %v7702_v36 = vpop.f32.mrb[177].mxu1 }
 0x5ac   : > { %v7710_v14 = vadd.f32 %v7702_v36, %v7544_v1  ;;  %v7704_v38 = vpop.f32.mrb[178].mxu1 }
 0x5ad   : > { %v7705_v29 = vpop.f32.mrb[179].mxu1 }
 0x5ba   : > { %v7825_v11 = vpop.f32.mrb[180].mxu0 }
 0x5bb   : > { %v7873_v30 = vadd.f32 %v7825_v11, %v7707_v39  ;;  %v7827_v22 = vpop.f32.mrb[181].mxu0 }
 0x5bc   : > { %v7874_v49 = vadd.f32 %v7827_v22, %v7708_v46  ;;  %v7829_v12 = vpop.f32.mrb[182].mxu0 }
 0x5bd   : > { %v7830_v28 = vpop.f32.mrb[183].mxu0 }
 0x5be   : > { %v7866_v54 = vpop.f32.mrb[180].mxu1 }
 0x5bf   : > { %v7875_v47 = vadd.f32 %v7866_v54, %v7709_v51  ;;  %v7868_v2 = vpop.f32.mrb[181].mxu1 }
 0x5c0   : > { %v7876_v55 = vadd.f32 %v7868_v2, %v7710_v14  ;;  %v7870_v10 = vpop.f32.mrb[182].mxu1 }
 0x5c1   : > { %v7871_v40 = vpop.f32.mrb[183].mxu1 }
 0x5cb   : > { %v7991_v25 = vpop.f32.mrb[184].mxu0 }
 0x5cc   : > { %v8039_v15 = vadd.f32 %v7991_v25, %v7873_v30  ;;  %v7993_v53 = vpop.f32.mrb[185].mxu0 }
 0x5cd   : > { %v8040_v48 = vadd.f32 %v7993_v53, %v7874_v49  ;;  %v7995_v18 = vpop.f32.mrb[186].mxu0 }
 0x5ce   : > { %v8032_v58 = vpop.f32.mrb[184].mxu1  ;;  %v7996_v56 = vpop.f32.mrb[187].mxu0 }
 0x5cf   : > { %v8041_v57 = vadd.f32 %v8032_v58, %v7875_v47  ;;  %v8034_v27 = vpop.f32.mrb[185].mxu1 }
 0x5d0   : > { %v8042_v23 = vadd.f32 %v8034_v27, %v7876_v55  ;;  %v8036_v60 = vpop.f32.mrb[186].mxu1 }
 0x5d1   : > { %v8037_v59 = vpop.f32.mrb[187].mxu1 }
 0x5da   : > { %v8157_v26 = vpop.f32.mrb[188].mxu0 }
 0x5db   : > { %v8205_v24 = vadd.f32 %v8157_v26, %v8039_v15  ;;  %v8159_v50 = vpop.f32.mrb[189].mxu0 }
 0x5dc   : > { %v8206_v8 = vadd.f32 %v8159_v50, %v8040_v48  ;;  %v8161_v16 = vpop.f32.mrb[190].mxu0 }
 0x5dd   : > { %v8162_v5 = vpop.f32.mrb[191].mxu0 }
 0x5de   : > { %v8198_v3 = vpop.f32.mrb[188].mxu1 }
 0x5df   : > { %v8207_v63 = vadd.f32 %v8198_v3, %v8041_v57  ;;  %v8200_v42 = vpop.f32.mrb[189].mxu1 }
 0x5e0   : > { %v8208_v43 = vadd.f32 %v8200_v42, %v8042_v23  ;;  %v8202_v19 = vpop.f32.mrb[190].mxu1 }
 0x5e1   : > { %v8203_v44 = vpop.f32.mrb[191].mxu1 }
 0x5e2   : > { %v8323_v62 = vpop.f32.mrb[192].mxu0  ;;  %v9209_v44 = vpop.permute.xlu0 %9208 }
 0x5e3   : > { %v8371_v34 = vadd.f32 %v8323_v62, %v8205_v24  ;;  %v8325_v4 = vpop.f32.mrb[193].mxu0 }
 0x5e4   : > { %v8372_v7 = vadd.f32 %v8325_v4, %v8206_v8  ;;  %v8327_v45 = vpop.f32.mrb[194].mxu0 }
 0x5e5   : > { %v8328_v9 = vpop.f32.mrb[195].mxu0 }
 0x5e6   : > { %v8364_v61 = vpop.f32.mrb[192].mxu1 }
 0x5e7   : > { %v8373_v0 = vadd.f32 %v8364_v61, %v8207_v63  ;;  %v8366_v20 = vpop.f32.mrb[193].mxu1 }
 0x5e8   : > { %v8374_v32 = vadd.f32 %v8366_v20, %v8208_v43  ;;  %v8368_v31 = vpop.f32.mrb[194].mxu1 }
 0x5e9   : > { %v8369_v6 = vpop.f32.mrb[195].mxu1 }
 0x5f2   : > { %v8489_v17 = vpop.f32.mrb[196].mxu0 }
 0x5f3   : > { %v8537_v1 = vadd.f32 %v8489_v17, %v8371_v34  ;;  %v8491_v21 = vpop.f32.mrb[197].mxu0 }
 0x5f4   : > { %v8538_v35 = vadd.f32 %v8491_v21, %v8372_v7  ;;  %v8493_v37 = vpop.f32.mrb[198].mxu0 }
 0x5f5   : > { %v8494_v39 = vpop.f32.mrb[199].mxu0 }
 0x5f6   : > { %v8530_v33 = vpop.f32.mrb[196].mxu1 }
 0x5f7   : > { %v8539_v46 = vadd.f32 %v8530_v33, %v8373_v0  ;;  %v8532_v13 = vpop.f32.mrb[197].mxu1 }
 0x5f8   : > { %v8540_v52 = vadd.f32 %v8532_v13, %v8374_v32  ;;  %v8534_v41 = vpop.f32.mrb[198].mxu1 }
 0x5f9   : > { %v8535_v51 = vpop.f32.mrb[199].mxu1 }
 0x606   : > { %v8655_v36 = vpop.f32.mrb[200].mxu0 }
 0x607   : > { %v8703_v14 = vadd.f32 %v8655_v36, %v8537_v1  ;;  %v8657_v38 = vpop.f32.mrb[201].mxu0 }
 0x608   : > { %v8704_v29 = vadd.f32 %v8657_v38, %v8538_v35  ;;  %v8659_v11 = vpop.f32.mrb[202].mxu0 }
 0x609   : > { %v8660_v30 = vpop.f32.mrb[203].mxu0 }
 0x60a   : > { %v8696_v22 = vpop.f32.mrb[200].mxu1 }
 0x60b   : > { %v8705_v49 = vadd.f32 %v8696_v22, %v8539_v46  ;;  %v8698_v12 = vpop.f32.mrb[201].mxu1 }
 0x60c   : > { %v8706_v28 = vadd.f32 %v8698_v12, %v8540_v52  ;;  %v8700_v54 = vpop.f32.mrb[202].mxu1 }
 0x60d   : > { %v8701_v47 = vpop.f32.mrb[203].mxu1 }
 0x616   : > { %v8821_v2 = vpop.f32.mrb[204].mxu0 }
 0x617   : > { %v8869_v55 = vadd.f32 %v8821_v2, %v8703_v14  ;;  %v8823_v10 = vpop.f32.mrb[205].mxu0 }
 0x618   : > { %v8870_v40 = vadd.f32 %v8823_v10, %v8704_v29  ;;  %v8825_v25 = vpop.f32.mrb[206].mxu0 }
 0x619   : > { %v8826_v15 = vpop.f32.mrb[207].mxu0 }
 0x61a   : > { %v8862_v53 = vpop.f32.mrb[204].mxu1 }
 0x61b   : > { %v8871_v48 = vadd.f32 %v8862_v53, %v8705_v49  ;;  %v8864_v18 = vpop.f32.mrb[205].mxu1 }
 0x61c   : > { %v8872_v58 = vadd.f32 %v8864_v18, %v8706_v28  ;;  %v8866_v56 = vpop.f32.mrb[206].mxu1 }
 0x61d   : > { %v8867_v57 = vpop.f32.mrb[207].mxu1 }
 0x62a   : > { %v8987_v27 = vpop.f32.mrb[208].mxu0 }
 0x62b   : > { %v9035_v23 = vadd.f32 %v8987_v27, %v8869_v55  ;;  %v8989_v60 = vpop.f32.mrb[209].mxu0 }
 0x62c   : > { %v9036_v59 = vadd.f32 %v8989_v60, %v8870_v40  ;;  %v8991_v26 = vpop.f32.mrb[210].mxu0 }
 0x62d   : > { %v8992_v24 = vpop.f32.mrb[211].mxu0 }
 0x62e   : > { %v9028_v50 = vpop.f32.mrb[208].mxu1 }
 0x62f   : > { %v9037_v8 = vadd.f32 %v9028_v50, %v8871_v48  ;;  %v9030_v16 = vpop.f32.mrb[209].mxu1 }
 0x630   : > { %v9038_v5 = vadd.f32 %v9030_v16, %v8872_v58  ;;  %v9032_v3 = vpop.f32.mrb[210].mxu1 }
 0x631   : > { %v9033_v63 = vpop.f32.mrb[211].mxu1 }
 0x63a   : > { %v9153_v42 = vpop.f32.mrb[212].mxu0 }
 0x63b   : > { %v9201_v43 = vadd.f32 %v9153_v42, %v9035_v23  ;;  %v9155_v19 = vpop.f32.mrb[213].mxu0 }
 0x63c   : > { %v9202_v62 = vadd.f32 %v9155_v19, %v9036_v59  ;;  %v9157_v34 = vpop.f32.mrb[214].mxu0 }
 0x63d   : > { %v9211_v4 = vadd.f32 %v9209_v44, %v9201_v43  ;;  %v9158_v7 = vpop.f32.mrb[215].mxu0 }
 0x63e   : > { %v9212_v45 = vadd.f32 %v9209_v44, %v9202_v62  ;;  %v9194_v9 = vpop.f32.mrb[212].mxu1 }
 0x63f   : > { %v9215_v61 = vmax.f32 %v9211_v4, 0.0  ;;  %v9203_v0 = vadd.f32 %v9194_v9, %v9037_v8  ;;  %v9196_v20 = vpop.f32.mrb[213].mxu1 }
 0x640   : > { %v9216_v32 = vmax.f32 %v9212_v45, 0.0  ;;  %v9204_v31 = vadd.f32 %v9196_v20, %v9038_v5  ;;  %v9198_v6 = vpop.f32.mrb[214].mxu1 }
 0x641   : > { %v9213_v17 = vadd.f32 %v9209_v44, %v9203_v0  ;;  %v9199_v1 = vpop.f32.mrb[215].mxu1 }
 0x642   : > { %v9223_v21 = vcombine.low %v9215_v61, %v9216_v32  ;;  %v9214_v35 = vadd.f32 %v9209_v44, %v9204_v31 }
 0x643   : > { %v9217_v37 = vmax.f32 %v9213_v17, 0.0 }
 0x644   : > { %9227 = vst [vmem:[%s251_s13] sm:$0xff] %v9223_v21  ;;  %v9218_v39 = vmax.f32 %v9214_v35, 0.0 }
 0x646   : > { %v9224_v33 = vcombine.low %v9217_v37, %v9218_v39 }
 0x648   : > { %9228 = vst [vmem:[%s251_s13 + $0x8] sm:$0xff] %v9224_v33 }
 0x649 PF: > { %s16_s21 = sadd.s32 1, %s9660_s21  }
 0x64a   : > { %p13_p4 = scmp.ge.s32.totalorder %s16_s21, 4  }
 0x64c   :  { %15 = sbr.rel (!%p13_p4) target bundleno = 1 (0x1), region = 151 }

</bundles_post_ra>
